<compile_context>
chip_gen: v6e
topology: v6e:2x2x1
jax: 0.10.0
libtpu: 0.0.40
codegen_flags: <defaults>
</compile_context>

<pallas_src>
import functools
import math

import jax
import jax.numpy as jnp
from jax.experimental import pallas as pl
from jax.experimental.pallas import tpu as pltpu

LN_EPS = 1e-5  # torch.nn.LayerNorm default


def _layer_norm(v, gamma, beta):
    mu = jnp.mean(v, axis=-1, keepdims=True)
    d = v - mu
    var = jnp.mean(d * d, axis=-1, keepdims=True)
    return d * jax.lax.rsqrt(var + LN_EPS) * gamma + beta


# -----------------------------------------------------------------------------
# Kernel: one encoder layer  x -> x + att(x) -> (.) + ff(.)
# -----------------------------------------------------------------------------
def encoder_layer_kernel(x_ref, *refs, n_heads, d_head, add_pos,
                         compute_dtype, head_split):
    if add_pos:
        pos_ref = refs[0]
        refs = refs[1:]
    (ln1g_ref, ln1b_ref, wqkv_ref, bqkv_ref, wo_ref, bo_ref,
     ln2g_ref, ln2b_ref, w1_ref, b1_ref, w2_ref, b2_ref, o_ref) = refs

    b_tile, T, D = x_ref.shape
    hdim = n_heads * d_head
    n_chunks = w1_ref.shape[0]
    M = b_tile * T
    cd = compute_dtype

    x = x_ref[...].astype(jnp.float32)              # (b_tile, T, D)
    if add_pos:
        x = x + pos_ref[...]                        # fused positional add
    x2 = x.reshape(M, D)                            # fill the MXU M dimension

    # ---- SelfAttention (pre-LN) ----
    xn = _layer_norm(x2, ln1g_ref[...], ln1b_ref[...]).astype(cd)
    # fused QKV projection; 1/sqrt(d_head) already folded into wq/bq
    qkv = jnp.dot(xn, wqkv_ref[...],
                  preferred_element_type=jnp.float32) + bqkv_ref[...]
    q = qkv[:, :hdim].astype(cd)
    k = qkv[:, hdim:2 * hdim].astype(cd)
    v = qkv[:, 2 * hdim:].astype(cd)

    if head_split == "reshape":
        def to_heads(a):            # (T, hdim) -> (H, T, Dh)
            return jnp.transpose(a.reshape(T, n_heads, d_head), (1, 0, 2))

        def from_heads(c):          # (H, T, Dh) -> (T, hdim)
            return jnp.transpose(c, (1, 0, 2)).reshape(T, hdim)
    else:                            # fallback: previously validated lowering
        def to_heads(a):
            return jnp.stack(
                [a[:, h * d_head:(h + 1) * d_head] for h in range(n_heads)], 0)

        def from_heads(c):
            return jnp.concatenate([c[h] for h in range(n_heads)], axis=-1)

    ctx_rows = []
    for b in range(b_tile):          # attention stays within a batch element
        sl = slice(b * T, (b + 1) * T)
        q3, k3, v3 = to_heads(q[sl]), to_heads(k[sl]), to_heads(v[sl])
        s = jnp.einsum('htd,hsd->hts', q3, k3,
                       preferred_element_type=jnp.float32)     # (H, T, T) f32
        m = jnp.max(s, axis=-1, keepdims=True)
        e = jnp.exp(s - m)
        p = e * pl.reciprocal(jnp.sum(e, axis=-1, keepdims=True), approx=True)
        # dropout(p) is identity in eval mode
        ctx = jnp.einsum('hts,hsd->htd', p.astype(cd), v3,
                         preferred_element_type=jnp.float32)   # (H, T, Dh)
        ctx_rows.append(from_heads(ctx.astype(cd)))
    heads = ctx_rows[0] if b_tile == 1 else jnp.concatenate(ctx_rows, axis=0)

    attn = jnp.dot(heads, wo_ref[...],
                   preferred_element_type=jnp.float32) + bo_ref[...]
    x1 = x2 + attn                                             # residual (f32)

    # ---- FeedForward (pre-LN); hidden dim processed in resident chunks ----
    xn2 = _layer_norm(x1, ln2g_ref[...], ln2b_ref[...]).astype(cd)
    if n_chunks == 1:
        hid = jnp.maximum(
            jnp.dot(xn2, w1_ref[0], preferred_element_type=jnp.float32)
            + b1_ref[0], 0.0)                                  # ReLU; dropout id
        ffo = jnp.dot(hid.astype(cd), w2_ref[0],
                      preferred_element_type=jnp.float32)
    else:
        def chunk_body(c, acc):      # dynamic leading-dim indexing only (cheap)
            hid = jnp.maximum(
                jnp.dot(xn2, w1_ref[c], preferred_element_type=jnp.float32)
                + b1_ref[c], 0.0)
            return acc + jnp.dot(hid.astype(cd), w2_ref[c],
                                 preferred_element_type=jnp.float32)
        ffo = jax.lax.fori_loop(0, n_chunks, chunk_body,
                                jnp.zeros((M, D), jnp.float32))
    ffo = ffo + b2_ref[...]

    o_ref[...] = (x1 + ffo).reshape(b_tile, T, D).astype(o_ref.dtype)


# -----------------------------------------------------------------------------
# Host-side helpers
# -----------------------------------------------------------------------------
def _pick_ff_chunk(d_ff):
    if d_ff <= 1024:
        return d_ff
    for c in (1024, 512, 256, 128):
        if d_ff % c == 0:
            return c
    # TODO(synk): ragged tail chunk for d_ff not divisible by 128
    return d_ff


def _pick_b_tile(B, T):
    # Fill the MXU M dimension (target ~256 rows per program) with whole batch
    # elements, without exceeding it so blocks stay VMEM/pipeline friendly.
    target = 256
    best = 1
    for c in range(1, B + 1):
        if B % c == 0 and c * T <= max(target, T):
            best = c
    return best


def _vmem_limit_bytes():
    cap = 128 * 1024 * 1024
    try:
        cap = int(pltpu.get_tpu_info().vmem_capacity_bytes)
    except Exception:
        pass
    return max(32 * 1024 * 1024, int(cap * 0.85))


def _cost_estimate(B, T, D, hdim, n_heads, d_ff, param_bytes):
    try:
        flops = (2 * B * T * D * 3 * hdim       # fused QKV projection
                 + 4 * B * T * T * hdim         # scores + context
                 + 2 * B * T * hdim * D         # output projection
                 + 4 * B * T * D * d_ff)        # FFN
        return pl.CostEstimate(
            flops=int(flops),
            transcendentals=int(B * n_heads * T * T),
            bytes_accessed=int(2 * B * T * D * 4 + param_bytes))
    except Exception:
        return None


def _encoder_layer_call(x, lp, pos, *, n_heads, d_head, b_tile, compute_dtype,
                        head_split, single_buffer):
    B, T, D = x.shape
    nb = B // b_tile
    add_pos = pos is not None
    hdim = n_heads * d_head
    n_chunks, _, ff_chunk = lp["w1c"].shape
    d_ff = n_chunks * ff_chunk

    kernel = functools.partial(
        encoder_layer_kernel, n_heads=n_heads, d_head=d_head, add_pos=add_pos,
        compute_dtype=compute_dtype, head_split=head_split)

    def const_spec(a):
        nd = a.ndim
        idx = lambda g, nd=nd: (0,) * nd
        if single_buffer:
            # grid-invariant: never refetched, one VMEM buffer is enough
            return pl.BlockSpec(a.shape, idx, pipeline_mode=pl.Buffered(1))
        return pl.BlockSpec(a.shape, idx)

    params = [lp["ln1_g"], lp["ln1_b"], lp["wqkv"], lp["bqkv"], lp["wo"],
              lp["bo"], lp["ln2_g"], lp["ln2_b"], lp["w1c"], lp["b1c"],
              lp["w2c"], lp["b2"]]

    inputs = [x]
    in_specs = [pl.BlockSpec((b_tile, T, D), lambda g: (g, 0, 0))]
    if add_pos:
        inputs.append(pos)
        in_specs.append(const_spec(pos))
    inputs.extend(params)
    in_specs.extend(const_spec(a) for a in params)

    param_bytes = sum(int(a.size) * jnp.dtype(a.dtype).itemsize
                      for a in params + ([pos] if add_pos else []))

    return pl.pallas_call(
        kernel,
        out_shape=jax.ShapeDtypeStruct((B, T, D), x.dtype),
        grid_spec=pltpu.PrefetchScalarGridSpec(
            num_scalar_prefetch=0,
            grid=(nb,),
            in_specs=in_specs,
            out_specs=pl.BlockSpec((b_tile, T, D), lambda g: (g, 0, 0)),
        ),
        compiler_params=pltpu.CompilerParams(
            dimension_semantics=("parallel",),
            vmem_limit_bytes=_vmem_limit_bytes(),
        ),
        cost_estimate=_cost_estimate(B, T, D, hdim, n_heads, d_ff, param_bytes),
    )(*inputs)


# Preferred config first; safer fallbacks if Mosaic rejects a lowering.
_LAYER_CONFIGS = (
    dict(head_split="reshape", single_buffer=True),
    dict(head_split="reshape", single_buffer=False),
    dict(head_split="stack", single_buffer=True),
    dict(head_split="stack", single_buffer=False),
)
_layer_cfg_idx = [0]


def encoder_layer(x, lp, *, n_heads, d_head, pos=None, b_tile=None,
                  compute_dtype=jnp.bfloat16):
    if b_tile is None:
        b_tile = _pick_b_tile(x.shape[0], x.shape[1])
    err = None
    for i in range(_layer_cfg_idx[0], len(_LAYER_CONFIGS)):
        cfg = _LAYER_CONFIGS[i]
        try:
            out = _encoder_layer_call(
                x, lp, pos, n_heads=n_heads, d_head=d_head, b_tile=b_tile,
                compute_dtype=compute_dtype, **cfg)
            _layer_cfg_idx[0] = i        # remember the working config
            return out
        except Exception as e:           # lowering rejected -> try safer config
            err = e
    raise err


# -----------------------------------------------------------------------------
# Parameter preparation / forward / reference
# -----------------------------------------------------------------------------
def prepare_params(raw, *, compute_dtype=jnp.bfloat16):
    """Pre-pack parameters into kernel-friendly layouts (done once)."""
    n_heads, d_head = raw["n_heads"], raw["d_head"]
    inv_scale = 1.0 / math.sqrt(float(d_head))
    prep = {"n_heads": n_heads, "d_head": d_head, "pos": raw["pos"]}
    layers = []
    for p in raw["layers"]:
        D, d_ff = p["w1"].shape
        ffc = _pick_ff_chunk(d_ff)
        nck = d_ff // ffc
        layers.append(dict(
            ln1_g=p["ln1_g"], ln1_b=p["ln1_b"],
            # fused QKV weight; 1/sqrt(d_head) folded into the Q block
            wqkv=jnp.concatenate(
                [p["wq"] * inv_scale, p["wk"], p["wv"]], axis=1
            ).astype(compute_dtype),
            bqkv=jnp.concatenate(
                [p["bq"] * inv_scale, p["bk"], p["bv"]], axis=1
            ).astype(jnp.float32),
            wo=p["wo"].astype(compute_dtype), bo=p["bo"],
            ln2_g=p["ln2_g"], ln2_b=p["ln2_b"],
            # FFN weights pre-chunked along d_ff (leading-dim indexed in-kernel)
            w1c=p["w1"].reshape(D, nck, ffc).transpose(1, 0, 2)
                       .astype(compute_dtype),
            b1c=p["b1"].reshape(nck, 1, ffc),
            w2c=p["w2"].reshape(nck, ffc, D).astype(compute_dtype),
            b2=p["b2"],
        ))
    prep["layers"] = layers
    return prep


def encoder_forward(x, prep, *, compute_dtype=jnp.bfloat16):
    """x: (B, T, D) float32.  prep: output of prepare_params."""
    B, T, D = x.shape
    pos = prep["pos"][:, :T, :]
    for li, lp in enumerate(prep["layers"]):
        x = encoder_layer(
            x, lp, n_heads=prep["n_heads"], d_head=prep["d_head"],
            pos=pos if li == 0 else None,        # pos add fused into layer 0
            compute_dtype=compute_dtype)
    return x


def encoder_reference(x, raw):
    """Pure-JAX f32 reference matching the PyTorch module (eval mode)."""
    H, Dh = raw["n_heads"], raw["d_head"]
    scale = math.sqrt(float(Dh))
    B, T, D = x.shape
    x = x + raw["pos"][:, :T, :]
    for p in raw["layers"]:
        xn = _layer_norm(x, p["ln1_g"], p["ln1_b"])
        q = (xn @ p["wq"] + p["bq"]).reshape(B, T, H, Dh)
        k = (xn @ p["wk"] + p["bk"]).reshape(B, T, H, Dh)
        v = (xn @ p["wv"] + p["bv"]).reshape(B, T, H, Dh)
        s = jnp.einsum("bihd,bjhd->bhij", q, k) / scale
        a = jax.nn.softmax(s, axis=-1)
        o = jnp.einsum("bhij,bjhd->bihd", a, v).reshape(B, T, H * Dh)
        x = x + (o @ p["wo"] + p["bo"])
        xn2 = _layer_norm(x, p["ln2_g"], p["ln2_b"])
        h = jax.nn.relu(xn2 @ p["w1"] + p["b1"])
        x = x + (h @ p["w2"] + p["b2"])
    return x


def init_params(key, *, nb_layers, seq_len, d_model, n_heads, d_head, d_ff):
    hdim = n_heads * d_head
    keys = jax.random.split(key, 1 + nb_layers)
    params = {
        "n_heads": n_heads,
        "d_head": d_head,
        "pos": jax.random.normal(keys[0], (1, seq_len, d_model), jnp.float32),
        "layers": [],
    }
    for li in range(nb_layers):
        ks = jax.random.split(keys[1 + li], 8)
        scale = 0.02
        layer = {
            "ln1_g": jnp.ones((1, d_model), jnp.float32),
            "ln1_b": jnp.zeros((1, d_model), jnp.float32),
            "ln2_g": jnp.ones((1, d_model), jnp.float32),
            "ln2_b": jnp.zeros((1, d_model), jnp.float32),
            # Linear weights pre-transposed: (in, out) so kernels do x @ W
            "wq": scale * jax.random.normal(ks[0], (d_model, hdim), jnp.float32),
            "bq": scale * jax.random.normal(ks[1], (1, hdim), jnp.float32),
            "wk": scale * jax.random.normal(ks[2], (d_model, hdim), jnp.float32),
            "bk": jnp.zeros((1, hdim), jnp.float32),
            "wv": scale * jax.random.normal(ks[3], (d_model, hdim), jnp.float32),
            "bv": jnp.zeros((1, hdim), jnp.float32),
            "wo": scale * jax.random.normal(ks[4], (hdim, d_model), jnp.float32),
            "bo": jnp.zeros((1, d_model), jnp.float32),
            "w1": scale * jax.random.normal(ks[5], (d_model, d_ff), jnp.float32),
            "b1": scale * jax.random.normal(ks[6], (1, d_ff), jnp.float32),
            "w2": scale * jax.random.normal(ks[7], (d_ff, d_model), jnp.float32),
            "b2": jnp.zeros((1, d_model), jnp.float32),
        }
        params["layers"].append(layer)
    return params


if __name__ == "__main__":
    # Small shapes consistent with the module; d_model chosen lane-dense (128).
    B, T, D = 2, 16, 128
    N_HEADS, D_HEAD, D_FF = 4, 32, 256
    NB_LAYERS = 2

    key = jax.random.PRNGKey(0)
    k_param, k_x = jax.random.split(key)

    raw = init_params(k_param, nb_layers=NB_LAYERS, seq_len=T, d_model=D,
                      n_heads=N_HEADS, d_head=D_HEAD, d_ff=D_FF)
    prep = prepare_params(raw)
    x = jax.random.normal(k_x, (B, T, D), jnp.float32)

    out = jax.block_until_ready(encoder_forward(x, prep))
    assert out.shape == (B, T, D), out.shape
    assert bool(jnp.all(jnp.isfinite(out))), "non-finite output"

    # Tolerance-based check vs. an f32 reference (kernel uses bf16 MXU operands
    # with f32 accumulation and an approx reciprocal in the softmax).
    ref = encoder_reference(x, raw)
    max_err = float(jnp.max(jnp.abs(out - ref)))
    assert max_err < 5e-2, f"max abs err vs reference: {max_err}"
    print("KERNEL_OK")
</pallas_src>

<mosaic_0001>
module attributes {stable_mosaic.version = 11 : i64} {
  func.func @encoder_layer_kernel(%arg0: i32, %arg1: memref<2x16x128xf32, #tpu.memory_space<vmem>>, %arg2: memref<1x16x128xf32, #tpu.memory_space<vmem>>, %arg3: memref<1x128xf32, #tpu.memory_space<vmem>>, %arg4: memref<1x128xf32, #tpu.memory_space<vmem>>, %arg5: memref<128x384xbf16, #tpu.memory_space<vmem>>, %arg6: memref<1x384xf32, #tpu.memory_space<vmem>>, %arg7: memref<128x128xbf16, #tpu.memory_space<vmem>>, %arg8: memref<1x128xf32, #tpu.memory_space<vmem>>, %arg9: memref<1x128xf32, #tpu.memory_space<vmem>>, %arg10: memref<1x128xf32, #tpu.memory_space<vmem>>, %arg11: memref<1x128x256xbf16, #tpu.memory_space<vmem>>, %arg12: memref<1x1x256xf32, #tpu.memory_space<vmem>>, %arg13: memref<1x256x128xbf16, #tpu.memory_space<vmem>>, %arg14: memref<1x128xf32, #tpu.memory_space<vmem>>, %arg15: memref<2x16x128xf32, #tpu.memory_space<vmem>>) attributes {dimension_semantics = [#tpu.dimension_semantics<parallel>], iteration_bounds = array<i64: 1>, scalar_prefetch = 0 : i64, scratch_operands = 0 : i64, tpu.core_type = #tpu.core_type<tc>, window_params = [{transform_indices = @transform_0, window_bounds = array<i64: 2, 16, 128>}, {pipeline_mode = #tpu.pipeline_mode<synchronous>, transform_indices = @transform_1, window_bounds = array<i64: 1, 16, 128>}, {pipeline_mode = #tpu.pipeline_mode<synchronous>, transform_indices = @transform_2, window_bounds = array<i64: 1, 128>}, {pipeline_mode = #tpu.pipeline_mode<synchronous>, transform_indices = @transform_3, window_bounds = array<i64: 1, 128>}, {pipeline_mode = #tpu.pipeline_mode<synchronous>, transform_indices = @transform_4, window_bounds = array<i64: 128, 384>}, {pipeline_mode = #tpu.pipeline_mode<synchronous>, transform_indices = @transform_5, window_bounds = array<i64: 1, 384>}, {pipeline_mode = #tpu.pipeline_mode<synchronous>, transform_indices = @transform_6, window_bounds = array<i64: 128, 128>}, {pipeline_mode = #tpu.pipeline_mode<synchronous>, transform_indices = @transform_7, window_bounds = array<i64: 1, 128>}, {pipeline_mode = #tpu.pipeline_mode<synchronous>, transform_indices = @transform_8, window_bounds = array<i64: 1, 128>}, {pipeline_mode = #tpu.pipeline_mode<synchronous>, transform_indices = @transform_9, window_bounds = array<i64: 1, 128>}, {pipeline_mode = #tpu.pipeline_mode<synchronous>, transform_indices = @transform_10, window_bounds = array<i64: 1, 128, 256>}, {pipeline_mode = #tpu.pipeline_mode<synchronous>, transform_indices = @transform_11, window_bounds = array<i64: 1, 1, 256>}, {pipeline_mode = #tpu.pipeline_mode<synchronous>, transform_indices = @transform_12, window_bounds = array<i64: 1, 256, 128>}, {pipeline_mode = #tpu.pipeline_mode<synchronous>, transform_indices = @transform_13, window_bounds = array<i64: 1, 128>}, {transform_indices = @transform_14, window_bounds = array<i64: 2, 16, 128>}]} {
    %c0 = arith.constant 0 : index
    %c0_0 = arith.constant 0 : index
    %c0_1 = arith.constant 0 : index
    %0 = vector.load %arg1[%c0, %c0_0, %c0_1] : memref<2x16x128xf32, #tpu.memory_space<vmem>>, vector<2x16x128xf32>
    %c0_2 = arith.constant 0 : index
    %c0_3 = arith.constant 0 : index
    %c0_4 = arith.constant 0 : index
    %1 = vector.load %arg2[%c0_2, %c0_3, %c0_4] : memref<1x16x128xf32, #tpu.memory_space<vmem>>, vector<1x16x128xf32>
    %2 = vector.broadcast %1 : vector<1x16x128xf32> to vector<2x16x128xf32>
    %3 = arith.addf %0, %2 : vector<2x16x128xf32>
    %4 = vector.shape_cast %3 : vector<2x16x128xf32> to vector<32x128xf32>
    %c0_5 = arith.constant 0 : index
    %c0_6 = arith.constant 0 : index
    %5 = vector.load %arg3[%c0_5, %c0_6] : memref<1x128xf32, #tpu.memory_space<vmem>>, vector<1x128xf32>
    %c0_7 = arith.constant 0 : index
    %c0_8 = arith.constant 0 : index
    %6 = vector.load %arg4[%c0_7, %c0_8] : memref<1x128xf32, #tpu.memory_space<vmem>>, vector<1x128xf32>
    %cst = arith.constant dense<0.000000e+00> : vector<32xf32>
    %7 = vector.multi_reduction <add>, %4, %cst [1] : vector<32x128xf32> to vector<32xf32>
    %8 = vector.shape_cast %7 : vector<32xf32> to vector<32x1xf32>
    %cst_9 = arith.constant 1.280000e+02 : f32
    %9 = vector.broadcast %cst_9 : f32 to vector<32x1xf32>
    %10 = arith.divf %8, %9 : vector<32x1xf32>
    %11 = vector.broadcast %10 : vector<32x1xf32> to vector<32x128xf32>
    %12 = arith.subf %4, %11 : vector<32x128xf32>
    %13 = arith.mulf %12, %12 : vector<32x128xf32>
    %cst_10 = arith.constant dense<0.000000e+00> : vector<32xf32>
    %14 = vector.multi_reduction <add>, %13, %cst_10 [1] : vector<32x128xf32> to vector<32xf32>
    %15 = vector.shape_cast %14 : vector<32xf32> to vector<32x1xf32>
    %cst_11 = arith.constant 1.280000e+02 : f32
    %16 = vector.broadcast %cst_11 : f32 to vector<32x1xf32>
    %17 = arith.divf %15, %16 : vector<32x1xf32>
    %cst_12 = arith.constant 9.99999974E-6 : f32
    %18 = vector.broadcast %cst_12 : f32 to vector<32x1xf32>
    %19 = arith.addf %17, %18 : vector<32x1xf32>
    %20 = math.rsqrt %19 : vector<32x1xf32>
    %21 = vector.broadcast %20 : vector<32x1xf32> to vector<32x128xf32>
    %22 = arith.mulf %12, %21 : vector<32x128xf32>
    %23 = vector.broadcast %5 : vector<1x128xf32> to vector<32x128xf32>
    %24 = arith.mulf %22, %23 : vector<32x128xf32>
    %25 = vector.broadcast %6 : vector<1x128xf32> to vector<32x128xf32>
    %26 = arith.addf %24, %25 : vector<32x128xf32>
    %27 = arith.truncf %26 : vector<32x128xf32> to vector<32x128xbf16>
    %c0_13 = arith.constant 0 : index
    %c0_14 = arith.constant 0 : index
    %28 = vector.load %arg5[%c0_13, %c0_14] : memref<128x384xbf16, #tpu.memory_space<vmem>>, vector<128x384xbf16>
    %cst_15 = arith.constant dense<0.000000e+00> : vector<32x384xf32>
    %29 = tpu.matmul %27, %28, %cst_15 {dimension_numbers = #tpu.dot_dimension_numbers<[1], [0], [0], [1], [0, 0, 1, 1], [], []>} : vector<32x128xbf16>, vector<128x384xbf16>, vector<32x384xf32> -> vector<32x384xf32>
    %c0_16 = arith.constant 0 : index
    %c0_17 = arith.constant 0 : index
    %30 = vector.load %arg6[%c0_16, %c0_17] : memref<1x384xf32, #tpu.memory_space<vmem>>, vector<1x384xf32>
    %31 = vector.broadcast %30 : vector<1x384xf32> to vector<32x384xf32>
    %32 = arith.addf %29, %31 : vector<32x384xf32>
    %33 = vector.extract_strided_slice %32 {offsets = [0, 0], sizes = [32, 128], strides = [1, 1]} : vector<32x384xf32> to vector<32x128xf32>
    %34 = arith.truncf %33 : vector<32x128xf32> to vector<32x128xbf16>
    %35 = vector.extract_strided_slice %32 {offsets = [0, 128], sizes = [32, 128], strides = [1, 1]} : vector<32x384xf32> to vector<32x128xf32>
    %36 = arith.truncf %35 : vector<32x128xf32> to vector<32x128xbf16>
    %37 = vector.extract_strided_slice %32 {offsets = [0, 256], sizes = [32, 128], strides = [1, 1]} : vector<32x384xf32> to vector<32x128xf32>
    %38 = arith.truncf %37 : vector<32x128xf32> to vector<32x128xbf16>
    %39 = vector.extract_strided_slice %34 {offsets = [0, 0], sizes = [16, 128], strides = [1, 1]} : vector<32x128xbf16> to vector<16x128xbf16>
    %40 = vector.shape_cast %39 : vector<16x128xbf16> to vector<16x4x32xbf16>
    %41 = tpu.transpose %40, [1, 0, 2] : vector<16x4x32xbf16> -> vector<4x16x32xbf16>
    %42 = vector.extract_strided_slice %36 {offsets = [0, 0], sizes = [16, 128], strides = [1, 1]} : vector<32x128xbf16> to vector<16x128xbf16>
    %43 = vector.shape_cast %42 : vector<16x128xbf16> to vector<16x4x32xbf16>
    %44 = tpu.transpose %43, [1, 0, 2] : vector<16x4x32xbf16> -> vector<4x16x32xbf16>
    %45 = vector.extract_strided_slice %38 {offsets = [0, 0], sizes = [16, 128], strides = [1, 1]} : vector<32x128xbf16> to vector<16x128xbf16>
    %46 = vector.shape_cast %45 : vector<16x128xbf16> to vector<16x4x32xbf16>
    %47 = tpu.transpose %46, [1, 0, 2] : vector<16x4x32xbf16> -> vector<4x16x32xbf16>
    "tpu.trace_start"() <{level = 10 : i32, message = "htd,hsd->hts"}> : () -> ()
    %cst_18 = arith.constant dense<0.000000e+00> : vector<4x16x16xf32>
    %48 = tpu.matmul %41, %44, %cst_18 {dimension_numbers = #tpu.dot_dimension_numbers<[2], [2], [1], [1], [0, 0, 0, 1, 1, 1], [0], [0]>} : vector<4x16x32xbf16>, vector<4x16x32xbf16>, vector<4x16x16xf32> -> vector<4x16x16xf32>
    "tpu.trace_stop"() : () -> ()
    %cst_19 = arith.constant dense<0xFF800000> : vector<4x16xf32>
    %49 = vector.multi_reduction <maximumf>, %48, %cst_19 [2] : vector<4x16x16xf32> to vector<4x16xf32>
    %50 = vector.shape_cast %49 : vector<4x16xf32> to vector<4x16x1xf32>
    %51 = vector.broadcast %50 : vector<4x16x1xf32> to vector<4x16x16xf32>
    %52 = arith.subf %48, %51 : vector<4x16x16xf32>
    %53 = math.exp %52 : vector<4x16x16xf32>
    %cst_20 = arith.constant dense<0.000000e+00> : vector<4x16xf32>
    %54 = vector.multi_reduction <add>, %53, %cst_20 [2] : vector<4x16x16xf32> to vector<4x16xf32>
    %55 = vector.shape_cast %54 : vector<4x16xf32> to vector<4x16x1xf32>
    %56 = tpu.reciprocal %55 {approx = true} : vector<4x16x1xf32> -> vector<4x16x1xf32>
    %57 = vector.broadcast %56 : vector<4x16x1xf32> to vector<4x16x16xf32>
    %58 = arith.mulf %53, %57 : vector<4x16x16xf32>
    %59 = arith.truncf %58 : vector<4x16x16xf32> to vector<4x16x16xbf16>
    "tpu.trace_start"() <{level = 10 : i32, message = "hts,hsd->htd"}> : () -> ()
    %cst_21 = arith.constant dense<0.000000e+00> : vector<4x16x32xf32>
    %60 = tpu.matmul %59, %47, %cst_21 {dimension_numbers = #tpu.dot_dimension_numbers<[2], [1], [1], [2], [0, 0, 0, 1, 1, 2], [0], [0]>} : vector<4x16x16xbf16>, vector<4x16x32xbf16>, vector<4x16x32xf32> -> vector<4x16x32xf32>
    "tpu.trace_stop"() : () -> ()
    %61 = arith.truncf %60 : vector<4x16x32xf32> to vector<4x16x32xbf16>
    %62 = tpu.transpose %61, [1, 0, 2] : vector<4x16x32xbf16> -> vector<16x4x32xbf16>
    %63 = vector.shape_cast %62 : vector<16x4x32xbf16> to vector<16x128xbf16>
    %64 = vector.extract_strided_slice %34 {offsets = [16, 0], sizes = [16, 128], strides = [1, 1]} : vector<32x128xbf16> to vector<16x128xbf16>
    %65 = vector.shape_cast %64 : vector<16x128xbf16> to vector<16x4x32xbf16>
    %66 = tpu.transpose %65, [1, 0, 2] : vector<16x4x32xbf16> -> vector<4x16x32xbf16>
    %67 = vector.extract_strided_slice %36 {offsets = [16, 0], sizes = [16, 128], strides = [1, 1]} : vector<32x128xbf16> to vector<16x128xbf16>
    %68 = vector.shape_cast %67 : vector<16x128xbf16> to vector<16x4x32xbf16>
    %69 = tpu.transpose %68, [1, 0, 2] : vector<16x4x32xbf16> -> vector<4x16x32xbf16>
    %70 = vector.extract_strided_slice %38 {offsets = [16, 0], sizes = [16, 128], strides = [1, 1]} : vector<32x128xbf16> to vector<16x128xbf16>
    %71 = vector.shape_cast %70 : vector<16x128xbf16> to vector<16x4x32xbf16>
    %72 = tpu.transpose %71, [1, 0, 2] : vector<16x4x32xbf16> -> vector<4x16x32xbf16>
    "tpu.trace_start"() <{level = 10 : i32, message = "htd,hsd->hts"}> : () -> ()
    %cst_22 = arith.constant dense<0.000000e+00> : vector<4x16x16xf32>
    %73 = tpu.matmul %66, %69, %cst_22 {dimension_numbers = #tpu.dot_dimension_numbers<[2], [2], [1], [1], [0, 0, 0, 1, 1, 1], [0], [0]>} : vector<4x16x32xbf16>, vector<4x16x32xbf16>, vector<4x16x16xf32> -> vector<4x16x16xf32>
    "tpu.trace_stop"() : () -> ()
    %cst_23 = arith.constant dense<0xFF800000> : vector<4x16xf32>
    %74 = vector.multi_reduction <maximumf>, %73, %cst_23 [2] : vector<4x16x16xf32> to vector<4x16xf32>
    %75 = vector.shape_cast %74 : vector<4x16xf32> to vector<4x16x1xf32>
    %76 = vector.broadcast %75 : vector<4x16x1xf32> to vector<4x16x16xf32>
    %77 = arith.subf %73, %76 : vector<4x16x16xf32>
    %78 = math.exp %77 : vector<4x16x16xf32>
    %cst_24 = arith.constant dense<0.000000e+00> : vector<4x16xf32>
    %79 = vector.multi_reduction <add>, %78, %cst_24 [2] : vector<4x16x16xf32> to vector<4x16xf32>
    %80 = vector.shape_cast %79 : vector<4x16xf32> to vector<4x16x1xf32>
    %81 = tpu.reciprocal %80 {approx = true} : vector<4x16x1xf32> -> vector<4x16x1xf32>
    %82 = vector.broadcast %81 : vector<4x16x1xf32> to vector<4x16x16xf32>
    %83 = arith.mulf %78, %82 : vector<4x16x16xf32>
    %84 = arith.truncf %83 : vector<4x16x16xf32> to vector<4x16x16xbf16>
    "tpu.trace_start"() <{level = 10 : i32, message = "hts,hsd->htd"}> : () -> ()
    %cst_25 = arith.constant dense<0.000000e+00> : vector<4x16x32xf32>
    %85 = tpu.matmul %84, %72, %cst_25 {dimension_numbers = #tpu.dot_dimension_numbers<[2], [1], [1], [2], [0, 0, 0, 1, 1, 2], [0], [0]>} : vector<4x16x16xbf16>, vector<4x16x32xbf16>, vector<4x16x32xf32> -> vector<4x16x32xf32>
    "tpu.trace_stop"() : () -> ()
    %86 = arith.truncf %85 : vector<4x16x32xf32> to vector<4x16x32xbf16>
    %87 = tpu.transpose %86, [1, 0, 2] : vector<4x16x32xbf16> -> vector<16x4x32xbf16>
    %88 = vector.shape_cast %87 : vector<16x4x32xbf16> to vector<16x128xbf16>
    %89 = tpu.concatenate %63, %88 in 0 : vector<16x128xbf16>, vector<16x128xbf16> -> vector<32x128xbf16>
    %c0_26 = arith.constant 0 : index
    %c0_27 = arith.constant 0 : index
    %90 = vector.load %arg7[%c0_26, %c0_27] : memref<128x128xbf16, #tpu.memory_space<vmem>>, vector<128x128xbf16>
    %cst_28 = arith.constant dense<0.000000e+00> : vector<32x128xf32>
    %91 = tpu.matmul %89, %90, %cst_28 {dimension_numbers = #tpu.dot_dimension_numbers<[1], [0], [0], [1], [0, 0, 1, 1], [], []>} : vector<32x128xbf16>, vector<128x128xbf16>, vector<32x128xf32> -> vector<32x128xf32>
    %c0_29 = arith.constant 0 : index
    %c0_30 = arith.constant 0 : index
    %92 = vector.load %arg8[%c0_29, %c0_30] : memref<1x128xf32, #tpu.memory_space<vmem>>, vector<1x128xf32>
    %93 = vector.broadcast %92 : vector<1x128xf32> to vector<32x128xf32>
    %94 = arith.addf %91, %93 : vector<32x128xf32>
    %95 = arith.addf %4, %94 : vector<32x128xf32>
    %c0_31 = arith.constant 0 : index
    %c0_32 = arith.constant 0 : index
    %96 = vector.load %arg9[%c0_31, %c0_32] : memref<1x128xf32, #tpu.memory_space<vmem>>, vector<1x128xf32>
    %c0_33 = arith.constant 0 : index
    %c0_34 = arith.constant 0 : index
    %97 = vector.load %arg10[%c0_33, %c0_34] : memref<1x128xf32, #tpu.memory_space<vmem>>, vector<1x128xf32>
    %cst_35 = arith.constant dense<0.000000e+00> : vector<32xf32>
    %98 = vector.multi_reduction <add>, %95, %cst_35 [1] : vector<32x128xf32> to vector<32xf32>
    %99 = vector.shape_cast %98 : vector<32xf32> to vector<32x1xf32>
    %cst_36 = arith.constant 1.280000e+02 : f32
    %100 = vector.broadcast %cst_36 : f32 to vector<32x1xf32>
    %101 = arith.divf %99, %100 : vector<32x1xf32>
    %102 = vector.broadcast %101 : vector<32x1xf32> to vector<32x128xf32>
    %103 = arith.subf %95, %102 : vector<32x128xf32>
    %104 = arith.mulf %103, %103 : vector<32x128xf32>
    %cst_37 = arith.constant dense<0.000000e+00> : vector<32xf32>
    %105 = vector.multi_reduction <add>, %104, %cst_37 [1] : vector<32x128xf32> to vector<32xf32>
    %106 = vector.shape_cast %105 : vector<32xf32> to vector<32x1xf32>
    %cst_38 = arith.constant 1.280000e+02 : f32
    %107 = vector.broadcast %cst_38 : f32 to vector<32x1xf32>
    %108 = arith.divf %106, %107 : vector<32x1xf32>
    %cst_39 = arith.constant 9.99999974E-6 : f32
    %109 = vector.broadcast %cst_39 : f32 to vector<32x1xf32>
    %110 = arith.addf %108, %109 : vector<32x1xf32>
    %111 = math.rsqrt %110 : vector<32x1xf32>
    %112 = vector.broadcast %111 : vector<32x1xf32> to vector<32x128xf32>
    %113 = arith.mulf %103, %112 : vector<32x128xf32>
    %114 = vector.broadcast %96 : vector<1x128xf32> to vector<32x128xf32>
    %115 = arith.mulf %113, %114 : vector<32x128xf32>
    %116 = vector.broadcast %97 : vector<1x128xf32> to vector<32x128xf32>
    %117 = arith.addf %115, %116 : vector<32x128xf32>
    %118 = arith.truncf %117 : vector<32x128xf32> to vector<32x128xbf16>
    %c0_40 = arith.constant 0 : index
    %c0_41 = arith.constant 0 : index
    %c0_42 = arith.constant 0 : index
    %119 = vector.load %arg11[%c0_40, %c0_41, %c0_42] : memref<1x128x256xbf16, #tpu.memory_space<vmem>>, vector<1x128x256xbf16>
    %120 = vector.shape_cast %119 : vector<1x128x256xbf16> to vector<128x256xbf16>
    %cst_43 = arith.constant dense<0.000000e+00> : vector<32x256xf32>
    %121 = tpu.matmul %118, %120, %cst_43 {dimension_numbers = #tpu.dot_dimension_numbers<[1], [0], [0], [1], [0, 0, 1, 1], [], []>} : vector<32x128xbf16>, vector<128x256xbf16>, vector<32x256xf32> -> vector<32x256xf32>
    %c0_44 = arith.constant 0 : index
    %c0_45 = arith.constant 0 : index
    %c0_46 = arith.constant 0 : index
    %122 = vector.load %arg12[%c0_44, %c0_45, %c0_46] : memref<1x1x256xf32, #tpu.memory_space<vmem>>, vector<1x1x256xf32>
    %123 = vector.shape_cast %122 : vector<1x1x256xf32> to vector<1x256xf32>
    %124 = vector.broadcast %123 : vector<1x256xf32> to vector<32x256xf32>
    %125 = arith.addf %121, %124 : vector<32x256xf32>
    %cst_47 = arith.constant 0.000000e+00 : f32
    %126 = vector.broadcast %cst_47 : f32 to vector<32x256xf32>
    %127 = arith.maximumf %125, %126 : vector<32x256xf32>
    %128 = arith.truncf %127 : vector<32x256xf32> to vector<32x256xbf16>
    %c0_48 = arith.constant 0 : index
    %c0_49 = arith.constant 0 : index
    %c0_50 = arith.constant 0 : index
    %129 = vector.load %arg13[%c0_48, %c0_49, %c0_50] : memref<1x256x128xbf16, #tpu.memory_space<vmem>>, vector<1x256x128xbf16>
    %130 = vector.shape_cast %129 : vector<1x256x128xbf16> to vector<256x128xbf16>
    %cst_51 = arith.constant dense<0.000000e+00> : vector<32x128xf32>
    %131 = tpu.matmul %128, %130, %cst_51 {dimension_numbers = #tpu.dot_dimension_numbers<[1], [0], [0], [1], [0, 0, 1, 1], [], []>} : vector<32x256xbf16>, vector<256x128xbf16>, vector<32x128xf32> -> vector<32x128xf32>
    %c0_52 = arith.constant 0 : index
    %c0_53 = arith.constant 0 : index
    %132 = vector.load %arg14[%c0_52, %c0_53] : memref<1x128xf32, #tpu.memory_space<vmem>>, vector<1x128xf32>
    %133 = vector.broadcast %132 : vector<1x128xf32> to vector<32x128xf32>
    %134 = arith.addf %131, %133 : vector<32x128xf32>
    %135 = arith.addf %95, %134 : vector<32x128xf32>
    %136 = vector.shape_cast %135 : vector<32x128xf32> to vector<2x16x128xf32>
    %c0_54 = arith.constant 0 : index
    %c0_55 = arith.constant 0 : index
    %c0_56 = arith.constant 0 : index
    %137 = vector.load %arg15[%c0_54, %c0_55, %c0_56] : memref<2x16x128xf32, #tpu.memory_space<vmem>>, vector<2x16x128xf32>
    tpu.vector_store %arg15[%c0_54, %c0_55, %c0_56], %136 {strides = array<i32>} : memref<2x16x128xf32, #tpu.memory_space<vmem>>, vector<2x16x128xf32>,
    return
  }
  func.func @transform_0(%arg0: i32) -> (i32, i32, i32) {
    %c0_i32 = arith.constant 0 : i32
    %c0_i32_0 = arith.constant 0 : i32
    %c0_i32_1 = arith.constant 0 : i32
    return %arg0, %c0_i32, %c0_i32_0 : i32, i32, i32
  }
  func.func @transform_1(%arg0: i32) -> (i32, i32, i32) {
    %c0_i32 = arith.constant 0 : i32
    %c0_i32_0 = arith.constant 0 : i32
    %c0_i32_1 = arith.constant 0 : i32
    %c0_i32_2 = arith.constant 0 : i32
    return %c0_i32, %c0_i32_0, %c0_i32_1 : i32, i32, i32
  }
  func.func @transform_2(%arg0: i32) -> (i32, i32) {
    %c0_i32 = arith.constant 0 : i32
    %c0_i32_0 = arith.constant 0 : i32
    %c0_i32_1 = arith.constant 0 : i32
    return %c0_i32, %c0_i32_0 : i32, i32
  }
  func.func @transform_3(%arg0: i32) -> (i32, i32) {
    %c0_i32 = arith.constant 0 : i32
    %c0_i32_0 = arith.constant 0 : i32
    %c0_i32_1 = arith.constant 0 : i32
    return %c0_i32, %c0_i32_0 : i32, i32
  }
  func.func @transform_4(%arg0: i32) -> (i32, i32) {
    %c0_i32 = arith.constant 0 : i32
    %c0_i32_0 = arith.constant 0 : i32
    %c0_i32_1 = arith.constant 0 : i32
    return %c0_i32, %c0_i32_0 : i32, i32
  }
  func.func @transform_5(%arg0: i32) -> (i32, i32) {
    %c0_i32 = arith.constant 0 : i32
    %c0_i32_0 = arith.constant 0 : i32
    %c0_i32_1 = arith.constant 0 : i32
    return %c0_i32, %c0_i32_0 : i32, i32
  }
  func.func @transform_6(%arg0: i32) -> (i32, i32) {
    %c0_i32 = arith.constant 0 : i32
    %c0_i32_0 = arith.constant 0 : i32
    %c0_i32_1 = arith.constant 0 : i32
    return %c0_i32, %c0_i32_0 : i32, i32
  }
  func.func @transform_7(%arg0: i32) -> (i32, i32) {
    %c0_i32 = arith.constant 0 : i32
    %c0_i32_0 = arith.constant 0 : i32
    %c0_i32_1 = arith.constant 0 : i32
    return %c0_i32, %c0_i32_0 : i32, i32
  }
  func.func @transform_8(%arg0: i32) -> (i32, i32) {
    %c0_i32 = arith.constant 0 : i32
    %c0_i32_0 = arith.constant 0 : i32
    %c0_i32_1 = arith.constant 0 : i32
    return %c0_i32, %c0_i32_0 : i32, i32
  }
  func.func @transform_9(%arg0: i32) -> (i32, i32) {
    %c0_i32 = arith.constant 0 : i32
    %c0_i32_0 = arith.constant 0 : i32
    %c0_i32_1 = arith.constant 0 : i32
    return %c0_i32, %c0_i32_0 : i32, i32
  }
  func.func @transform_10(%arg0: i32) -> (i32, i32, i32) {
    %c0_i32 = arith.constant 0 : i32
    %c0_i32_0 = arith.constant 0 : i32
    %c0_i32_1 = arith.constant 0 : i32
    %c0_i32_2 = arith.constant 0 : i32
    return %c0_i32, %c0_i32_0, %c0_i32_1 : i32, i32, i32
  }
  func.func @transform_11(%arg0: i32) -> (i32, i32, i32) {
    %c0_i32 = arith.constant 0 : i32
    %c0_i32_0 = arith.constant 0 : i32
    %c0_i32_1 = arith.constant 0 : i32
    %c0_i32_2 = arith.constant 0 : i32
    return %c0_i32, %c0_i32_0, %c0_i32_1 : i32, i32, i32
  }
  func.func @transform_12(%arg0: i32) -> (i32, i32, i32) {
    %c0_i32 = arith.constant 0 : i32
    %c0_i32_0 = arith.constant 0 : i32
    %c0_i32_1 = arith.constant 0 : i32
    %c0_i32_2 = arith.constant 0 : i32
    return %c0_i32, %c0_i32_0, %c0_i32_1 : i32, i32, i32
  }
  func.func @transform_13(%arg0: i32) -> (i32, i32) {
    %c0_i32 = arith.constant 0 : i32
    %c0_i32_0 = arith.constant 0 : i32
    %c0_i32_1 = arith.constant 0 : i32
    return %c0_i32, %c0_i32_0 : i32, i32
  }
  func.func @transform_14(%arg0: i32) -> (i32, i32, i32) {
    %c0_i32 = arith.constant 0 : i32
    %c0_i32_0 = arith.constant 0 : i32
    %c0_i32_1 = arith.constant 0 : i32
    return %arg0, %c0_i32, %c0_i32_0 : i32, i32, i32
  }
}

module attributes {stable_mosaic.version = 11 : i64} {
  func.func @encoder_layer_kernel(%arg0: i32, %arg1: memref<2x16x128xf32, #tpu.memory_space<vmem>>, %arg2: memref<1x16x128xf32, #tpu.memory_space<vmem>>, %arg3: memref<1x128xf32, #tpu.memory_space<vmem>>, %arg4: memref<1x128xf32, #tpu.memory_space<vmem>>, %arg5: memref<128x384xbf16, #tpu.memory_space<vmem>>, %arg6: memref<1x384xf32, #tpu.memory_space<vmem>>, %arg7: memref<128x128xbf16, #tpu.memory_space<vmem>>, %arg8: memref<1x128xf32, #tpu.memory_space<vmem>>, %arg9: memref<1x128xf32, #tpu.memory_space<vmem>>, %arg10: memref<1x128xf32, #tpu.memory_space<vmem>>, %arg11: memref<1x128x256xbf16, #tpu.memory_space<vmem>>, %arg12: memref<1x1x256xf32, #tpu.memory_space<vmem>>, %arg13: memref<1x256x128xbf16, #tpu.memory_space<vmem>>, %arg14: memref<1x128xf32, #tpu.memory_space<vmem>>, %arg15: memref<2x16x128xf32, #tpu.memory_space<vmem>>) attributes {dimension_semantics = [#tpu.dimension_semantics<parallel>], iteration_bounds = array<i64: 1>, scalar_prefetch = 0 : i64, scratch_operands = 0 : i64, tpu.core_type = #tpu.core_type<tc>, window_params = [{transform_indices = @transform_0, window_bounds = array<i64: 2, 16, 128>}, {pipeline_mode = #tpu.pipeline_mode<synchronous>, transform_indices = @transform_1, window_bounds = array<i64: 1, 16, 128>}, {pipeline_mode = #tpu.pipeline_mode<synchronous>, transform_indices = @transform_2, window_bounds = array<i64: 1, 128>}, {pipeline_mode = #tpu.pipeline_mode<synchronous>, transform_indices = @transform_3, window_bounds = array<i64: 1, 128>}, {pipeline_mode = #tpu.pipeline_mode<synchronous>, transform_indices = @transform_4, window_bounds = array<i64: 128, 384>}, {pipeline_mode = #tpu.pipeline_mode<synchronous>, transform_indices = @transform_5, window_bounds = array<i64: 1, 384>}, {pipeline_mode = #tpu.pipeline_mode<synchronous>, transform_indices = @transform_6, window_bounds = array<i64: 128, 128>}, {pipeline_mode = #tpu.pipeline_mode<synchronous>, transform_indices = @transform_7, window_bounds = array<i64: 1, 128>}, {pipeline_mode = #tpu.pipeline_mode<synchronous>, transform_indices = @transform_8, window_bounds = array<i64: 1, 128>}, {pipeline_mode = #tpu.pipeline_mode<synchronous>, transform_indices = @transform_9, window_bounds = array<i64: 1, 128>}, {pipeline_mode = #tpu.pipeline_mode<synchronous>, transform_indices = @transform_10, window_bounds = array<i64: 1, 128, 256>}, {pipeline_mode = #tpu.pipeline_mode<synchronous>, transform_indices = @transform_11, window_bounds = array<i64: 1, 1, 256>}, {pipeline_mode = #tpu.pipeline_mode<synchronous>, transform_indices = @transform_12, window_bounds = array<i64: 1, 256, 128>}, {pipeline_mode = #tpu.pipeline_mode<synchronous>, transform_indices = @transform_13, window_bounds = array<i64: 1, 128>}, {transform_indices = @transform_14, window_bounds = array<i64: 2, 16, 128>}]} {
    %c0 = arith.constant 0 : index
    %c0_0 = arith.constant 0 : index
    %c0_1 = arith.constant 0 : index
    %0 = vector.load %arg1[%c0, %c0_0, %c0_1] : memref<2x16x128xf32, #tpu.memory_space<vmem>>, vector<2x16x128xf32>
    %c0_2 = arith.constant 0 : index
    %c0_3 = arith.constant 0 : index
    %c0_4 = arith.constant 0 : index
    %1 = vector.load %arg2[%c0_2, %c0_3, %c0_4] : memref<1x16x128xf32, #tpu.memory_space<vmem>>, vector<1x16x128xf32>
    %2 = vector.broadcast %1 : vector<1x16x128xf32> to vector<2x16x128xf32>
    %3 = arith.addf %0, %2 : vector<2x16x128xf32>
    %4 = vector.shape_cast %3 : vector<2x16x128xf32> to vector<32x128xf32>
    %c0_5 = arith.constant 0 : index
    %c0_6 = arith.constant 0 : index
    %5 = vector.load %arg3[%c0_5, %c0_6] : memref<1x128xf32, #tpu.memory_space<vmem>>, vector<1x128xf32>
    %c0_7 = arith.constant 0 : index
    %c0_8 = arith.constant 0 : index
    %6 = vector.load %arg4[%c0_7, %c0_8] : memref<1x128xf32, #tpu.memory_space<vmem>>, vector<1x128xf32>
    %cst = arith.constant dense<0.000000e+00> : vector<32xf32>
    %7 = vector.multi_reduction <add>, %4, %cst [1] : vector<32x128xf32> to vector<32xf32>
    %8 = vector.shape_cast %7 : vector<32xf32> to vector<32x1xf32>
    %cst_9 = arith.constant 1.280000e+02 : f32
    %9 = vector.broadcast %cst_9 : f32 to vector<32x1xf32>
    %10 = arith.divf %8, %9 : vector<32x1xf32>
    %11 = vector.broadcast %10 : vector<32x1xf32> to vector<32x128xf32>
    %12 = arith.subf %4, %11 : vector<32x128xf32>
    %13 = arith.mulf %12, %12 : vector<32x128xf32>
    %cst_10 = arith.constant dense<0.000000e+00> : vector<32xf32>
    %14 = vector.multi_reduction <add>, %13, %cst_10 [1] : vector<32x128xf32> to vector<32xf32>
    %15 = vector.shape_cast %14 : vector<32xf32> to vector<32x1xf32>
    %cst_11 = arith.constant 1.280000e+02 : f32
    %16 = vector.broadcast %cst_11 : f32 to vector<32x1xf32>
    %17 = arith.divf %15, %16 : vector<32x1xf32>
    %cst_12 = arith.constant 9.99999974E-6 : f32
    %18 = vector.broadcast %cst_12 : f32 to vector<32x1xf32>
    %19 = arith.addf %17, %18 : vector<32x1xf32>
    %20 = math.rsqrt %19 : vector<32x1xf32>
    %21 = vector.broadcast %20 : vector<32x1xf32> to vector<32x128xf32>
    %22 = arith.mulf %12, %21 : vector<32x128xf32>
    %23 = vector.broadcast %5 : vector<1x128xf32> to vector<32x128xf32>
    %24 = arith.mulf %22, %23 : vector<32x128xf32>
    %25 = vector.broadcast %6 : vector<1x128xf32> to vector<32x128xf32>
    %26 = arith.addf %24, %25 : vector<32x128xf32>
    %27 = arith.truncf %26 : vector<32x128xf32> to vector<32x128xbf16>
    %c0_13 = arith.constant 0 : index
    %c0_14 = arith.constant 0 : index
    %28 = vector.load %arg5[%c0_13, %c0_14] : memref<128x384xbf16, #tpu.memory_space<vmem>>, vector<128x384xbf16>
    %cst_15 = arith.constant dense<0.000000e+00> : vector<32x384xf32>
    %29 = tpu.matmul %27, %28, %cst_15 {dimension_numbers = #tpu.dot_dimension_numbers<[1], [0], [0], [1], [0, 0, 1, 1], [], []>} : vector<32x128xbf16>, vector<128x384xbf16>, vector<32x384xf32> -> vector<32x384xf32>
    %c0_16 = arith.constant 0 : index
    %c0_17 = arith.constant 0 : index
    %30 = vector.load %arg6[%c0_16, %c0_17] : memref<1x384xf32, #tpu.memory_space<vmem>>, vector<1x384xf32>
    %31 = vector.broadcast %30 : vector<1x384xf32> to vector<32x384xf32>
    %32 = arith.addf %29, %31 : vector<32x384xf32>
    %33 = vector.extract_strided_slice %32 {offsets = [0, 0], sizes = [32, 128], strides = [1, 1]} : vector<32x384xf32> to vector<32x128xf32>
    %34 = arith.truncf %33 : vector<32x128xf32> to vector<32x128xbf16>
    %35 = vector.extract_strided_slice %32 {offsets = [0, 128], sizes = [32, 128], strides = [1, 1]} : vector<32x384xf32> to vector<32x128xf32>
    %36 = arith.truncf %35 : vector<32x128xf32> to vector<32x128xbf16>
    %37 = vector.extract_strided_slice %32 {offsets = [0, 256], sizes = [32, 128], strides = [1, 1]} : vector<32x384xf32> to vector<32x128xf32>
    %38 = arith.truncf %37 : vector<32x128xf32> to vector<32x128xbf16>
    %39 = vector.extract_strided_slice %34 {offsets = [0, 0], sizes = [16, 128], strides = [1, 1]} : vector<32x128xbf16> to vector<16x128xbf16>
    %40 = vector.shape_cast %39 : vector<16x128xbf16> to vector<16x4x32xbf16>
    %41 = tpu.transpose %40, [1, 0, 2] : vector<16x4x32xbf16> -> vector<4x16x32xbf16>
    %42 = vector.extract_strided_slice %36 {offsets = [0, 0], sizes = [16, 128], strides = [1, 1]} : vector<32x128xbf16> to vector<16x128xbf16>
    %43 = vector.shape_cast %42 : vector<16x128xbf16> to vector<16x4x32xbf16>
    %44 = tpu.transpose %43, [1, 0, 2] : vector<16x4x32xbf16> -> vector<4x16x32xbf16>
    %45 = vector.extract_strided_slice %38 {offsets = [0, 0], sizes = [16, 128], strides = [1, 1]} : vector<32x128xbf16> to vector<16x128xbf16>
    %46 = vector.shape_cast %45 : vector<16x128xbf16> to vector<16x4x32xbf16>
    %47 = tpu.transpose %46, [1, 0, 2] : vector<16x4x32xbf16> -> vector<4x16x32xbf16>
    "tpu.trace_start"() <{level = 10 : i32, message = "htd,hsd->hts"}> : () -> ()
    %cst_18 = arith.constant dense<0.000000e+00> : vector<4x16x16xf32>
    %48 = tpu.matmul %41, %44, %cst_18 {dimension_numbers = #tpu.dot_dimension_numbers<[2], [2], [1], [1], [0, 0, 0, 1, 1, 1], [0], [0]>} : vector<4x16x32xbf16>, vector<4x16x32xbf16>, vector<4x16x16xf32> -> vector<4x16x16xf32>
    "tpu.trace_stop"() : () -> ()
    %cst_19 = arith.constant dense<0xFF800000> : vector<4x16xf32>
    %49 = vector.multi_reduction <maximumf>, %48, %cst_19 [2] : vector<4x16x16xf32> to vector<4x16xf32>
    %50 = vector.shape_cast %49 : vector<4x16xf32> to vector<4x16x1xf32>
    %51 = vector.broadcast %50 : vector<4x16x1xf32> to vector<4x16x16xf32>
    %52 = arith.subf %48, %51 : vector<4x16x16xf32>
    %53 = math.exp %52 : vector<4x16x16xf32>
    %cst_20 = arith.constant dense<0.000000e+00> : vector<4x16xf32>
    %54 = vector.multi_reduction <add>, %53, %cst_20 [2] : vector<4x16x16xf32> to vector<4x16xf32>
    %55 = vector.shape_cast %54 : vector<4x16xf32> to vector<4x16x1xf32>
    %56 = tpu.reciprocal %55 {approx = true} : vector<4x16x1xf32> -> vector<4x16x1xf32>
    %57 = vector.broadcast %56 : vector<4x16x1xf32> to vector<4x16x16xf32>
    %58 = arith.mulf %53, %57 : vector<4x16x16xf32>
    %59 = arith.truncf %58 : vector<4x16x16xf32> to vector<4x16x16xbf16>
    "tpu.trace_start"() <{level = 10 : i32, message = "hts,hsd->htd"}> : () -> ()
    %cst_21 = arith.constant dense<0.000000e+00> : vector<4x16x32xf32>
    %60 = tpu.matmul %59, %47, %cst_21 {dimension_numbers = #tpu.dot_dimension_numbers<[2], [1], [1], [2], [0, 0, 0, 1, 1, 2], [0], [0]>} : vector<4x16x16xbf16>, vector<4x16x32xbf16>, vector<4x16x32xf32> -> vector<4x16x32xf32>
    "tpu.trace_stop"() : () -> ()
    %61 = arith.truncf %60 : vector<4x16x32xf32> to vector<4x16x32xbf16>
    %62 = tpu.transpose %61, [1, 0, 2] : vector<4x16x32xbf16> -> vector<16x4x32xbf16>
    %63 = vector.shape_cast %62 : vector<16x4x32xbf16> to vector<16x128xbf16>
    %64 = vector.extract_strided_slice %34 {offsets = [16, 0], sizes = [16, 128], strides = [1, 1]} : vector<32x128xbf16> to vector<16x128xbf16>
    %65 = vector.shape_cast %64 : vector<16x128xbf16> to vector<16x4x32xbf16>
    %66 = tpu.transpose %65, [1, 0, 2] : vector<16x4x32xbf16> -> vector<4x16x32xbf16>
    %67 = vector.extract_strided_slice %36 {offsets = [16, 0], sizes = [16, 128], strides = [1, 1]} : vector<32x128xbf16> to vector<16x128xbf16>
    %68 = vector.shape_cast %67 : vector<16x128xbf16> to vector<16x4x32xbf16>
    %69 = tpu.transpose %68, [1, 0, 2] : vector<16x4x32xbf16> -> vector<4x16x32xbf16>
    %70 = vector.extract_strided_slice %38 {offsets = [16, 0], sizes = [16, 128], strides = [1, 1]} : vector<32x128xbf16> to vector<16x128xbf16>
    %71 = vector.shape_cast %70 : vector<16x128xbf16> to vector<16x4x32xbf16>
    %72 = tpu.transpose %71, [1, 0, 2] : vector<16x4x32xbf16> -> vector<4x16x32xbf16>
    "tpu.trace_start"() <{level = 10 : i32, message = "htd,hsd->hts"}> : () -> ()
    %cst_22 = arith.constant dense<0.000000e+00> : vector<4x16x16xf32>
    %73 = tpu.matmul %66, %69, %cst_22 {dimension_numbers = #tpu.dot_dimension_numbers<[2], [2], [1], [1], [0, 0, 0, 1, 1, 1], [0], [0]>} : vector<4x16x32xbf16>, vector<4x16x32xbf16>, vector<4x16x16xf32> -> vector<4x16x16xf32>
    "tpu.trace_stop"() : () -> ()
    %cst_23 = arith.constant dense<0xFF800000> : vector<4x16xf32>
    %74 = vector.multi_reduction <maximumf>, %73, %cst_23 [2] : vector<4x16x16xf32> to vector<4x16xf32>
    %75 = vector.shape_cast %74 : vector<4x16xf32> to vector<4x16x1xf32>
    %76 = vector.broadcast %75 : vector<4x16x1xf32> to vector<4x16x16xf32>
    %77 = arith.subf %73, %76 : vector<4x16x16xf32>
    %78 = math.exp %77 : vector<4x16x16xf32>
    %cst_24 = arith.constant dense<0.000000e+00> : vector<4x16xf32>
    %79 = vector.multi_reduction <add>, %78, %cst_24 [2] : vector<4x16x16xf32> to vector<4x16xf32>
    %80 = vector.shape_cast %79 : vector<4x16xf32> to vector<4x16x1xf32>
    %81 = tpu.reciprocal %80 {approx = true} : vector<4x16x1xf32> -> vector<4x16x1xf32>
    %82 = vector.broadcast %81 : vector<4x16x1xf32> to vector<4x16x16xf32>
    %83 = arith.mulf %78, %82 : vector<4x16x16xf32>
    %84 = arith.truncf %83 : vector<4x16x16xf32> to vector<4x16x16xbf16>
    "tpu.trace_start"() <{level = 10 : i32, message = "hts,hsd->htd"}> : () -> ()
    %cst_25 = arith.constant dense<0.000000e+00> : vector<4x16x32xf32>
    %85 = tpu.matmul %84, %72, %cst_25 {dimension_numbers = #tpu.dot_dimension_numbers<[2], [1], [1], [2], [0, 0, 0, 1, 1, 2], [0], [0]>} : vector<4x16x16xbf16>, vector<4x16x32xbf16>, vector<4x16x32xf32> -> vector<4x16x32xf32>
    "tpu.trace_stop"() : () -> ()
    %86 = arith.truncf %85 : vector<4x16x32xf32> to vector<4x16x32xbf16>
    %87 = tpu.transpose %86, [1, 0, 2] : vector<4x16x32xbf16> -> vector<16x4x32xbf16>
    %88 = vector.shape_cast %87 : vector<16x4x32xbf16> to vector<16x128xbf16>
    %89 = tpu.concatenate %63, %88 in 0 : vector<16x128xbf16>, vector<16x128xbf16> -> vector<32x128xbf16>
    %c0_26 = arith.constant 0 : index
    %c0_27 = arith.constant 0 : index
    %90 = vector.load %arg7[%c0_26, %c0_27] : memref<128x128xbf16, #tpu.memory_space<vmem>>, vector<128x128xbf16>
    %cst_28 = arith.constant dense<0.000000e+00> : vector<32x128xf32>
    %91 = tpu.matmul %89, %90, %cst_28 {dimension_numbers = #tpu.dot_dimension_numbers<[1], [0], [0], [1], [0, 0, 1, 1], [], []>} : vector<32x128xbf16>, vector<128x128xbf16>, vector<32x128xf32> -> vector<32x128xf32>
    %c0_29 = arith.constant 0 : index
    %c0_30 = arith.constant 0 : index
    %92 = vector.load %arg8[%c0_29, %c0_30] : memref<1x128xf32, #tpu.memory_space<vmem>>, vector<1x128xf32>
    %93 = vector.broadcast %92 : vector<1x128xf32> to vector<32x128xf32>
    %94 = arith.addf %91, %93 : vector<32x128xf32>
    %95 = arith.addf %4, %94 : vector<32x128xf32>
    %c0_31 = arith.constant 0 : index
    %c0_32 = arith.constant 0 : index
    %96 = vector.load %arg9[%c0_31, %c0_32] : memref<1x128xf32, #tpu.memory_space<vmem>>, vector<1x128xf32>
    %c0_33 = arith.constant 0 : index
    %c0_34 = arith.constant 0 : index
    %97 = vector.load %arg10[%c0_33, %c0_34] : memref<1x128xf32, #tpu.memory_space<vmem>>, vector<1x128xf32>
    %cst_35 = arith.constant dense<0.000000e+00> : vector<32xf32>
    %98 = vector.multi_reduction <add>, %95, %cst_35 [1] : vector<32x128xf32> to vector<32xf32>
    %99 = vector.shape_cast %98 : vector<32xf32> to vector<32x1xf32>
    %cst_36 = arith.constant 1.280000e+02 : f32
    %100 = vector.broadcast %cst_36 : f32 to vector<32x1xf32>
    %101 = arith.divf %99, %100 : vector<32x1xf32>
    %102 = vector.broadcast %101 : vector<32x1xf32> to vector<32x128xf32>
    %103 = arith.subf %95, %102 : vector<32x128xf32>
    %104 = arith.mulf %103, %103 : vector<32x128xf32>
    %cst_37 = arith.constant dense<0.000000e+00> : vector<32xf32>
    %105 = vector.multi_reduction <add>, %104, %cst_37 [1] : vector<32x128xf32> to vector<32xf32>
    %106 = vector.shape_cast %105 : vector<32xf32> to vector<32x1xf32>
    %cst_38 = arith.constant 1.280000e+02 : f32
    %107 = vector.broadcast %cst_38 : f32 to vector<32x1xf32>
    %108 = arith.divf %106, %107 : vector<32x1xf32>
    %cst_39 = arith.constant 9.99999974E-6 : f32
    %109 = vector.broadcast %cst_39 : f32 to vector<32x1xf32>
    %110 = arith.addf %108, %109 : vector<32x1xf32>
    %111 = math.rsqrt %110 : vector<32x1xf32>
    %112 = vector.broadcast %111 : vector<32x1xf32> to vector<32x128xf32>
    %113 = arith.mulf %103, %112 : vector<32x128xf32>
    %114 = vector.broadcast %96 : vector<1x128xf32> to vector<32x128xf32>
    %115 = arith.mulf %113, %114 : vector<32x128xf32>
    %116 = vector.broadcast %97 : vector<1x128xf32> to vector<32x128xf32>
    %117 = arith.addf %115, %116 : vector<32x128xf32>
    %118 = arith.truncf %117 : vector<32x128xf32> to vector<32x128xbf16>
    %c0_40 = arith.constant 0 : index
    %c0_41 = arith.constant 0 : index
    %c0_42 = arith.constant 0 : index
    %119 = vector.load %arg11[%c0_40, %c0_41, %c0_42] : memref<1x128x256xbf16, #tpu.memory_space<vmem>>, vector<1x128x256xbf16>
    %120 = vector.shape_cast %119 : vector<1x128x256xbf16> to vector<128x256xbf16>
    %cst_43 = arith.constant dense<0.000000e+00> : vector<32x256xf32>
    %121 = tpu.matmul %118, %120, %cst_43 {dimension_numbers = #tpu.dot_dimension_numbers<[1], [0], [0], [1], [0, 0, 1, 1], [], []>} : vector<32x128xbf16>, vector<128x256xbf16>, vector<32x256xf32> -> vector<32x256xf32>
    %c0_44 = arith.constant 0 : index
    %c0_45 = arith.constant 0 : index
    %c0_46 = arith.constant 0 : index
    %122 = vector.load %arg12[%c0_44, %c0_45, %c0_46] : memref<1x1x256xf32, #tpu.memory_space<vmem>>, vector<1x1x256xf32>
    %123 = vector.shape_cast %122 : vector<1x1x256xf32> to vector<1x256xf32>
    %124 = vector.broadcast %123 : vector<1x256xf32> to vector<32x256xf32>
    %125 = arith.addf %121, %124 : vector<32x256xf32>
    %cst_47 = arith.constant 0.000000e+00 : f32
    %126 = vector.broadcast %cst_47 : f32 to vector<32x256xf32>
    %127 = arith.maximumf %125, %126 : vector<32x256xf32>
    %128 = arith.truncf %127 : vector<32x256xf32> to vector<32x256xbf16>
    %c0_48 = arith.constant 0 : index
    %c0_49 = arith.constant 0 : index
    %c0_50 = arith.constant 0 : index
    %129 = vector.load %arg13[%c0_48, %c0_49, %c0_50] : memref<1x256x128xbf16, #tpu.memory_space<vmem>>, vector<1x256x128xbf16>
    %130 = vector.shape_cast %129 : vector<1x256x128xbf16> to vector<256x128xbf16>
    %cst_51 = arith.constant dense<0.000000e+00> : vector<32x128xf32>
    %131 = tpu.matmul %128, %130, %cst_51 {dimension_numbers = #tpu.dot_dimension_numbers<[1], [0], [0], [1], [0, 0, 1, 1], [], []>} : vector<32x256xbf16>, vector<256x128xbf16>, vector<32x128xf32> -> vector<32x128xf32>
    %c0_52 = arith.constant 0 : index
    %c0_53 = arith.constant 0 : index
    %132 = vector.load %arg14[%c0_52, %c0_53] : memref<1x128xf32, #tpu.memory_space<vmem>>, vector<1x128xf32>
    %133 = vector.broadcast %132 : vector<1x128xf32> to vector<32x128xf32>
    %134 = arith.addf %131, %133 : vector<32x128xf32>
    %135 = arith.addf %95, %134 : vector<32x128xf32>
    %136 = vector.shape_cast %135 : vector<32x128xf32> to vector<2x16x128xf32>
    %c0_54 = arith.constant 0 : index
    %c0_55 = arith.constant 0 : index
    %c0_56 = arith.constant 0 : index
    %137 = vector.load %arg15[%c0_54, %c0_55, %c0_56] : memref<2x16x128xf32, #tpu.memory_space<vmem>>, vector<2x16x128xf32>
    tpu.vector_store %arg15[%c0_54, %c0_55, %c0_56], %136 {strides = array<i32>} : memref<2x16x128xf32, #tpu.memory_space<vmem>>, vector<2x16x128xf32>,
    return
  }
  func.func @transform_0(%arg0: i32) -> (i32, i32, i32) {
    %c0_i32 = arith.constant 0 : i32
    %c0_i32_0 = arith.constant 0 : i32
    %c0_i32_1 = arith.constant 0 : i32
    return %arg0, %c0_i32, %c0_i32_0 : i32, i32, i32
  }
  func.func @transform_1(%arg0: i32) -> (i32, i32, i32) {
    %c0_i32 = arith.constant 0 : i32
    %c0_i32_0 = arith.constant 0 : i32
    %c0_i32_1 = arith.constant 0 : i32
    %c0_i32_2 = arith.constant 0 : i32
    return %c0_i32, %c0_i32_0, %c0_i32_1 : i32, i32, i32
  }
  func.func @transform_2(%arg0: i32) -> (i32, i32) {
    %c0_i32 = arith.constant 0 : i32
    %c0_i32_0 = arith.constant 0 : i32
    %c0_i32_1 = arith.constant 0 : i32
    return %c0_i32, %c0_i32_0 : i32, i32
  }
  func.func @transform_3(%arg0: i32) -> (i32, i32) {
    %c0_i32 = arith.constant 0 : i32
    %c0_i32_0 = arith.constant 0 : i32
    %c0_i32_1 = arith.constant 0 : i32
    return %c0_i32, %c0_i32_0 : i32, i32
  }
  func.func @transform_4(%arg0: i32) -> (i32, i32) {
    %c0_i32 = arith.constant 0 : i32
    %c0_i32_0 = arith.constant 0 : i32
    %c0_i32_1 = arith.constant 0 : i32
    return %c0_i32, %c0_i32_0 : i32, i32
  }
  func.func @transform_5(%arg0: i32) -> (i32, i32) {
    %c0_i32 = arith.constant 0 : i32
    %c0_i32_0 = arith.constant 0 : i32
    %c0_i32_1 = arith.constant 0 : i32
    return %c0_i32, %c0_i32_0 : i32, i32
  }
  func.func @transform_6(%arg0: i32) -> (i32, i32) {
    %c0_i32 = arith.constant 0 : i32
    %c0_i32_0 = arith.constant 0 : i32
    %c0_i32_1 = arith.constant 0 : i32
    return %c0_i32, %c0_i32_0 : i32, i32
  }
  func.func @transform_7(%arg0: i32) -> (i32, i32) {
    %c0_i32 = arith.constant 0 : i32
    %c0_i32_0 = arith.constant 0 : i32
    %c0_i32_1 = arith.constant 0 : i32
    return %c0_i32, %c0_i32_0 : i32, i32
  }
  func.func @transform_8(%arg0: i32) -> (i32, i32) {
    %c0_i32 = arith.constant 0 : i32
    %c0_i32_0 = arith.constant 0 : i32
    %c0_i32_1 = arith.constant 0 : i32
    return %c0_i32, %c0_i32_0 : i32, i32
  }
  func.func @transform_9(%arg0: i32) -> (i32, i32) {
    %c0_i32 = arith.constant 0 : i32
    %c0_i32_0 = arith.constant 0 : i32
    %c0_i32_1 = arith.constant 0 : i32
    return %c0_i32, %c0_i32_0 : i32, i32
  }
  func.func @transform_10(%arg0: i32) -> (i32, i32, i32) {
    %c0_i32 = arith.constant 0 : i32
    %c0_i32_0 = arith.constant 0 : i32
    %c0_i32_1 = arith.constant 0 : i32
    %c0_i32_2 = arith.constant 0 : i32
    return %c0_i32, %c0_i32_0, %c0_i32_1 : i32, i32, i32
  }
  func.func @transform_11(%arg0: i32) -> (i32, i32, i32) {
    %c0_i32 = arith.constant 0 : i32
    %c0_i32_0 = arith.constant 0 : i32
    %c0_i32_1 = arith.constant 0 : i32
    %c0_i32_2 = arith.constant 0 : i32
    return %c0_i32, %c0_i32_0, %c0_i32_1 : i32, i32, i32
  }
  func.func @transform_12(%arg0: i32) -> (i32, i32, i32) {
    %c0_i32 = arith.constant 0 : i32
    %c0_i32_0 = arith.constant 0 : i32
    %c0_i32_1 = arith.constant 0 : i32
    %c0_i32_2 = arith.constant 0 : i32
    return %c0_i32, %c0_i32_0, %c0_i32_1 : i32, i32, i32
  }
  func.func @transform_13(%arg0: i32) -> (i32, i32) {
    %c0_i32 = arith.constant 0 : i32
    %c0_i32_0 = arith.constant 0 : i32
    %c0_i32_1 = arith.constant 0 : i32
    return %c0_i32, %c0_i32_0 : i32, i32
  }
  func.func @transform_14(%arg0: i32) -> (i32, i32, i32) {
    %c0_i32 = arith.constant 0 : i32
    %c0_i32_0 = arith.constant 0 : i32
    %c0_i32_1 = arith.constant 0 : i32
    return %arg0, %c0_i32, %c0_i32_0 : i32, i32, i32
  }
}

module attributes {stable_mosaic.version = 11 : i64} {
  func.func @encoder_layer_kernel(%arg0: i32, %arg1: memref<2x16x128xf32, #tpu.memory_space<vmem>>, %arg2: memref<1x16x128xf32, #tpu.memory_space<vmem>>, %arg3: memref<1x128xf32, #tpu.memory_space<vmem>>, %arg4: memref<1x128xf32, #tpu.memory_space<vmem>>, %arg5: memref<128x384xbf16, #tpu.memory_space<vmem>>, %arg6: memref<1x384xf32, #tpu.memory_space<vmem>>, %arg7: memref<128x128xbf16, #tpu.memory_space<vmem>>, %arg8: memref<1x128xf32, #tpu.memory_space<vmem>>, %arg9: memref<1x128xf32, #tpu.memory_space<vmem>>, %arg10: memref<1x128xf32, #tpu.memory_space<vmem>>, %arg11: memref<1x128x256xbf16, #tpu.memory_space<vmem>>, %arg12: memref<1x1x256xf32, #tpu.memory_space<vmem>>, %arg13: memref<1x256x128xbf16, #tpu.memory_space<vmem>>, %arg14: memref<1x128xf32, #tpu.memory_space<vmem>>, %arg15: memref<2x16x128xf32, #tpu.memory_space<vmem>>) attributes {dimension_semantics = [#tpu.dimension_semantics<parallel>], iteration_bounds = array<i64: 1>, scalar_prefetch = 0 : i64, scratch_operands = 0 : i64, tpu.core_type = #tpu.core_type<tc>, window_params = [{transform_indices = @transform_0, window_bounds = array<i64: 2, 16, 128>}, {pipeline_mode = #tpu.pipeline_mode<synchronous>, transform_indices = @transform_1, window_bounds = array<i64: 1, 16, 128>}, {pipeline_mode = #tpu.pipeline_mode<synchronous>, transform_indices = @transform_2, window_bounds = array<i64: 1, 128>}, {pipeline_mode = #tpu.pipeline_mode<synchronous>, transform_indices = @transform_3, window_bounds = array<i64: 1, 128>}, {pipeline_mode = #tpu.pipeline_mode<synchronous>, transform_indices = @transform_4, window_bounds = array<i64: 128, 384>}, {pipeline_mode = #tpu.pipeline_mode<synchronous>, transform_indices = @transform_5, window_bounds = array<i64: 1, 384>}, {pipeline_mode = #tpu.pipeline_mode<synchronous>, transform_indices = @transform_6, window_bounds = array<i64: 128, 128>}, {pipeline_mode = #tpu.pipeline_mode<synchronous>, transform_indices = @transform_7, window_bounds = array<i64: 1, 128>}, {pipeline_mode = #tpu.pipeline_mode<synchronous>, transform_indices = @transform_8, window_bounds = array<i64: 1, 128>}, {pipeline_mode = #tpu.pipeline_mode<synchronous>, transform_indices = @transform_9, window_bounds = array<i64: 1, 128>}, {pipeline_mode = #tpu.pipeline_mode<synchronous>, transform_indices = @transform_10, window_bounds = array<i64: 1, 128, 256>}, {pipeline_mode = #tpu.pipeline_mode<synchronous>, transform_indices = @transform_11, window_bounds = array<i64: 1, 1, 256>}, {pipeline_mode = #tpu.pipeline_mode<synchronous>, transform_indices = @transform_12, window_bounds = array<i64: 1, 256, 128>}, {pipeline_mode = #tpu.pipeline_mode<synchronous>, transform_indices = @transform_13, window_bounds = array<i64: 1, 128>}, {transform_indices = @transform_14, window_bounds = array<i64: 2, 16, 128>}]} {
    %c0 = arith.constant 0 : index
    %c0_0 = arith.constant 0 : index
    %c0_1 = arith.constant 0 : index
    %0 = vector.load %arg1[%c0, %c0_0, %c0_1] : memref<2x16x128xf32, #tpu.memory_space<vmem>>, vector<2x16x128xf32>
    %c0_2 = arith.constant 0 : index
    %c0_3 = arith.constant 0 : index
    %c0_4 = arith.constant 0 : index
    %1 = vector.load %arg2[%c0_2, %c0_3, %c0_4] : memref<1x16x128xf32, #tpu.memory_space<vmem>>, vector<1x16x128xf32>
    %2 = vector.broadcast %1 : vector<1x16x128xf32> to vector<2x16x128xf32>
    %3 = arith.addf %0, %2 : vector<2x16x128xf32>
    %4 = vector.shape_cast %3 : vector<2x16x128xf32> to vector<32x128xf32>
    %c0_5 = arith.constant 0 : index
    %c0_6 = arith.constant 0 : index
    %5 = vector.load %arg3[%c0_5, %c0_6] : memref<1x128xf32, #tpu.memory_space<vmem>>, vector<1x128xf32>
    %c0_7 = arith.constant 0 : index
    %c0_8 = arith.constant 0 : index
    %6 = vector.load %arg4[%c0_7, %c0_8] : memref<1x128xf32, #tpu.memory_space<vmem>>, vector<1x128xf32>
    %cst = arith.constant dense<0.000000e+00> : vector<32xf32>
    %7 = vector.multi_reduction <add>, %4, %cst [1] : vector<32x128xf32> to vector<32xf32>
    %8 = vector.shape_cast %7 : vector<32xf32> to vector<32x1xf32>
    %cst_9 = arith.constant 1.280000e+02 : f32
    %9 = vector.broadcast %cst_9 : f32 to vector<32x1xf32>
    %10 = arith.divf %8, %9 : vector<32x1xf32>
    %11 = vector.broadcast %10 : vector<32x1xf32> to vector<32x128xf32>
    %12 = arith.subf %4, %11 : vector<32x128xf32>
    %13 = arith.mulf %12, %12 : vector<32x128xf32>
    %cst_10 = arith.constant dense<0.000000e+00> : vector<32xf32>
    %14 = vector.multi_reduction <add>, %13, %cst_10 [1] : vector<32x128xf32> to vector<32xf32>
    %15 = vector.shape_cast %14 : vector<32xf32> to vector<32x1xf32>
    %cst_11 = arith.constant 1.280000e+02 : f32
    %16 = vector.broadcast %cst_11 : f32 to vector<32x1xf32>
    %17 = arith.divf %15, %16 : vector<32x1xf32>
    %cst_12 = arith.constant 9.99999974E-6 : f32
    %18 = vector.broadcast %cst_12 : f32 to vector<32x1xf32>
    %19 = arith.addf %17, %18 : vector<32x1xf32>
    %20 = math.rsqrt %19 : vector<32x1xf32>
    %21 = vector.broadcast %20 : vector<32x1xf32> to vector<32x128xf32>
    %22 = arith.mulf %12, %21 : vector<32x128xf32>
    %23 = vector.broadcast %5 : vector<1x128xf32> to vector<32x128xf32>
    %24 = arith.mulf %22, %23 : vector<32x128xf32>
    %25 = vector.broadcast %6 : vector<1x128xf32> to vector<32x128xf32>
    %26 = arith.addf %24, %25 : vector<32x128xf32>
    %27 = arith.truncf %26 : vector<32x128xf32> to vector<32x128xbf16>
    %c0_13 = arith.constant 0 : index
    %c0_14 = arith.constant 0 : index
    %28 = vector.load %arg5[%c0_13, %c0_14] : memref<128x384xbf16, #tpu.memory_space<vmem>>, vector<128x384xbf16>
    %cst_15 = arith.constant dense<0.000000e+00> : vector<32x384xf32>
    %29 = tpu.matmul %27, %28, %cst_15 {dimension_numbers = #tpu.dot_dimension_numbers<[1], [0], [0], [1], [0, 0, 1, 1], [], []>} : vector<32x128xbf16>, vector<128x384xbf16>, vector<32x384xf32> -> vector<32x384xf32>
    %c0_16 = arith.constant 0 : index
    %c0_17 = arith.constant 0 : index
    %30 = vector.load %arg6[%c0_16, %c0_17] : memref<1x384xf32, #tpu.memory_space<vmem>>, vector<1x384xf32>
    %31 = vector.broadcast %30 : vector<1x384xf32> to vector<32x384xf32>
    %32 = arith.addf %29, %31 : vector<32x384xf32>
    %33 = vector.extract_strided_slice %32 {offsets = [0, 0], sizes = [32, 128], strides = [1, 1]} : vector<32x384xf32> to vector<32x128xf32>
    %34 = arith.truncf %33 : vector<32x128xf32> to vector<32x128xbf16>
    %35 = vector.extract_strided_slice %32 {offsets = [0, 128], sizes = [32, 128], strides = [1, 1]} : vector<32x384xf32> to vector<32x128xf32>
    %36 = arith.truncf %35 : vector<32x128xf32> to vector<32x128xbf16>
    %37 = vector.extract_strided_slice %32 {offsets = [0, 256], sizes = [32, 128], strides = [1, 1]} : vector<32x384xf32> to vector<32x128xf32>
    %38 = arith.truncf %37 : vector<32x128xf32> to vector<32x128xbf16>
    %39 = vector.extract_strided_slice %34 {offsets = [0, 0], sizes = [16, 128], strides = [1, 1]} : vector<32x128xbf16> to vector<16x128xbf16>
    %40 = vector.extract_strided_slice %39 {offsets = [0, 0], sizes = [16, 32], strides = [1, 1]} : vector<16x128xbf16> to vector<16x32xbf16>
    %41 = vector.extract_strided_slice %39 {offsets = [0, 32], sizes = [16, 32], strides = [1, 1]} : vector<16x128xbf16> to vector<16x32xbf16>
    %42 = vector.extract_strided_slice %39 {offsets = [0, 64], sizes = [16, 32], strides = [1, 1]} : vector<16x128xbf16> to vector<16x32xbf16>
    %43 = vector.extract_strided_slice %39 {offsets = [0, 96], sizes = [16, 32], strides = [1, 1]} : vector<16x128xbf16> to vector<16x32xbf16>
    %44 = vector.shape_cast %40 : vector<16x32xbf16> to vector<1x16x32xbf16>
    %45 = vector.shape_cast %41 : vector<16x32xbf16> to vector<1x16x32xbf16>
    %46 = vector.shape_cast %42 : vector<16x32xbf16> to vector<1x16x32xbf16>
    %47 = vector.shape_cast %43 : vector<16x32xbf16> to vector<1x16x32xbf16>
    %48 = tpu.concatenate %44, %45, %46, %47 in 0 : vector<1x16x32xbf16>, vector<1x16x32xbf16>, vector<1x16x32xbf16>, vector<1x16x32xbf16> -> vector<4x16x32xbf16>
    %49 = vector.extract_strided_slice %36 {offsets = [0, 0], sizes = [16, 128], strides = [1, 1]} : vector<32x128xbf16> to vector<16x128xbf16>
    %50 = vector.extract_strided_slice %49 {offsets = [0, 0], sizes = [16, 32], strides = [1, 1]} : vector<16x128xbf16> to vector<16x32xbf16>
    %51 = vector.extract_strided_slice %49 {offsets = [0, 32], sizes = [16, 32], strides = [1, 1]} : vector<16x128xbf16> to vector<16x32xbf16>
    %52 = vector.extract_strided_slice %49 {offsets = [0, 64], sizes = [16, 32], strides = [1, 1]} : vector<16x128xbf16> to vector<16x32xbf16>
    %53 = vector.extract_strided_slice %49 {offsets = [0, 96], sizes = [16, 32], strides = [1, 1]} : vector<16x128xbf16> to vector<16x32xbf16>
    %54 = vector.shape_cast %50 : vector<16x32xbf16> to vector<1x16x32xbf16>
    %55 = vector.shape_cast %51 : vector<16x32xbf16> to vector<1x16x32xbf16>
    %56 = vector.shape_cast %52 : vector<16x32xbf16> to vector<1x16x32xbf16>
    %57 = vector.shape_cast %53 : vector<16x32xbf16> to vector<1x16x32xbf16>
    %58 = tpu.concatenate %54, %55, %56, %57 in 0 : vector<1x16x32xbf16>, vector<1x16x32xbf16>, vector<1x16x32xbf16>, vector<1x16x32xbf16> -> vector<4x16x32xbf16>
    %59 = vector.extract_strided_slice %38 {offsets = [0, 0], sizes = [16, 128], strides = [1, 1]} : vector<32x128xbf16> to vector<16x128xbf16>
    %60 = vector.extract_strided_slice %59 {offsets = [0, 0], sizes = [16, 32], strides = [1, 1]} : vector<16x128xbf16> to vector<16x32xbf16>
    %61 = vector.extract_strided_slice %59 {offsets = [0, 32], sizes = [16, 32], strides = [1, 1]} : vector<16x128xbf16> to vector<16x32xbf16>
    %62 = vector.extract_strided_slice %59 {offsets = [0, 64], sizes = [16, 32], strides = [1, 1]} : vector<16x128xbf16> to vector<16x32xbf16>
    %63 = vector.extract_strided_slice %59 {offsets = [0, 96], sizes = [16, 32], strides = [1, 1]} : vector<16x128xbf16> to vector<16x32xbf16>
    %64 = vector.shape_cast %60 : vector<16x32xbf16> to vector<1x16x32xbf16>
    %65 = vector.shape_cast %61 : vector<16x32xbf16> to vector<1x16x32xbf16>
    %66 = vector.shape_cast %62 : vector<16x32xbf16> to vector<1x16x32xbf16>
    %67 = vector.shape_cast %63 : vector<16x32xbf16> to vector<1x16x32xbf16>
    %68 = tpu.concatenate %64, %65, %66, %67 in 0 : vector<1x16x32xbf16>, vector<1x16x32xbf16>, vector<1x16x32xbf16>, vector<1x16x32xbf16> -> vector<4x16x32xbf16>
    "tpu.trace_start"() <{level = 10 : i32, message = "htd,hsd->hts"}> : () -> ()
    %cst_18 = arith.constant dense<0.000000e+00> : vector<4x16x16xf32>
    %69 = tpu.matmul %48, %58, %cst_18 {dimension_numbers = #tpu.dot_dimension_numbers<[2], [2], [1], [1], [0, 0, 0, 1, 1, 1], [0], [0]>} : vector<4x16x32xbf16>, vector<4x16x32xbf16>, vector<4x16x16xf32> -> vector<4x16x16xf32>
    "tpu.trace_stop"() : () -> ()
    %cst_19 = arith.constant dense<0xFF800000> : vector<4x16xf32>
    %70 = vector.multi_reduction <maximumf>, %69, %cst_19 [2] : vector<4x16x16xf32> to vector<4x16xf32>
    %71 = vector.shape_cast %70 : vector<4x16xf32> to vector<4x16x1xf32>
    %72 = vector.broadcast %71 : vector<4x16x1xf32> to vector<4x16x16xf32>
    %73 = arith.subf %69, %72 : vector<4x16x16xf32>
    %74 = math.exp %73 : vector<4x16x16xf32>
    %cst_20 = arith.constant dense<0.000000e+00> : vector<4x16xf32>
    %75 = vector.multi_reduction <add>, %74, %cst_20 [2] : vector<4x16x16xf32> to vector<4x16xf32>
    %76 = vector.shape_cast %75 : vector<4x16xf32> to vector<4x16x1xf32>
    %77 = tpu.reciprocal %76 {approx = true} : vector<4x16x1xf32> -> vector<4x16x1xf32>
    %78 = vector.broadcast %77 : vector<4x16x1xf32> to vector<4x16x16xf32>
    %79 = arith.mulf %74, %78 : vector<4x16x16xf32>
    %80 = arith.truncf %79 : vector<4x16x16xf32> to vector<4x16x16xbf16>
    "tpu.trace_start"() <{level = 10 : i32, message = "hts,hsd->htd"}> : () -> ()
    %cst_21 = arith.constant dense<0.000000e+00> : vector<4x16x32xf32>
    %81 = tpu.matmul %80, %68, %cst_21 {dimension_numbers = #tpu.dot_dimension_numbers<[2], [1], [1], [2], [0, 0, 0, 1, 1, 2], [0], [0]>} : vector<4x16x16xbf16>, vector<4x16x32xbf16>, vector<4x16x32xf32> -> vector<4x16x32xf32>
    "tpu.trace_stop"() : () -> ()
    %82 = arith.truncf %81 : vector<4x16x32xf32> to vector<4x16x32xbf16>
    %83 = vector.extract_strided_slice %82 {offsets = [0, 0, 0], sizes = [1, 16, 32], strides = [1, 1, 1]} : vector<4x16x32xbf16> to vector<1x16x32xbf16>
    %84 = vector.shape_cast %83 : vector<1x16x32xbf16> to vector<16x32xbf16>
    %85 = vector.extract_strided_slice %82 {offsets = [1, 0, 0], sizes = [1, 16, 32], strides = [1, 1, 1]} : vector<4x16x32xbf16> to vector<1x16x32xbf16>
    %86 = vector.shape_cast %85 : vector<1x16x32xbf16> to vector<16x32xbf16>
    %87 = vector.extract_strided_slice %82 {offsets = [2, 0, 0], sizes = [1, 16, 32], strides = [1, 1, 1]} : vector<4x16x32xbf16> to vector<1x16x32xbf16>
    %88 = vector.shape_cast %87 : vector<1x16x32xbf16> to vector<16x32xbf16>
    %89 = vector.extract_strided_slice %82 {offsets = [3, 0, 0], sizes = [1, 16, 32], strides = [1, 1, 1]} : vector<4x16x32xbf16> to vector<1x16x32xbf16>
    %90 = vector.shape_cast %89 : vector<1x16x32xbf16> to vector<16x32xbf16>
    %91 = tpu.concatenate %84, %86, %88, %90 in 1 : vector<16x32xbf16>, vector<16x32xbf16>, vector<16x32xbf16>, vector<16x32xbf16> -> vector<16x128xbf16>
    %92 = vector.extract_strided_slice %34 {offsets = [16, 0], sizes = [16, 128], strides = [1, 1]} : vector<32x128xbf16> to vector<16x128xbf16>
    %93 = vector.extract_strided_slice %92 {offsets = [0, 0], sizes = [16, 32], strides = [1, 1]} : vector<16x128xbf16> to vector<16x32xbf16>
    %94 = vector.extract_strided_slice %92 {offsets = [0, 32], sizes = [16, 32], strides = [1, 1]} : vector<16x128xbf16> to vector<16x32xbf16>
    %95 = vector.extract_strided_slice %92 {offsets = [0, 64], sizes = [16, 32], strides = [1, 1]} : vector<16x128xbf16> to vector<16x32xbf16>
    %96 = vector.extract_strided_slice %92 {offsets = [0, 96], sizes = [16, 32], strides = [1, 1]} : vector<16x128xbf16> to vector<16x32xbf16>
    %97 = vector.shape_cast %93 : vector<16x32xbf16> to vector<1x16x32xbf16>
    %98 = vector.shape_cast %94 : vector<16x32xbf16> to vector<1x16x32xbf16>
    %99 = vector.shape_cast %95 : vector<16x32xbf16> to vector<1x16x32xbf16>
    %100 = vector.shape_cast %96 : vector<16x32xbf16> to vector<1x16x32xbf16>
    %101 = tpu.concatenate %97, %98, %99, %100 in 0 : vector<1x16x32xbf16>, vector<1x16x32xbf16>, vector<1x16x32xbf16>, vector<1x16x32xbf16> -> vector<4x16x32xbf16>
    %102 = vector.extract_strided_slice %36 {offsets = [16, 0], sizes = [16, 128], strides = [1, 1]} : vector<32x128xbf16> to vector<16x128xbf16>
    %103 = vector.extract_strided_slice %102 {offsets = [0, 0], sizes = [16, 32], strides = [1, 1]} : vector<16x128xbf16> to vector<16x32xbf16>
    %104 = vector.extract_strided_slice %102 {offsets = [0, 32], sizes = [16, 32], strides = [1, 1]} : vector<16x128xbf16> to vector<16x32xbf16>
    %105 = vector.extract_strided_slice %102 {offsets = [0, 64], sizes = [16, 32], strides = [1, 1]} : vector<16x128xbf16> to vector<16x32xbf16>
    %106 = vector.extract_strided_slice %102 {offsets = [0, 96], sizes = [16, 32], strides = [1, 1]} : vector<16x128xbf16> to vector<16x32xbf16>
    %107 = vector.shape_cast %103 : vector<16x32xbf16> to vector<1x16x32xbf16>
    %108 = vector.shape_cast %104 : vector<16x32xbf16> to vector<1x16x32xbf16>
    %109 = vector.shape_cast %105 : vector<16x32xbf16> to vector<1x16x32xbf16>
    %110 = vector.shape_cast %106 : vector<16x32xbf16> to vector<1x16x32xbf16>
    %111 = tpu.concatenate %107, %108, %109, %110 in 0 : vector<1x16x32xbf16>, vector<1x16x32xbf16>, vector<1x16x32xbf16>, vector<1x16x32xbf16> -> vector<4x16x32xbf16>
    %112 = vector.extract_strided_slice %38 {offsets = [16, 0], sizes = [16, 128], strides = [1, 1]} : vector<32x128xbf16> to vector<16x128xbf16>
    %113 = vector.extract_strided_slice %112 {offsets = [0, 0], sizes = [16, 32], strides = [1, 1]} : vector<16x128xbf16> to vector<16x32xbf16>
    %114 = vector.extract_strided_slice %112 {offsets = [0, 32], sizes = [16, 32], strides = [1, 1]} : vector<16x128xbf16> to vector<16x32xbf16>
    %115 = vector.extract_strided_slice %112 {offsets = [0, 64], sizes = [16, 32], strides = [1, 1]} : vector<16x128xbf16> to vector<16x32xbf16>
    %116 = vector.extract_strided_slice %112 {offsets = [0, 96], sizes = [16, 32], strides = [1, 1]} : vector<16x128xbf16> to vector<16x32xbf16>
    %117 = vector.shape_cast %113 : vector<16x32xbf16> to vector<1x16x32xbf16>
    %118 = vector.shape_cast %114 : vector<16x32xbf16> to vector<1x16x32xbf16>
    %119 = vector.shape_cast %115 : vector<16x32xbf16> to vector<1x16x32xbf16>
    %120 = vector.shape_cast %116 : vector<16x32xbf16> to vector<1x16x32xbf16>
    %121 = tpu.concatenate %117, %118, %119, %120 in 0 : vector<1x16x32xbf16>, vector<1x16x32xbf16>, vector<1x16x32xbf16>, vector<1x16x32xbf16> -> vector<4x16x32xbf16>
    "tpu.trace_start"() <{level = 10 : i32, message = "htd,hsd->hts"}> : () -> ()
    %cst_22 = arith.constant dense<0.000000e+00> : vector<4x16x16xf32>
    %122 = tpu.matmul %101, %111, %cst_22 {dimension_numbers = #tpu.dot_dimension_numbers<[2], [2], [1], [1], [0, 0, 0, 1, 1, 1], [0], [0]>} : vector<4x16x32xbf16>, vector<4x16x32xbf16>, vector<4x16x16xf32> -> vector<4x16x16xf32>
    "tpu.trace_stop"() : () -> ()
    %cst_23 = arith.constant dense<0xFF800000> : vector<4x16xf32>
    %123 = vector.multi_reduction <maximumf>, %122, %cst_23 [2] : vector<4x16x16xf32> to vector<4x16xf32>
    %124 = vector.shape_cast %123 : vector<4x16xf32> to vector<4x16x1xf32>
    %125 = vector.broadcast %124 : vector<4x16x1xf32> to vector<4x16x16xf32>
    %126 = arith.subf %122, %125 : vector<4x16x16xf32>
    %127 = math.exp %126 : vector<4x16x16xf32>
    %cst_24 = arith.constant dense<0.000000e+00> : vector<4x16xf32>
    %128 = vector.multi_reduction <add>, %127, %cst_24 [2] : vector<4x16x16xf32> to vector<4x16xf32>
    %129 = vector.shape_cast %128 : vector<4x16xf32> to vector<4x16x1xf32>
    %130 = tpu.reciprocal %129 {approx = true} : vector<4x16x1xf32> -> vector<4x16x1xf32>
    %131 = vector.broadcast %130 : vector<4x16x1xf32> to vector<4x16x16xf32>
    %132 = arith.mulf %127, %131 : vector<4x16x16xf32>
    %133 = arith.truncf %132 : vector<4x16x16xf32> to vector<4x16x16xbf16>
    "tpu.trace_start"() <{level = 10 : i32, message = "hts,hsd->htd"}> : () -> ()
    %cst_25 = arith.constant dense<0.000000e+00> : vector<4x16x32xf32>
    %134 = tpu.matmul %133, %121, %cst_25 {dimension_numbers = #tpu.dot_dimension_numbers<[2], [1], [1], [2], [0, 0, 0, 1, 1, 2], [0], [0]>} : vector<4x16x16xbf16>, vector<4x16x32xbf16>, vector<4x16x32xf32> -> vector<4x16x32xf32>
    "tpu.trace_stop"() : () -> ()
    %135 = arith.truncf %134 : vector<4x16x32xf32> to vector<4x16x32xbf16>
    %136 = vector.extract_strided_slice %135 {offsets = [0, 0, 0], sizes = [1, 16, 32], strides = [1, 1, 1]} : vector<4x16x32xbf16> to vector<1x16x32xbf16>
    %137 = vector.shape_cast %136 : vector<1x16x32xbf16> to vector<16x32xbf16>
    %138 = vector.extract_strided_slice %135 {offsets = [1, 0, 0], sizes = [1, 16, 32], strides = [1, 1, 1]} : vector<4x16x32xbf16> to vector<1x16x32xbf16>
    %139 = vector.shape_cast %138 : vector<1x16x32xbf16> to vector<16x32xbf16>
    %140 = vector.extract_strided_slice %135 {offsets = [2, 0, 0], sizes = [1, 16, 32], strides = [1, 1, 1]} : vector<4x16x32xbf16> to vector<1x16x32xbf16>
    %141 = vector.shape_cast %140 : vector<1x16x32xbf16> to vector<16x32xbf16>
    %142 = vector.extract_strided_slice %135 {offsets = [3, 0, 0], sizes = [1, 16, 32], strides = [1, 1, 1]} : vector<4x16x32xbf16> to vector<1x16x32xbf16>
    %143 = vector.shape_cast %142 : vector<1x16x32xbf16> to vector<16x32xbf16>
    %144 = tpu.concatenate %137, %139, %141, %143 in 1 : vector<16x32xbf16>, vector<16x32xbf16>, vector<16x32xbf16>, vector<16x32xbf16> -> vector<16x128xbf16>
    %145 = tpu.concatenate %91, %144 in 0 : vector<16x128xbf16>, vector<16x128xbf16> -> vector<32x128xbf16>
    %c0_26 = arith.constant 0 : index
    %c0_27 = arith.constant 0 : index
    %146 = vector.load %arg7[%c0_26, %c0_27] : memref<128x128xbf16, #tpu.memory_space<vmem>>, vector<128x128xbf16>
    %cst_28 = arith.constant dense<0.000000e+00> : vector<32x128xf32>
    %147 = tpu.matmul %145, %146, %cst_28 {dimension_numbers = #tpu.dot_dimension_numbers<[1], [0], [0], [1], [0, 0, 1, 1], [], []>} : vector<32x128xbf16>, vector<128x128xbf16>, vector<32x128xf32> -> vector<32x128xf32>
    %c0_29 = arith.constant 0 : index
    %c0_30 = arith.constant 0 : index
    %148 = vector.load %arg8[%c0_29, %c0_30] : memref<1x128xf32, #tpu.memory_space<vmem>>, vector<1x128xf32>
    %149 = vector.broadcast %148 : vector<1x128xf32> to vector<32x128xf32>
    %150 = arith.addf %147, %149 : vector<32x128xf32>
    %151 = arith.addf %4, %150 : vector<32x128xf32>
    %c0_31 = arith.constant 0 : index
    %c0_32 = arith.constant 0 : index
    %152 = vector.load %arg9[%c0_31, %c0_32] : memref<1x128xf32, #tpu.memory_space<vmem>>, vector<1x128xf32>
    %c0_33 = arith.constant 0 : index
    %c0_34 = arith.constant 0 : index
    %153 = vector.load %arg10[%c0_33, %c0_34] : memref<1x128xf32, #tpu.memory_space<vmem>>, vector<1x128xf32>
    %cst_35 = arith.constant dense<0.000000e+00> : vector<32xf32>
    %154 = vector.multi_reduction <add>, %151, %cst_35 [1] : vector<32x128xf32> to vector<32xf32>
    %155 = vector.shape_cast %154 : vector<32xf32> to vector<32x1xf32>
    %cst_36 = arith.constant 1.280000e+02 : f32
    %156 = vector.broadcast %cst_36 : f32 to vector<32x1xf32>
    %157 = arith.divf %155, %156 : vector<32x1xf32>
    %158 = vector.broadcast %157 : vector<32x1xf32> to vector<32x128xf32>
    %159 = arith.subf %151, %158 : vector<32x128xf32>
    %160 = arith.mulf %159, %159 : vector<32x128xf32>
    %cst_37 = arith.constant dense<0.000000e+00> : vector<32xf32>
    %161 = vector.multi_reduction <add>, %160, %cst_37 [1] : vector<32x128xf32> to vector<32xf32>
    %162 = vector.shape_cast %161 : vector<32xf32> to vector<32x1xf32>
    %cst_38 = arith.constant 1.280000e+02 : f32
    %163 = vector.broadcast %cst_38 : f32 to vector<32x1xf32>
    %164 = arith.divf %162, %163 : vector<32x1xf32>
    %cst_39 = arith.constant 9.99999974E-6 : f32
    %165 = vector.broadcast %cst_39 : f32 to vector<32x1xf32>
    %166 = arith.addf %164, %165 : vector<32x1xf32>
    %167 = math.rsqrt %166 : vector<32x1xf32>
    %168 = vector.broadcast %167 : vector<32x1xf32> to vector<32x128xf32>
    %169 = arith.mulf %159, %168 : vector<32x128xf32>
    %170 = vector.broadcast %152 : vector<1x128xf32> to vector<32x128xf32>
    %171 = arith.mulf %169, %170 : vector<32x128xf32>
    %172 = vector.broadcast %153 : vector<1x128xf32> to vector<32x128xf32>
    %173 = arith.addf %171, %172 : vector<32x128xf32>
    %174 = arith.truncf %173 : vector<32x128xf32> to vector<32x128xbf16>
    %c0_40 = arith.constant 0 : index
    %c0_41 = arith.constant 0 : index
    %c0_42 = arith.constant 0 : index
    %175 = vector.load %arg11[%c0_40, %c0_41, %c0_42] : memref<1x128x256xbf16, #tpu.memory_space<vmem>>, vector<1x128x256xbf16>
    %176 = vector.shape_cast %175 : vector<1x128x256xbf16> to vector<128x256xbf16>
    %cst_43 = arith.constant dense<0.000000e+00> : vector<32x256xf32>
    %177 = tpu.matmul %174, %176, %cst_43 {dimension_numbers = #tpu.dot_dimension_numbers<[1], [0], [0], [1], [0, 0, 1, 1], [], []>} : vector<32x128xbf16>, vector<128x256xbf16>, vector<32x256xf32> -> vector<32x256xf32>
    %c0_44 = arith.constant 0 : index
    %c0_45 = arith.constant 0 : index
    %c0_46 = arith.constant 0 : index
    %178 = vector.load %arg12[%c0_44, %c0_45, %c0_46] : memref<1x1x256xf32, #tpu.memory_space<vmem>>, vector<1x1x256xf32>
    %179 = vector.shape_cast %178 : vector<1x1x256xf32> to vector<1x256xf32>
    %180 = vector.broadcast %179 : vector<1x256xf32> to vector<32x256xf32>
    %181 = arith.addf %177, %180 : vector<32x256xf32>
    %cst_47 = arith.constant 0.000000e+00 : f32
    %182 = vector.broadcast %cst_47 : f32 to vector<32x256xf32>
    %183 = arith.maximumf %181, %182 : vector<32x256xf32>
    %184 = arith.truncf %183 : vector<32x256xf32> to vector<32x256xbf16>
    %c0_48 = arith.constant 0 : index
    %c0_49 = arith.constant 0 : index
    %c0_50 = arith.constant 0 : index
    %185 = vector.load %arg13[%c0_48, %c0_49, %c0_50] : memref<1x256x128xbf16, #tpu.memory_space<vmem>>, vector<1x256x128xbf16>
    %186 = vector.shape_cast %185 : vector<1x256x128xbf16> to vector<256x128xbf16>
    %cst_51 = arith.constant dense<0.000000e+00> : vector<32x128xf32>
    %187 = tpu.matmul %184, %186, %cst_51 {dimension_numbers = #tpu.dot_dimension_numbers<[1], [0], [0], [1], [0, 0, 1, 1], [], []>} : vector<32x256xbf16>, vector<256x128xbf16>, vector<32x128xf32> -> vector<32x128xf32>
    %c0_52 = arith.constant 0 : index
    %c0_53 = arith.constant 0 : index
    %188 = vector.load %arg14[%c0_52, %c0_53] : memref<1x128xf32, #tpu.memory_space<vmem>>, vector<1x128xf32>
    %189 = vector.broadcast %188 : vector<1x128xf32> to vector<32x128xf32>
    %190 = arith.addf %187, %189 : vector<32x128xf32>
    %191 = arith.addf %151, %190 : vector<32x128xf32>
    %192 = vector.shape_cast %191 : vector<32x128xf32> to vector<2x16x128xf32>
    %c0_54 = arith.constant 0 : index
    %c0_55 = arith.constant 0 : index
    %c0_56 = arith.constant 0 : index
    %193 = vector.load %arg15[%c0_54, %c0_55, %c0_56] : memref<2x16x128xf32, #tpu.memory_space<vmem>>, vector<2x16x128xf32>
    tpu.vector_store %arg15[%c0_54, %c0_55, %c0_56], %192 {strides = array<i32>} : memref<2x16x128xf32, #tpu.memory_space<vmem>>, vector<2x16x128xf32>,
    return
  }
  func.func @transform_0(%arg0: i32) -> (i32, i32, i32) {
    %c0_i32 = arith.constant 0 : i32
    %c0_i32_0 = arith.constant 0 : i32
    %c0_i32_1 = arith.constant 0 : i32
    return %arg0, %c0_i32, %c0_i32_0 : i32, i32, i32
  }
  func.func @transform_1(%arg0: i32) -> (i32, i32, i32) {
    %c0_i32 = arith.constant 0 : i32
    %c0_i32_0 = arith.constant 0 : i32
    %c0_i32_1 = arith.constant 0 : i32
    %c0_i32_2 = arith.constant 0 : i32
    return %c0_i32, %c0_i32_0, %c0_i32_1 : i32, i32, i32
  }
  func.func @transform_2(%arg0: i32) -> (i32, i32) {
    %c0_i32 = arith.constant 0 : i32
    %c0_i32_0 = arith.constant 0 : i32
    %c0_i32_1 = arith.constant 0 : i32
    return %c0_i32, %c0_i32_0 : i32, i32
  }
  func.func @transform_3(%arg0: i32) -> (i32, i32) {
    %c0_i32 = arith.constant 0 : i32
    %c0_i32_0 = arith.constant 0 : i32
    %c0_i32_1 = arith.constant 0 : i32
    return %c0_i32, %c0_i32_0 : i32, i32
  }
  func.func @transform_4(%arg0: i32) -> (i32, i32) {
    %c0_i32 = arith.constant 0 : i32
    %c0_i32_0 = arith.constant 0 : i32
    %c0_i32_1 = arith.constant 0 : i32
    return %c0_i32, %c0_i32_0 : i32, i32
  }
  func.func @transform_5(%arg0: i32) -> (i32, i32) {
    %c0_i32 = arith.constant 0 : i32
    %c0_i32_0 = arith.constant 0 : i32
    %c0_i32_1 = arith.constant 0 : i32
    return %c0_i32, %c0_i32_0 : i32, i32
  }
  func.func @transform_6(%arg0: i32) -> (i32, i32) {
    %c0_i32 = arith.constant 0 : i32
    %c0_i32_0 = arith.constant 0 : i32
    %c0_i32_1 = arith.constant 0 : i32
    return %c0_i32, %c0_i32_0 : i32, i32
  }
  func.func @transform_7(%arg0: i32) -> (i32, i32) {
    %c0_i32 = arith.constant 0 : i32
    %c0_i32_0 = arith.constant 0 : i32
    %c0_i32_1 = arith.constant 0 : i32
    return %c0_i32, %c0_i32_0 : i32, i32
  }
  func.func @transform_8(%arg0: i32) -> (i32, i32) {
    %c0_i32 = arith.constant 0 : i32
    %c0_i32_0 = arith.constant 0 : i32
    %c0_i32_1 = arith.constant 0 : i32
    return %c0_i32, %c0_i32_0 : i32, i32
  }
  func.func @transform_9(%arg0: i32) -> (i32, i32) {
    %c0_i32 = arith.constant 0 : i32
    %c0_i32_0 = arith.constant 0 : i32
    %c0_i32_1 = arith.constant 0 : i32
    return %c0_i32, %c0_i32_0 : i32, i32
  }
  func.func @transform_10(%arg0: i32) -> (i32, i32, i32) {
    %c0_i32 = arith.constant 0 : i32
    %c0_i32_0 = arith.constant 0 : i32
    %c0_i32_1 = arith.constant 0 : i32
    %c0_i32_2 = arith.constant 0 : i32
    return %c0_i32, %c0_i32_0, %c0_i32_1 : i32, i32, i32
  }
  func.func @transform_11(%arg0: i32) -> (i32, i32, i32) {
    %c0_i32 = arith.constant 0 : i32
    %c0_i32_0 = arith.constant 0 : i32
    %c0_i32_1 = arith.constant 0 : i32
    %c0_i32_2 = arith.constant 0 : i32
    return %c0_i32, %c0_i32_0, %c0_i32_1 : i32, i32, i32
  }
  func.func @transform_12(%arg0: i32) -> (i32, i32, i32) {
    %c0_i32 = arith.constant 0 : i32
    %c0_i32_0 = arith.constant 0 : i32
    %c0_i32_1 = arith.constant 0 : i32
    %c0_i32_2 = arith.constant 0 : i32
    return %c0_i32, %c0_i32_0, %c0_i32_1 : i32, i32, i32
  }
  func.func @transform_13(%arg0: i32) -> (i32, i32) {
    %c0_i32 = arith.constant 0 : i32
    %c0_i32_0 = arith.constant 0 : i32
    %c0_i32_1 = arith.constant 0 : i32
    return %c0_i32, %c0_i32_0 : i32, i32
  }
  func.func @transform_14(%arg0: i32) -> (i32, i32, i32) {
    %c0_i32 = arith.constant 0 : i32
    %c0_i32_0 = arith.constant 0 : i32
    %c0_i32_1 = arith.constant 0 : i32
    return %arg0, %c0_i32, %c0_i32_0 : i32, i32, i32
  }
}

module attributes {stable_mosaic.version = 11 : i64} {
  func.func @encoder_layer_kernel(%arg0: i32, %arg1: memref<2x16x128xf32, #tpu.memory_space<vmem>>, %arg2: memref<1x16x128xf32, #tpu.memory_space<vmem>>, %arg3: memref<1x128xf32, #tpu.memory_space<vmem>>, %arg4: memref<1x128xf32, #tpu.memory_space<vmem>>, %arg5: memref<128x384xbf16, #tpu.memory_space<vmem>>, %arg6: memref<1x384xf32, #tpu.memory_space<vmem>>, %arg7: memref<128x128xbf16, #tpu.memory_space<vmem>>, %arg8: memref<1x128xf32, #tpu.memory_space<vmem>>, %arg9: memref<1x128xf32, #tpu.memory_space<vmem>>, %arg10: memref<1x128xf32, #tpu.memory_space<vmem>>, %arg11: memref<1x128x256xbf16, #tpu.memory_space<vmem>>, %arg12: memref<1x1x256xf32, #tpu.memory_space<vmem>>, %arg13: memref<1x256x128xbf16, #tpu.memory_space<vmem>>, %arg14: memref<1x128xf32, #tpu.memory_space<vmem>>, %arg15: memref<2x16x128xf32, #tpu.memory_space<vmem>>) attributes {dimension_semantics = [#tpu.dimension_semantics<parallel>], iteration_bounds = array<i64: 1>, scalar_prefetch = 0 : i64, scratch_operands = 0 : i64, tpu.core_type = #tpu.core_type<tc>, window_params = [{transform_indices = @transform_0, window_bounds = array<i64: 2, 16, 128>}, {pipeline_mode = #tpu.pipeline_mode<synchronous>, transform_indices = @transform_1, window_bounds = array<i64: 1, 16, 128>}, {pipeline_mode = #tpu.pipeline_mode<synchronous>, transform_indices = @transform_2, window_bounds = array<i64: 1, 128>}, {pipeline_mode = #tpu.pipeline_mode<synchronous>, transform_indices = @transform_3, window_bounds = array<i64: 1, 128>}, {pipeline_mode = #tpu.pipeline_mode<synchronous>, transform_indices = @transform_4, window_bounds = array<i64: 128, 384>}, {pipeline_mode = #tpu.pipeline_mode<synchronous>, transform_indices = @transform_5, window_bounds = array<i64: 1, 384>}, {pipeline_mode = #tpu.pipeline_mode<synchronous>, transform_indices = @transform_6, window_bounds = array<i64: 128, 128>}, {pipeline_mode = #tpu.pipeline_mode<synchronous>, transform_indices = @transform_7, window_bounds = array<i64: 1, 128>}, {pipeline_mode = #tpu.pipeline_mode<synchronous>, transform_indices = @transform_8, window_bounds = array<i64: 1, 128>}, {pipeline_mode = #tpu.pipeline_mode<synchronous>, transform_indices = @transform_9, window_bounds = array<i64: 1, 128>}, {pipeline_mode = #tpu.pipeline_mode<synchronous>, transform_indices = @transform_10, window_bounds = array<i64: 1, 128, 256>}, {pipeline_mode = #tpu.pipeline_mode<synchronous>, transform_indices = @transform_11, window_bounds = array<i64: 1, 1, 256>}, {pipeline_mode = #tpu.pipeline_mode<synchronous>, transform_indices = @transform_12, window_bounds = array<i64: 1, 256, 128>}, {pipeline_mode = #tpu.pipeline_mode<synchronous>, transform_indices = @transform_13, window_bounds = array<i64: 1, 128>}, {transform_indices = @transform_14, window_bounds = array<i64: 2, 16, 128>}]} {
    %c0 = arith.constant 0 : index
    %c0_0 = arith.constant 0 : index
    %c0_1 = arith.constant 0 : index
    %0 = vector.load %arg1[%c0, %c0_0, %c0_1] : memref<2x16x128xf32, #tpu.memory_space<vmem>>, vector<2x16x128xf32>
    %c0_2 = arith.constant 0 : index
    %c0_3 = arith.constant 0 : index
    %c0_4 = arith.constant 0 : index
    %1 = vector.load %arg2[%c0_2, %c0_3, %c0_4] : memref<1x16x128xf32, #tpu.memory_space<vmem>>, vector<1x16x128xf32>
    %2 = vector.broadcast %1 : vector<1x16x128xf32> to vector<2x16x128xf32>
    %3 = arith.addf %0, %2 : vector<2x16x128xf32>
    %4 = vector.shape_cast %3 : vector<2x16x128xf32> to vector<32x128xf32>
    %c0_5 = arith.constant 0 : index
    %c0_6 = arith.constant 0 : index
    %5 = vector.load %arg3[%c0_5, %c0_6] : memref<1x128xf32, #tpu.memory_space<vmem>>, vector<1x128xf32>
    %c0_7 = arith.constant 0 : index
    %c0_8 = arith.constant 0 : index
    %6 = vector.load %arg4[%c0_7, %c0_8] : memref<1x128xf32, #tpu.memory_space<vmem>>, vector<1x128xf32>
    %cst = arith.constant dense<0.000000e+00> : vector<32xf32>
    %7 = vector.multi_reduction <add>, %4, %cst [1] : vector<32x128xf32> to vector<32xf32>
    %8 = vector.shape_cast %7 : vector<32xf32> to vector<32x1xf32>
    %cst_9 = arith.constant 1.280000e+02 : f32
    %9 = vector.broadcast %cst_9 : f32 to vector<32x1xf32>
    %10 = arith.divf %8, %9 : vector<32x1xf32>
    %11 = vector.broadcast %10 : vector<32x1xf32> to vector<32x128xf32>
    %12 = arith.subf %4, %11 : vector<32x128xf32>
    %13 = arith.mulf %12, %12 : vector<32x128xf32>
    %cst_10 = arith.constant dense<0.000000e+00> : vector<32xf32>
    %14 = vector.multi_reduction <add>, %13, %cst_10 [1] : vector<32x128xf32> to vector<32xf32>
    %15 = vector.shape_cast %14 : vector<32xf32> to vector<32x1xf32>
    %cst_11 = arith.constant 1.280000e+02 : f32
    %16 = vector.broadcast %cst_11 : f32 to vector<32x1xf32>
    %17 = arith.divf %15, %16 : vector<32x1xf32>
    %cst_12 = arith.constant 9.99999974E-6 : f32
    %18 = vector.broadcast %cst_12 : f32 to vector<32x1xf32>
    %19 = arith.addf %17, %18 : vector<32x1xf32>
    %20 = math.rsqrt %19 : vector<32x1xf32>
    %21 = vector.broadcast %20 : vector<32x1xf32> to vector<32x128xf32>
    %22 = arith.mulf %12, %21 : vector<32x128xf32>
    %23 = vector.broadcast %5 : vector<1x128xf32> to vector<32x128xf32>
    %24 = arith.mulf %22, %23 : vector<32x128xf32>
    %25 = vector.broadcast %6 : vector<1x128xf32> to vector<32x128xf32>
    %26 = arith.addf %24, %25 : vector<32x128xf32>
    %27 = arith.truncf %26 : vector<32x128xf32> to vector<32x128xbf16>
    %c0_13 = arith.constant 0 : index
    %c0_14 = arith.constant 0 : index
    %28 = vector.load %arg5[%c0_13, %c0_14] : memref<128x384xbf16, #tpu.memory_space<vmem>>, vector<128x384xbf16>
    %cst_15 = arith.constant dense<0.000000e+00> : vector<32x384xf32>
    %29 = tpu.matmul %27, %28, %cst_15 {dimension_numbers = #tpu.dot_dimension_numbers<[1], [0], [0], [1], [0, 0, 1, 1], [], []>} : vector<32x128xbf16>, vector<128x384xbf16>, vector<32x384xf32> -> vector<32x384xf32>
    %c0_16 = arith.constant 0 : index
    %c0_17 = arith.constant 0 : index
    %30 = vector.load %arg6[%c0_16, %c0_17] : memref<1x384xf32, #tpu.memory_space<vmem>>, vector<1x384xf32>
    %31 = vector.broadcast %30 : vector<1x384xf32> to vector<32x384xf32>
    %32 = arith.addf %29, %31 : vector<32x384xf32>
    %33 = vector.extract_strided_slice %32 {offsets = [0, 0], sizes = [32, 128], strides = [1, 1]} : vector<32x384xf32> to vector<32x128xf32>
    %34 = arith.truncf %33 : vector<32x128xf32> to vector<32x128xbf16>
    %35 = vector.extract_strided_slice %32 {offsets = [0, 128], sizes = [32, 128], strides = [1, 1]} : vector<32x384xf32> to vector<32x128xf32>
    %36 = arith.truncf %35 : vector<32x128xf32> to vector<32x128xbf16>
    %37 = vector.extract_strided_slice %32 {offsets = [0, 256], sizes = [32, 128], strides = [1, 1]} : vector<32x384xf32> to vector<32x128xf32>
    %38 = arith.truncf %37 : vector<32x128xf32> to vector<32x128xbf16>
    %39 = vector.extract_strided_slice %34 {offsets = [0, 0], sizes = [16, 128], strides = [1, 1]} : vector<32x128xbf16> to vector<16x128xbf16>
    %40 = vector.extract_strided_slice %39 {offsets = [0, 0], sizes = [16, 32], strides = [1, 1]} : vector<16x128xbf16> to vector<16x32xbf16>
    %41 = vector.extract_strided_slice %39 {offsets = [0, 32], sizes = [16, 32], strides = [1, 1]} : vector<16x128xbf16> to vector<16x32xbf16>
    %42 = vector.extract_strided_slice %39 {offsets = [0, 64], sizes = [16, 32], strides = [1, 1]} : vector<16x128xbf16> to vector<16x32xbf16>
    %43 = vector.extract_strided_slice %39 {offsets = [0, 96], sizes = [16, 32], strides = [1, 1]} : vector<16x128xbf16> to vector<16x32xbf16>
    %44 = vector.shape_cast %40 : vector<16x32xbf16> to vector<1x16x32xbf16>
    %45 = vector.shape_cast %41 : vector<16x32xbf16> to vector<1x16x32xbf16>
    %46 = vector.shape_cast %42 : vector<16x32xbf16> to vector<1x16x32xbf16>
    %47 = vector.shape_cast %43 : vector<16x32xbf16> to vector<1x16x32xbf16>
    %48 = tpu.concatenate %44, %45, %46, %47 in 0 : vector<1x16x32xbf16>, vector<1x16x32xbf16>, vector<1x16x32xbf16>, vector<1x16x32xbf16> -> vector<4x16x32xbf16>
    %49 = vector.extract_strided_slice %36 {offsets = [0, 0], sizes = [16, 128], strides = [1, 1]} : vector<32x128xbf16> to vector<16x128xbf16>
    %50 = vector.extract_strided_slice %49 {offsets = [0, 0], sizes = [16, 32], strides = [1, 1]} : vector<16x128xbf16> to vector<16x32xbf16>
    %51 = vector.extract_strided_slice %49 {offsets = [0, 32], sizes = [16, 32], strides = [1, 1]} : vector<16x128xbf16> to vector<16x32xbf16>
    %52 = vector.extract_strided_slice %49 {offsets = [0, 64], sizes = [16, 32], strides = [1, 1]} : vector<16x128xbf16> to vector<16x32xbf16>
    %53 = vector.extract_strided_slice %49 {offsets = [0, 96], sizes = [16, 32], strides = [1, 1]} : vector<16x128xbf16> to vector<16x32xbf16>
    %54 = vector.shape_cast %50 : vector<16x32xbf16> to vector<1x16x32xbf16>
    %55 = vector.shape_cast %51 : vector<16x32xbf16> to vector<1x16x32xbf16>
    %56 = vector.shape_cast %52 : vector<16x32xbf16> to vector<1x16x32xbf16>
    %57 = vector.shape_cast %53 : vector<16x32xbf16> to vector<1x16x32xbf16>
    %58 = tpu.concatenate %54, %55, %56, %57 in 0 : vector<1x16x32xbf16>, vector<1x16x32xbf16>, vector<1x16x32xbf16>, vector<1x16x32xbf16> -> vector<4x16x32xbf16>
    %59 = vector.extract_strided_slice %38 {offsets = [0, 0], sizes = [16, 128], strides = [1, 1]} : vector<32x128xbf16> to vector<16x128xbf16>
    %60 = vector.extract_strided_slice %59 {offsets = [0, 0], sizes = [16, 32], strides = [1, 1]} : vector<16x128xbf16> to vector<16x32xbf16>
    %61 = vector.extract_strided_slice %59 {offsets = [0, 32], sizes = [16, 32], strides = [1, 1]} : vector<16x128xbf16> to vector<16x32xbf16>
    %62 = vector.extract_strided_slice %59 {offsets = [0, 64], sizes = [16, 32], strides = [1, 1]} : vector<16x128xbf16> to vector<16x32xbf16>
    %63 = vector.extract_strided_slice %59 {offsets = [0, 96], sizes = [16, 32], strides = [1, 1]} : vector<16x128xbf16> to vector<16x32xbf16>
    %64 = vector.shape_cast %60 : vector<16x32xbf16> to vector<1x16x32xbf16>
    %65 = vector.shape_cast %61 : vector<16x32xbf16> to vector<1x16x32xbf16>
    %66 = vector.shape_cast %62 : vector<16x32xbf16> to vector<1x16x32xbf16>
    %67 = vector.shape_cast %63 : vector<16x32xbf16> to vector<1x16x32xbf16>
    %68 = tpu.concatenate %64, %65, %66, %67 in 0 : vector<1x16x32xbf16>, vector<1x16x32xbf16>, vector<1x16x32xbf16>, vector<1x16x32xbf16> -> vector<4x16x32xbf16>
    "tpu.trace_start"() <{level = 10 : i32, message = "htd,hsd->hts"}> : () -> ()
    %cst_18 = arith.constant dense<0.000000e+00> : vector<4x16x16xf32>
    %69 = tpu.matmul %48, %58, %cst_18 {dimension_numbers = #tpu.dot_dimension_numbers<[2], [2], [1], [1], [0, 0, 0, 1, 1, 1], [0], [0]>} : vector<4x16x32xbf16>, vector<4x16x32xbf16>, vector<4x16x16xf32> -> vector<4x16x16xf32>
    "tpu.trace_stop"() : () -> ()
    %cst_19 = arith.constant dense<0xFF800000> : vector<4x16xf32>
    %70 = vector.multi_reduction <maximumf>, %69, %cst_19 [2] : vector<4x16x16xf32> to vector<4x16xf32>
    %71 = vector.shape_cast %70 : vector<4x16xf32> to vector<4x16x1xf32>
    %72 = vector.broadcast %71 : vector<4x16x1xf32> to vector<4x16x16xf32>
    %73 = arith.subf %69, %72 : vector<4x16x16xf32>
    %74 = math.exp %73 : vector<4x16x16xf32>
    %cst_20 = arith.constant dense<0.000000e+00> : vector<4x16xf32>
    %75 = vector.multi_reduction <add>, %74, %cst_20 [2] : vector<4x16x16xf32> to vector<4x16xf32>
    %76 = vector.shape_cast %75 : vector<4x16xf32> to vector<4x16x1xf32>
    %77 = tpu.reciprocal %76 {approx = true} : vector<4x16x1xf32> -> vector<4x16x1xf32>
    %78 = vector.broadcast %77 : vector<4x16x1xf32> to vector<4x16x16xf32>
    %79 = arith.mulf %74, %78 : vector<4x16x16xf32>
    %80 = arith.truncf %79 : vector<4x16x16xf32> to vector<4x16x16xbf16>
    "tpu.trace_start"() <{level = 10 : i32, message = "hts,hsd->htd"}> : () -> ()
    %cst_21 = arith.constant dense<0.000000e+00> : vector<4x16x32xf32>
    %81 = tpu.matmul %80, %68, %cst_21 {dimension_numbers = #tpu.dot_dimension_numbers<[2], [1], [1], [2], [0, 0, 0, 1, 1, 2], [0], [0]>} : vector<4x16x16xbf16>, vector<4x16x32xbf16>, vector<4x16x32xf32> -> vector<4x16x32xf32>
    "tpu.trace_stop"() : () -> ()
    %82 = arith.truncf %81 : vector<4x16x32xf32> to vector<4x16x32xbf16>
    %83 = vector.extract_strided_slice %82 {offsets = [0, 0, 0], sizes = [1, 16, 32], strides = [1, 1, 1]} : vector<4x16x32xbf16> to vector<1x16x32xbf16>
    %84 = vector.shape_cast %83 : vector<1x16x32xbf16> to vector<16x32xbf16>
    %85 = vector.extract_strided_slice %82 {offsets = [1, 0, 0], sizes = [1, 16, 32], strides = [1, 1, 1]} : vector<4x16x32xbf16> to vector<1x16x32xbf16>
    %86 = vector.shape_cast %85 : vector<1x16x32xbf16> to vector<16x32xbf16>
    %87 = vector.extract_strided_slice %82 {offsets = [2, 0, 0], sizes = [1, 16, 32], strides = [1, 1, 1]} : vector<4x16x32xbf16> to vector<1x16x32xbf16>
    %88 = vector.shape_cast %87 : vector<1x16x32xbf16> to vector<16x32xbf16>
    %89 = vector.extract_strided_slice %82 {offsets = [3, 0, 0], sizes = [1, 16, 32], strides = [1, 1, 1]} : vector<4x16x32xbf16> to vector<1x16x32xbf16>
    %90 = vector.shape_cast %89 : vector<1x16x32xbf16> to vector<16x32xbf16>
    %91 = tpu.concatenate %84, %86, %88, %90 in 1 : vector<16x32xbf16>, vector<16x32xbf16>, vector<16x32xbf16>, vector<16x32xbf16> -> vector<16x128xbf16>
    %92 = vector.extract_strided_slice %34 {offsets = [16, 0], sizes = [16, 128], strides = [1, 1]} : vector<32x128xbf16> to vector<16x128xbf16>
    %93 = vector.extract_strided_slice %92 {offsets = [0, 0], sizes = [16, 32], strides = [1, 1]} : vector<16x128xbf16> to vector<16x32xbf16>
    %94 = vector.extract_strided_slice %92 {offsets = [0, 32], sizes = [16, 32], strides = [1, 1]} : vector<16x128xbf16> to vector<16x32xbf16>
    %95 = vector.extract_strided_slice %92 {offsets = [0, 64], sizes = [16, 32], strides = [1, 1]} : vector<16x128xbf16> to vector<16x32xbf16>
    %96 = vector.extract_strided_slice %92 {offsets = [0, 96], sizes = [16, 32], strides = [1, 1]} : vector<16x128xbf16> to vector<16x32xbf16>
    %97 = vector.shape_cast %93 : vector<16x32xbf16> to vector<1x16x32xbf16>
    %98 = vector.shape_cast %94 : vector<16x32xbf16> to vector<1x16x32xbf16>
    %99 = vector.shape_cast %95 : vector<16x32xbf16> to vector<1x16x32xbf16>
    %100 = vector.shape_cast %96 : vector<16x32xbf16> to vector<1x16x32xbf16>
    %101 = tpu.concatenate %97, %98, %99, %100 in 0 : vector<1x16x32xbf16>, vector<1x16x32xbf16>, vector<1x16x32xbf16>, vector<1x16x32xbf16> -> vector<4x16x32xbf16>
    %102 = vector.extract_strided_slice %36 {offsets = [16, 0], sizes = [16, 128], strides = [1, 1]} : vector<32x128xbf16> to vector<16x128xbf16>
    %103 = vector.extract_strided_slice %102 {offsets = [0, 0], sizes = [16, 32], strides = [1, 1]} : vector<16x128xbf16> to vector<16x32xbf16>
    %104 = vector.extract_strided_slice %102 {offsets = [0, 32], sizes = [16, 32], strides = [1, 1]} : vector<16x128xbf16> to vector<16x32xbf16>
    %105 = vector.extract_strided_slice %102 {offsets = [0, 64], sizes = [16, 32], strides = [1, 1]} : vector<16x128xbf16> to vector<16x32xbf16>
    %106 = vector.extract_strided_slice %102 {offsets = [0, 96], sizes = [16, 32], strides = [1, 1]} : vector<16x128xbf16> to vector<16x32xbf16>
    %107 = vector.shape_cast %103 : vector<16x32xbf16> to vector<1x16x32xbf16>
    %108 = vector.shape_cast %104 : vector<16x32xbf16> to vector<1x16x32xbf16>
    %109 = vector.shape_cast %105 : vector<16x32xbf16> to vector<1x16x32xbf16>
    %110 = vector.shape_cast %106 : vector<16x32xbf16> to vector<1x16x32xbf16>
    %111 = tpu.concatenate %107, %108, %109, %110 in 0 : vector<1x16x32xbf16>, vector<1x16x32xbf16>, vector<1x16x32xbf16>, vector<1x16x32xbf16> -> vector<4x16x32xbf16>
    %112 = vector.extract_strided_slice %38 {offsets = [16, 0], sizes = [16, 128], strides = [1, 1]} : vector<32x128xbf16> to vector<16x128xbf16>
    %113 = vector.extract_strided_slice %112 {offsets = [0, 0], sizes = [16, 32], strides = [1, 1]} : vector<16x128xbf16> to vector<16x32xbf16>
    %114 = vector.extract_strided_slice %112 {offsets = [0, 32], sizes = [16, 32], strides = [1, 1]} : vector<16x128xbf16> to vector<16x32xbf16>
    %115 = vector.extract_strided_slice %112 {offsets = [0, 64], sizes = [16, 32], strides = [1, 1]} : vector<16x128xbf16> to vector<16x32xbf16>
    %116 = vector.extract_strided_slice %112 {offsets = [0, 96], sizes = [16, 32], strides = [1, 1]} : vector<16x128xbf16> to vector<16x32xbf16>
    %117 = vector.shape_cast %113 : vector<16x32xbf16> to vector<1x16x32xbf16>
    %118 = vector.shape_cast %114 : vector<16x32xbf16> to vector<1x16x32xbf16>
    %119 = vector.shape_cast %115 : vector<16x32xbf16> to vector<1x16x32xbf16>
    %120 = vector.shape_cast %116 : vector<16x32xbf16> to vector<1x16x32xbf16>
    %121 = tpu.concatenate %117, %118, %119, %120 in 0 : vector<1x16x32xbf16>, vector<1x16x32xbf16>, vector<1x16x32xbf16>, vector<1x16x32xbf16> -> vector<4x16x32xbf16>
    "tpu.trace_start"() <{level = 10 : i32, message = "htd,hsd->hts"}> : () -> ()
    %cst_22 = arith.constant dense<0.000000e+00> : vector<4x16x16xf32>
    %122 = tpu.matmul %101, %111, %cst_22 {dimension_numbers = #tpu.dot_dimension_numbers<[2], [2], [1], [1], [0, 0, 0, 1, 1, 1], [0], [0]>} : vector<4x16x32xbf16>, vector<4x16x32xbf16>, vector<4x16x16xf32> -> vector<4x16x16xf32>
    "tpu.trace_stop"() : () -> ()
    %cst_23 = arith.constant dense<0xFF800000> : vector<4x16xf32>
    %123 = vector.multi_reduction <maximumf>, %122, %cst_23 [2] : vector<4x16x16xf32> to vector<4x16xf32>
    %124 = vector.shape_cast %123 : vector<4x16xf32> to vector<4x16x1xf32>
    %125 = vector.broadcast %124 : vector<4x16x1xf32> to vector<4x16x16xf32>
    %126 = arith.subf %122, %125 : vector<4x16x16xf32>
    %127 = math.exp %126 : vector<4x16x16xf32>
    %cst_24 = arith.constant dense<0.000000e+00> : vector<4x16xf32>
    %128 = vector.multi_reduction <add>, %127, %cst_24 [2] : vector<4x16x16xf32> to vector<4x16xf32>
    %129 = vector.shape_cast %128 : vector<4x16xf32> to vector<4x16x1xf32>
    %130 = tpu.reciprocal %129 {approx = true} : vector<4x16x1xf32> -> vector<4x16x1xf32>
    %131 = vector.broadcast %130 : vector<4x16x1xf32> to vector<4x16x16xf32>
    %132 = arith.mulf %127, %131 : vector<4x16x16xf32>
    %133 = arith.truncf %132 : vector<4x16x16xf32> to vector<4x16x16xbf16>
    "tpu.trace_start"() <{level = 10 : i32, message = "hts,hsd->htd"}> : () -> ()
    %cst_25 = arith.constant dense<0.000000e+00> : vector<4x16x32xf32>
    %134 = tpu.matmul %133, %121, %cst_25 {dimension_numbers = #tpu.dot_dimension_numbers<[2], [1], [1], [2], [0, 0, 0, 1, 1, 2], [0], [0]>} : vector<4x16x16xbf16>, vector<4x16x32xbf16>, vector<4x16x32xf32> -> vector<4x16x32xf32>
    "tpu.trace_stop"() : () -> ()
    %135 = arith.truncf %134 : vector<4x16x32xf32> to vector<4x16x32xbf16>
    %136 = vector.extract_strided_slice %135 {offsets = [0, 0, 0], sizes = [1, 16, 32], strides = [1, 1, 1]} : vector<4x16x32xbf16> to vector<1x16x32xbf16>
    %137 = vector.shape_cast %136 : vector<1x16x32xbf16> to vector<16x32xbf16>
    %138 = vector.extract_strided_slice %135 {offsets = [1, 0, 0], sizes = [1, 16, 32], strides = [1, 1, 1]} : vector<4x16x32xbf16> to vector<1x16x32xbf16>
    %139 = vector.shape_cast %138 : vector<1x16x32xbf16> to vector<16x32xbf16>
    %140 = vector.extract_strided_slice %135 {offsets = [2, 0, 0], sizes = [1, 16, 32], strides = [1, 1, 1]} : vector<4x16x32xbf16> to vector<1x16x32xbf16>
    %141 = vector.shape_cast %140 : vector<1x16x32xbf16> to vector<16x32xbf16>
    %142 = vector.extract_strided_slice %135 {offsets = [3, 0, 0], sizes = [1, 16, 32], strides = [1, 1, 1]} : vector<4x16x32xbf16> to vector<1x16x32xbf16>
    %143 = vector.shape_cast %142 : vector<1x16x32xbf16> to vector<16x32xbf16>
    %144 = tpu.concatenate %137, %139, %141, %143 in 1 : vector<16x32xbf16>, vector<16x32xbf16>, vector<16x32xbf16>, vector<16x32xbf16> -> vector<16x128xbf16>
    %145 = tpu.concatenate %91, %144 in 0 : vector<16x128xbf16>, vector<16x128xbf16> -> vector<32x128xbf16>
    %c0_26 = arith.constant 0 : index
    %c0_27 = arith.constant 0 : index
    %146 = vector.load %arg7[%c0_26, %c0_27] : memref<128x128xbf16, #tpu.memory_space<vmem>>, vector<128x128xbf16>
    %cst_28 = arith.constant dense<0.000000e+00> : vector<32x128xf32>
    %147 = tpu.matmul %145, %146, %cst_28 {dimension_numbers = #tpu.dot_dimension_numbers<[1], [0], [0], [1], [0, 0, 1, 1], [], []>} : vector<32x128xbf16>, vector<128x128xbf16>, vector<32x128xf32> -> vector<32x128xf32>
    %c0_29 = arith.constant 0 : index
    %c0_30 = arith.constant 0 : index
    %148 = vector.load %arg8[%c0_29, %c0_30] : memref<1x128xf32, #tpu.memory_space<vmem>>, vector<1x128xf32>
    %149 = vector.broadcast %148 : vector<1x128xf32> to vector<32x128xf32>
    %150 = arith.addf %147, %149 : vector<32x128xf32>
    %151 = arith.addf %4, %150 : vector<32x128xf32>
    %c0_31 = arith.constant 0 : index
    %c0_32 = arith.constant 0 : index
    %152 = vector.load %arg9[%c0_31, %c0_32] : memref<1x128xf32, #tpu.memory_space<vmem>>, vector<1x128xf32>
    %c0_33 = arith.constant 0 : index
    %c0_34 = arith.constant 0 : index
    %153 = vector.load %arg10[%c0_33, %c0_34] : memref<1x128xf32, #tpu.memory_space<vmem>>, vector<1x128xf32>
    %cst_35 = arith.constant dense<0.000000e+00> : vector<32xf32>
    %154 = vector.multi_reduction <add>, %151, %cst_35 [1] : vector<32x128xf32> to vector<32xf32>
    %155 = vector.shape_cast %154 : vector<32xf32> to vector<32x1xf32>
    %cst_36 = arith.constant 1.280000e+02 : f32
    %156 = vector.broadcast %cst_36 : f32 to vector<32x1xf32>
    %157 = arith.divf %155, %156 : vector<32x1xf32>
    %158 = vector.broadcast %157 : vector<32x1xf32> to vector<32x128xf32>
    %159 = arith.subf %151, %158 : vector<32x128xf32>
    %160 = arith.mulf %159, %159 : vector<32x128xf32>
    %cst_37 = arith.constant dense<0.000000e+00> : vector<32xf32>
    %161 = vector.multi_reduction <add>, %160, %cst_37 [1] : vector<32x128xf32> to vector<32xf32>
    %162 = vector.shape_cast %161 : vector<32xf32> to vector<32x1xf32>
    %cst_38 = arith.constant 1.280000e+02 : f32
    %163 = vector.broadcast %cst_38 : f32 to vector<32x1xf32>
    %164 = arith.divf %162, %163 : vector<32x1xf32>
    %cst_39 = arith.constant 9.99999974E-6 : f32
    %165 = vector.broadcast %cst_39 : f32 to vector<32x1xf32>
    %166 = arith.addf %164, %165 : vector<32x1xf32>
    %167 = math.rsqrt %166 : vector<32x1xf32>
    %168 = vector.broadcast %167 : vector<32x1xf32> to vector<32x128xf32>
    %169 = arith.mulf %159, %168 : vector<32x128xf32>
    %170 = vector.broadcast %152 : vector<1x128xf32> to vector<32x128xf32>
    %171 = arith.mulf %169, %170 : vector<32x128xf32>
    %172 = vector.broadcast %153 : vector<1x128xf32> to vector<32x128xf32>
    %173 = arith.addf %171, %172 : vector<32x128xf32>
    %174 = arith.truncf %173 : vector<32x128xf32> to vector<32x128xbf16>
    %c0_40 = arith.constant 0 : index
    %c0_41 = arith.constant 0 : index
    %c0_42 = arith.constant 0 : index
    %175 = vector.load %arg11[%c0_40, %c0_41, %c0_42] : memref<1x128x256xbf16, #tpu.memory_space<vmem>>, vector<1x128x256xbf16>
    %176 = vector.shape_cast %175 : vector<1x128x256xbf16> to vector<128x256xbf16>
    %cst_43 = arith.constant dense<0.000000e+00> : vector<32x256xf32>
    %177 = tpu.matmul %174, %176, %cst_43 {dimension_numbers = #tpu.dot_dimension_numbers<[1], [0], [0], [1], [0, 0, 1, 1], [], []>} : vector<32x128xbf16>, vector<128x256xbf16>, vector<32x256xf32> -> vector<32x256xf32>
    %c0_44 = arith.constant 0 : index
    %c0_45 = arith.constant 0 : index
    %c0_46 = arith.constant 0 : index
    %178 = vector.load %arg12[%c0_44, %c0_45, %c0_46] : memref<1x1x256xf32, #tpu.memory_space<vmem>>, vector<1x1x256xf32>
    %179 = vector.shape_cast %178 : vector<1x1x256xf32> to vector<1x256xf32>
    %180 = vector.broadcast %179 : vector<1x256xf32> to vector<32x256xf32>
    %181 = arith.addf %177, %180 : vector<32x256xf32>
    %cst_47 = arith.constant 0.000000e+00 : f32
    %182 = vector.broadcast %cst_47 : f32 to vector<32x256xf32>
    %183 = arith.maximumf %181, %182 : vector<32x256xf32>
    %184 = arith.truncf %183 : vector<32x256xf32> to vector<32x256xbf16>
    %c0_48 = arith.constant 0 : index
    %c0_49 = arith.constant 0 : index
    %c0_50 = arith.constant 0 : index
    %185 = vector.load %arg13[%c0_48, %c0_49, %c0_50] : memref<1x256x128xbf16, #tpu.memory_space<vmem>>, vector<1x256x128xbf16>
    %186 = vector.shape_cast %185 : vector<1x256x128xbf16> to vector<256x128xbf16>
    %cst_51 = arith.constant dense<0.000000e+00> : vector<32x128xf32>
    %187 = tpu.matmul %184, %186, %cst_51 {dimension_numbers = #tpu.dot_dimension_numbers<[1], [0], [0], [1], [0, 0, 1, 1], [], []>} : vector<32x256xbf16>, vector<256x128xbf16>, vector<32x128xf32> -> vector<32x128xf32>
    %c0_52 = arith.constant 0 : index
    %c0_53 = arith.constant 0 : index
    %188 = vector.load %arg14[%c0_52, %c0_53] : memref<1x128xf32, #tpu.memory_space<vmem>>, vector<1x128xf32>
    %189 = vector.broadcast %188 : vector<1x128xf32> to vector<32x128xf32>
    %190 = arith.addf %187, %189 : vector<32x128xf32>
    %191 = arith.addf %151, %190 : vector<32x128xf32>
    %192 = vector.shape_cast %191 : vector<32x128xf32> to vector<2x16x128xf32>
    %c0_54 = arith.constant 0 : index
    %c0_55 = arith.constant 0 : index
    %c0_56 = arith.constant 0 : index
    %193 = vector.load %arg15[%c0_54, %c0_55, %c0_56] : memref<2x16x128xf32, #tpu.memory_space<vmem>>, vector<2x16x128xf32>
    tpu.vector_store %arg15[%c0_54, %c0_55, %c0_56], %192 {strides = array<i32>} : memref<2x16x128xf32, #tpu.memory_space<vmem>>, vector<2x16x128xf32>,
    return
  }
  func.func @transform_0(%arg0: i32) -> (i32, i32, i32) {
    %c0_i32 = arith.constant 0 : i32
    %c0_i32_0 = arith.constant 0 : i32
    %c0_i32_1 = arith.constant 0 : i32
    return %arg0, %c0_i32, %c0_i32_0 : i32, i32, i32
  }
  func.func @transform_1(%arg0: i32) -> (i32, i32, i32) {
    %c0_i32 = arith.constant 0 : i32
    %c0_i32_0 = arith.constant 0 : i32
    %c0_i32_1 = arith.constant 0 : i32
    %c0_i32_2 = arith.constant 0 : i32
    return %c0_i32, %c0_i32_0, %c0_i32_1 : i32, i32, i32
  }
  func.func @transform_2(%arg0: i32) -> (i32, i32) {
    %c0_i32 = arith.constant 0 : i32
    %c0_i32_0 = arith.constant 0 : i32
    %c0_i32_1 = arith.constant 0 : i32
    return %c0_i32, %c0_i32_0 : i32, i32
  }
  func.func @transform_3(%arg0: i32) -> (i32, i32) {
    %c0_i32 = arith.constant 0 : i32
    %c0_i32_0 = arith.constant 0 : i32
    %c0_i32_1 = arith.constant 0 : i32
    return %c0_i32, %c0_i32_0 : i32, i32
  }
  func.func @transform_4(%arg0: i32) -> (i32, i32) {
    %c0_i32 = arith.constant 0 : i32
    %c0_i32_0 = arith.constant 0 : i32
    %c0_i32_1 = arith.constant 0 : i32
    return %c0_i32, %c0_i32_0 : i32, i32
  }
  func.func @transform_5(%arg0: i32) -> (i32, i32) {
    %c0_i32 = arith.constant 0 : i32
    %c0_i32_0 = arith.constant 0 : i32
    %c0_i32_1 = arith.constant 0 : i32
    return %c0_i32, %c0_i32_0 : i32, i32
  }
  func.func @transform_6(%arg0: i32) -> (i32, i32) {
    %c0_i32 = arith.constant 0 : i32
    %c0_i32_0 = arith.constant 0 : i32
    %c0_i32_1 = arith.constant 0 : i32
    return %c0_i32, %c0_i32_0 : i32, i32
  }
  func.func @transform_7(%arg0: i32) -> (i32, i32) {
    %c0_i32 = arith.constant 0 : i32
    %c0_i32_0 = arith.constant 0 : i32
    %c0_i32_1 = arith.constant 0 : i32
    return %c0_i32, %c0_i32_0 : i32, i32
  }
  func.func @transform_8(%arg0: i32) -> (i32, i32) {
    %c0_i32 = arith.constant 0 : i32
    %c0_i32_0 = arith.constant 0 : i32
    %c0_i32_1 = arith.constant 0 : i32
    return %c0_i32, %c0_i32_0 : i32, i32
  }
  func.func @transform_9(%arg0: i32) -> (i32, i32) {
    %c0_i32 = arith.constant 0 : i32
    %c0_i32_0 = arith.constant 0 : i32
    %c0_i32_1 = arith.constant 0 : i32
    return %c0_i32, %c0_i32_0 : i32, i32
  }
  func.func @transform_10(%arg0: i32) -> (i32, i32, i32) {
    %c0_i32 = arith.constant 0 : i32
    %c0_i32_0 = arith.constant 0 : i32
    %c0_i32_1 = arith.constant 0 : i32
    %c0_i32_2 = arith.constant 0 : i32
    return %c0_i32, %c0_i32_0, %c0_i32_1 : i32, i32, i32
  }
  func.func @transform_11(%arg0: i32) -> (i32, i32, i32) {
    %c0_i32 = arith.constant 0 : i32
    %c0_i32_0 = arith.constant 0 : i32
    %c0_i32_1 = arith.constant 0 : i32
    %c0_i32_2 = arith.constant 0 : i32
    return %c0_i32, %c0_i32_0, %c0_i32_1 : i32, i32, i32
  }
  func.func @transform_12(%arg0: i32) -> (i32, i32, i32) {
    %c0_i32 = arith.constant 0 : i32
    %c0_i32_0 = arith.constant 0 : i32
    %c0_i32_1 = arith.constant 0 : i32
    %c0_i32_2 = arith.constant 0 : i32
    return %c0_i32, %c0_i32_0, %c0_i32_1 : i32, i32, i32
  }
  func.func @transform_13(%arg0: i32) -> (i32, i32) {
    %c0_i32 = arith.constant 0 : i32
    %c0_i32_0 = arith.constant 0 : i32
    %c0_i32_1 = arith.constant 0 : i32
    return %c0_i32, %c0_i32_0 : i32, i32
  }
  func.func @transform_14(%arg0: i32) -> (i32, i32, i32) {
    %c0_i32 = arith.constant 0 : i32
    %c0_i32_0 = arith.constant 0 : i32
    %c0_i32_1 = arith.constant 0 : i32
    return %arg0, %c0_i32, %c0_i32_0 : i32, i32, i32
  }
}

</mosaic_0001>

<bundles_post_ra>
// kernel: tpu_custom_call.1
= control target key start
LH: loop header
LB: loop body
LE: loop exit
PB: predicated region body
PF: predicated region fallthrough
CT: control target
= control target key end

     0   :  { %19 = vsyncpa [#allocation3], 0  ;;  %s5765_s0 = inlined_call_operand.hbm [shape: f32[2,16,128], index: 0, kind: input, shape index: {}]   ;;  %s5766_s1 = inlined_call_operand.hbm [shape: f32[1,16,128], index: 1, kind: input, shape index: {}]   ;;  %s5767_s2 = inlined_call_operand.hbm [shape: f32[1,128], index: 2, kind: input, shape index: {}]   ;;  %s5768_s3 = inlined_call_operand.hbm [shape: f32[1,128], index: 3, kind: input, shape index: {}]   ;;  %s5769_s4 = inlined_call_operand.hbm [shape: bf16[128,384], index: 4, kind: input, shape index: {}]   ;;  %s5770_s5 = inlined_call_operand.vmem [shape: f32[1,384], index: 5, kind: input, shape index: {}]   ;;  %s5771_s6 = inlined_call_operand.hbm [shape: bf16[128,128], index: 6, kind: input, shape index: {}]   ;;  %s5772_s7 = inlined_call_operand.vmem [shape: f32[1,128], index: 7, kind: input, shape index: {}]   ;;  %s5773_s8 = inlined_call_operand.vmem [shape: f32[1,128], index: 8, kind: input, shape index: {}]   ;;  %s5774_s9 = inlined_call_operand.vmem [shape: f32[1,128], index: 9, kind: input, shape index: {}]   ;;  %s5775_s10 = inlined_call_operand.hbm [shape: bf16[1,128,256], index: 10, kind: input, shape index: {}]   ;;  %s5776_s11 = inlined_call_operand.vmem [shape: f32[1,1,256], index: 11, kind: input, shape index: {}]   ;;  %s5777_s12 = inlined_call_operand.hbm [shape: bf16[1,256,128], index: 12, kind: input, shape index: {}]   ;;  %s5778_s13 = inlined_call_operand.vmem [shape: f32[1,128], index: 13, kind: input, shape index: {}]   ;;  %s5779_s14 = inlined_call_operand.hbm [shape: f32[2,16,128], index: 14, kind: output, shape index: {}]  }
   0x1   :  { %20 = vsyncpa [#allocation6], 0 }
   0x2   :  { %21 = vsyncpa [#allocation9], 0 }
   0x3   :  { %22 = vsyncpa [#allocation12], 0 }
   0x4   :  { %23 = vsyncpa [#allocation15], 0 }
   0x5   :  { %24 = vsyncpa [#allocation4], 0  ;;  %s4892_s29 = smov [#allocation5]   ;;  %s4893_s15 = smov [#allocation8]  }
   0x6   :  { %s42_s30 = sshll.u32 %s4892_s29, 4  ;;  %s65_s16 = sshll.u32 %s4893_s15, 4  ;;  %s43_s30 = int_to_ptr.vmem [resolvable:$true] %s42_s30  ;;  %s66_s16 = int_to_ptr.vmem [resolvable:$true] %s65_s16 }
   0x7   :  { %s4708_s17 = scalar_lea.vmem %s43_s30, 256  ;;  %p4713_p1 = scmp.lt.s32.totalorder %s43_s30, %s43_s30 }
   0x8   :  { %p4709_p0 = scmp.ne.s32.totalorder %s43_s30, %s4708_s17  ;;  %p4714_p2 = scmp.lt.s32.totalorder %s4708_s17, %s4708_s17 }
   0xa   :  { %p4715_p3 = por %p4714_p2, %p4713_p1 }
   0xc   :  { %p4716_p4 = pnand %p4715_p3, %p4709_p0 }
   0xe   :  { %4719 = shalt.err (!%p4716_p4)
}
   0xf   :  { %s4894_s18 = smov 128   ;;  %s4895_s19 = smov 8  }
  0x10   :  { %48 = dma.hbm_to_vmem [thread:$0]  %s5766_s1, 256, %s43_s30, [#allocation6], %s4894_s18, %s4894_s18, %s4895_s19  }
  0x11   :  { %s4728_s22 = scalar_lea.vmem %s66_s16, 16  ;;  %s4732_s23 = scalar_lea.vmem %s66_s16, 32 }
  0x12   :  { %p4729_p5 = scmp.ne.s32.totalorder %s66_s16, %s4728_s22  ;;  %p4733_p6 = scmp.lt.s32.totalorder %s66_s16, %s66_s16 }
  0x13   :  { %p4734_p7 = scmp.lt.s32.totalorder %s4732_s23, %s4728_s22 }
  0x15   :  { %p4735_p8 = por %p4734_p7, %p4733_p6 }
  0x17   :  { %p4736_p9 = pnand %p4735_p8, %p4729_p5 }
  0x19   :  { %4739 = shalt.err (!%p4736_p9)
}
  0x1a   :  { %68 = dma.hbm_to_vmem [thread:$0]  %s5768_s3, 16, %s66_s16, [#allocation9]  }
  0x1b   :  { %s4896_s26 = smov [#allocation11]  }
  0x1c   :  { %s88_s27 = sshll.u32 %s4896_s26, 4  ;;  %s89_s27 = int_to_ptr.vmem [resolvable:$true] %s88_s27 }
  0x1d   :  { %s4748_s28 = scalar_lea.vmem %s89_s27, 1024  ;;  %p4753_p11 = scmp.lt.s32.totalorder %s89_s27, %s89_s27 }
  0x1e   :  { %p4749_p10 = scmp.ne.s32.totalorder %s89_s27, %s4748_s28  ;;  %p4754_p12 = scmp.lt.s32.totalorder %s4748_s28, %s4748_s28 }
  0x20   :  { %p4755_p13 = por %p4754_p12, %p4753_p11 }
  0x22   :  { %p4756_p0 = pnand %p4755_p13, %p4749_p10 }
  0x24   :  { %4759 = shalt.err (!%p4756_p0)
}
  0x25   :  { %s4897_s1 = smov 64   ;;  %s4898_s29 = smov 4  }
  0x26   :  { %94 = dma.hbm_to_vmem [thread:$0]  %s5771_s6, 1024, %s89_s27, [#allocation12], %s4897_s1, %s4897_s1, %s4898_s29  }
  0x27   :  { %s4899_s3 = smov [#allocation2]   ;;  %s4900_s17 = smov [#allocation7]  }
  0x28   :  { %s30_s16 = sshll.u32 %s4899_s3, 4  ;;  %s55_s20 = sshll.u32 %s4900_s17, 4  ;;  %s31_s16 = int_to_ptr.vmem [resolvable:$true] %s30_s16  ;;  %s56_s20 = int_to_ptr.vmem [resolvable:$true] %s55_s20 }
  0x29   :  { %s4768_s21 = scalar_lea.vmem %s31_s16, 512  ;;  %p4773_p2 = scmp.lt.s32.totalorder %s31_s16, %s31_s16 }
  0x2a   :  { %p4769_p1 = scmp.ne.s32.totalorder %s31_s16, %s4768_s21  ;;  %p4774_p3 = scmp.lt.s32.totalorder %s4768_s21, %s4768_s21 }
  0x2c   :  { %p4775_p4 = por %p4774_p3, %p4773_p2 }
  0x2e   :  { %p4776_p5 = pnand %p4775_p4, %p4769_p1 }
  0x30   :  { %4779 = shalt.err (!%p4776_p5)
}
  0x31   :  { %36 = dma.hbm_to_vmem [thread:$0]  %s5765_s0, 512, %s31_s16, [#allocation3], %s4894_s18, %s4894_s18, %s4895_s19  }
  0x32   :  { %s4788_s6 = scalar_lea.vmem %s56_s20, 16  ;;  %s4792_s24 = scalar_lea.vmem %s56_s20, 32 }
  0x33   :  { %p4789_p6 = scmp.ne.s32.totalorder %s56_s20, %s4788_s6  ;;  %p4793_p7 = scmp.lt.s32.totalorder %s56_s20, %s56_s20 }
  0x34   :  { %p4794_p8 = scmp.lt.s32.totalorder %s4792_s24, %s4788_s6 }
  0x36   :  { %p4795_p9 = por %p4794_p8, %p4793_p7 }
  0x38   :  { %p4796_p10 = pnand %p4795_p9, %p4789_p6 }
  0x3a   :  { %4799 = shalt.err (!%p4796_p10)
}
  0x3b   :  { %58 = dma.hbm_to_vmem [thread:$0]  %s5767_s2, 16, %s56_s20, [#allocation6]  }
  0x3c   :  { %s4901_s27 = smov [#allocation10]  }
  0x3d   :  { %s74_s28 = sshll.u32 %s4901_s27, 4  ;;  %s75_s28 = int_to_ptr.vmem [resolvable:$true] %s74_s28 }
  0x3e   :  { %s4808_s30 = scalar_lea.vmem %s75_s28, 3072  ;;  %p4813_p12 = scmp.lt.s32.totalorder %s75_s28, %s75_s28 }
  0x3f   :  { %p4809_p11 = scmp.ne.s32.totalorder %s75_s28, %s4808_s30  ;;  %p4814_p13 = scmp.lt.s32.totalorder %s4808_s30, %s4808_s30 }
  0x41   :  { %p4815_p0 = por %p4814_p13, %p4813_p12 }
  0x43   :  { %p4816_p1 = pnand %p4815_p0, %p4809_p11 }
  0x45   :  { %4819 = shalt.err (!%p4816_p1)
}
  0x46   :  { %s4902_s0 = smov 192   ;;  %s4903_s15 = smov 12  }
  0x47   :  { %80 = dma.hbm_to_vmem [thread:$0]  %s5769_s4, 3072, %s75_s28, [#allocation9], %s4902_s0, %s4902_s0, %s4903_s15  }
  0x48   :  { %s4904_s17 = smov [#allocation13]   ;;  %s4905_s22 = smov [#allocation14]  }
  0x49   :  { %s106_s21 = sshll.u32 %s4904_s17, 4  ;;  %s120_s2 = sshll.u32 %s4905_s22, 4  ;;  %s107_s21 = int_to_ptr.vmem [resolvable:$true] %s106_s21  ;;  %s121_s2 = int_to_ptr.vmem [resolvable:$true] %s120_s2 }
  0x4a   :  { %s4828_s20 = scalar_lea.vmem %s107_s21, 2048  ;;  %p4833_p3 = scmp.lt.s32.totalorder %s107_s21, %s107_s21 }
  0x4b   :  { %p4829_p2 = scmp.ne.s32.totalorder %s107_s21, %s4828_s20  ;;  %p4834_p4 = scmp.lt.s32.totalorder %s4828_s20, %s4828_s20 }
  0x4d   :  { %p4835_p5 = por %p4834_p4, %p4833_p3 }
  0x4f   :  { %p4836_p6 = pnand %p4835_p5, %p4829_p2 }
  0x51   :  { %4839 = shalt.err (!%p4836_p6)
}
  0x52   :  { %112 = dma.hbm_to_vmem [thread:$0]  %s5775_s10, 2048, %s107_s21, [#allocation12], %s4894_s18, %s4894_s18, %s4895_s19  }
  0x53   :  { %s4848_s4 = scalar_lea.vmem %s121_s2, 2048  ;;  %p4853_p8 = scmp.lt.s32.totalorder %s121_s2, %s121_s2 }
  0x54   :  { %p4849_p7 = scmp.ne.s32.totalorder %s121_s2, %s4848_s4  ;;  %p4854_p9 = scmp.lt.s32.totalorder %s4848_s4, %s4848_s4 }
  0x56   :  { %p4855_p10 = por %p4854_p9, %p4853_p8 }
  0x58   :  { %p4856_p11 = pnand %p4855_p10, %p4849_p7 }
  0x5a   :  { %4859 = shalt.err (!%p4856_p11)
}
  0x5b   :  { %126 = dma.hbm_to_vmem [thread:$0]  %s5777_s12, 2048, %s121_s2, [#allocation15], %s4897_s1, %s4897_s1, %s4898_s29  }
  0x5c   :  { %4880 = dma.done.wait [#allocation3], 512  }
  0x5d   :  { %4881 = vsyncadd [#allocation3], 4294966784 }
  0x5e   :  { %4882 = dma.done.wait [#allocation6], 272  }
  0x5f   :  { %4883 = vsyncadd [#allocation6], 4294967024 }
  0x60   :  { %4884 = dma.done.wait [#allocation9], 3088  }
  0x61   :  { %4885 = vsyncadd [#allocation9], 4294964208 }
  0x62   :  { %4886 = dma.done.wait [#allocation12], 3072  }
  0x63   :  { %4887 = vsyncadd [#allocation12], 4294964224 }
  0x64   :  { %4888 = dma.done.wait [#allocation15], 2048  }
  0x65   :  { %4889 = vsyncadd [#allocation15], 4294965248  ;;  %v154_v0 = vld [vmem:[#allocation2] sm:$0xff]  ;;  %v155_v2 = vld [vmem:[#allocation2 + $0x8] sm:$0xff]  ;;  %v4906_v29 = vmov 0   ;;  %s4908_s29 = smov 32  }
  0x66   :  { %v158_v1 = vld [vmem:[#allocation5] sm:$0xff]  ;;  %v159_v4 = vld [vmem:[#allocation5 + $0x8] sm:$0xff]  ;;  %v156_v6 = vld [vmem:[#allocation2 + $0x10] sm:$0xff]  ;;  %442 = vmatprep.mubr.bf16.mxu0 %v4906_v29  ;;  %vm4910_vm0 = vmmov 0   ;;  %vm1329_vm1 = vcmask 261120   ;;  %vm1518_vm2 = vcmask 130048  }
  0x67   :  { %v5028_v3 = vadd.f32 %v158_v1, %v154_v0  ;;  %v5031_v5 = vadd.f32 %v159_v4, %v155_v2  ;;  %v5034_v7 = vadd.f32 %v158_v1, %v156_v6  ;;  %v4540_v8 = vld [vmem:[#allocation10 + $0xac] ss:$12 sps:$4 sm:$0xff]   ;;  %v4542_v9 = vld [vmem:[#allocation10 + $0xa8] ss:$12 sps:$4 sm:$0xff]   ;;  %v4545_v21 = vld [vmem:[#allocation10 + $0x90] ss:$12 sps:$4 sm:$0xff]  }
  0x68   :  { %410 = vmatprep.subr.bf16.mxu0 %v4540_v8  ;;  %v157_v17 = vld [vmem:[#allocation2 + $0x18] sm:$0xff]  ;;  %v4543_v20 = vld [vmem:[#allocation10 + $0x94] ss:$12 sps:$4 sm:$0xff]   ;;  %v4552_v26 = vld [vmem:[#allocation10 + $0x4c] ss:$12 sps:$4 sm:$0xff]   ;;  %vm2060_vm3 = vcmask 523264  }
  0x69   :  { %166 = vadd.xlane.f32.xlu0 %v5028_v3  ;;  %411 = vmatpush1.bf16.msra.mxu0 %v4542_v9  ;;  %v5047_v19 = vadd.f32 %v159_v4, %v157_v17  ;;  %v4546_v22 = vld [vmem:[#allocation10 + $0x7c] ss:$12 sps:$4 sm:$0xff]   ;;  %v4548_v23 = vld [vmem:[#allocation10 + $0x78] ss:$12 sps:$4 sm:$0xff]   ;;  %v4551_v25 = vld [vmem:[#allocation10 + $0x60] ss:$12 sps:$4 sm:$0xff]  }
  0x6a   :  { %412 = vmatprep.subr.bf16.mxu0 %v4543_v20  ;;  %v4549_v24 = vld [vmem:[#allocation10 + $0x64] ss:$12 sps:$4 sm:$0xff]   ;;  %v4554_v27 = vld [vmem:[#allocation10 + $0x48] ss:$12 sps:$4 sm:$0xff]   ;;  %v4563_v34 = vld [vmem:[#allocation10] ss:$12 sps:$4 sm:$0xff]  }
  0x6b   :  { %v4555_v28 = vld [vmem:[#allocation10 + $0x34] ss:$12 sps:$4 sm:$0xff]   ;;  %v4557_v30 = vld [vmem:[#allocation10 + $0x30] ss:$12 sps:$4 sm:$0xff]   ;;  %v4560_v32 = vld [vmem:[#allocation10 + $0x18] ss:$12 sps:$4 sm:$0xff]  }
  0x6c   :  { %v4558_v31 = vld [vmem:[#allocation10 + $0x1c] ss:$12 sps:$4 sm:$0xff]   ;;  %v4561_v33 = vld [vmem:[#allocation10 + $0x4] ss:$12 sps:$4 sm:$0xff]   ;;  %v4566_v62 = vld [vmem:[#allocation10 + $0x80] ss:$12 sps:$4 sm:$0xff]  }
  0x6d   :  { %168 = vadd.xlane.f32.xlu0 %v5031_v5  ;;  %413 = vmatpush1.bf16.msra.mxu0 %v4545_v21  ;;  %v4564_v36 = vld [vmem:[#allocation10 + $0xb0] ss:$12 sps:$4 sm:$0xff]   ;;  %v4565_v37 = vld [vmem:[#allocation10 + $0x98] ss:$12 sps:$4 sm:$0xff]   ;;  %v4567_v63 = vld [vmem:[#allocation10 + $0x68] ss:$12 sps:$4 sm:$0xff]  }
  0x6e   :  { %414 = vmatprep.subr.bf16.mxu0 %v4546_v22  ;;  %4382 = vmatprep.subr.bf16.mxu1 %v4564_v36  ;;  %v4184_v53 = vld [vmem:[#allocation7] ss:$0 sm:$0xff]  ;;  %v4185_v57 = vld [vmem:[#allocation8] ss:$0 sm:$0xff]  ;;  %v4569_v1 = vld [vmem:[#allocation10 + $0x38] ss:$12 sps:$4 sm:$0xff]  }
  0x6f   :  { %4383 = vmatpush3.bf16.msra.mxu1 %v4564_v36  ;;  %v4568_v0 = vld [vmem:[#allocation10 + $0x50] ss:$12 sps:$4 sm:$0xff]   ;;  %v4570_v2 = vld [vmem:[#allocation10 + $0x20] ss:$12 sps:$4 sm:$0xff]   ;;  %v4571_v4 = vld [vmem:[#allocation10 + $0x8] ss:$12 sps:$4 sm:$0xff]  }
  0x70   :  { %4384 = vmatprep.subr.bf16.mxu1 %v4565_v37  ;;  %vm2063_vm4 = vcmask 785408  }
  0x71   :  { %170 = vadd.xlane.f32.xlu0 %v5034_v7  ;;  %415 = vmatpush1.bf16.msra.mxu0 %v4548_v23  ;;  %v267_v23 = vlaneseq }
  0x72   :  { %416 = vmatprep.subr.bf16.mxu0 %v4549_v24 }
  0x73   :  { %4385 = vmatpush3.bf16.msra.mxu1 %v4565_v37  ;;  %v5056_v24 = vshrl.u32 %v267_v23, 7 }
  0x74   :  { %4386 = vmatprep.subr.bf16.mxu1 %v4566_v62 }
  0x75   :  { %417 = vmatpush1.bf16.msra.mxu0 %v4551_v25  ;;  %v273_v25 = vsub.s32 1, %v5056_v24 }
  0x76   :  { %418 = vmatprep.subr.bf16.mxu0 %v4552_v26 }
  0x77   :  { %4387 = vmatpush3.bf16.msra.mxu1 %v4566_v62 }
  0x78   :  { %4388 = vmatprep.subr.bf16.mxu1 %v4567_v63 }
  0x79   :  { %419 = vmatpush1.bf16.msra.mxu0 %v4554_v27  ;;  %v5062_v27 = vld [vmem:[%s5770_s5] sm:$0x7]  ;;  %s4907_s5 = smov 96  }
  0x7a   :  { %420 = vmatprep.subr.bf16.mxu0 %v4555_v28 }
  0x7b   :  { %4389 = vmatpush3.bf16.msra.mxu1 %v4567_v63 }
  0x7c   :  { %4390 = vmatprep.subr.bf16.mxu1 %v4568_v0 }
  0x7d   :  { %421 = vmatpush1.bf16.msra.mxu0 %v4557_v30  ;;  %v269_v30 = vsub.s32 0, %v5056_v24 }
  0x7e   :  { %422 = vmatprep.subr.bf16.mxu0 %v4558_v31  ;;  %v5068_v31 = vrot.slane %v5062_v27, %v273_v25 }
  0x7f   :  { %4391 = vmatpush3.bf16.msra.mxu1 %v4568_v0 }
  0x80   :  { %4392 = vmatprep.subr.bf16.mxu1 %v4569_v1 }
  0x81   :  { %423 = vmatpush1.bf16.msra.mxu0 %v4560_v32 }
  0x82   :  { %424 = vmatprep.subr.bf16.mxu0 %v4561_v33 }
  0x83   :  { %4393 = vmatpush3.bf16.msra.mxu1 %v4569_v1 }
  0x84   :  { %4394 = vmatprep.subr.bf16.mxu1 %v4570_v2 }
  0x85   :  { %425 = vmatpush1.bf16.msra.mxu0 %v4563_v34  ;;  %v5073_v34 = vrot.slane %v5062_v27, %v269_v30 }
  0x87   :  { %4395 = vmatpush3.bf16.msra.mxu1 %v4570_v2 }
  0x88   :  { %4396 = vmatprep.subr.bf16.mxu1 %v4571_v4 }
  0x8b   :  { %4397 = vmatpush3.bf16.msra.mxu1 %v4571_v4 }
  0xf2   :  { %v167_v10 = vpop.xlane.xlu0 %166 }
  0xf3   :  { %v175_v11 = vmul.f32 0.0078125, %v167_v10 }
  0xf5   :  { %v5038_v12 = vsub.f32 %v5028_v3, %v175_v11 }
  0xf6   :  { %v169_v13 = vpop.xlane.xlu0 %168 }
  0xf7   :  { %v176_v14 = vmul.f32 0.0078125, %v169_v13  ;;  %v183_v15 = vmul.f32 %v5038_v12, %v5038_v12 }
  0xf9   :  { %v5043_v16 = vsub.f32 %v5031_v5, %v176_v14  ;;  %187 = vadd.xlane.f32.xlu1 %v183_v15 }
  0xfa   :  { %v171_v35 = vpop.xlane.xlu0 %170 }
  0xfb   :  { %v184_v18 = vmul.f32 %v5043_v16, %v5043_v16  ;;  %v177_v38 = vmul.f32 0.0078125, %v171_v35 }
  0xfd   :  { %189 = vadd.xlane.f32.xlu1 %v184_v18  ;;  %v181_v39 = vsub.f32 %v5034_v7, %v177_v38 }
  0xff   :  { %v185_v40 = vmul.f32 %v181_v39, %v181_v39 }
 0x101   :  { %172 = vadd.xlane.f32.xlu1 %v5047_v19  ;;  %191 = vadd.xlane.f32.xlu0 %v185_v40 }
 0x182   :  { %v188_v41 = vpop.xlane.xlu1 %187 }
 0x183   :  { %v195_v42 = vmul.f32 0.0078125, %v188_v41  ;;  %v4909_v41 = vmov 0.0  }
 0x184   :  { %4402 = vmatprep.subr.bf16.mxu0 %v4909_v41  ;;  %4414 = vmatprep.subr.bf16.mxu1 %v4909_v41 }
 0x185   :  { %v199_v43 = vadd.f32 1e-05, %v195_v42  ;;  %v4911_v42 = vmov 1983009808  }
 0x186   :  { %v190_v44 = vpop.xlane.xlu1 %189 }
 0x187   :  { %4620 = vrsqrt.f32 %v199_v43  ;;  %v196_v45 = vmul.f32 0.0078125, %v190_v44  ;;  %v549_v43 = vunpack.c.l.s4 %v4911_v42  ;;  %v4912_v44 = vmov 1934713408  }
 0x189   :  { %v200_v46 = vadd.f32 1e-05, %v196_v45  ;;  %v580_v45 = vunpack.c.l.s4 %v4912_v44 }
 0x18a   :  { %v173_v47 = vpop.xlane.xlu1 %172  ;;  %v192_v6 = vpop.xlane.xlu0 %191 }
 0x18b   :  { %4622 = vrsqrt.f32 %v200_v46  ;;  %v178_v48 = vmul.f32 0.0078125, %v173_v47  ;;  %v197_v8 = vmul.f32 0.0078125, %v192_v6  ;;  %v550_v46 = vunpack.c.0.s8 %v549_v43 }
 0x18c   :  { %v5093_v47 = vpack.i.b16 %v4906_v29, %v4906_v29 }
 0x18d   :  { %v182_v49 = vsub.f32 %v5047_v19, %v178_v48  ;;  %v201_v9 = vadd.f32 1e-05, %v197_v8 }
 0x18f   :  { %v186_v50 = vmul.f32 %v182_v49, %v182_v49  ;;  %4624 = vrsqrt.f32 %v201_v9 }
 0x191   :  { %193 = vadd.xlane.f32.xlu1 %v186_v50 }
 0x194   :  { %v4621_v51 = vpop.eup %4620 }
 0x195   :  { %v207_v52 = vmul.f32 %v4621_v51, %v5038_v12 }
 0x197   :  { %v217_v56 = vmul.f32 %v4184_v53, %v207_v52 }
 0x198   :  { %v4623_v54 = vpop.eup %4622 }
 0x199   :  { %v208_v55 = vmul.f32 %v4623_v54, %v5043_v16  ;;  %v227_v59 = vadd.f32 %v4185_v57, %v217_v56  ;;  %v5096_v54 = vsub.s32 %v550_v46, %v5056_v24 }
 0x19b   :  { %v218_v58 = vmul.f32 %v4184_v53, %v208_v55 }
 0x19c   :  { %v4625_v13 = vpop.eup %4624 }
 0x19d   :  { %v228_v60 = vadd.f32 %v4185_v57, %v218_v58  ;;  %v209_v14 = vmul.f32 %v4625_v13, %v181_v39 }
 0x19f   :  { %v231_v61 = vpack.c.bf16 %v228_v60, %v227_v59  ;;  %v219_v15 = vmul.f32 %v4184_v53, %v209_v14 }
 0x1a1   :  { %443 = vmatmul.mubr.bf16.vlgmr.msra.gmra.mxu0 %v231_v61  ;;  %4398 = vmatprep.mubr.bf16.mxu1 %v231_v61  ;;  %v229_v20 = vadd.f32 %v4185_v57, %v219_v15 }
 0x1a2   :  { %452 = vmatprep.mubr.bf16.mxu0 %v4906_v29 }
 0x21a   :  { %v194_v10 = vpop.xlane.xlu1 %193 }
 0x21b   :  { %v198_v11 = vmul.f32 0.0078125, %v194_v10  ;;  %v277_v10 = vsub.s32 2, %v5056_v24 }
 0x21d   :  { %v202_v12 = vadd.f32 1e-05, %v198_v11 }
 0x21f   :  { %4626 = vrsqrt.f32 %v202_v12 }
 0x22c   :  { %v4627_v16 = vpop.eup %4626 }
 0x22d   :  { %v210_v17 = vmul.f32 %v4627_v16, %v182_v49 }
 0x22f   :  { %v220_v18 = vmul.f32 %v4184_v53, %v210_v17  ;;  %v581_v53 = vunpack.c.0.s8 %v580_v45 }
 0x231   :  { %v230_v21 = vadd.f32 %v4185_v57, %v220_v18  ;;  %v5101_v60 = vsub.s32 %v581_v53, %v5056_v24 }
 0x233   :  { %v232_v22 = vpack.c.bf16 %v230_v21, %v229_v20 }
 0x235   :  { %453 = vmatmul.mubr.bf16.gmra.mxu0 %v232_v22  ;;  %4399 = vmatmul.mubr.bf16.vlgmr.msra.gmra.mxu1 %v232_v22 }
 0x236   :  { %4404 = vmatprep.mubr.msk.bf16.mxu0 %vm4910_vm0, %v4909_v41  ;;  %4416 = vmatprep.mubr.msk.bf16.mxu1 %vm4910_vm0, %v4909_v41 }
 0x261   :  { %v444_v26 = vpop.f32.mrf.mxu0 }
 0x262   :  { %v445_v39 = vadd.f32 %v444_v26, %v5073_v34 }
 0x263   :  { %v446_v28 = vpop.f32.mrf.mxu0 }
 0x264   :  { %v447_v35 = vadd.f32 %v446_v28, %v5068_v31 }
 0x265   :  { %v448_v32 = vpop.f32.mrf.mxu0 }
 0x266   :  { %v449_v37 = vadd.f32 %v448_v32, %v5073_v34 }
 0x267   :  { %v450_v33 = vpop.f32.mrf.mxu0 }
 0x268   :  { %v451_v36 = vadd.f32 %v450_v33, %v5068_v31  ;;  %v512_v40 = vpack.c.bf16 %v449_v37, %v445_v39 }
 0x26a   :  { %v514_v38 = vpack.c.bf16 %v451_v36, %v447_v35  ;;  %v529_v2 = vshrl.u32 %v512_v40, 16 }
 0x26c   :  { %794 = vrot.lane.b32.xlu1 %v514_v38, %s4897_s1  ;;  %792 = vrot.lane.b32.xlu0 %v514_v38, %s4907_s5  ;;  %v802_v50 = vshrl.u32 %v514_v38, 16 }
 0x270   :  { %796 = vrot.lane.b32.xlu1 %v514_v38, %s4908_s29  ;;  %521 = vrot.lane.b32.xlu0 %v512_v40, %s4897_s1 }
 0x274   :  { %519 = vrot.lane.b32.xlu1 %v512_v40, %s4907_s5 }
 0x278   :  { %523 = vrot.lane.b32.xlu1 %v512_v40, %s4908_s29 }
 0x2de   :  { %v795_v48 = vpop.permute.xlu1 %794  ;;  %v793_v49 = vpop.permute.xlu0 %792 }
 0x2df   :  { %v800_v51 = vpack.i.b16 %v793_v49, %v514_v38  ;;  %v803_v52 = vshrl.u32 %v793_v49, 16  ;;  %v810_v61 = vshrl.u32 %v795_v48, 16  ;;  %v5121_v49 = vrot.slane %v5062_v27, %v277_v10 }
 0x2e1   :  { %v804_v55 = vpack.i.b16 %v803_v52, %v802_v50  ;;  %v814_v56 = vcombine.high %v800_v51, %v5093_v47  ;;  %v821_v63 = vrot.slane %v800_v51, %v5096_v54 }
 0x2e2   :  { %v797_v57 = vpop.permute.xlu1 %796  ;;  %v522_v39 = vpop.permute.xlu0 %521 }
 0x2e3   :  { %v880_v58 = vcombine.high %v804_v55, %v5093_v47  ;;  %v808_v59 = vpack.i.b16 %v797_v57, %v795_v48  ;;  %v811_v62 = vshrl.u32 %v797_v57, 16  ;;  %v828_v4 = vrot.slane %v814_v56, %v5096_v54 }
 0x2e4   :  { %v887_v6 = vrot.slane %v804_v55, %v5096_v54  ;;  %v537_v53 = vshrl.u32 %v522_v39, 16 }
 0x2e5   :  { %v829_v0 = vcombine.high %v808_v59, %v5093_v47  ;;  %v836_v1 = vrot.slane %v808_v59, %v5096_v54  ;;  %v812_v8 = vpack.i.b16 %v811_v62, %v810_v61  ;;  %v894_v11 = vrot.slane %v880_v58, %v5096_v54 }
 0x2e6   :  { %v520_v9 = vpop.permute.xlu1 %519 }
 0x2e7   :  { %v843_v12 = vrot.slane %v829_v0, %v5096_v54  ;;  %v844_v13 = vcombine.low %v821_v63, %v836_v1  ;;  %v845_v14 = vcombine.high %v821_v63, %v836_v1  ;;  %v895_v15 = vcombine.high %v812_v8, %v5093_v47 }
 0x2e8   :  { %v902_v16 = vrot.slane %v812_v8, %v5096_v54  ;;  %v527_v17 = vpack.i.b16 %v520_v9, %v512_v40  ;;  %v530_v18 = vshrl.u32 %v520_v9, 16 }
 0x2e9   :  { %v852_v20 = vrot.slane %v844_v13, %v5101_v60  ;;  %v859_v21 = vrot.slane %v845_v14, %v5101_v60  ;;  %v860_v22 = vcombine.low %v828_v4, %v843_v12  ;;  %v861_v23 = vcombine.high %v828_v4, %v843_v12 }
 0x2ea   :  { %v909_v26 = vrot.slane %v895_v15, %v5096_v54  ;;  %v910_v28 = vcombine.low %v887_v6, %v902_v16  ;;  %v911_v32 = vcombine.high %v887_v6, %v902_v16  ;;  %v531_v33 = vpack.i.b16 %v530_v18, %v529_v2  ;;  %v524_v48 = vpop.permute.xlu1 %523 }
 0x2eb   :  { %v868_v35 = vrot.slane %v860_v22, %v5101_v60  ;;  %v875_v36 = vrot.slane %v861_v23, %v5101_v60  ;;  %v946_v37 = vcombine.low %v852_v20, %v859_v21  ;;  %v4214_v38 = vcombine.high %v852_v20, %v859_v21 }
 0x2ec   :  { %v918_v40 = vrot.slane %v910_v28, %v5101_v60  ;;  %v925_v42 = vrot.slane %v911_v32, %v5101_v60  ;;  %v926_v43 = vcombine.low %v894_v11, %v909_v26  ;;  %v927_v44 = vcombine.high %v894_v11, %v909_v26 }
 0x2ed   :  { %v962_v45 = vcombine.low %v868_v35, %v875_v36  ;;  %v4215_v46 = vcombine.high %v868_v35, %v875_v36  ;;  %v5126_v52 = vrot.slane %v946_v37, %v5096_v54  ;;  %v5129_v55 = vrot.slane %v4214_v38, %v5096_v54 }
 0x2ee   :  { %v934_v50 = vrot.slane %v926_v43, %v5101_v60  ;;  %v941_v51 = vrot.slane %v927_v44, %v5101_v60  ;;  %v996_v56 = vcombine.low %v918_v40, %v925_v42  ;;  %v547_v57 = vcombine.high %v527_v17, %v5093_v47 }
 0x2ef   :  { %v613_v58 = vcombine.high %v531_v33, %v5093_v47  ;;  %v4216_v59 = vcombine.high %v918_v40, %v925_v42  ;;  %v554_v27 = vrot.slane %v527_v17, %v5096_v54  ;;  %v535_v61 = vpack.i.b16 %v524_v48, %v522_v39 }
 0x2f0   :  { %v538_v62 = vshrl.u32 %v524_v48, 16  ;;  %v1012_v63 = vcombine.low %v934_v50, %v941_v51  ;;  %v620_v0 = vrot.slane %v531_v33, %v5096_v54  ;;  %v969_v1 = vrot.slane %v962_v45, %v5096_v54 }
 0x2f1   :  { %v977_v2 = vrot.slane %v4215_v46, %v5096_v54  ;;  %v4217_v4 = vcombine.high %v934_v50, %v941_v51  ;;  %v562_v8 = vcombine.high %v535_v61, %v5093_v47  ;;  %v569_v9 = vrot.slane %v535_v61, %v5096_v54 }
 0x2f2   :  { %v539_v6 = vpack.i.b16 %v538_v62, %v537_v53  ;;  %v561_v10 = vrot.slane %v547_v57, %v5096_v54  ;;  %v627_v11 = vrot.slane %v613_v58, %v5096_v54  ;;  %v978_v12 = vcombine.low %v5126_v52, %v5129_v55 }
 0x2f3   :  { %v986_v13 = vcombine.low %v969_v1, %v977_v2  ;;  %v576_v14 = vrot.slane %v562_v8, %v5096_v54  ;;  %v577_v15 = vcombine.low %v554_v27, %v569_v9  ;;  %v578_v16 = vcombine.high %v554_v27, %v569_v9 }
 0x2f4   :  { %v628_v17 = vcombine.high %v539_v6, %v5093_v47  ;;  %v635_v18 = vrot.slane %v539_v6, %v5096_v54  ;;  %v1003_v20 = vrot.slane %v996_v56, %v5096_v54  ;;  %v1011_v21 = vrot.slane %v4216_v59, %v5096_v54 }
 0x2f5   :  { %v1019_v22 = vrot.slane %v1012_v63, %v5096_v54  ;;  %v585_v23 = vrot.slane %v577_v15, %v5101_v60  ;;  %v592_v26 = vrot.slane %v578_v16, %v5101_v60  ;;  %v593_v28 = vcombine.low %v561_v10, %v576_v14  ;;  %v454_v53 = vpop.f32.mrf.mxu0 }
 0x2f6   :  { %v594_v32 = vcombine.high %v561_v10, %v576_v14  ;;  %v642_v33 = vrot.slane %v628_v17, %v5096_v54  ;;  %v643_v35 = vcombine.low %v620_v0, %v635_v18  ;;  %v644_v36 = vcombine.high %v620_v0, %v635_v18 }
 0x2f7   :  { %v993_v37 = vrot.slane %v986_v13, %v5101_v60  ;;  %v601_v38 = vrot.slane %v593_v28, %v5101_v60  ;;  %v679_v40 = vcombine.low %v585_v23, %v592_v26  ;;  %v4210_v42 = vcombine.high %v585_v23, %v592_v26  ;;  %v5166_v6 = vpop.f32.mrf.mxu0  ;;  %v4400_v13 = vpop.f32.mrf.mxu1 }
 0x2f8   :  { %v608_v39 = vrot.slane %v594_v32, %v5101_v60  ;;  %v651_v43 = vrot.slane %v643_v35, %v5101_v60  ;;  %v658_v44 = vrot.slane %v644_v36, %v5101_v60  ;;  %v659_v45 = vcombine.low %v627_v11, %v642_v33 }
 0x2f9   :  { %v660_v46 = vcombine.high %v627_v11, %v642_v33  ;;  %v686_v48 = vrot.slane %v679_v40, %v5096_v54  ;;  %v1027_v52 = vrot.slane %v4217_v4, %v5096_v54  ;;  %v694_v59 = vrot.slane %v4210_v42, %v5096_v54  ;;  %v458_v32 = vpop.f32.mrf.mxu0  ;;  %v5177_v35 = vpop.f32.mrf.mxu1 }
 0x2fa   :  { %v695_v50 = vcombine.low %v601_v38, %v608_v39  ;;  %v4211_v51 = vcombine.high %v601_v38, %v608_v39  ;;  %v667_v55 = vrot.slane %v659_v45, %v5101_v60  ;;  %v729_v57 = vcombine.low %v651_v43, %v658_v44 }
 0x2fb   :  { %v674_v56 = vrot.slane %v660_v46, %v5101_v60  ;;  %v4212_v58 = vcombine.high %v651_v43, %v658_v44  ;;  %v1028_v62 = vcombine.low %v1003_v20, %v1011_v21  ;;  %v1036_v4 = vcombine.low %v1019_v22, %v1027_v52 }
 0x2fc   :  { %v702_v27 = vrot.slane %v695_v50, %v5096_v54  ;;  %v710_v61 = vrot.slane %v4211_v51, %v5096_v54  ;;  %v736_v63 = vrot.slane %v729_v57, %v5096_v54  ;;  %v985_v11 = vrot.slane %v978_v12, %v5101_v60  ;;  %v4401_v50 = vpop.f32.mrf.mxu1 }
 0x2fd   :  { %v744_v0 = vrot.slane %v4212_v58, %v5096_v54  ;;  %v745_v1 = vcombine.low %v667_v55, %v674_v56  ;;  %v4213_v2 = vcombine.high %v667_v55, %v674_v56  ;;  %v1035_v15 = vrot.slane %v1028_v62, %v5101_v60 }
 0x2fe   :  { %v719_v14 = vcombine.low %v702_v27, %v710_v61  ;;  %v1043_v16 = vrot.slane %v1036_v4, %v5101_v60  ;;  %v711_v17 = vcombine.low %v686_v48, %v694_v59  ;;  %v994_v20 = vcombine.low %v985_v11, %v993_v37 }
 0x2ff   :  { %v752_v8 = vrot.slane %v745_v1, %v5096_v54  ;;  %v760_v9 = vrot.slane %v4213_v2, %v5096_v54  ;;  %v761_v10 = vcombine.low %v736_v63, %v744_v0  ;;  %v506_v21 = vadd.f32 %v4400_v13, %v5121_v49 }
 0x300   :  { %v1044_v22 = vcombine.low %v1035_v15, %v1043_v16  ;;  %v995_v23 = vcombine.high %v985_v11, %v993_v37  ;;  %v1045_v26 = vcombine.high %v1035_v15, %v1043_v16  ;;  %v455_v28 = vadd.f32 %v454_v53, %v5073_v34  ;;  %v500_v11 = vpop.f32.mrf.mxu1 }
 0x301   :  { %v769_v18 = vcombine.low %v752_v8, %v760_v9  ;;  %v768_v33 = vrot.slane %v761_v10, %v5101_v60  ;;  %v459_v36 = vadd.f32 %v458_v32, %v5073_v34  ;;  %v726_v38 = vrot.slane %v719_v14, %v5101_v60  ;;  %v460_v10 = vpop.f32.mrf.mxu0 }
 0x302   :  { %v1048_v39 = vpack.i.b16 %v1044_v22, %v994_v20  ;;  %v1054_v40 = vpack.i.b16 %v1045_v26, %v995_v23  ;;  %v718_v42 = vrot.slane %v711_v17, %v5101_v60  ;;  %v1050_v43 = vshrl.u32 %v1044_v22, 16 }
 0x303   :  { %v776_v12 = vrot.slane %v769_v18, %v5101_v60  ;;  %v5184_v48 = vpack.c.bf16 %v459_v36, %v455_v28  ;;  %v1049_v52 = vshrl.u32 %v994_v20, 16  ;;  %v509_v53 = vadd.f32 %v4401_v50, %v5121_v49 }
 0x304   :  { %v1334_v44 = vsel %vm1329_vm1, %v1048_v39, 0  ;;  %v1428_v45 = vsel %vm1329_vm1, %v1054_v40, 0  ;;  %v727_v51 = vcombine.low %v718_v42, %v726_v38  ;;  %v728_v34 = vcombine.high %v718_v42, %v726_v38 }
 0x305   :  { %v777_v37 = vcombine.low %v768_v33, %v776_v12  ;;  %v778_v46 = vcombine.high %v768_v33, %v776_v12  ;;  %4403 = vmatpush3.bf16.xpose.msra.mxu0 %v1334_v44  ;;  %4415 = vmatpush3.bf16.xpose.msra.mxu1 %v1428_v45  ;;  %v1051_v57 = vpack.i.b16 %v1050_v43, %v1049_v52  ;;  %v1056_v27 = vshrl.u32 %v1045_v26, 16 }
 0x306   :  { %4408 = vmatprep.subr.bf16.mxu0 %v4909_v41  ;;  %4426 = vmatprep.subr.bf16.mxu1 %v4909_v41  ;;  %v5189_v58 = vpack.c.bf16 %v509_v53, %v506_v21  ;;  %v1055_v62 = vshrl.u32 %v995_v23, 16  ;;  %v782_v63 = vshrl.u32 %v727_v51, 16  ;;  %v788_v8 = vshrl.u32 %v728_v34, 16 }
 0x307   :  { %v781_v55 = vpack.i.b16 %v777_v37, %v727_v51  ;;  %v787_v56 = vpack.i.b16 %v778_v46, %v728_v34  ;;  %v1381_v59 = vsel %vm1329_vm1, %v1051_v57, 0  ;;  %v783_v61 = vshrl.u32 %v777_v37, 16 }
 0x308   :  { %v1057_v0 = vpack.i.b16 %v1056_v27, %v1055_v62  ;;  %v789_v4 = vshrl.u32 %v778_v46, 16  ;;  %v498_v43 = vadd.f32 %v5177_v35, %v5121_v49  ;;  %v501_v44 = vadd.f32 %v500_v11, %v5121_v49 }
 0x309   :  { %v784_v1 = vpack.i.b16 %v783_v61, %v782_v63  ;;  %v457_v51 = vadd.f32 %v5166_v6, %v5068_v31  ;;  %v461_v34 = vadd.f32 %v460_v10, %v5068_v31 }
 0x30a   :  { %v1475_v2 = vsel %vm1329_vm1, %v1057_v0, 0  ;;  %v790_v9 = vpack.i.b16 %v789_v4, %v788_v8  ;;  %v516_v50 = vpack.c.bf16 %v501_v44, %v498_v43 }
 0x30b   :  { %v5230_v52 = vpack.c.bf16 %v461_v34, %v457_v51 }
 0x30c   :  { %4405 = vmatmul.mubr.msk.bf16.vlgmr.msra.gmra.mxu0 %vm1329_vm1, %v781_v55  ;;  %4417 = vmatmul.mubr.msk.bf16.vlgmr.msra.gmra.mxu1 %vm1329_vm1, %v787_v56 }
 0x30d   :  { %4409 = vmatpush3.bf16.xpose.msra.mxu0 %v1381_v59  ;;  %4410 = vmatprep.mubr.msk.bf16.mxu0 %vm4910_vm0, %v4909_v41 }
 0x30e   :  { %4420 = vmatprep.subr.bf16.mxu0 %v4909_v41  ;;  %4428 = vmatprep.mubr.msk.bf16.mxu1 %vm4910_vm0, %v4909_v41 }
 0x314   :  { %4411 = vmatmul.mubr.msk.bf16.vlgmr.msra.gmra.mxu0 %vm1329_vm1, %v784_v1 }
 0x315   :  { %4421 = vmatpush3.bf16.xpose.msra.mxu0 %v1475_v2  ;;  %4422 = vmatprep.mubr.msk.bf16.mxu0 %vm4910_vm0, %v4909_v41 }
 0x316   :  { %4432 = vmatprep.subr.bf16.mxu0 %v4909_v41 }
 0x31c   :  { %4423 = vmatmul.mubr.msk.bf16.vlgmr.msra.gmra.mxu0 %vm1329_vm1, %v790_v9 }
 0x31d   :  { %4434 = vmatprep.mubr.msk.bf16.mxu0 %vm4910_vm0, %v4909_v41 }
 0x3cc   :  { %v1370_v13 = vpop.f32.mrf.mxu0  ;;  %v5207_v14 = vpop.f32.mrf.mxu1 }
 0x3cd   :  { %v1519_v15 = vsel %vm1518_vm2, %v1370_v13, -inf  ;;  %v1531_v40 = vsel %vm1518_vm2, %v5207_v14, -inf }
 0x3ce   :  { %v4418_v16 = vpop.f32.mrf.mxu1  ;;  %1520 = vmax.xlane.f32.xlu0 %v1519_v15  ;;  %v4406_v17 = vpop.f32.mrf.mxu0 }
 0x3d0   :  { %v5210_v18 = vpop.f32.mrf.mxu0  ;;  %v1467_v20 = vpop.f32.mrf.mxu1 }
 0x3d1   :  { %v1522_v21 = vsel %vm1518_vm2, %v5210_v18, -inf  ;;  %v1534_v28 = vsel %vm1518_vm2, %v1467_v20, -inf }
 0x3d2   :  { %v4419_v22 = vpop.f32.mrf.mxu1  ;;  %1523 = vmax.xlane.f32.xlu1 %v1522_v21  ;;  %v4407_v23 = vpop.f32.mrf.mxu0 }
 0x3d4   :  { %v1417_v26 = vpop.f32.mrf.mxu0 }
 0x3d5   :  { %v1525_v32 = vsel %vm1518_vm2, %v1417_v26, -inf }
 0x3d6   :  { %1535 = vmax.xlane.f32.xlu1 %v1534_v28  ;;  %1526 = vmax.xlane.f32.xlu0 %v1525_v32  ;;  %v4412_v33 = vpop.f32.mrf.mxu0  ;;  %v1069_v28 = vshrl.u32 %v516_v50, 16 }
 0x3d8   :  { %v1420_v12 = vpop.f32.mrf.mxu0 }
 0x3d9   :  { %v1528_v36 = vsel %vm1518_vm2, %v1420_v12, -inf }
 0x3da   :  { %1529 = vmax.xlane.f32.xlu0 %v1528_v36  ;;  %v4413_v38 = vpop.f32.mrf.mxu0 }
 0x3dc   :  { %v1511_v39 = vpop.f32.mrf.mxu0 }
 0x3dd   :  { %v1537_v45 = vsel %vm1518_vm2, %v1511_v39, -inf }
 0x3de   :  { %1532 = vmax.xlane.f32.xlu0 %v1531_v40  ;;  %v4424_v42 = vpop.f32.mrf.mxu0 }
 0x3e0   :  { %v5219_v37 = vpop.f32.mrf.mxu0 }
 0x3e1   :  { %v1540_v49 = vsel %vm1518_vm2, %v5219_v37, -inf }
 0x3e2   :  { %1538 = vmax.xlane.f32.xlu0 %v1537_v45  ;;  %v4425_v46 = vpop.f32.mrf.mxu0 }
 0x3e7   :  { %1061 = vrot.lane.b32.xlu1 %v516_v50, %s4897_s1 }
 0x3eb   :  { %1063 = vrot.lane.b32.xlu1 %v516_v50, %s4908_s29 }
 0x3ef   :  { %2335 = vrot.lane.b32.xlu1 %v5230_v52, %s4907_s5 }
 0x3f8   :  { %1059 = vrot.lane.b32.xlu0 %v516_v50, %s4907_s5 }
 0x3fc   :  { %2337 = vrot.lane.b32.xlu0 %v5230_v52, %s4897_s1 }
 0x413   :  { %1541 = vmax.xlane.f32.xlu1 %v1540_v49 }
 0x424   :  { %2339 = vrot.lane.b32.xlu1 %v5230_v52, %s4908_s29 }
 0x428   :  { %2068 = vrot.lane.b32.xlu1 %v5184_v48, %s4907_s5 }
 0x457   :  { %v1521_v31 = vpop.xlane.xlu0 %1520 }
 0x458   :  { %v1543_v6 = vsub.f32 %v1370_v13, %v1521_v31 }
 0x45a   :  { %v1551_v35 = vmul.f32 1.442695, %v1543_v6 }
 0x45b   :  { %v1524_v53 = vpop.xlane.xlu1 %1523 }
 0x45c   :  { %4628 = vpow2.f32 %v1551_v35  ;;  %v1544_v1 = vsub.f32 %v5210_v18, %v1524_v53 }
 0x45e   :  { %v1553_v17 = vmul.f32 1.442695, %v1544_v1 }
 0x45f   :  { %v1536_v55 = vpop.xlane.xlu1 %1535  ;;  %v1527_v56 = vpop.xlane.xlu0 %1526 }
 0x460   :  { %v1548_v57 = vsub.f32 %v1467_v20, %v1536_v55  ;;  %v1545_v59 = vsub.f32 %v1417_v26, %v1527_v56 }
 0x462   :  { %v1561_v27 = vmul.f32 1.442695, %v1548_v57  ;;  %v1555_v61 = vmul.f32 1.442695, %v1545_v59 }
 0x463   :  { %v1062_v62 = vpop.permute.xlu1 %1061  ;;  %v1530_v63 = vpop.xlane.xlu0 %1529 }
 0x464   :  { %4630 = vpow2.f32 %v1561_v27  ;;  %v1546_v10 = vsub.f32 %v1420_v12, %v1530_v63  ;;  %v1077_v20 = vshrl.u32 %v1062_v62, 16 }
 0x465   :  { %4632 = vpow2.f32 %v1555_v61 }
 0x466   :  { %v1557_v22 = vmul.f32 1.442695, %v1546_v10 }
 0x467   :  { %v1533_v0 = vpop.xlane.xlu0 %1532  ;;  %v1064_v2 = vpop.permute.xlu1 %1063 }
 0x468   :  { %v1547_v4 = vsub.f32 %v5207_v14, %v1533_v0  ;;  %v1075_v11 = vpack.i.b16 %v1064_v2, %v1062_v62  ;;  %v1078_v13 = vshrl.u32 %v1064_v2, 16 }
 0x469   :  { %v5245_v8 = vpop.eup %4628 }
 0x46a   :  { %v1559_v9 = vmul.f32 1.442695, %v1547_v4  ;;  %v1567_v15 = vsel %vm1518_vm2, %v5245_v8, 0.0  ;;  %v1079_v18 = vpack.i.b16 %v1078_v13, %v1077_v20  ;;  %v1096_v23 = vcombine.high %v1075_v11, %v5093_v47 }
 0x46b   :  { %v1539_v16 = vpop.xlane.xlu0 %1538  ;;  %1568 = vadd.xlane.f32.xlu0 %v1567_v15  ;;  %v1103_v36 = vrot.slane %v1075_v11, %v5096_v54 }
 0x46c   :  { %4634 = vpow2.f32 %v1559_v9  ;;  %v1549_v21 = vsub.f32 %v1511_v39, %v1539_v16  ;;  %v1110_v44 = vrot.slane %v1096_v23, %v5096_v54  ;;  %v1162_v45 = vcombine.high %v1079_v18, %v5093_v47 }
 0x46d   :  { %4636 = vpow2.f32 %v1553_v17  ;;  %v1169_v49 = vrot.slane %v1079_v18, %v5096_v54 }
 0x46e   :  { %v1563_v14 = vmul.f32 1.442695, %v1549_v21  ;;  %v1176_v57 = vrot.slane %v1162_v45, %v5096_v54 }
 0x46f   :  { %v1060_v26 = vpop.permute.xlu0 %1059 }
 0x470   :  { %v1067_v32 = vpack.i.b16 %v1060_v26, %v516_v50  ;;  %v1070_v33 = vshrl.u32 %v1060_v26, 16  ;;  %4638 = vpow2.f32 %v1563_v14 }
 0x471   :  { %v5250_v12 = vpop.eup %4630  ;;  %4640 = vpow2.f32 %v1557_v22 }
 0x472   :  { %v5253_v38 = vpop.eup %4632  ;;  %v1071_v40 = vpack.i.b16 %v1070_v33, %v1069_v28  ;;  %v1081_v39 = vcombine.high %v1067_v32, %v5093_v47  ;;  %v1088_v42 = vrot.slane %v1067_v32, %v5096_v54  ;;  %v1582_v43 = vsel %vm1518_vm2, %v5250_v12, 0.0 }
 0x473   :  { %1583 = vadd.xlane.f32.xlu0 %v1582_v43  ;;  %v1573_v6 = vsel %vm1518_vm2, %v5253_v38, 0.0 }
 0x474   :  { %v1095_v46 = vrot.slane %v1081_v39, %v5096_v54  ;;  %v1111_v50 = vcombine.low %v1088_v42, %v1103_v36  ;;  %v1112_v51 = vcombine.high %v1088_v42, %v1103_v36  ;;  %v1147_v34 = vcombine.high %v1071_v40, %v5093_v47 }
 0x475   :  { %v1154_v31 = vrot.slane %v1071_v40, %v5096_v54 }
 0x476   :  { %v1119_v35 = vrot.slane %v1111_v50, %v5101_v60  ;;  %v1126_v53 = vrot.slane %v1112_v51, %v5101_v60  ;;  %v1127_v55 = vcombine.low %v1095_v46, %v1110_v44  ;;  %v1128_v56 = vcombine.high %v1095_v46, %v1110_v44 }
 0x477   :  { %v1161_v59 = vrot.slane %v1147_v34, %v5096_v54  ;;  %v1177_v27 = vcombine.low %v1154_v31, %v1169_v49  ;;  %v1178_v61 = vcombine.high %v1154_v31, %v1169_v49  ;;  %1574 = vadd.xlane.f32.xlu0 %v1573_v6 }
 0x478   :  { %v1135_v62 = vrot.slane %v1127_v55, %v5101_v60  ;;  %v1142_v63 = vrot.slane %v1128_v56, %v5101_v60  ;;  %v1213_v0 = vcombine.low %v1119_v35, %v1126_v53  ;;  %v4218_v1 = vcombine.high %v1119_v35, %v1126_v53 }
 0x479   :  { %v5273_v2 = vpop.eup %4634  ;;  %v1185_v4 = vrot.slane %v1177_v27, %v5101_v60  ;;  %v1192_v9 = vrot.slane %v1178_v61, %v5101_v60  ;;  %v1193_v10 = vcombine.low %v1161_v59, %v1176_v57  ;;  %v1194_v11 = vcombine.high %v1161_v59, %v1176_v57 }
 0x47a   :  { %v1220_v13 = vrot.slane %v1213_v0, %v5096_v54  ;;  %v1228_v15 = vrot.slane %v4218_v1, %v5096_v54  ;;  %v1229_v16 = vcombine.low %v1135_v62, %v1142_v63  ;;  %v4219_v17 = vcombine.high %v1135_v62, %v1142_v63  ;;  %v5285_v32 = vpop.eup %4636 }
 0x47b   :  { %v1201_v20 = vrot.slane %v1193_v10, %v5101_v60  ;;  %v1208_v21 = vrot.slane %v1194_v11, %v5101_v60  ;;  %v1263_v22 = vcombine.low %v1185_v4, %v1192_v9  ;;  %v4220_v18 = vcombine.high %v1185_v4, %v1192_v9  ;;  %v2336_v11 = vpop.permute.xlu1 %2335 }
 0x47c   :  { %v1236_v23 = vrot.slane %v1229_v16, %v5096_v54  ;;  %v1244_v14 = vrot.slane %v4219_v17, %v5096_v54  ;;  %v1579_v26 = vsel %vm1518_vm2, %v5273_v2, 0.0  ;;  %v1245_v28 = vcombine.low %v1220_v13, %v1228_v15 }
 0x47d   :  { %v1270_v33 = vrot.slane %v1263_v22, %v5096_v54  ;;  %v1278_v36 = vrot.slane %v4220_v18, %v5096_v54  ;;  %v1279_v40 = vcombine.low %v1201_v20, %v1208_v21  ;;  %v4221_v39 = vcombine.high %v1201_v20, %v1208_v21  ;;  %1580 = vadd.xlane.f32.xlu1 %v1579_v26  ;;  %v5289_v42 = vpop.eup %4638  ;;  %v2338_v22 = vpop.permute.xlu0 %2337 }
 0x47e   :  { %v1253_v43 = vcombine.low %v1236_v23, %v1244_v14  ;;  %v1585_v44 = vsel %vm1518_vm2, %v5289_v42, 0.0  ;;  %v5295_v51 = vpop.eup %4640  ;;  %v1570_v34 = vsel %vm1518_vm2, %v5285_v32, 0.0  ;;  %v1252_v49 = vrot.slane %v1245_v28, %v5101_v60 }
 0x47f   :  { %v1286_v45 = vrot.slane %v1279_v40, %v5096_v54  ;;  %v1294_v46 = vrot.slane %v4221_v39, %v5096_v54  ;;  %v1295_v50 = vcombine.low %v1270_v33, %v1278_v36  ;;  %1586 = vadd.xlane.f32.xlu0 %v1585_v44  ;;  %v1576_v57 = vsel %vm1518_vm2, %v5295_v51, 0.0 }
 0x480   :  { %v1260_v31 = vrot.slane %v1253_v43, %v5101_v60  ;;  %v2346_v23 = vshrl.u32 %v2336_v11, 16  ;;  %v2353_v14 = vshrl.u32 %v2338_v22, 16  ;;  %v2345_v26 = vshrl.u32 %v5230_v52, 16 }
 0x481   :  { %1571 = vadd.xlane.f32.xlu1 %v1570_v34  ;;  %v1303_v6 = vcombine.low %v1286_v45, %v1294_v46  ;;  %v1302_v55 = vrot.slane %v1295_v50, %v5101_v60  ;;  %v2343_v36 = vpack.i.b16 %v2336_v11, %v5230_v52 }
 0x482   :  { %v1261_v35 = vcombine.low %v1252_v49, %v1260_v31  ;;  %v5301_v53 = vcombine.high %v1252_v49, %v1260_v31  ;;  %v2347_v33 = vpack.i.b16 %v2346_v23, %v2345_v26 }
 0x483   :  { %v1310_v56 = vrot.slane %v1303_v6, %v5101_v60  ;;  %v2357_v44 = vcombine.high %v2343_v36, %v5093_v47 }
 0x484   :  { %v1317_v61 = vshrl.u32 %v1261_v35, 16  ;;  %v1325_v62 = vshrl.u32 %v5301_v53, 16  ;;  %v2423_v43 = vcombine.high %v2347_v33, %v5093_v47 }
 0x485   :  { %1577 = vadd.xlane.f32.xlu1 %v1576_v57  ;;  %v1311_v59 = vcombine.low %v1302_v55, %v1310_v56  ;;  %v5307_v27 = vcombine.high %v1302_v55, %v1310_v56  ;;  %v2371_v52 = vrot.slane %v2357_v44, %v5096_v54  ;;  %v2430_v55 = vrot.slane %v2347_v33, %v5096_v54 }
 0x486   :  { %v2437_v49 = vrot.slane %v2423_v43, %v5096_v54 }
 0x487   :  { %v1315_v63 = vpack.i.b16 %v1311_v59, %v1261_v35  ;;  %v1318_v0 = vshrl.u32 %v1311_v59, 16  ;;  %v1323_v1 = vpack.i.b16 %v5307_v27, %v5301_v53  ;;  %v1326_v4 = vshrl.u32 %v5307_v27, 16 }
 0x488   :  { %v2364_v59 = vrot.slane %v2343_v36, %v5096_v54 }
 0x489   :  { %4427 = vmatpush3.bf16.msra.mxu1 %v1315_v63  ;;  %v1319_v9 = vpack.i.b16 %v1318_v0, %v1317_v61  ;;  %v5313_v10 = vpack.i.b16 %v1326_v4, %v1325_v62 }
 0x48a   :  { %4438 = vmatprep.subr.bf16.mxu1 %v4909_v41 }
 0x48b   :  { %4433 = vmatpush3.bf16.msra.mxu0 %v1319_v9 }
 0x48c   :  { %4444 = vmatprep.subr.bf16.mxu0 %v4909_v41 }
 0x496   :  { %2070 = vrot.lane.b32.xlu1 %v5184_v48, %s4897_s1 }
 0x49c   :  { %v1542_v13 = vpop.xlane.xlu1 %1541 }
 0x49d   :  { %v1550_v15 = vsub.f32 %v5219_v37, %v1542_v13 }
 0x49f   :  { %v1565_v16 = vmul.f32 1.442695, %v1550_v15 }
 0x4a0   :  { %v2340_v21 = vpop.permute.xlu1 %2339 }
 0x4a1   :  { %4642 = vpow2.f32 %v1565_v16  ;;  %v2354_v18 = vshrl.u32 %v2340_v21, 16  ;;  %v2351_v37 = vpack.i.b16 %v2340_v21, %v2338_v22 }
 0x4a3   :  { %v2355_v28 = vpack.i.b16 %v2354_v18, %v2353_v14  ;;  %v2372_v39 = vcombine.high %v2351_v37, %v5093_v47  ;;  %v2379_v6 = vrot.slane %v2351_v37, %v5096_v54 }
 0x4a4   :  { %v5334_v34 = vpop.permute.xlu1 %2068 }
 0x4a5   :  { %v2438_v40 = vcombine.high %v2355_v28, %v5093_v47  ;;  %v2386_v50 = vrot.slane %v2372_v39, %v5096_v54  ;;  %v2445_v31 = vrot.slane %v2355_v28, %v5096_v54  ;;  %v2387_v9 = vcombine.low %v2364_v59, %v2379_v6 }
 0x4a6   :  { %v2388_v11 = vcombine.high %v2364_v59, %v2379_v6  ;;  %v2079_v27 = vshrl.u32 %v5334_v34, 16 }
 0x4a7   :  { %v2452_v46 = vrot.slane %v2438_v40, %v5096_v54  ;;  %v2403_v61 = vcombine.low %v2371_v52, %v2386_v50  ;;  %v2404_v62 = vcombine.high %v2371_v52, %v2386_v50  ;;  %v2453_v0 = vcombine.low %v2430_v55, %v2445_v31 }
 0x4a8   :  { %v2454_v4 = vcombine.high %v2430_v55, %v2445_v31  ;;  %v2395_v14 = vrot.slane %v2387_v9, %v5101_v60  ;;  %v2402_v26 = vrot.slane %v2388_v11, %v5101_v60 }
 0x4a9   :  { %v2469_v56 = vcombine.low %v2437_v49, %v2452_v46  ;;  %v2470_v57 = vcombine.high %v2437_v49, %v2452_v46  ;;  %v2411_v16 = vrot.slane %v2403_v61, %v5101_v60  ;;  %v2461_v18 = vrot.slane %v2453_v0, %v5101_v60 }
 0x4aa   :  { %v2468_v23 = vrot.slane %v2454_v4, %v5101_v60  ;;  %v2489_v44 = vcombine.low %v2395_v14, %v2402_v26 }
 0x4ab   :  { %v2477_v13 = vrot.slane %v2469_v56, %v5101_v60  ;;  %v2484_v15 = vrot.slane %v2470_v57, %v5101_v60 }
 0x4ac   :  { %v2539_v39 = vcombine.low %v2461_v18, %v2468_v23  ;;  %v4240_v43 = vcombine.high %v2461_v18, %v2468_v23  ;;  %v2496_v55 = vrot.slane %v2489_v44, %v5096_v54 }
 0x4ad   :  { %v2555_v28 = vcombine.low %v2477_v13, %v2484_v15  ;;  %v4241_v37 = vcombine.high %v2477_v13, %v2484_v15 }
 0x4ae   :  { %v5320_v17 = vpop.eup %4642  ;;  %v2546_v52 = vrot.slane %v2539_v39, %v5096_v54  ;;  %v2554_v6 = vrot.slane %v4240_v43, %v5096_v54 }
 0x4af   :  { %v1588_v20 = vsel %vm1518_vm2, %v5320_v17, 0.0  ;;  %v2562_v46 = vrot.slane %v2555_v28, %v5096_v54  ;;  %v2570_v50 = vrot.slane %v4241_v37, %v5096_v54 }
 0x4b0   :  { %1589 = vadd.xlane.f32.xlu0 %v1588_v20  ;;  %v2418_v20 = vrot.slane %v2404_v62, %v5101_v60 }
 0x4b1   :  { %v2579_v57 = vcombine.low %v2562_v46, %v2570_v50 }
 0x4b2   :  { %v2505_v33 = vcombine.low %v2411_v16, %v2418_v20  ;;  %v4239_v40 = vcombine.high %v2411_v16, %v2418_v20 }
 0x4b3   :  { %v5361_v9 = vrot.slane %v2579_v57, %v5101_v60 }
 0x4b4   :  { %v2512_v49 = vrot.slane %v2505_v33, %v5096_v54  ;;  %v2520_v31 = vrot.slane %v4239_v40, %v5096_v54 }
 0x4b6   :  { %v2529_v61 = vcombine.low %v2512_v49, %v2520_v31 }
 0x4b8   :  { %v5364_v16 = vrot.slane %v2529_v61, %v5101_v60 }
 0x4c6   :  { %2072 = vrot.lane.b32.xlu0 %v5184_v48, %s4908_s29 }
 0x4f4   :  { %v1569_v45 = vpop.xlane.xlu0 %1568 }
 0x4f5   :  { %4644 = vrcp.f32 %v1569_v45  ;;  %v4238_v45 = vcombine.high %v2395_v14, %v2402_v26 }
 0x4f7   :  { %v2504_v56 = vrot.slane %v4238_v45, %v5096_v54 }
 0x4f9   :  { %v2521_v4 = vcombine.low %v2496_v55, %v2504_v56 }
 0x4fc   :  { %v1584_v35 = vpop.xlane.xlu0 %1583 }
 0x500   :  { %v1575_v21 = vpop.xlane.xlu0 %1574 }
 0x502   :  { %v4645_v59 = vpop.eup %4644 }
 0x506   :  { %v1581_v63 = vpop.xlane.xlu1 %1580 }
 0x50a   :  { %v1572_v22 = vpop.xlane.xlu1 %1571 }
 0x50b   :  { %4646 = vrcp.f32 %v1572_v22  ;;  %v5373_v22 = vrot.slane %v2521_v4, %v5101_v60 }
 0x50c   :  { %4648 = vrcp.f32 %v1575_v21 }
 0x50d   :  { %4650 = vrcp.f32 %v1581_v63  ;;  %v1599_v63 = vmul.f32 %v4645_v59, %v5245_v8 }
 0x50e   :  { %v1578_v36 = vpop.xlane.xlu1 %1577 }
 0x50f   :  { %4652 = vrcp.f32 %v1578_v36 }
 0x510   :  { %4654 = vrcp.f32 %v1584_v35  ;;  %v2571_v35 = vcombine.low %v2546_v52, %v2554_v6 }
 0x512   :  { %v5367_v20 = vrot.slane %v2571_v35, %v5101_v60  ;;  %v2071_v36 = vpop.permute.xlu1 %2070 }
 0x513   :  { %v2086_v43 = vshrl.u32 %v2071_v36, 16 }
 0x514   :  { %v2587_v18 = vcombine.low %v5367_v20, %v5361_v9 }
 0x516   :  { %v2593_v50 = vshrl.u32 %v2587_v18, 16 }
 0x518   :  { %v4647_v62 = vpop.eup %4646 }
 0x519   :  { %v1600_v0 = vmul.f32 %v4647_v62, %v5285_v32  ;;  %v4649_v11 = vpop.eup %4648 }
 0x51a   :  { %v4651_v13 = vpop.eup %4650  ;;  %v1601_v8 = vmul.f32 %v4649_v11, %v5253_v38 }
 0x51b   :  { %v1607_v15 = vpack.c.bf16 %v1600_v0, %v1599_v63  ;;  %v1603_v38 = vmul.f32 %v4651_v13, %v5273_v2 }
 0x51c   :  { %v4653_v21 = vpop.eup %4652 }
 0x51d   :  { %4429 = vmatmul.mubr.msk.bf16.vlgmr.msra.gmra.mxu1 %vm1518_vm2, %v1607_v15  ;;  %v1602_v32 = vmul.f32 %v4653_v21, %v5295_v51  ;;  %v4655_v23 = vpop.eup %4654  ;;  %v2537_v51 = vcombine.low %v5373_v22, %v5364_v16 }
 0x51e   :  { %4439 = vmatpush3.bf16.msra.mxu1 %v1323_v1  ;;  %4440 = vmatprep.mubr.msk.bf16.mxu1 %vm4910_vm0, %v4909_v41  ;;  %v1604_v26 = vmul.f32 %v4655_v23, %v5250_v12  ;;  %v1587_v12 = vpop.xlane.xlu0 %1586  ;;  %v2078_v1 = vshrl.u32 %v5184_v48, 16 }
 0x51f   :  { %v1608_v14 = vpack.c.bf16 %v1602_v32, %v1601_v8  ;;  %4450 = vmatprep.subr.bf16.mxu1 %v4909_v41  ;;  %v2591_v28 = vpack.i.b16 %v2587_v18, %v2537_v51  ;;  %4656 = vrcp.f32 %v1587_v12  ;;  %v2592_v6 = vshrl.u32 %v2537_v51, 16 }
 0x520   :  { %v1609_v53 = vpack.c.bf16 %v1604_v26, %v1603_v38  ;;  %v2080_v33 = vpack.i.b16 %v2079_v27, %v2078_v1 }
 0x521   :  { %4435 = vmatmul.mubr.msk.bf16.vlgmr.msra.gmra.mxu0 %vm1518_vm2, %v1608_v14  ;;  %v2876_v2 = vsel %vm1329_vm1, %v2591_v28, 0  ;;  %v2594_v0 = vpack.i.b16 %v2593_v50, %v2592_v6 }
 0x522   :  { %4445 = vmatpush3.bf16.msra.mxu0 %v5313_v10  ;;  %4446 = vmatprep.mubr.msk.bf16.mxu0 %vm4910_vm0, %v4909_v41  ;;  %v2076_v10 = vpack.i.b16 %v5334_v34, %v5184_v48  ;;  %v2156_v46 = vcombine.high %v2080_v33, %v5093_v47  ;;  %v2163_v35 = vrot.slane %v2080_v33, %v5096_v54 }
 0x523   :  { %4456 = vmatprep.subr.bf16.mxu0 %v4909_v41 }
 0x524   :  { %v2090_v40 = vcombine.high %v2076_v10, %v5093_v47  ;;  %v2097_v49 = vrot.slane %v2076_v10, %v5096_v54  ;;  %v2170_v62 = vrot.slane %v2156_v46, %v5096_v54 }
 0x525   :  { %4441 = vmatmul.mubr.msk.bf16.vlgmr.msra.gmra.mxu1 %vm1518_vm2, %v1609_v53 }
 0x526   :  { %4451 = vmatpush3.bf16.xpose.msra.mxu1 %v2876_v2  ;;  %4452 = vmatprep.mubr.msk.bf16.mxu1 %vm4910_vm0, %v4909_v41  ;;  %v2104_v34 = vrot.slane %v2090_v40, %v5096_v54 }
 0x527   :  { %4462 = vmatprep.subr.bf16.mxu1 %v4909_v41 }
 0x52c   :  { %v4657_v55 = vpop.eup %4656 }
 0x52d   :  { %v1605_v18 = vmul.f32 %v4657_v55, %v5289_v42 }
 0x539   :  { %v1590_v37 = vpop.xlane.xlu0 %1589 }
 0x53a   :  { %4658 = vrcp.f32 %v1590_v37 }
 0x53d   :  { %v2073_v39 = vpop.permute.xlu0 %2072 }
 0x53e   :  { %v2084_v44 = vpack.i.b16 %v2073_v39, %v2071_v36  ;;  %v2087_v45 = vshrl.u32 %v2073_v39, 16 }
 0x540   :  { %v2088_v31 = vpack.i.b16 %v2087_v45, %v2086_v43  ;;  %v2105_v52 = vcombine.high %v2084_v44, %v5093_v47  ;;  %v2112_v48 = vrot.slane %v2084_v44, %v5096_v54 }
 0x542   :  { %v2119_v56 = vrot.slane %v2105_v52, %v5096_v54  ;;  %v2120_v57 = vcombine.low %v2097_v49, %v2112_v48  ;;  %v2121_v59 = vcombine.high %v2097_v49, %v2112_v48  ;;  %v2171_v61 = vcombine.high %v2088_v31, %v5093_v47 }
 0x543   :  { %v2178_v63 = vrot.slane %v2088_v31, %v5096_v54 }
 0x544   :  { %v2128_v4 = vrot.slane %v2120_v57, %v5101_v60  ;;  %v2135_v11 = vrot.slane %v2121_v59, %v5101_v60  ;;  %v2136_v13 = vcombine.low %v2104_v34, %v2119_v56  ;;  %v2137_v15 = vcombine.high %v2104_v34, %v2119_v56 }
 0x545   :  { %v2185_v21 = vrot.slane %v2171_v61, %v5096_v54  ;;  %v2186_v8 = vcombine.low %v2163_v35, %v2178_v63  ;;  %v2187_v32 = vcombine.high %v2163_v35, %v2178_v63  ;;  %v2588_v56 = vcombine.high %v5367_v20, %v5361_v9 }
 0x546   :  { %v2144_v23 = vrot.slane %v2136_v13, %v5101_v60  ;;  %v2151_v14 = vrot.slane %v2137_v15, %v5101_v60  ;;  %v2222_v38 = vcombine.low %v2128_v4, %v2135_v11  ;;  %v4234_v51 = vcombine.high %v2128_v4, %v2135_v11 }
 0x547   :  { %v4659_v26 = vpop.eup %4658  ;;  %v2194_v28 = vrot.slane %v2186_v8, %v5101_v60  ;;  %v2201_v53 = vrot.slane %v2187_v32, %v5101_v60  ;;  %v2202_v2 = vcombine.low %v2170_v62, %v2185_v21  ;;  %v2203_v12 = vcombine.high %v2170_v62, %v2185_v21 }
 0x548   :  { %v2229_v27 = vrot.slane %v2222_v38, %v5096_v54  ;;  %v2237_v1 = vrot.slane %v4234_v51, %v5096_v54  ;;  %v2238_v10 = vcombine.low %v2144_v23, %v2151_v14  ;;  %v4235_v37 = vcombine.high %v2144_v23, %v2151_v14 }
 0x549   :  { %v2210_v42 = vrot.slane %v2202_v2, %v5101_v60  ;;  %v2217_v33 = vrot.slane %v2203_v12, %v5101_v60  ;;  %v2272_v36 = vcombine.low %v2194_v28, %v2201_v53  ;;  %v4236_v40 = vcombine.high %v2194_v28, %v2201_v53 }
 0x54a   :  { %v2245_v39 = vrot.slane %v2238_v10, %v5096_v54  ;;  %v2253_v43 = vrot.slane %v4235_v37, %v5096_v54  ;;  %v2254_v44 = vcombine.low %v2229_v27, %v2237_v1  ;;  %v1606_v45 = vmul.f32 %v4659_v26, %v5320_v17 }
 0x54b   :  { %v2279_v46 = vrot.slane %v2272_v36, %v5096_v54  ;;  %v2287_v50 = vrot.slane %v4236_v40, %v5096_v54  ;;  %v2288_v49 = vcombine.low %v2210_v42, %v2217_v33  ;;  %v4237_v31 = vcombine.high %v2210_v42, %v2217_v33 }
 0x54c   :  { %v2262_v52 = vcombine.low %v2245_v39, %v2253_v43  ;;  %v1610_v48 = vpack.c.bf16 %v1606_v45, %v1605_v18  ;;  %v2923_v17 = vsel %vm1329_vm1, %v2594_v0, 0  ;;  %v2261_v59 = vrot.slane %v2254_v44, %v5101_v60 }
 0x54d   :  { %v2295_v34 = vrot.slane %v2288_v49, %v5096_v54  ;;  %v2303_v6 = vrot.slane %v4237_v31, %v5096_v54  ;;  %v2304_v55 = vcombine.low %v2279_v46, %v2287_v50  ;;  %v2538_v35 = vcombine.high %v5373_v22, %v5364_v16 }
 0x54e   :  { %4447 = vmatmul.mubr.msk.bf16.vlgmr.msra.gmra.mxu0 %vm1518_vm2, %v1610_v48  ;;  %v2269_v57 = vrot.slane %v2262_v52, %v5101_v60  ;;  %v2599_v63 = vshrl.u32 %v2588_v56, 16 }
 0x54f   :  { %v2312_v61 = vcombine.low %v2295_v34, %v2303_v6  ;;  %4457 = vmatpush3.bf16.xpose.msra.mxu0 %v2923_v17  ;;  %4458 = vmatprep.mubr.msk.bf16.mxu0 %vm4910_vm0, %v4909_v41  ;;  %v2311_v9 = vrot.slane %v2304_v55, %v5101_v60  ;;  %v2597_v4 = vpack.i.b16 %v2588_v56, %v2538_v35  ;;  %v2598_v11 = vshrl.u32 %v2538_v35, 16 }
 0x550   :  { %4468 = vmatprep.subr.bf16.mxu0 %v4909_v41  ;;  %v2270_v62 = vcombine.low %v2261_v59, %v2269_v57  ;;  %v2271_v23 = vcombine.high %v2261_v59, %v2269_v57 }
 0x551   :  { %v2319_v20 = vrot.slane %v2312_v61, %v5101_v60  ;;  %v2600_v8 = vpack.i.b16 %v2599_v63, %v2598_v11  ;;  %v2970_v16 = vsel %vm1329_vm1, %v2597_v4, 0 }
 0x552   :  { %v2325_v15 = vshrl.u32 %v2270_v62, 16  ;;  %v2331_v51 = vshrl.u32 %v2271_v23, 16 }
 0x553   :  { %v2320_v0 = vcombine.low %v2311_v9, %v2319_v20  ;;  %v2321_v32 = vcombine.high %v2311_v9, %v2319_v20  ;;  %v3017_v18 = vsel %vm1329_vm1, %v2600_v8, 0 }
 0x555   :  { %v2324_v13 = vpack.i.b16 %v2320_v0, %v2270_v62  ;;  %v2326_v21 = vshrl.u32 %v2320_v0, 16  ;;  %v2332_v14 = vshrl.u32 %v2321_v32, 16  ;;  %v2330_v38 = vpack.i.b16 %v2321_v32, %v2271_v23 }
 0x557   :  { %4453 = vmatmul.mubr.msk.bf16.vlgmr.msra.gmra.mxu1 %vm1329_vm1, %v2324_v13  ;;  %v2327_v22 = vpack.i.b16 %v2326_v21, %v2325_v15  ;;  %v2333_v26 = vpack.i.b16 %v2332_v14, %v2331_v51 }
 0x558   :  { %4463 = vmatpush3.bf16.xpose.msra.mxu1 %v2970_v16  ;;  %4464 = vmatprep.mubr.msk.bf16.mxu1 %vm4910_vm0, %v4909_v41 }
 0x559   :  { %4459 = vmatmul.mubr.msk.bf16.vlgmr.msra.gmra.mxu0 %vm1329_vm1, %v2327_v22  ;;  %4474 = vmatprep.subr.bf16.mxu1 %v4909_v41 }
 0x55a   :  { %4469 = vmatpush3.bf16.xpose.msra.mxu0 %v3017_v18  ;;  %4470 = vmatprep.mubr.msk.bf16.mxu0 %vm4910_vm0, %v4909_v41 }
 0x55b   :  { %4480 = vmatprep.subr.bf16.mxu0 %v4909_v41 }
 0x55f   :  { %4465 = vmatmul.mubr.msk.bf16.vlgmr.msra.gmra.mxu1 %vm1329_vm1, %v2330_v38 }
 0x560   :  { %4476 = vmatprep.mubr.msk.bf16.mxu1 %vm4910_vm0, %v4909_v41 }
 0x561   :  { %4471 = vmatmul.mubr.msk.bf16.vlgmr.msra.gmra.mxu0 %vm1329_vm1, %v2333_v26 }
 0x562   :  { %4482 = vmatprep.mubr.msk.bf16.mxu0 %vm4910_vm0, %v4909_v41 }
 0x5dd   :  { %v1648_v28 = vpop.f32.mrf.mxu1 }
 0x5df   :  { %v4430_v53 = vpop.f32.mrf.mxu1 }
 0x5e1   :  { %v1651_v2 = vpop.f32.mrf.mxu1  ;;  %v1692_v12 = vpop.f32.mrf.mxu0 }
 0x5e2   :  { %v1787_v27 = vpack.c.bf16 %v1651_v2, %v1648_v28 }
 0x5e3   :  { %v4431_v1 = vpop.f32.mrf.mxu1  ;;  %v4436_v10 = vpop.f32.mrf.mxu0 }
 0x5e4   :  { %v1795_v39 = vshrl.u32 %v1787_v27, 16 }
 0x5e5   :  { %v1695_v37 = vpop.f32.mrf.mxu0  ;;  %v1736_v42 = vpop.f32.mrf.mxu1 }
 0x5e6   :  { %v1788_v33 = vpack.c.bf16 %v1695_v37, %v1692_v12 }
 0x5e7   :  { %v4437_v36 = vpop.f32.mrf.mxu0  ;;  %v4442_v40 = vpop.f32.mrf.mxu1 }
 0x5e8   :  { %v1793_v43 = vpack.i.b16 %v1788_v33, %v1787_v27  ;;  %v1796_v44 = vshrl.u32 %v1788_v33, 16 }
 0x5e9   :  { %v1739_v45 = vpop.f32.mrf.mxu1 }
 0x5ea   :  { %v1797_v46 = vpack.i.b16 %v1796_v44, %v1795_v39  ;;  %v1789_v50 = vpack.c.bf16 %v1739_v45, %v1736_v42  ;;  %v1807_v6 = vcombine.high %v1793_v43, %v5093_v47  ;;  %v1814_v61 = vrot.slane %v1793_v43, %v5096_v54 }
 0x5eb   :  { %v4443_v49 = vpop.f32.mrf.mxu1 }
 0x5ec   :  { %v1803_v56 = vshrl.u32 %v1789_v50, 16  ;;  %v1873_v59 = vcombine.high %v1797_v46, %v5093_v47  ;;  %v1821_v63 = vrot.slane %v1807_v6, %v5096_v54  ;;  %v1880_v16 = vrot.slane %v1797_v46, %v5096_v54 }
 0x5ee   :  { %v1887_v22 = vrot.slane %v1873_v59, %v5096_v54 }
 0x60e   :  { %v1780_v31 = vpop.f32.mrf.mxu0 }
 0x610   :  { %v4448_v52 = vpop.f32.mrf.mxu0 }
 0x612   :  { %v1783_v48 = vpop.f32.mrf.mxu0 }
 0x613   :  { %v1790_v34 = vpack.c.bf16 %v1783_v48, %v1780_v31 }
 0x614   :  { %v4449_v55 = vpop.f32.mrf.mxu0 }
 0x615   :  { %v1801_v17 = vpack.i.b16 %v1790_v34, %v1789_v50  ;;  %v1804_v57 = vshrl.u32 %v1790_v34, 16 }
 0x617   :  { %v1805_v35 = vpack.i.b16 %v1804_v57, %v1803_v56  ;;  %v1822_v62 = vcombine.high %v1801_v17, %v5093_v47  ;;  %v1829_v9 = vrot.slane %v1801_v17, %v5096_v54  ;;  %v5465_v20 = vpop.f32.mrf.mxu1 }
 0x618   :  { %v3060_v0 = vsel %vm1518_vm2, %v5465_v20, -inf }
 0x619   :  { %v1836_v4 = vrot.slane %v1822_v62, %v5096_v54  ;;  %v1837_v11 = vcombine.low %v1814_v61, %v1829_v9  ;;  %v1838_v13 = vcombine.high %v1814_v61, %v1829_v9  ;;  %v1888_v15 = vcombine.high %v1805_v35, %v5093_v47  ;;  %3061 = vmax.xlane.f32.xlu1 %v3060_v0  ;;  %v4454_v21 = vpop.f32.mrf.mxu1  ;;  %v5472_v8 = vpop.f32.mrf.mxu0 }
 0x61a   :  { %v1895_v32 = vrot.slane %v1805_v35, %v5096_v54  ;;  %v3066_v46 = vsel %vm1518_vm2, %v5472_v8, -inf }
 0x61b   :  { %v1845_v18 = vrot.slane %v1837_v11, %v5101_v60  ;;  %v1852_v23 = vrot.slane %v1838_v13, %v5101_v60  ;;  %v1853_v14 = vcombine.low %v1821_v63, %v1836_v4  ;;  %v1854_v38 = vcombine.high %v1821_v63, %v1836_v4  ;;  %v5479_v51 = vpop.f32.mrf.mxu1  ;;  %v4460_v26 = vpop.f32.mrf.mxu0 }
 0x61c   :  { %v1902_v28 = vrot.slane %v1888_v15, %v5096_v54  ;;  %v1903_v53 = vcombine.low %v1880_v16, %v1895_v32  ;;  %v1904_v2 = vcombine.high %v1880_v16, %v1895_v32  ;;  %v3063_v12 = vsel %vm1518_vm2, %v5479_v51, -inf }
 0x61d   :  { %v1861_v27 = vrot.slane %v1853_v14, %v5101_v60  ;;  %v1868_v1 = vrot.slane %v1854_v38, %v5101_v60  ;;  %v1939_v10 = vcombine.low %v1845_v18, %v1852_v23  ;;  %v4230_v37 = vcombine.high %v1845_v18, %v1852_v23  ;;  %3064 = vmax.xlane.f32.xlu0 %v3063_v12  ;;  %v4455_v42 = vpop.f32.mrf.mxu1  ;;  %v5486_v33 = vpop.f32.mrf.mxu0 }
 0x61e   :  { %v1911_v36 = vrot.slane %v1903_v53, %v5101_v60  ;;  %v1918_v40 = vrot.slane %v1904_v2, %v5101_v60  ;;  %v1919_v39 = vcombine.low %v1887_v22, %v1902_v28  ;;  %v1920_v43 = vcombine.high %v1887_v22, %v1902_v28 }
 0x61f   :  { %v4461_v44 = vpop.f32.mrf.mxu0  ;;  %v5490_v45 = vpop.f32.mrf.mxu1  ;;  %v1946_v50 = vrot.slane %v1939_v10, %v5096_v54  ;;  %v1954_v49 = vrot.slane %v4230_v37, %v5096_v54  ;;  %v1955_v31 = vcombine.low %v1861_v27, %v1868_v1  ;;  %v4231_v6 = vcombine.high %v1861_v27, %v1868_v1 }
 0x620   :  { %v1927_v52 = vrot.slane %v1919_v39, %v5101_v60  ;;  %v1934_v48 = vrot.slane %v1920_v43, %v5101_v60  ;;  %v3072_v34 = vsel %vm1518_vm2, %v5490_v45, -inf  ;;  %v1989_v59 = vcombine.low %v1911_v36, %v1918_v40 }
 0x621   :  { %3073 = vmax.xlane.f32.xlu1 %v3072_v34  ;;  %v4466_v55 = vpop.f32.mrf.mxu1  ;;  %3067 = vmax.xlane.f32.xlu0 %v3066_v46  ;;  %v5500_v56 = vpop.f32.mrf.mxu0  ;;  %v1962_v17 = vrot.slane %v1955_v31, %v5096_v54  ;;  %v1971_v57 = vcombine.low %v1946_v50, %v1954_v49  ;;  %v1970_v61 = vrot.slane %v4231_v6, %v5096_v54  ;;  %v3069_v0 = vsel %vm1518_vm2, %v5486_v33, -inf }
 0x622   :  { %v4232_v35 = vcombine.high %v1911_v36, %v1918_v40  ;;  %v2005_v62 = vcombine.low %v1927_v52, %v1934_v48  ;;  %v1996_v4 = vrot.slane %v1989_v59, %v5096_v54  ;;  %v4233_v11 = vcombine.high %v1927_v52, %v1934_v48 }
 0x623   :  { %v5504_v9 = vpop.f32.mrf.mxu1  ;;  %v4472_v63 = vpop.f32.mrf.mxu0  ;;  %v3078_v13 = vsel %vm1518_vm2, %v5500_v56, -inf  ;;  %v1979_v15 = vcombine.low %v1962_v17, %v1970_v61  ;;  %v1978_v23 = vrot.slane %v1971_v57, %v5101_v60 }
 0x624   :  { %v2004_v21 = vrot.slane %v4232_v35, %v5096_v54  ;;  %v2012_v16 = vrot.slane %v2005_v62, %v5096_v54  ;;  %v2020_v18 = vrot.slane %v4233_v11, %v5096_v54  ;;  %v3075_v53 = vsel %vm1518_vm2, %v5504_v9, -inf }
 0x625   :  { %v4467_v22 = vpop.f32.mrf.mxu1  ;;  %3070 = vmax.xlane.f32.xlu0 %v3069_v0  ;;  %3079 = vmax.xlane.f32.xlu1 %v3078_v13  ;;  %v5513_v32 = vpop.f32.mrf.mxu0  ;;  %v1986_v14 = vrot.slane %v1979_v15, %v5101_v60 }
 0x626   :  { %v2021_v38 = vcombine.low %v1996_v4, %v2004_v21  ;;  %v2029_v28 = vcombine.low %v2012_v16, %v2020_v18  ;;  %v3081_v42 = vsel %vm1518_vm2, %v5513_v32, -inf  ;;  %v2612_v16 = vshrl.u32 %v5189_v58, 16 }
 0x627   :  { %v4473_v26 = vpop.f32.mrf.mxu0  ;;  %v5520_v2 = vcombine.low %v1978_v23, %v1986_v14  ;;  %v5522_v12 = vcombine.high %v1978_v23, %v1986_v14 }
 0x628   :  { %v2028_v27 = vrot.slane %v2021_v38, %v5101_v60  ;;  %v2036_v1 = vrot.slane %v2029_v28, %v5101_v60 }
 0x629   :  { %3076 = vmax.xlane.f32.xlu0 %v3075_v53  ;;  %v2048_v36 = vshrl.u32 %v5522_v12, 16  ;;  %v2042_v40 = vshrl.u32 %v5520_v2, 16 }
 0x62a   :  { %v5526_v10 = vcombine.low %v2028_v27, %v2036_v1  ;;  %v5528_v37 = vcombine.high %v2028_v27, %v2036_v1 }
 0x62c   :  { %v2047_v39 = vpack.i.b16 %v5528_v37, %v5522_v12  ;;  %v2049_v43 = vshrl.u32 %v5528_v37, 16  ;;  %v2043_v44 = vshrl.u32 %v5526_v10, 16  ;;  %v2041_v46 = vpack.i.b16 %v5526_v10, %v5520_v2 }
 0x62d   :  { %3082 = vmax.xlane.f32.xlu0 %v3081_v42 }
 0x62e   :  { %v5540_v50 = vpack.i.b16 %v2049_v43, %v2048_v36  ;;  %v5542_v49 = vpack.i.b16 %v2043_v44, %v2042_v40 }
 0x636   :  { %2602 = vrot.lane.b32.xlu1 %v5189_v58, %s4907_s5 }
 0x63a   :  { %2606 = vrot.lane.b32.xlu1 %v5189_v58, %s4908_s29 }
 0x643   :  { %2604 = vrot.lane.b32.xlu0 %v5189_v58, %s4897_s1 }
 0x6a2   :  { %v3062_v31 = vpop.xlane.xlu1 %3061 }
 0x6a3   :  { %v3084_v52 = vsub.f32 %v5465_v20, %v3062_v31 }
 0x6a5   :  { %v3092_v48 = vmul.f32 1.442695, %v3084_v52 }
 0x6a6   :  { %v3065_v34 = vpop.xlane.xlu0 %3064 }
 0x6a7   :  { %4660 = vpow2.f32 %v3092_v48  ;;  %v3085_v6 = vsub.f32 %v5479_v51, %v3065_v34 }
 0x6a9   :  { %v3094_v55 = vmul.f32 1.442695, %v3085_v6 }
 0x6aa   :  { %v3074_v17 = vpop.xlane.xlu1 %3073  ;;  %v3068_v57 = vpop.xlane.xlu0 %3067 }
 0x6ab   :  { %4662 = vpow2.f32 %v3094_v55  ;;  %v3088_v59 = vsub.f32 %v5490_v45, %v3074_v17  ;;  %v3086_v61 = vsub.f32 %v5472_v8, %v3068_v57 }
 0x6ad   :  { %v3100_v35 = vmul.f32 1.442695, %v3088_v59  ;;  %v3096_v62 = vmul.f32 1.442695, %v3086_v61 }
 0x6ae   :  { %v3071_v63 = vpop.xlane.xlu0 %3070  ;;  %v3080_v0 = vpop.xlane.xlu1 %3079 }
 0x6af   :  { %4664 = vpow2.f32 %v3100_v35  ;;  %v3087_v20 = vsub.f32 %v5486_v33, %v3071_v63  ;;  %v3090_v51 = vsub.f32 %v5500_v56, %v3080_v0 }
 0x6b0   :  { %4666 = vpow2.f32 %v3096_v62 }
 0x6b1   :  { %v3098_v4 = vmul.f32 1.442695, %v3087_v20  ;;  %v3104_v23 = vmul.f32 1.442695, %v3090_v51 }
 0x6b2   :  { %v3077_v11 = vpop.xlane.xlu0 %3076  ;;  %v2603_v13 = vpop.permute.xlu1 %2602 }
 0x6b3   :  { %4668 = vpow2.f32 %v3098_v4  ;;  %v3089_v15 = vsub.f32 %v5504_v9, %v3077_v11  ;;  %v2613_v45 = vshrl.u32 %v2603_v13, 16  ;;  %v2610_v22 = vpack.i.b16 %v2603_v13, %v5189_v58 }
 0x6b4   :  { %v5557_v21 = vpop.eup %4660 }
 0x6b5   :  { %v3102_v8 = vmul.f32 1.442695, %v3089_v15  ;;  %v3108_v33 = vsel %vm1518_vm2, %v5557_v21, 0.0  ;;  %v2614_v56 = vpack.i.b16 %v2613_v45, %v2612_v16  ;;  %v2624_v28 = vcombine.high %v2610_v22, %v5093_v47 }
 0x6b6   :  { %v3083_v18 = vpop.xlane.xlu0 %3082  ;;  %3109 = vadd.xlane.f32.xlu1 %v3108_v33  ;;  %v2607_v38 = vpop.permute.xlu1 %2606 }
 0x6b7   :  { %4670 = vpow2.f32 %v3102_v8  ;;  %v3091_v9 = vsub.f32 %v5513_v32, %v3083_v18  ;;  %v2621_v27 = vshrl.u32 %v2607_v38, 16  ;;  %v2690_v40 = vcombine.high %v2614_v56, %v5093_v47 }
 0x6b8   :  { %v5563_v14 = vpop.eup %4662  ;;  %4672 = vpow2.f32 %v3104_v23  ;;  %v2631_v32 = vrot.slane %v2610_v22, %v5096_v54  ;;  %v2638_v48 = vrot.slane %v2624_v28, %v5096_v54  ;;  %v2697_v61 = vrot.slane %v2614_v56, %v5096_v54 }
 0x6b9   :  { %v3111_v26 = vsel %vm1518_vm2, %v5563_v14, 0.0  ;;  %v3106_v53 = vmul.f32 1.442695, %v3091_v9  ;;  %v2704_v35 = vrot.slane %v2690_v40, %v5096_v54 }
 0x6ba   :  { %3112 = vadd.xlane.f32.xlu0 %v3111_v26  ;;  %v2605_v58 = vpop.permute.xlu0 %2604 }
 0x6bb   :  { %v2618_v1 = vpack.i.b16 %v2607_v38, %v2605_v58  ;;  %v2620_v42 = vshrl.u32 %v2605_v58, 16  ;;  %4674 = vpow2.f32 %v3106_v53 }
 0x6bc   :  { %v5569_v36 = vpop.eup %4664 }
 0x6bd   :  { %v5572_v43 = vpop.eup %4666  ;;  %v2622_v44 = vpack.i.b16 %v2621_v27, %v2620_v42  ;;  %v2639_v31 = vcombine.high %v2618_v1, %v5093_v47  ;;  %v2646_v52 = vrot.slane %v2618_v1, %v5096_v54  ;;  %v3120_v63 = vsel %vm1518_vm2, %v5569_v36, 0.0 }
 0x6be   :  { %v3114_v34 = vsel %vm1518_vm2, %v5572_v43, 0.0 }
 0x6bf   :  { %v2653_v6 = vrot.slane %v2639_v31, %v5096_v54  ;;  %v2654_v55 = vcombine.low %v2631_v32, %v2646_v52  ;;  %v2655_v17 = vcombine.high %v2631_v32, %v2646_v52  ;;  %v2705_v57 = vcombine.high %v2622_v44, %v5093_v47  ;;  %3115 = vadd.xlane.f32.xlu1 %v3114_v34 }
 0x6c0   :  { %v5582_v59 = vpop.eup %4668  ;;  %v2712_v62 = vrot.slane %v2622_v44, %v5096_v54 }
 0x6c1   :  { %v2662_v0 = vrot.slane %v2654_v55, %v5101_v60  ;;  %v2669_v20 = vrot.slane %v2655_v17, %v5101_v60  ;;  %v2670_v4 = vcombine.low %v2638_v48, %v2653_v6  ;;  %v2671_v11 = vcombine.high %v2638_v48, %v2653_v6 }
 0x6c2   :  { %v2719_v13 = vrot.slane %v2705_v57, %v5096_v54  ;;  %v2720_v51 = vcombine.low %v2697_v61, %v2712_v62  ;;  %v2721_v15 = vcombine.high %v2697_v61, %v2712_v62  ;;  %v3117_v45 = vsel %vm1518_vm2, %v5582_v59, 0.0 }
 0x6c3   :  { %v2678_v8 = vrot.slane %v2670_v4, %v5101_v60  ;;  %v2685_v16 = vrot.slane %v2671_v11, %v5101_v60  ;;  %v2756_v22 = vcombine.low %v2662_v0, %v2669_v20  ;;  %v4242_v33 = vcombine.high %v2662_v0, %v2669_v20  ;;  %3121 = vadd.xlane.f32.xlu1 %v3120_v63 }
 0x6c4   :  { %v5596_v18 = vpop.eup %4670  ;;  %v2728_v23 = vrot.slane %v2720_v51, %v5101_v60  ;;  %v2735_v56 = vrot.slane %v2721_v15, %v5101_v60  ;;  %v2736_v38 = vcombine.low %v2704_v35, %v2719_v13  ;;  %v2737_v9 = vcombine.high %v2704_v35, %v2719_v13  ;;  %3118 = vadd.xlane.f32.xlu0 %v3117_v45 }
 0x6c5   :  { %v2763_v26 = vrot.slane %v2756_v22, %v5096_v54  ;;  %v2771_v28 = vrot.slane %v4242_v33, %v5096_v54  ;;  %v2772_v53 = vcombine.low %v2678_v8, %v2685_v16  ;;  %v4243_v58 = vcombine.high %v2678_v8, %v2685_v16  ;;  %v5608_v52 = vpop.eup %4672 }
 0x6c6   :  { %v2744_v27 = vrot.slane %v2736_v38, %v5101_v60  ;;  %v2751_v1 = vrot.slane %v2737_v9, %v5101_v60  ;;  %v2806_v42 = vcombine.low %v2728_v23, %v2735_v56  ;;  %v4244_v40 = vcombine.high %v2728_v23, %v2735_v56 }
 0x6c7   :  { %v2779_v32 = vrot.slane %v2772_v53, %v5096_v54  ;;  %v2787_v44 = vrot.slane %v4243_v58, %v5096_v54  ;;  %v3123_v31 = vsel %vm1518_vm2, %v5596_v18, 0.0  ;;  %v2788_v57 = vcombine.low %v2763_v26, %v2771_v28 }
 0x6c8   :  { %v2813_v48 = vrot.slane %v2806_v42, %v5096_v54  ;;  %v2821_v34 = vrot.slane %v4244_v40, %v5096_v54  ;;  %v2822_v6 = vcombine.low %v2744_v27, %v2751_v1  ;;  %v4245_v55 = vcombine.high %v2744_v27, %v2751_v1  ;;  %3124 = vadd.xlane.f32.xlu0 %v3123_v31  ;;  %v5612_v17 = vpop.eup %4674 }
 0x6c9   :  { %v2796_v61 = vcombine.low %v2779_v32, %v2787_v44  ;;  %v3129_v35 = vsel %vm1518_vm2, %v5612_v17, 0.0  ;;  %v3126_v20 = vsel %vm1518_vm2, %v5608_v52, 0.0  ;;  %v2795_v4 = vrot.slane %v2788_v57, %v5101_v60 }
 0x6ca   :  { %v2829_v62 = vrot.slane %v2822_v6, %v5096_v54  ;;  %v2837_v63 = vrot.slane %v4245_v55, %v5096_v54  ;;  %v2838_v0 = vcombine.low %v2813_v48, %v2821_v34  ;;  %3130 = vadd.xlane.f32.xlu1 %v3129_v35 }
 0x6cb   :  { %v2803_v11 = vrot.slane %v2796_v61, %v5101_v60 }
 0x6cc   :  { %3127 = vadd.xlane.f32.xlu0 %v3126_v20  ;;  %v2846_v13 = vcombine.low %v2829_v62, %v2837_v63  ;;  %v2845_v45 = vrot.slane %v2838_v0, %v5101_v60 }
 0x6cd   :  { %v2804_v51 = vcombine.low %v2795_v4, %v2803_v11  ;;  %v2805_v15 = vcombine.high %v2795_v4, %v2803_v11  ;;  %v4573_v11 = vld [vmem:[#allocation11 + $0x30] sm:$0xff]  }
 0x6ce   :  { %v2853_v8 = vrot.slane %v2846_v13, %v5101_v60  ;;  %v4574_v13 = vld [vmem:[#allocation11 + $0x28] sm:$0xff]  }
 0x6cf   :  { %v2860_v33 = vshrl.u32 %v2804_v51, 16  ;;  %v2868_v23 = vshrl.u32 %v2805_v15, 16 }
 0x6d0   :  { %v2854_v16 = vcombine.low %v2845_v45, %v2853_v8  ;;  %v2855_v22 = vcombine.high %v2845_v45, %v2853_v8 }
 0x6d2   :  { %v2858_v56 = vpack.i.b16 %v2854_v16, %v2804_v51  ;;  %v2861_v38 = vshrl.u32 %v2854_v16, 16  ;;  %v2866_v9 = vpack.i.b16 %v2855_v22, %v2805_v15  ;;  %v2869_v26 = vshrl.u32 %v2855_v22, 16  ;;  %v4576_v51 = vld [vmem:[#allocation11 + $0x18] sm:$0xff]   ;;  %v4578_v15 = vld [vmem:[#allocation11 + $0x8] sm:$0xff]  }
 0x6d4   :  { %4475 = vmatpush3.bf16.msra.mxu1 %v2858_v56  ;;  %v2862_v28 = vpack.i.b16 %v2861_v38, %v2860_v33  ;;  %v2870_v53 = vpack.i.b16 %v2869_v26, %v2868_v23 }
 0x6d5   :  { %4486 = vmatprep.subr.bf16.mxu1 %v4909_v41 }
 0x6d6   :  { %4481 = vmatpush3.bf16.msra.mxu0 %v2862_v28 }
 0x6d7   :  { %4492 = vmatprep.subr.bf16.mxu0 %v4909_v41 }
 0x6db   :  { %2053 = vrot.lane.b32.xlu1 %v2047_v39, %s4897_s1 }
 0x6df   :  { %2055 = vrot.lane.b32.xlu1 %v5540_v50, %s4907_s5 }
 0x6e2   :  { %2051 = vrot.lane.b32.xlu0 %v5542_v49, %s4908_s29 }
 0x73f   :  { %v3110_v58 = vpop.xlane.xlu1 %3109 }
 0x740   :  { %4676 = vrcp.f32 %v3110_v58 }
 0x743   :  { %v3113_v27 = vpop.xlane.xlu0 %3112 }
 0x744   :  { %4678 = vrcp.f32 %v3113_v27 }
 0x748   :  { %v3116_v1 = vpop.xlane.xlu1 %3115 }
 0x749   :  { %4680 = vrcp.f32 %v3116_v1 }
 0x74c   :  { %v3122_v42 = vpop.xlane.xlu1 %3121 }
 0x74d   :  { %v3119_v40 = vpop.xlane.xlu0 %3118  ;;  %v4677_v32 = vpop.eup %4676 }
 0x74e   :  { %4682 = vrcp.f32 %v3119_v40  ;;  %v3140_v37 = vmul.f32 %v4677_v32, %v5557_v21 }
 0x74f   :  { %4684 = vrcp.f32 %v3122_v42 }
 0x751   :  { %v4679_v44 = vpop.eup %4678  ;;  %v3125_v12 = vpop.xlane.xlu0 %3124 }
 0x752   :  { %4686 = vrcp.f32 %v3125_v12  ;;  %v3141_v39 = vmul.f32 %v4679_v44, %v5563_v14 }
 0x753   :  { %v3131_v50 = vpop.xlane.xlu1 %3130 }
 0x754   :  { %v3148_v49 = vpack.c.bf16 %v3141_v39, %v3140_v37  ;;  %4688 = vrcp.f32 %v3131_v50 }
 0x755   :  { %v3128_v31 = vpop.xlane.xlu0 %3127 }
 0x756   :  { %4690 = vrcp.f32 %v3128_v31  ;;  %4477 = vmatmul.mubr.msk.bf16.vlgmr.msra.gmra.mxu1 %vm1518_vm2, %v3148_v49  ;;  %v4681_v48 = vpop.eup %4680 }
 0x757   :  { %4487 = vmatpush3.bf16.msra.mxu1 %v2866_v9  ;;  %4488 = vmatprep.mubr.msk.bf16.mxu1 %vm4910_vm0, %v4909_v41  ;;  %v2054_v6 = vpop.permute.xlu1 %2053  ;;  %v3142_v55 = vmul.f32 %v4681_v48, %v5572_v43 }
 0x759   :  { %v2052_v14 = vpop.permute.xlu0 %2051 }
 0x75a   :  { %v2059_v62 = vsel %vm1329_vm1, %v2041_v46, %v2052_v14 }
 0x75b   :  { %v4683_v34 = vpop.eup %4682  ;;  %v2056_v20 = vpop.permute.xlu1 %2055  ;;  %v2062_v2 = vsel %vm2060_vm3, %v2059_v62, %v2054_v6 }
 0x75c   :  { %v3143_v21 = vmul.f32 %v4683_v34, %v5582_v59  ;;  %v4685_v57 = vpop.eup %4684  ;;  %v2065_v46 = vsel %vm2063_vm4, %v2062_v2, %v2056_v20 }
 0x75d   :  { %v3144_v63 = vmul.f32 %v4685_v57, %v5569_v36 }
 0x75e   :  { %v3149_v61 = vpack.c.bf16 %v3143_v21, %v3142_v55 }
 0x75f   :  { %v4687_v35 = vpop.eup %4686 }
 0x760   :  { %4483 = vmatmul.mubr.msk.bf16.vlgmr.msra.gmra.mxu0 %vm1518_vm2, %v3149_v61  ;;  %v3145_v0 = vmul.f32 %v4687_v35, %v5596_v18 }
 0x761   :  { %4493 = vmatpush3.bf16.msra.mxu0 %v2870_v53  ;;  %4494 = vmatprep.mubr.msk.bf16.mxu0 %vm4910_vm0, %v4909_v41  ;;  %v4689_v43 = vpop.eup %4688  ;;  %v4572_v41 = vld [vmem:[#allocation11 + $0x38] sm:$0xff]  }
 0x762   :  { %v3150_v59 = vpack.c.bf16 %v3145_v0, %v3144_v63  ;;  %v3147_v10 = vmul.f32 %v4689_v43, %v5612_v17  ;;  %4498 = vmatprep.subr.bf16.mxu1 %v4572_v41  ;;  %v4575_v17 = vld [vmem:[#allocation11 + $0x20] sm:$0xff]  }
 0x763   :  { %v4691_v4 = vpop.eup %4690 }
 0x764   :  { %4489 = vmatmul.mubr.msk.bf16.vlgmr.msra.gmra.mxu1 %vm1518_vm2, %v3150_v59  ;;  %v3146_v36 = vmul.f32 %v4691_v4, %v5608_v52  ;;  %v4577_v52 = vld [vmem:[#allocation11 + $0x10] sm:$0xff]  }
 0x765   :  { %4514 = vmatprep.mubr.bf16.mxu1 %v2065_v46  ;;  %4499 = vmatpush3.bf16.msra.mxu1 %v4572_v41 }
 0x766   :  { %v3151_v18 = vpack.c.bf16 %v3147_v10, %v3146_v36  ;;  %4500 = vmatprep.subr.bf16.mxu1 %v4573_v11 }
 0x768   :  { %4495 = vmatmul.mubr.msk.bf16.vlgmr.msra.gmra.mxu0 %vm1518_vm2, %v3151_v18 }
 0x769   :  { %3938 = vmatprep.mubr.bf16.mxu0 %v4906_v29  ;;  %4501 = vmatpush3.bf16.msra.mxu1 %v4573_v11 }
 0x76a   :  { %4502 = vmatprep.subr.bf16.mxu1 %v4574_v13 }
 0x76d   :  { %4503 = vmatpush3.bf16.msra.mxu1 %v4574_v13 }
 0x76e   :  { %4504 = vmatprep.subr.bf16.mxu1 %v4575_v17 }
 0x771   :  { %4505 = vmatpush3.bf16.msra.mxu1 %v4575_v17 }
 0x772   :  { %4506 = vmatprep.subr.bf16.mxu1 %v4576_v51 }
 0x775   :  { %4507 = vmatpush3.bf16.msra.mxu1 %v4576_v51 }
 0x776   :  { %4508 = vmatprep.subr.bf16.mxu1 %v4577_v52 }
 0x779   :  { %4509 = vmatpush3.bf16.msra.mxu1 %v4577_v52 }
 0x77a   :  { %4510 = vmatprep.subr.bf16.mxu1 %v4578_v15 }
 0x77d   :  { %4511 = vmatpush3.bf16.msra.mxu1 %v4578_v15 }
 0x816   :  { %v3189_v45 = vpop.f32.mrf.mxu1 }
 0x818   :  { %v4478_v8 = vpop.f32.mrf.mxu1 }
 0x81a   :  { %v3192_v16 = vpop.f32.mrf.mxu1 }
 0x81b   :  { %v3328_v53 = vpack.c.bf16 %v3192_v16, %v3189_v45 }
 0x81c   :  { %v4479_v22 = vpop.f32.mrf.mxu1 }
 0x81d   :  { %v3336_v12 = vshrl.u32 %v3328_v53, 16 }
 0x820   :  { %v3233_v33 = vpop.f32.mrf.mxu0 }
 0x822   :  { %v4484_v23 = vpop.f32.mrf.mxu0 }
 0x824   :  { %v3236_v56 = vpop.f32.mrf.mxu0  ;;  %v3277_v38 = vpop.f32.mrf.mxu1 }
 0x825   :  { %v3329_v9 = vpack.c.bf16 %v3236_v56, %v3233_v33 }
 0x826   :  { %v4485_v26 = vpop.f32.mrf.mxu0  ;;  %v4490_v28 = vpop.f32.mrf.mxu1 }
 0x827   :  { %v3334_v1 = vpack.i.b16 %v3329_v9, %v3328_v53  ;;  %v3337_v42 = vshrl.u32 %v3329_v9, 16 }
 0x828   :  { %v3280_v58 = vpop.f32.mrf.mxu1  ;;  %v3321_v27 = vpop.f32.mrf.mxu0 }
 0x829   :  { %v3330_v44 = vpack.c.bf16 %v3280_v58, %v3277_v38  ;;  %v3338_v50 = vpack.i.b16 %v3337_v42, %v3336_v12  ;;  %v3348_v49 = vcombine.high %v3334_v1, %v5093_v47  ;;  %v3355_v55 = vrot.slane %v3334_v1, %v5096_v54 }
 0x82a   :  { %v4491_v40 = vpop.f32.mrf.mxu1  ;;  %v4496_v32 = vpop.f32.mrf.mxu0 }
 0x82b   :  { %v3344_v48 = vshrl.u32 %v3330_v44, 16  ;;  %v3362_v61 = vrot.slane %v3348_v49, %v5096_v54  ;;  %v3414_v35 = vcombine.high %v3338_v50, %v5093_v47  ;;  %v3421_v43 = vrot.slane %v3338_v50, %v5096_v54 }
 0x82c   :  { %v3324_v37 = vpop.f32.mrf.mxu0 }
 0x82d   :  { %v3331_v39 = vpack.c.bf16 %v3324_v37, %v3321_v27  ;;  %v3428_v36 = vrot.slane %v3414_v35, %v5096_v54 }
 0x82e   :  { %v4497_v31 = vpop.f32.mrf.mxu0 }
 0x82f   :  { %v3342_v34 = vpack.i.b16 %v3331_v39, %v3330_v44  ;;  %v3345_v6 = vshrl.u32 %v3331_v39, 16  ;;  %v4579_v44 = vld [vmem:[#allocation11] sm:$0xff]  }
 0x830   :  { %4512 = vmatprep.subr.bf16.mxu1 %v4579_v44 }
 0x831   :  { %v3346_v21 = vpack.i.b16 %v3345_v6, %v3344_v48  ;;  %v3363_v57 = vcombine.high %v3342_v34, %v5093_v47  ;;  %v3370_v14 = vrot.slane %v3342_v34, %v5096_v54  ;;  %4513 = vmatpush3.bf16.msra.mxu1 %v4579_v44  ;;  %v4588_v44 = vld [vmem:[#allocation13 + $0x54] ss:$8 sps:$4 sm:$0xff]  }
 0x833   :  { %v3377_v62 = vrot.slane %v3363_v57, %v5096_v54  ;;  %v3378_v63 = vcombine.low %v3355_v55, %v3370_v14  ;;  %v3379_v0 = vcombine.high %v3355_v55, %v3370_v14  ;;  %v3429_v20 = vcombine.high %v3346_v21, %v5093_v47 }
 0x834   :  { %v3436_v59 = vrot.slane %v3346_v21, %v5096_v54 }
 0x835   :  { %v3386_v4 = vrot.slane %v3378_v63, %v5101_v60  ;;  %v3393_v2 = vrot.slane %v3379_v0, %v5101_v60  ;;  %v3394_v10 = vcombine.low %v3362_v61, %v3377_v62  ;;  %v3395_v46 = vcombine.high %v3362_v61, %v3377_v62 }
 0x836   :  { %v3443_v18 = vrot.slane %v3429_v20, %v5096_v54  ;;  %v3444_v41 = vcombine.low %v3421_v43, %v3436_v59  ;;  %v3445_v11 = vcombine.high %v3421_v43, %v3436_v59 }
 0x837   :  { %v3402_v13 = vrot.slane %v3394_v10, %v5101_v60  ;;  %v3409_v47 = vrot.slane %v3395_v46, %v5101_v60  ;;  %v3480_v17 = vcombine.low %v3386_v4, %v3393_v2  ;;  %v4254_v51 = vcombine.high %v3386_v4, %v3393_v2 }
 0x838   :  { %v3452_v52 = vrot.slane %v3444_v41, %v5101_v60  ;;  %v3459_v15 = vrot.slane %v3445_v11, %v5101_v60  ;;  %v3460_v45 = vcombine.low %v3428_v36, %v3443_v18  ;;  %v3461_v8 = vcombine.high %v3428_v36, %v3443_v18  ;;  %v4258_v36 = vld [vmem:[%s5772_s7] ss:$0 sm:$0xff] }
 0x839   :  { %v3487_v16 = vrot.slane %v3480_v17, %v5096_v54  ;;  %v3495_v22 = vrot.slane %v4254_v51, %v5096_v54  ;;  %v3496_v33 = vcombine.low %v3402_v13, %v3409_v47  ;;  %v4255_v23 = vcombine.high %v3402_v13, %v3409_v47 }
 0x83a   :  { %v3468_v56 = vrot.slane %v3460_v45, %v5101_v60  ;;  %v3475_v38 = vrot.slane %v3461_v8, %v5101_v60  ;;  %v3530_v9 = vcombine.low %v3452_v52, %v3459_v15  ;;  %v4256_v26 = vcombine.high %v3452_v52, %v3459_v15 }
 0x83b   :  { %v3503_v28 = vrot.slane %v3496_v33, %v5096_v54  ;;  %v3511_v53 = vrot.slane %v4255_v23, %v5096_v54  ;;  %v3512_v58 = vcombine.low %v3487_v16, %v3495_v22  ;;  %v4582_v16 = vld [vmem:[#allocation13 + $0x74] ss:$8 sps:$4 sm:$0xff]  }
 0x83c   :  { %v3537_v27 = vrot.slane %v3530_v9, %v5096_v54  ;;  %v3545_v1 = vrot.slane %v4256_v26, %v5096_v54  ;;  %v3546_v42 = vcombine.low %v3468_v56, %v3475_v38  ;;  %v4257_v40 = vcombine.high %v3468_v56, %v3475_v38  ;;  %3906 = vmatprep.subr.bf16.mxu0 %v4582_v16 }
 0x83d   :  { %v3520_v32 = vcombine.low %v3503_v28, %v3511_v53  ;;  %v3519_v49 = vrot.slane %v3512_v58, %v5101_v60 }
 0x83e   :  { %v3553_v12 = vrot.slane %v3546_v42, %v5096_v54  ;;  %v3561_v37 = vrot.slane %v4257_v40, %v5096_v54  ;;  %v3562_v39 = vcombine.low %v3537_v27, %v3545_v1  ;;  %v4585_v40 = vld [vmem:[#allocation13 + $0x64] ss:$8 sps:$4 sm:$0xff]  }
 0x83f   :  { %v3527_v50 = vrot.slane %v3520_v32, %v5101_v60  ;;  %v4583_v32 = vld [vmem:[#allocation13 + $0x60] ss:$8 sps:$4 sm:$0xff]  }
 0x840   :  { %v3570_v31 = vcombine.low %v3553_v12, %v3561_v37  ;;  %v3569_v48 = vrot.slane %v3562_v39, %v5101_v60  ;;  %v4586_v12 = vld [vmem:[#allocation13 + $0x50] ss:$8 sps:$4 sm:$0xff]   ;;  %v4591_v37 = vld [vmem:[#allocation13 + $0x44] ss:$8 sps:$4 sm:$0xff]   ;;  %v4589_v39 = vld [vmem:[#allocation13 + $0x40] ss:$8 sps:$4 sm:$0xff]  }
 0x841   :  { %v3528_v6 = vcombine.low %v3519_v49, %v3527_v50  ;;  %v3529_v55 = vcombine.high %v3519_v49, %v3527_v50  ;;  %v4594_v50 = vld [vmem:[#allocation13 + $0x34] ss:$8 sps:$4 sm:$0xff]   ;;  %v4592_v49 = vld [vmem:[#allocation13 + $0x30] ss:$8 sps:$4 sm:$0xff]  }
 0x842   :  { %v3577_v34 = vrot.slane %v3570_v31, %v5101_v60  ;;  %v4597_v31 = vld [vmem:[#allocation13 + $0x24] ss:$8 sps:$4 sm:$0xff]  }
 0x843   :  { %v3583_v61 = vshrl.u32 %v3528_v6, 16  ;;  %v3589_v0 = vshrl.u32 %v3529_v55, 16 }
 0x844   :  { %v3578_v21 = vcombine.low %v3569_v48, %v3577_v34  ;;  %v3579_v57 = vcombine.high %v3569_v48, %v3577_v34  ;;  %v4595_v48 = vld [vmem:[#allocation13 + $0x20] ss:$8 sps:$4 sm:$0xff]   ;;  %v4600_v34 = vld [vmem:[#allocation13 + $0x14] ss:$8 sps:$4 sm:$0xff]  }
 0x846   :  { %v3588_v14 = vpack.i.b16 %v3579_v57, %v3529_v55  ;;  %v3584_v35 = vshrl.u32 %v3578_v21, 16  ;;  %v3582_v54 = vpack.i.b16 %v3578_v21, %v3528_v6  ;;  %v3590_v62 = vshrl.u32 %v3579_v57, 16  ;;  %v4598_v6 = vld [vmem:[#allocation13 + $0x10] ss:$8 sps:$4 sm:$0xff]   ;;  %v4603_v55 = vld [vmem:[#allocation13 + $0x4] ss:$8 sps:$4 sm:$0xff]  }
 0x847   :  { %v4601_v21 = vld [vmem:[#allocation13] ss:$8 sps:$4 sm:$0xff]   ;;  %v4604_v57 = vld [vmem:[#allocation14 + $0x78] sm:$0xff]  }
 0x848   :  { %3594 = vrot.lane.b32.xlu0 %v3588_v14, %s4897_s1  ;;  %v3585_v63 = vpack.i.b16 %v3584_v35, %v3583_v61  ;;  %v3591_v20 = vpack.i.b16 %v3590_v62, %v3589_v0  ;;  %v4605_v14 = vld [vmem:[#allocation14 + $0x38] sm:$0xff]   ;;  %v4606_v61 = vld [vmem:[#allocation14 + $0x70] sm:$0xff]   ;;  %4354 = vmatprep.subr.bf16.mxu1 %v4604_v57  ;;  %v4609_v62 = vld [vmem:[#allocation14 + $0x28] sm:$0xff]  }
 0x849   :  { %v4607_v35 = vld [vmem:[#allocation14 + $0x30] sm:$0xff]   ;;  %v4611_v0 = vld [vmem:[#allocation14 + $0x20] sm:$0xff]  }
 0x84a   :  { %3592 = vrot.lane.b32.xlu1 %v3585_v63, %s4908_s29  ;;  %v4610_v63 = vld [vmem:[#allocation14 + $0x60] sm:$0xff]  }
 0x84e   :  { %3596 = vrot.lane.b32.xlu1 %v3591_v20, %s4907_s5  ;;  %v4612_v20 = vld [vmem:[#allocation14 + $0x58] sm:$0xff]  }
 0x8ba   :  { %v3595_v59 = vpop.permute.xlu0 %3594 }
 0x8bc   :  { %v3593_v43 = vpop.permute.xlu1 %3592 }
 0x8bd   :  { %v3600_v60 = vsel %vm1329_vm1, %v3582_v54, %v3593_v43  ;;  %v4608_v54 = vld [vmem:[#allocation14 + $0x68] sm:$0xff]   ;;  %v4613_v43 = vld [vmem:[#allocation14 + $0x18] sm:$0xff]  }
 0x8be   :  { %v3602_v2 = vsel %vm2060_vm3, %v3600_v60, %v3595_v59 }
 0x8c0   :  { %v3597_v4 = vpop.permute.xlu1 %3596 }
 0x8c1   :  { %v3604_v10 = vsel %vm2063_vm4, %v3602_v2, %v3597_v4 }
 0x8c2   :  { %4515 = vmatmul.mubr.bf16.vlgmr.msra.gmra.mxu1 %v3604_v10 }
 0x8c3   :  { %4355 = vmatpush3.bf16.msra.mxu1 %v4605_v14 }
 0x8c4   :  { %4356 = vmatprep.subr.bf16.mxu1 %v4606_v61 }
 0x8c7   :  { %4357 = vmatpush3.bf16.msra.mxu1 %v4607_v35 }
 0x8c8   :  { %4358 = vmatprep.subr.bf16.mxu1 %v4608_v54 }
 0x8cb   :  { %4359 = vmatpush3.bf16.msra.mxu1 %v4609_v62 }
 0x8cc   :  { %4360 = vmatprep.subr.bf16.mxu1 %v4610_v63 }
 0x8cf   :  { %4361 = vmatpush3.bf16.msra.mxu1 %v4611_v0 }
 0x8d0   :  { %4362 = vmatprep.subr.bf16.mxu1 %v4612_v20 }
 0x8d3   :  { %4363 = vmatpush3.bf16.msra.mxu1 %v4613_v43 }
 0x982   :  { %v4516_v46 = vpop.f32.mrf.mxu1 }
 0x983   :  { %v3720_v13 = vadd.f32 %v4516_v46, %v4258_v36 }
 0x984   :  { %v3711_v18 = vpop.f32.mrf.mxu1 }
 0x985   :  { %v3712_v41 = vadd.f32 %v4258_v36, %v3711_v18  ;;  %v5703_v52 = vadd.f32 %v3720_v13, %v5034_v7 }
 0x986   :  { %v4517_v11 = vpop.f32.mrf.mxu1 }
 0x987   :  { %v5699_v47 = vadd.f32 %v3712_v41, %v5028_v3  ;;  %v3723_v15 = vadd.f32 %v4517_v11, %v4258_v36  ;;  %v4580_v3 = vld [vmem:[#allocation13 + $0x70] ss:$8 sps:$4 sm:$0xff]  }
 0x988   :  { %v3714_v17 = vpop.f32.mrf.mxu1  ;;  %3907 = vmatpush1.bf16.msra.mxu0 %v4580_v3  ;;  %v4267_v3 = vld [vmem:[%s5773_s8] ss:$0 sm:$0xff] }
 0x989   :  { %v3715_v51 = vadd.f32 %v4258_v36, %v3714_v17  ;;  %3732 = vadd.xlane.f32.xlu0 %v5699_v47  ;;  %v5711_v8 = vadd.f32 %v3723_v15, %v5047_v19  ;;  %3908 = vmatprep.subr.bf16.mxu0 %v4585_v40 }
 0x98b   :  { %v5706_v45 = vadd.f32 %v3715_v51, %v5031_v5 }
 0x98c   :  { %3909 = vmatpush1.bf16.msra.mxu0 %v4583_v32 }
 0x98d   :  { %3734 = vadd.xlane.f32.xlu1 %v5706_v45  ;;  %3736 = vadd.xlane.f32.xlu0 %v5703_v52 }
 0x98e   :  { %3910 = vmatprep.subr.bf16.mxu0 %v4588_v44  ;;  %v4614_v44 = vld [vmem:[#allocation14 + $0x50] sm:$0xff]  }
 0x98f   :  { %4364 = vmatprep.subr.bf16.mxu1 %v4614_v44 }
 0x990   :  { %3911 = vmatpush1.bf16.msra.mxu0 %v4586_v12  ;;  %v4615_v12 = vld [vmem:[#allocation14 + $0x10] sm:$0xff]  }
 0x991   :  { %3738 = vadd.xlane.f32.xlu0 %v5711_v8  ;;  %3912 = vmatprep.subr.bf16.mxu0 %v4591_v37  ;;  %v4616_v37 = vld [vmem:[#allocation14 + $0x48] sm:$0xff]  }
 0x992   :  { %4365 = vmatpush3.bf16.msra.mxu1 %v4615_v12 }
 0x993   :  { %4366 = vmatprep.subr.bf16.mxu1 %v4616_v37 }
 0x994   :  { %3913 = vmatpush1.bf16.msra.mxu0 %v4589_v39  ;;  %v4617_v39 = vld [vmem:[#allocation14 + $0x8] sm:$0xff]  }
 0x995   :  { %3914 = vmatprep.subr.bf16.mxu0 %v4594_v50 }
 0x996   :  { %4367 = vmatpush3.bf16.msra.mxu1 %v4617_v39 }
 0x998   :  { %3915 = vmatpush1.bf16.msra.mxu0 %v4592_v49 }
 0x999   :  { %3916 = vmatprep.subr.bf16.mxu0 %v4597_v31 }
 0x99c   :  { %3917 = vmatpush1.bf16.msra.mxu0 %v4595_v48 }
 0x99d   :  { %3918 = vmatprep.subr.bf16.mxu0 %v4600_v34 }
 0x9a0   :  { %3919 = vmatpush1.bf16.msra.mxu0 %v4598_v6 }
 0x9a1   :  { %3920 = vmatprep.subr.bf16.mxu0 %v4603_v55 }
 0x9a4   :  { %3921 = vmatpush1.bf16.msra.mxu0 %v4601_v21 }
 0xa12   :  { %v3733_v22 = vpop.xlane.xlu0 %3732 }
 0xa13   :  { %v3740_v7 = vmul.f32 0.0078125, %v3733_v22 }
 0xa15   :  { %v5715_v33 = vsub.f32 %v5699_v47, %v3740_v7 }
 0xa16   :  { %v3735_v5 = vpop.xlane.xlu1 %3734  ;;  %v3737_v23 = vpop.xlane.xlu0 %3736 }
 0xa17   :  { %v3741_v56 = vmul.f32 0.0078125, %v3735_v5  ;;  %v3742_v38 = vmul.f32 0.0078125, %v3737_v23  ;;  %v3748_v9 = vmul.f32 %v5715_v33, %v5715_v33  ;;  %v4268_v23 = vld [vmem:[%s5774_s9] ss:$0 sm:$0xff] }
 0xa19   :  { %v5720_v19 = vsub.f32 %v5706_v45, %v3741_v56  ;;  %v5723_v26 = vsub.f32 %v5703_v52, %v3742_v38  ;;  %3752 = vadd.xlane.f32.xlu0 %v3748_v9 }
 0xa1a   :  { %v3739_v28 = vpop.xlane.xlu0 %3738 }
 0xa1b   :  { %v3743_v53 = vmul.f32 0.0078125, %v3739_v28  ;;  %v3749_v58 = vmul.f32 %v5720_v19, %v5720_v19  ;;  %v3750_v27 = vmul.f32 %v5723_v26, %v5723_v26 }
 0xa1d   :  { %v5730_v1 = vsub.f32 %v5711_v8, %v3743_v53  ;;  %3754 = vadd.xlane.f32.xlu1 %v3749_v58  ;;  %3756 = vadd.xlane.f32.xlu0 %v3750_v27 }
 0xa1f   :  { %v3751_v42 = vmul.f32 %v5730_v1, %v5730_v1 }
 0xa21   :  { %3758 = vadd.xlane.f32.xlu1 %v3751_v42 }
 0xaa2   :  { %v3753_v60 = vpop.xlane.xlu0 %3752 }
 0xaa3   :  { %v3760_v59 = vmul.f32 0.0078125, %v3753_v60 }
 0xaa5   :  { %v3764_v4 = vadd.f32 1e-05, %v3760_v59 }
 0xaa6   :  { %v3755_v2 = vpop.xlane.xlu1 %3754  ;;  %v3757_v10 = vpop.xlane.xlu0 %3756 }
 0xaa7   :  { %4692 = vrsqrt.f32 %v3764_v4  ;;  %v3761_v46 = vmul.f32 0.0078125, %v3755_v2  ;;  %v3762_v36 = vmul.f32 0.0078125, %v3757_v10 }
 0xaa9   :  { %v3765_v18 = vadd.f32 1e-05, %v3761_v46  ;;  %v3766_v41 = vadd.f32 1e-05, %v3762_v36 }
 0xaaa   :  { %v3759_v11 = vpop.xlane.xlu1 %3758 }
 0xaab   :  { %4694 = vrsqrt.f32 %v3765_v18  ;;  %v3763_v13 = vmul.f32 0.0078125, %v3759_v11 }
 0xaac   :  { %4696 = vrsqrt.f32 %v3766_v41 }
 0xaad   :  { %v3767_v17 = vadd.f32 1e-05, %v3763_v13  ;;  %v4285_v13 = vld [vmem:[%s5778_s13] ss:$0 sm:$0xff]  ;;  %s4913_s13 = smov [#allocation16]  }
 0xaae   :  { %s4168_s15 = sshll.u32 %s4913_s13, 4  ;;  %s4169_s15 = int_to_ptr.vmem [resolvable:$true] %s4168_s15 }
 0xaaf   :  { %4698 = vrsqrt.f32 %v3767_v17  ;;  %s4860_s3 = scalar_lea.vmem %s4169_s15, 512  ;;  %p4865_p13 = scmp.lt.s32.totalorder %s4169_s15, %s4169_s15 }
 0xab0   :  { %p4861_p12 = scmp.ne.s32.totalorder %s4169_s15, %s4860_s3  ;;  %p4866_p0 = scmp.lt.s32.totalorder %s4860_s3, %s4860_s3 }
 0xab2   :  { %p4867_p1 = por %p4866_p0, %p4865_p13 }
 0xab4   :  { %v4693_v51 = vpop.eup %4692  ;;  %p4868_p2 = pnand %p4867_p1, %p4861_p12 }
 0xab5   :  { %v3772_v15 = vmul.f32 %v4693_v51, %v5715_v33 }
 0xab7   :  { %v3782_v7 = vmul.f32 %v4267_v3, %v3772_v15 }
 0xab8   :  { %v4695_v16 = vpop.eup %4694 }
 0xab9   :  { %v3773_v22 = vmul.f32 %v4695_v16, %v5720_v19  ;;  %v4697_v5 = vpop.eup %4696  ;;  %v3792_v9 = vadd.f32 %v4268_v23, %v3782_v7 }
 0xaba   :  { %v3774_v53 = vmul.f32 %v4697_v5, %v5723_v26  ;;  %v4618_v26 = vld [vmem:[#allocation14 + $0x40] sm:$0xff]  }
 0xabb   :  { %v3783_v56 = vmul.f32 %v4267_v3, %v3773_v22  ;;  %4368 = vmatprep.subr.bf16.mxu1 %v4618_v26 }
 0xabc   :  { %v4699_v38 = vpop.eup %4698  ;;  %v3784_v42 = vmul.f32 %v4267_v3, %v3774_v53 }
 0xabd   :  { %v3793_v28 = vadd.f32 %v4268_v23, %v3783_v56  ;;  %v3775_v33 = vmul.f32 %v4699_v38, %v5730_v1  ;;  %v4619_v1 = vld [vmem:[#allocation14] sm:$0xff]  }
 0xabe   :  { %v3794_v40 = vadd.f32 %v4268_v23, %v3784_v42  ;;  %4369 = vmatpush3.bf16.msra.mxu1 %v4619_v1 }
 0xabf   :  { %v3796_v58 = vpack.c.bf16 %v3793_v28, %v3792_v9  ;;  %v3785_v27 = vmul.f32 %v4267_v3, %v3775_v33 }
 0xac1   :  { %3939 = vmatmul.mubr.bf16.vlgmr.msra.gmra.mxu0 %v3796_v58  ;;  %v3795_v19 = vadd.f32 %v4268_v23, %v3785_v27 }
 0xac2   :  { %3948 = vmatprep.mubr.bf16.mxu0 %v4906_v29  ;;  %v3814_v29 = vld [vmem:[%s5776_s11] sm:$0x3] }
 0xac3   :  { %v3797_v32 = vpack.c.bf16 %v3795_v19, %v3794_v40  ;;  %v3823_v49 = vrot.slane %v3814_v29, %v273_v25  ;;  %v3819_v31 = vrot.slane %v3814_v29, %v269_v30 }
 0xac9   :  { %3949 = vmatmul.mubr.bf16.gmra.mxu0 %v3797_v32 }
 0xb81   :  { %v3940_v50 = vpop.f32.mrf.mxu0 }
 0xb82   :  { %v3941_v21 = vadd.f32 %v3940_v50, %v3819_v31 }
 0xb83   :  { %v3942_v48 = vpop.f32.mrf.mxu0 }
 0xb84   :  { %v3943_v6 = vadd.f32 %v3942_v48, %v3823_v49  ;;  %v3959_v63 = vmax.f32 %v3941_v21, 0.0 }
 0xb85   :  { %v3944_v34 = vpop.f32.mrf.mxu0 }
 0xb86   :  { %v3945_v55 = vadd.f32 %v3944_v34, %v3819_v31  ;;  %v3960_v54 = vmax.f32 %v3943_v6, 0.0 }
 0xb87   :  { %v3946_v57 = vpop.f32.mrf.mxu0 }
 0xb88   :  { %v3947_v14 = vadd.f32 %v3946_v57, %v3823_v49  ;;  %v3961_v61 = vmax.f32 %v3945_v55, 0.0 }
 0xb89   :  { %v3950_v35 = vpop.f32.mrf.mxu0 }
 0xb8a   :  { %v3962_v62 = vmax.f32 %v3947_v14, 0.0  ;;  %v3967_v43 = vpack.c.bf16 %v3961_v61, %v3959_v63  ;;  %v3951_v24 = vadd.f32 %v3950_v35, %v3819_v31 }
 0xb8b   :  { %v3952_v0 = vpop.f32.mrf.mxu0 }
 0xb8c   :  { %v3968_v20 = vpack.c.bf16 %v3962_v62, %v3960_v54  ;;  %v3953_v25 = vadd.f32 %v3952_v0, %v3823_v49  ;;  %v3963_v36 = vmax.f32 %v3951_v24, 0.0 }
 0xb8d   :  { %v3954_v60 = vpop.f32.mrf.mxu0 }
 0xb8e   :  { %v3955_v59 = vadd.f32 %v3954_v60, %v3819_v31  ;;  %4138 = vmatprep.mubr.bf16.mxu1 %v3968_v20  ;;  %v3964_v10 = vmax.f32 %v3953_v25, 0.0 }
 0xb8f   :  { %v3956_v30 = vpop.f32.mrf.mxu0  ;;  %4139 = vmatmul.mubr.bf16.vlgmr.msra.gmra.mxu1 %v3967_v43 }
 0xb90   :  { %v3957_v4 = vadd.f32 %v3956_v30, %v3823_v49  ;;  %v3965_v2 = vmax.f32 %v3955_v59, 0.0 }
 0xb92   :  { %v3966_v46 = vmax.f32 %v3957_v4, 0.0  ;;  %v3969_v41 = vpack.c.bf16 %v3965_v2, %v3963_v36 }
 0xb94   :  { %v3970_v18 = vpack.c.bf16 %v3966_v46, %v3964_v10 }
 0xb96   :  { %4146 = vmatprep.mubr.bf16.mxu1 %v3970_v18 }
 0xb97   :  { %4147 = vmatmul.mubr.bf16.gmra.mxu1 %v3969_v41 }
 0xc4f   :  { %v4370_v11 = vpop.f32.mrf.mxu1 }
 0xc51   :  { %v4371_v17 = vpop.f32.mrf.mxu1 }
 0xc52   :  { %v4372_v51 = vadd.f32 %v4371_v17, %v4370_v11 }
 0xc53   :  { %v4373_v15 = vpop.f32.mrf.mxu1 }
 0xc54   :  { %v4141_v3 = vadd.f32 %v4372_v51, %v4285_v13 }
 0xc55   :  { %v4374_v16 = vpop.f32.mrf.mxu1 }
 0xc56   :  { %v4155_v22 = vadd.f32 %v4141_v3, %v5699_v47  ;;  %v4375_v7 = vadd.f32 %v4374_v16, %v4373_v15 }
 0xc57   :  { %v4376_v5 = vpop.f32.mrf.mxu1 }
 0xc58   :  { %4159 = vst [vmem:[#allocation16] sm:$0xff] %v4155_v22  ;;  %v4144_v23 = vadd.f32 %v4375_v7, %v4285_v13 }
 0xc59   :  { %v4377_v56 = vpop.f32.mrf.mxu1 }
 0xc5a   :  { %v4156_v38 = vadd.f32 %v4144_v23, %v5706_v45  ;;  %v4378_v9 = vadd.f32 %v4377_v56, %v4376_v5 }
 0xc5b   :  { %v4379_v28 = vpop.f32.mrf.mxu1 }
 0xc5c   :  { %4160 = vst [vmem:[#allocation16 + $0x8] sm:$0xff] %v4156_v38  ;;  %v4149_v53 = vadd.f32 %v4378_v9, %v4285_v13 }
 0xc5d   :  { %v4380_v33 = vpop.f32.mrf.mxu1 }
 0xc5e   :  { %v4157_v58 = vadd.f32 %v4149_v53, %v5703_v52  ;;  %v4381_v27 = vadd.f32 %v4380_v33, %v4379_v28 }
 0xc60   :  { %4161 = vst [vmem:[#allocation16 + $0x10] sm:$0xff] %v4157_v58  ;;  %v4152_v42 = vadd.f32 %v4381_v27, %v4285_v13 }
 0xc62   :  { %v4158_v47 = vadd.f32 %v4152_v42, %v5711_v8 }
 0xc64   :  { %4162 = vst [vmem:[#allocation16 + $0x18] sm:$0xff] %v4158_v47 }
 0xc65   :  { %4871 = shalt.err (!%p4868_p2)
}
 0xc66   :  { %4174 = dma.vmem_to_hbm [thread:$0]  %s4169_s15, 512, %s5779_s14, [#allocation4], %s4894_s18, %s4894_s18, %s4895_s19  }
 0xc67   :  { %4890 = dma.done.wait [#allocation4], 512  }
 0xc68   :  { %4891 = vsyncadd [#allocation4], 4294966784 }
 0xc69   :  { %4178 = vsyncpa [#allocation3], 1 }
 0xc6a   :  { %4179 = vsyncpa [#allocation6], 1 }
 0xc6b   :  { %4180 = vsyncpa [#allocation9], 1 }
 0xc6c   :  { %4181 = vsyncpa [#allocation12], 1 }
 0xc6d   :  { %4182 = vsyncpa [#allocation15], 1 }
 0xc6e   :  { %4183 = vsyncpa [#allocation4], 1 }

// kernel: tpu_custom_call.1
= control target key start
LH: loop header
LB: loop body
LE: loop exit
PB: predicated region body
PF: predicated region fallthrough
CT: control target
= control target key end

     0   :  { %19 = vsyncpa [#allocation3], 0  ;;  %s5765_s0 = inlined_call_operand.hbm [shape: f32[2,16,128], index: 0, kind: input, shape index: {}]   ;;  %s5766_s1 = inlined_call_operand.hbm [shape: f32[1,16,128], index: 1, kind: input, shape index: {}]   ;;  %s5767_s2 = inlined_call_operand.hbm [shape: f32[1,128], index: 2, kind: input, shape index: {}]   ;;  %s5768_s3 = inlined_call_operand.hbm [shape: f32[1,128], index: 3, kind: input, shape index: {}]   ;;  %s5769_s4 = inlined_call_operand.hbm [shape: bf16[128,384], index: 4, kind: input, shape index: {}]   ;;  %s5770_s5 = inlined_call_operand.vmem [shape: f32[1,384], index: 5, kind: input, shape index: {}]   ;;  %s5771_s6 = inlined_call_operand.hbm [shape: bf16[128,128], index: 6, kind: input, shape index: {}]   ;;  %s5772_s7 = inlined_call_operand.vmem [shape: f32[1,128], index: 7, kind: input, shape index: {}]   ;;  %s5773_s8 = inlined_call_operand.vmem [shape: f32[1,128], index: 8, kind: input, shape index: {}]   ;;  %s5774_s9 = inlined_call_operand.vmem [shape: f32[1,128], index: 9, kind: input, shape index: {}]   ;;  %s5775_s10 = inlined_call_operand.hbm [shape: bf16[1,128,256], index: 10, kind: input, shape index: {}]   ;;  %s5776_s11 = inlined_call_operand.vmem [shape: f32[1,1,256], index: 11, kind: input, shape index: {}]   ;;  %s5777_s12 = inlined_call_operand.hbm [shape: bf16[1,256,128], index: 12, kind: input, shape index: {}]   ;;  %s5778_s13 = inlined_call_operand.vmem [shape: f32[1,128], index: 13, kind: input, shape index: {}]   ;;  %s5779_s14 = inlined_call_operand.hbm [shape: f32[2,16,128], index: 14, kind: output, shape index: {}]  }
   0x1   :  { %20 = vsyncpa [#allocation6], 0 }
   0x2   :  { %21 = vsyncpa [#allocation9], 0 }
   0x3   :  { %22 = vsyncpa [#allocation12], 0 }
   0x4   :  { %23 = vsyncpa [#allocation15], 0 }
   0x5   :  { %24 = vsyncpa [#allocation4], 0  ;;  %s4892_s29 = smov [#allocation5]   ;;  %s4893_s15 = smov [#allocation8]  }
   0x6   :  { %s42_s30 = sshll.u32 %s4892_s29, 4  ;;  %s65_s16 = sshll.u32 %s4893_s15, 4  ;;  %s43_s30 = int_to_ptr.vmem [resolvable:$true] %s42_s30  ;;  %s66_s16 = int_to_ptr.vmem [resolvable:$true] %s65_s16 }
   0x7   :  { %s4708_s17 = scalar_lea.vmem %s43_s30, 256  ;;  %p4713_p1 = scmp.lt.s32.totalorder %s43_s30, %s43_s30 }
   0x8   :  { %p4709_p0 = scmp.ne.s32.totalorder %s43_s30, %s4708_s17  ;;  %p4714_p2 = scmp.lt.s32.totalorder %s4708_s17, %s4708_s17 }
   0xa   :  { %p4715_p3 = por %p4714_p2, %p4713_p1 }
   0xc   :  { %p4716_p4 = pnand %p4715_p3, %p4709_p0 }
   0xe   :  { %4719 = shalt.err (!%p4716_p4)
}
   0xf   :  { %s4894_s18 = smov 128   ;;  %s4895_s19 = smov 8  }
  0x10   :  { %48 = dma.hbm_to_vmem [thread:$0]  %s5766_s1, 256, %s43_s30, [#allocation6], %s4894_s18, %s4894_s18, %s4895_s19  }
  0x11   :  { %s4728_s22 = scalar_lea.vmem %s66_s16, 16  ;;  %s4732_s23 = scalar_lea.vmem %s66_s16, 32 }
  0x12   :  { %p4729_p5 = scmp.ne.s32.totalorder %s66_s16, %s4728_s22  ;;  %p4733_p6 = scmp.lt.s32.totalorder %s66_s16, %s66_s16 }
  0x13   :  { %p4734_p7 = scmp.lt.s32.totalorder %s4732_s23, %s4728_s22 }
  0x15   :  { %p4735_p8 = por %p4734_p7, %p4733_p6 }
  0x17   :  { %p4736_p9 = pnand %p4735_p8, %p4729_p5 }
  0x19   :  { %4739 = shalt.err (!%p4736_p9)
}
  0x1a   :  { %68 = dma.hbm_to_vmem [thread:$0]  %s5768_s3, 16, %s66_s16, [#allocation9]  }
  0x1b   :  { %s4896_s26 = smov [#allocation11]  }
  0x1c   :  { %s88_s27 = sshll.u32 %s4896_s26, 4  ;;  %s89_s27 = int_to_ptr.vmem [resolvable:$true] %s88_s27 }
  0x1d   :  { %s4748_s28 = scalar_lea.vmem %s89_s27, 1024  ;;  %p4753_p11 = scmp.lt.s32.totalorder %s89_s27, %s89_s27 }
  0x1e   :  { %p4749_p10 = scmp.ne.s32.totalorder %s89_s27, %s4748_s28  ;;  %p4754_p12 = scmp.lt.s32.totalorder %s4748_s28, %s4748_s28 }
  0x20   :  { %p4755_p13 = por %p4754_p12, %p4753_p11 }
  0x22   :  { %p4756_p0 = pnand %p4755_p13, %p4749_p10 }
  0x24   :  { %4759 = shalt.err (!%p4756_p0)
}
  0x25   :  { %s4897_s1 = smov 64   ;;  %s4898_s29 = smov 4  }
  0x26   :  { %94 = dma.hbm_to_vmem [thread:$0]  %s5771_s6, 1024, %s89_s27, [#allocation12], %s4897_s1, %s4897_s1, %s4898_s29  }
  0x27   :  { %s4899_s3 = smov [#allocation2]   ;;  %s4900_s17 = smov [#allocation7]  }
  0x28   :  { %s30_s16 = sshll.u32 %s4899_s3, 4  ;;  %s55_s20 = sshll.u32 %s4900_s17, 4  ;;  %s31_s16 = int_to_ptr.vmem [resolvable:$true] %s30_s16  ;;  %s56_s20 = int_to_ptr.vmem [resolvable:$true] %s55_s20 }
  0x29   :  { %s4768_s21 = scalar_lea.vmem %s31_s16, 512  ;;  %p4773_p2 = scmp.lt.s32.totalorder %s31_s16, %s31_s16 }
  0x2a   :  { %p4769_p1 = scmp.ne.s32.totalorder %s31_s16, %s4768_s21  ;;  %p4774_p3 = scmp.lt.s32.totalorder %s4768_s21, %s4768_s21 }
  0x2c   :  { %p4775_p4 = por %p4774_p3, %p4773_p2 }
  0x2e   :  { %p4776_p5 = pnand %p4775_p4, %p4769_p1 }
  0x30   :  { %4779 = shalt.err (!%p4776_p5)
}
  0x31   :  { %36 = dma.hbm_to_vmem [thread:$0]  %s5765_s0, 512, %s31_s16, [#allocation3], %s4894_s18, %s4894_s18, %s4895_s19  }
  0x32   :  { %s4788_s6 = scalar_lea.vmem %s56_s20, 16  ;;  %s4792_s24 = scalar_lea.vmem %s56_s20, 32 }
  0x33   :  { %p4789_p6 = scmp.ne.s32.totalorder %s56_s20, %s4788_s6  ;;  %p4793_p7 = scmp.lt.s32.totalorder %s56_s20, %s56_s20 }
  0x34   :  { %p4794_p8 = scmp.lt.s32.totalorder %s4792_s24, %s4788_s6 }
  0x36   :  { %p4795_p9 = por %p4794_p8, %p4793_p7 }
  0x38   :  { %p4796_p10 = pnand %p4795_p9, %p4789_p6 }
  0x3a   :  { %4799 = shalt.err (!%p4796_p10)
}
  0x3b   :  { %58 = dma.hbm_to_vmem [thread:$0]  %s5767_s2, 16, %s56_s20, [#allocation6]  }
  0x3c   :  { %s4901_s27 = smov [#allocation10]  }
  0x3d   :  { %s74_s28 = sshll.u32 %s4901_s27, 4  ;;  %s75_s28 = int_to_ptr.vmem [resolvable:$true] %s74_s28 }
  0x3e   :  { %s4808_s30 = scalar_lea.vmem %s75_s28, 3072  ;;  %p4813_p12 = scmp.lt.s32.totalorder %s75_s28, %s75_s28 }
  0x3f   :  { %p4809_p11 = scmp.ne.s32.totalorder %s75_s28, %s4808_s30  ;;  %p4814_p13 = scmp.lt.s32.totalorder %s4808_s30, %s4808_s30 }
  0x41   :  { %p4815_p0 = por %p4814_p13, %p4813_p12 }
  0x43   :  { %p4816_p1 = pnand %p4815_p0, %p4809_p11 }
  0x45   :  { %4819 = shalt.err (!%p4816_p1)
}
  0x46   :  { %s4902_s0 = smov 192   ;;  %s4903_s15 = smov 12  }
  0x47   :  { %80 = dma.hbm_to_vmem [thread:$0]  %s5769_s4, 3072, %s75_s28, [#allocation9], %s4902_s0, %s4902_s0, %s4903_s15  }
  0x48   :  { %s4904_s17 = smov [#allocation13]   ;;  %s4905_s22 = smov [#allocation14]  }
  0x49   :  { %s106_s21 = sshll.u32 %s4904_s17, 4  ;;  %s120_s2 = sshll.u32 %s4905_s22, 4  ;;  %s107_s21 = int_to_ptr.vmem [resolvable:$true] %s106_s21  ;;  %s121_s2 = int_to_ptr.vmem [resolvable:$true] %s120_s2 }
  0x4a   :  { %s4828_s20 = scalar_lea.vmem %s107_s21, 2048  ;;  %p4833_p3 = scmp.lt.s32.totalorder %s107_s21, %s107_s21 }
  0x4b   :  { %p4829_p2 = scmp.ne.s32.totalorder %s107_s21, %s4828_s20  ;;  %p4834_p4 = scmp.lt.s32.totalorder %s4828_s20, %s4828_s20 }
  0x4d   :  { %p4835_p5 = por %p4834_p4, %p4833_p3 }
  0x4f   :  { %p4836_p6 = pnand %p4835_p5, %p4829_p2 }
  0x51   :  { %4839 = shalt.err (!%p4836_p6)
}
  0x52   :  { %112 = dma.hbm_to_vmem [thread:$0]  %s5775_s10, 2048, %s107_s21, [#allocation12], %s4894_s18, %s4894_s18, %s4895_s19  }
  0x53   :  { %s4848_s4 = scalar_lea.vmem %s121_s2, 2048  ;;  %p4853_p8 = scmp.lt.s32.totalorder %s121_s2, %s121_s2 }
  0x54   :  { %p4849_p7 = scmp.ne.s32.totalorder %s121_s2, %s4848_s4  ;;  %p4854_p9 = scmp.lt.s32.totalorder %s4848_s4, %s4848_s4 }
  0x56   :  { %p4855_p10 = por %p4854_p9, %p4853_p8 }
  0x58   :  { %p4856_p11 = pnand %p4855_p10, %p4849_p7 }
  0x5a   :  { %4859 = shalt.err (!%p4856_p11)
}
  0x5b   :  { %126 = dma.hbm_to_vmem [thread:$0]  %s5777_s12, 2048, %s121_s2, [#allocation15], %s4897_s1, %s4897_s1, %s4898_s29  }
  0x5c   :  { %4880 = dma.done.wait [#allocation3], 512  }
  0x5d   :  { %4881 = vsyncadd [#allocation3], 4294966784 }
  0x5e   :  { %4882 = dma.done.wait [#allocation6], 272  }
  0x5f   :  { %4883 = vsyncadd [#allocation6], 4294967024 }
  0x60   :  { %4884 = dma.done.wait [#allocation9], 3088  }
  0x61   :  { %4885 = vsyncadd [#allocation9], 4294964208 }
  0x62   :  { %4886 = dma.done.wait [#allocation12], 3072  }
  0x63   :  { %4887 = vsyncadd [#allocation12], 4294964224 }
  0x64   :  { %4888 = dma.done.wait [#allocation15], 2048  }
  0x65   :  { %4889 = vsyncadd [#allocation15], 4294965248  ;;  %v154_v0 = vld [vmem:[#allocation2] sm:$0xff]  ;;  %v155_v2 = vld [vmem:[#allocation2 + $0x8] sm:$0xff]  ;;  %v4906_v29 = vmov 0   ;;  %s4908_s29 = smov 32  }
  0x66   :  { %v158_v1 = vld [vmem:[#allocation5] sm:$0xff]  ;;  %v159_v4 = vld [vmem:[#allocation5 + $0x8] sm:$0xff]  ;;  %v156_v6 = vld [vmem:[#allocation2 + $0x10] sm:$0xff]  ;;  %442 = vmatprep.mubr.bf16.mxu0 %v4906_v29  ;;  %vm4910_vm0 = vmmov 0   ;;  %vm1329_vm1 = vcmask 261120   ;;  %vm1518_vm2 = vcmask 130048  }
  0x67   :  { %v5028_v3 = vadd.f32 %v158_v1, %v154_v0  ;;  %v5031_v5 = vadd.f32 %v159_v4, %v155_v2  ;;  %v5034_v7 = vadd.f32 %v158_v1, %v156_v6  ;;  %v4540_v8 = vld [vmem:[#allocation10 + $0xac] ss:$12 sps:$4 sm:$0xff]   ;;  %v4542_v9 = vld [vmem:[#allocation10 + $0xa8] ss:$12 sps:$4 sm:$0xff]   ;;  %v4545_v21 = vld [vmem:[#allocation10 + $0x90] ss:$12 sps:$4 sm:$0xff]  }
  0x68   :  { %410 = vmatprep.subr.bf16.mxu0 %v4540_v8  ;;  %v157_v17 = vld [vmem:[#allocation2 + $0x18] sm:$0xff]  ;;  %v4543_v20 = vld [vmem:[#allocation10 + $0x94] ss:$12 sps:$4 sm:$0xff]   ;;  %v4552_v26 = vld [vmem:[#allocation10 + $0x4c] ss:$12 sps:$4 sm:$0xff]   ;;  %vm2060_vm3 = vcmask 523264  }
  0x69   :  { %166 = vadd.xlane.f32.xlu0 %v5028_v3  ;;  %411 = vmatpush1.bf16.msra.mxu0 %v4542_v9  ;;  %v5047_v19 = vadd.f32 %v159_v4, %v157_v17  ;;  %v4546_v22 = vld [vmem:[#allocation10 + $0x7c] ss:$12 sps:$4 sm:$0xff]   ;;  %v4548_v23 = vld [vmem:[#allocation10 + $0x78] ss:$12 sps:$4 sm:$0xff]   ;;  %v4551_v25 = vld [vmem:[#allocation10 + $0x60] ss:$12 sps:$4 sm:$0xff]  }
  0x6a   :  { %412 = vmatprep.subr.bf16.mxu0 %v4543_v20  ;;  %v4549_v24 = vld [vmem:[#allocation10 + $0x64] ss:$12 sps:$4 sm:$0xff]   ;;  %v4554_v27 = vld [vmem:[#allocation10 + $0x48] ss:$12 sps:$4 sm:$0xff]   ;;  %v4563_v34 = vld [vmem:[#allocation10] ss:$12 sps:$4 sm:$0xff]  }
  0x6b   :  { %v4555_v28 = vld [vmem:[#allocation10 + $0x34] ss:$12 sps:$4 sm:$0xff]   ;;  %v4557_v30 = vld [vmem:[#allocation10 + $0x30] ss:$12 sps:$4 sm:$0xff]   ;;  %v4560_v32 = vld [vmem:[#allocation10 + $0x18] ss:$12 sps:$4 sm:$0xff]  }
  0x6c   :  { %v4558_v31 = vld [vmem:[#allocation10 + $0x1c] ss:$12 sps:$4 sm:$0xff]   ;;  %v4561_v33 = vld [vmem:[#allocation10 + $0x4] ss:$12 sps:$4 sm:$0xff]   ;;  %v4566_v62 = vld [vmem:[#allocation10 + $0x80] ss:$12 sps:$4 sm:$0xff]  }
  0x6d   :  { %168 = vadd.xlane.f32.xlu0 %v5031_v5  ;;  %413 = vmatpush1.bf16.msra.mxu0 %v4545_v21  ;;  %v4564_v36 = vld [vmem:[#allocation10 + $0xb0] ss:$12 sps:$4 sm:$0xff]   ;;  %v4565_v37 = vld [vmem:[#allocation10 + $0x98] ss:$12 sps:$4 sm:$0xff]   ;;  %v4567_v63 = vld [vmem:[#allocation10 + $0x68] ss:$12 sps:$4 sm:$0xff]  }
  0x6e   :  { %414 = vmatprep.subr.bf16.mxu0 %v4546_v22  ;;  %4382 = vmatprep.subr.bf16.mxu1 %v4564_v36  ;;  %v4184_v53 = vld [vmem:[#allocation7] ss:$0 sm:$0xff]  ;;  %v4185_v57 = vld [vmem:[#allocation8] ss:$0 sm:$0xff]  ;;  %v4569_v1 = vld [vmem:[#allocation10 + $0x38] ss:$12 sps:$4 sm:$0xff]  }
  0x6f   :  { %4383 = vmatpush3.bf16.msra.mxu1 %v4564_v36  ;;  %v4568_v0 = vld [vmem:[#allocation10 + $0x50] ss:$12 sps:$4 sm:$0xff]   ;;  %v4570_v2 = vld [vmem:[#allocation10 + $0x20] ss:$12 sps:$4 sm:$0xff]   ;;  %v4571_v4 = vld [vmem:[#allocation10 + $0x8] ss:$12 sps:$4 sm:$0xff]  }
  0x70   :  { %4384 = vmatprep.subr.bf16.mxu1 %v4565_v37  ;;  %vm2063_vm4 = vcmask 785408  }
  0x71   :  { %170 = vadd.xlane.f32.xlu0 %v5034_v7  ;;  %415 = vmatpush1.bf16.msra.mxu0 %v4548_v23  ;;  %v267_v23 = vlaneseq }
  0x72   :  { %416 = vmatprep.subr.bf16.mxu0 %v4549_v24 }
  0x73   :  { %4385 = vmatpush3.bf16.msra.mxu1 %v4565_v37  ;;  %v5056_v24 = vshrl.u32 %v267_v23, 7 }
  0x74   :  { %4386 = vmatprep.subr.bf16.mxu1 %v4566_v62 }
  0x75   :  { %417 = vmatpush1.bf16.msra.mxu0 %v4551_v25  ;;  %v273_v25 = vsub.s32 1, %v5056_v24 }
  0x76   :  { %418 = vmatprep.subr.bf16.mxu0 %v4552_v26 }
  0x77   :  { %4387 = vmatpush3.bf16.msra.mxu1 %v4566_v62 }
  0x78   :  { %4388 = vmatprep.subr.bf16.mxu1 %v4567_v63 }
  0x79   :  { %419 = vmatpush1.bf16.msra.mxu0 %v4554_v27  ;;  %v5062_v27 = vld [vmem:[%s5770_s5] sm:$0x7]  ;;  %s4907_s5 = smov 96  }
  0x7a   :  { %420 = vmatprep.subr.bf16.mxu0 %v4555_v28 }
  0x7b   :  { %4389 = vmatpush3.bf16.msra.mxu1 %v4567_v63 }
  0x7c   :  { %4390 = vmatprep.subr.bf16.mxu1 %v4568_v0 }
  0x7d   :  { %421 = vmatpush1.bf16.msra.mxu0 %v4557_v30  ;;  %v269_v30 = vsub.s32 0, %v5056_v24 }
  0x7e   :  { %422 = vmatprep.subr.bf16.mxu0 %v4558_v31  ;;  %v5068_v31 = vrot.slane %v5062_v27, %v273_v25 }
  0x7f   :  { %4391 = vmatpush3.bf16.msra.mxu1 %v4568_v0 }
  0x80   :  { %4392 = vmatprep.subr.bf16.mxu1 %v4569_v1 }
  0x81   :  { %423 = vmatpush1.bf16.msra.mxu0 %v4560_v32 }
  0x82   :  { %424 = vmatprep.subr.bf16.mxu0 %v4561_v33 }
  0x83   :  { %4393 = vmatpush3.bf16.msra.mxu1 %v4569_v1 }
  0x84   :  { %4394 = vmatprep.subr.bf16.mxu1 %v4570_v2 }
  0x85   :  { %425 = vmatpush1.bf16.msra.mxu0 %v4563_v34  ;;  %v5073_v34 = vrot.slane %v5062_v27, %v269_v30 }
  0x87   :  { %4395 = vmatpush3.bf16.msra.mxu1 %v4570_v2 }
  0x88   :  { %4396 = vmatprep.subr.bf16.mxu1 %v4571_v4 }
  0x8b   :  { %4397 = vmatpush3.bf16.msra.mxu1 %v4571_v4 }
  0xf2   :  { %v167_v10 = vpop.xlane.xlu0 %166 }
  0xf3   :  { %v175_v11 = vmul.f32 0.0078125, %v167_v10 }
  0xf5   :  { %v5038_v12 = vsub.f32 %v5028_v3, %v175_v11 }
  0xf6   :  { %v169_v13 = vpop.xlane.xlu0 %168 }
  0xf7   :  { %v176_v14 = vmul.f32 0.0078125, %v169_v13  ;;  %v183_v15 = vmul.f32 %v5038_v12, %v5038_v12 }
  0xf9   :  { %v5043_v16 = vsub.f32 %v5031_v5, %v176_v14  ;;  %187 = vadd.xlane.f32.xlu1 %v183_v15 }
  0xfa   :  { %v171_v35 = vpop.xlane.xlu0 %170 }
  0xfb   :  { %v184_v18 = vmul.f32 %v5043_v16, %v5043_v16  ;;  %v177_v38 = vmul.f32 0.0078125, %v171_v35 }
  0xfd   :  { %189 = vadd.xlane.f32.xlu1 %v184_v18  ;;  %v181_v39 = vsub.f32 %v5034_v7, %v177_v38 }
  0xff   :  { %v185_v40 = vmul.f32 %v181_v39, %v181_v39 }
 0x101   :  { %172 = vadd.xlane.f32.xlu1 %v5047_v19  ;;  %191 = vadd.xlane.f32.xlu0 %v185_v40 }
 0x182   :  { %v188_v41 = vpop.xlane.xlu1 %187 }
 0x183   :  { %v195_v42 = vmul.f32 0.0078125, %v188_v41  ;;  %v4909_v41 = vmov 0.0  }
 0x184   :  { %4402 = vmatprep.subr.bf16.mxu0 %v4909_v41  ;;  %4414 = vmatprep.subr.bf16.mxu1 %v4909_v41 }
 0x185   :  { %v199_v43 = vadd.f32 1e-05, %v195_v42  ;;  %v4911_v42 = vmov 1983009808  }
 0x186   :  { %v190_v44 = vpop.xlane.xlu1 %189 }
 0x187   :  { %4620 = vrsqrt.f32 %v199_v43  ;;  %v196_v45 = vmul.f32 0.0078125, %v190_v44  ;;  %v549_v43 = vunpack.c.l.s4 %v4911_v42  ;;  %v4912_v44 = vmov 1934713408  }
 0x189   :  { %v200_v46 = vadd.f32 1e-05, %v196_v45  ;;  %v580_v45 = vunpack.c.l.s4 %v4912_v44 }
 0x18a   :  { %v173_v47 = vpop.xlane.xlu1 %172  ;;  %v192_v6 = vpop.xlane.xlu0 %191 }
 0x18b   :  { %4622 = vrsqrt.f32 %v200_v46  ;;  %v178_v48 = vmul.f32 0.0078125, %v173_v47  ;;  %v197_v8 = vmul.f32 0.0078125, %v192_v6  ;;  %v550_v46 = vunpack.c.0.s8 %v549_v43 }
 0x18c   :  { %v5093_v47 = vpack.i.b16 %v4906_v29, %v4906_v29 }
 0x18d   :  { %v182_v49 = vsub.f32 %v5047_v19, %v178_v48  ;;  %v201_v9 = vadd.f32 1e-05, %v197_v8 }
 0x18f   :  { %v186_v50 = vmul.f32 %v182_v49, %v182_v49  ;;  %4624 = vrsqrt.f32 %v201_v9 }
 0x191   :  { %193 = vadd.xlane.f32.xlu1 %v186_v50 }
 0x194   :  { %v4621_v51 = vpop.eup %4620 }
 0x195   :  { %v207_v52 = vmul.f32 %v4621_v51, %v5038_v12 }
 0x197   :  { %v217_v56 = vmul.f32 %v4184_v53, %v207_v52 }
 0x198   :  { %v4623_v54 = vpop.eup %4622 }
 0x199   :  { %v208_v55 = vmul.f32 %v4623_v54, %v5043_v16  ;;  %v227_v59 = vadd.f32 %v4185_v57, %v217_v56  ;;  %v5096_v54 = vsub.s32 %v550_v46, %v5056_v24 }
 0x19b   :  { %v218_v58 = vmul.f32 %v4184_v53, %v208_v55 }
 0x19c   :  { %v4625_v13 = vpop.eup %4624 }
 0x19d   :  { %v228_v60 = vadd.f32 %v4185_v57, %v218_v58  ;;  %v209_v14 = vmul.f32 %v4625_v13, %v181_v39 }
 0x19f   :  { %v231_v61 = vpack.c.bf16 %v228_v60, %v227_v59  ;;  %v219_v15 = vmul.f32 %v4184_v53, %v209_v14 }
 0x1a1   :  { %443 = vmatmul.mubr.bf16.vlgmr.msra.gmra.mxu0 %v231_v61  ;;  %4398 = vmatprep.mubr.bf16.mxu1 %v231_v61  ;;  %v229_v20 = vadd.f32 %v4185_v57, %v219_v15 }
 0x1a2   :  { %452 = vmatprep.mubr.bf16.mxu0 %v4906_v29 }
 0x21a   :  { %v194_v10 = vpop.xlane.xlu1 %193 }
 0x21b   :  { %v198_v11 = vmul.f32 0.0078125, %v194_v10  ;;  %v277_v10 = vsub.s32 2, %v5056_v24 }
 0x21d   :  { %v202_v12 = vadd.f32 1e-05, %v198_v11 }
 0x21f   :  { %4626 = vrsqrt.f32 %v202_v12 }
 0x22c   :  { %v4627_v16 = vpop.eup %4626 }
 0x22d   :  { %v210_v17 = vmul.f32 %v4627_v16, %v182_v49 }
 0x22f   :  { %v220_v18 = vmul.f32 %v4184_v53, %v210_v17  ;;  %v581_v53 = vunpack.c.0.s8 %v580_v45 }
 0x231   :  { %v230_v21 = vadd.f32 %v4185_v57, %v220_v18  ;;  %v5101_v60 = vsub.s32 %v581_v53, %v5056_v24 }
 0x233   :  { %v232_v22 = vpack.c.bf16 %v230_v21, %v229_v20 }
 0x235   :  { %453 = vmatmul.mubr.bf16.gmra.mxu0 %v232_v22  ;;  %4399 = vmatmul.mubr.bf16.vlgmr.msra.gmra.mxu1 %v232_v22 }
 0x236   :  { %4404 = vmatprep.mubr.msk.bf16.mxu0 %vm4910_vm0, %v4909_v41  ;;  %4416 = vmatprep.mubr.msk.bf16.mxu1 %vm4910_vm0, %v4909_v41 }
 0x261   :  { %v444_v26 = vpop.f32.mrf.mxu0 }
 0x262   :  { %v445_v39 = vadd.f32 %v444_v26, %v5073_v34 }
 0x263   :  { %v446_v28 = vpop.f32.mrf.mxu0 }
 0x264   :  { %v447_v35 = vadd.f32 %v446_v28, %v5068_v31 }
 0x265   :  { %v448_v32 = vpop.f32.mrf.mxu0 }
 0x266   :  { %v449_v37 = vadd.f32 %v448_v32, %v5073_v34 }
 0x267   :  { %v450_v33 = vpop.f32.mrf.mxu0 }
 0x268   :  { %v451_v36 = vadd.f32 %v450_v33, %v5068_v31  ;;  %v512_v40 = vpack.c.bf16 %v449_v37, %v445_v39 }
 0x26a   :  { %v514_v38 = vpack.c.bf16 %v451_v36, %v447_v35  ;;  %v529_v2 = vshrl.u32 %v512_v40, 16 }
 0x26c   :  { %794 = vrot.lane.b32.xlu1 %v514_v38, %s4897_s1  ;;  %792 = vrot.lane.b32.xlu0 %v514_v38, %s4907_s5  ;;  %v802_v50 = vshrl.u32 %v514_v38, 16 }
 0x270   :  { %796 = vrot.lane.b32.xlu1 %v514_v38, %s4908_s29  ;;  %521 = vrot.lane.b32.xlu0 %v512_v40, %s4897_s1 }
 0x274   :  { %519 = vrot.lane.b32.xlu1 %v512_v40, %s4907_s5 }
 0x278   :  { %523 = vrot.lane.b32.xlu1 %v512_v40, %s4908_s29 }
 0x2de   :  { %v795_v48 = vpop.permute.xlu1 %794  ;;  %v793_v49 = vpop.permute.xlu0 %792 }
 0x2df   :  { %v800_v51 = vpack.i.b16 %v793_v49, %v514_v38  ;;  %v803_v52 = vshrl.u32 %v793_v49, 16  ;;  %v810_v61 = vshrl.u32 %v795_v48, 16  ;;  %v5121_v49 = vrot.slane %v5062_v27, %v277_v10 }
 0x2e1   :  { %v804_v55 = vpack.i.b16 %v803_v52, %v802_v50  ;;  %v814_v56 = vcombine.high %v800_v51, %v5093_v47  ;;  %v821_v63 = vrot.slane %v800_v51, %v5096_v54 }
 0x2e2   :  { %v797_v57 = vpop.permute.xlu1 %796  ;;  %v522_v39 = vpop.permute.xlu0 %521 }
 0x2e3   :  { %v880_v58 = vcombine.high %v804_v55, %v5093_v47  ;;  %v808_v59 = vpack.i.b16 %v797_v57, %v795_v48  ;;  %v811_v62 = vshrl.u32 %v797_v57, 16  ;;  %v828_v4 = vrot.slane %v814_v56, %v5096_v54 }
 0x2e4   :  { %v887_v6 = vrot.slane %v804_v55, %v5096_v54  ;;  %v537_v53 = vshrl.u32 %v522_v39, 16 }
 0x2e5   :  { %v829_v0 = vcombine.high %v808_v59, %v5093_v47  ;;  %v836_v1 = vrot.slane %v808_v59, %v5096_v54  ;;  %v812_v8 = vpack.i.b16 %v811_v62, %v810_v61  ;;  %v894_v11 = vrot.slane %v880_v58, %v5096_v54 }
 0x2e6   :  { %v520_v9 = vpop.permute.xlu1 %519 }
 0x2e7   :  { %v843_v12 = vrot.slane %v829_v0, %v5096_v54  ;;  %v844_v13 = vcombine.low %v821_v63, %v836_v1  ;;  %v845_v14 = vcombine.high %v821_v63, %v836_v1  ;;  %v895_v15 = vcombine.high %v812_v8, %v5093_v47 }
 0x2e8   :  { %v902_v16 = vrot.slane %v812_v8, %v5096_v54  ;;  %v527_v17 = vpack.i.b16 %v520_v9, %v512_v40  ;;  %v530_v18 = vshrl.u32 %v520_v9, 16 }
 0x2e9   :  { %v852_v20 = vrot.slane %v844_v13, %v5101_v60  ;;  %v859_v21 = vrot.slane %v845_v14, %v5101_v60  ;;  %v860_v22 = vcombine.low %v828_v4, %v843_v12  ;;  %v861_v23 = vcombine.high %v828_v4, %v843_v12 }
 0x2ea   :  { %v909_v26 = vrot.slane %v895_v15, %v5096_v54  ;;  %v910_v28 = vcombine.low %v887_v6, %v902_v16  ;;  %v911_v32 = vcombine.high %v887_v6, %v902_v16  ;;  %v531_v33 = vpack.i.b16 %v530_v18, %v529_v2  ;;  %v524_v48 = vpop.permute.xlu1 %523 }
 0x2eb   :  { %v868_v35 = vrot.slane %v860_v22, %v5101_v60  ;;  %v875_v36 = vrot.slane %v861_v23, %v5101_v60  ;;  %v946_v37 = vcombine.low %v852_v20, %v859_v21  ;;  %v4214_v38 = vcombine.high %v852_v20, %v859_v21 }
 0x2ec   :  { %v918_v40 = vrot.slane %v910_v28, %v5101_v60  ;;  %v925_v42 = vrot.slane %v911_v32, %v5101_v60  ;;  %v926_v43 = vcombine.low %v894_v11, %v909_v26  ;;  %v927_v44 = vcombine.high %v894_v11, %v909_v26 }
 0x2ed   :  { %v962_v45 = vcombine.low %v868_v35, %v875_v36  ;;  %v4215_v46 = vcombine.high %v868_v35, %v875_v36  ;;  %v5126_v52 = vrot.slane %v946_v37, %v5096_v54  ;;  %v5129_v55 = vrot.slane %v4214_v38, %v5096_v54 }
 0x2ee   :  { %v934_v50 = vrot.slane %v926_v43, %v5101_v60  ;;  %v941_v51 = vrot.slane %v927_v44, %v5101_v60  ;;  %v996_v56 = vcombine.low %v918_v40, %v925_v42  ;;  %v547_v57 = vcombine.high %v527_v17, %v5093_v47 }
 0x2ef   :  { %v613_v58 = vcombine.high %v531_v33, %v5093_v47  ;;  %v4216_v59 = vcombine.high %v918_v40, %v925_v42  ;;  %v554_v27 = vrot.slane %v527_v17, %v5096_v54  ;;  %v535_v61 = vpack.i.b16 %v524_v48, %v522_v39 }
 0x2f0   :  { %v538_v62 = vshrl.u32 %v524_v48, 16  ;;  %v1012_v63 = vcombine.low %v934_v50, %v941_v51  ;;  %v620_v0 = vrot.slane %v531_v33, %v5096_v54  ;;  %v969_v1 = vrot.slane %v962_v45, %v5096_v54 }
 0x2f1   :  { %v977_v2 = vrot.slane %v4215_v46, %v5096_v54  ;;  %v4217_v4 = vcombine.high %v934_v50, %v941_v51  ;;  %v562_v8 = vcombine.high %v535_v61, %v5093_v47  ;;  %v569_v9 = vrot.slane %v535_v61, %v5096_v54 }
 0x2f2   :  { %v539_v6 = vpack.i.b16 %v538_v62, %v537_v53  ;;  %v561_v10 = vrot.slane %v547_v57, %v5096_v54  ;;  %v627_v11 = vrot.slane %v613_v58, %v5096_v54  ;;  %v978_v12 = vcombine.low %v5126_v52, %v5129_v55 }
 0x2f3   :  { %v986_v13 = vcombine.low %v969_v1, %v977_v2  ;;  %v576_v14 = vrot.slane %v562_v8, %v5096_v54  ;;  %v577_v15 = vcombine.low %v554_v27, %v569_v9  ;;  %v578_v16 = vcombine.high %v554_v27, %v569_v9 }
 0x2f4   :  { %v628_v17 = vcombine.high %v539_v6, %v5093_v47  ;;  %v635_v18 = vrot.slane %v539_v6, %v5096_v54  ;;  %v1003_v20 = vrot.slane %v996_v56, %v5096_v54  ;;  %v1011_v21 = vrot.slane %v4216_v59, %v5096_v54 }
 0x2f5   :  { %v1019_v22 = vrot.slane %v1012_v63, %v5096_v54  ;;  %v585_v23 = vrot.slane %v577_v15, %v5101_v60  ;;  %v592_v26 = vrot.slane %v578_v16, %v5101_v60  ;;  %v593_v28 = vcombine.low %v561_v10, %v576_v14  ;;  %v454_v53 = vpop.f32.mrf.mxu0 }
 0x2f6   :  { %v594_v32 = vcombine.high %v561_v10, %v576_v14  ;;  %v642_v33 = vrot.slane %v628_v17, %v5096_v54  ;;  %v643_v35 = vcombine.low %v620_v0, %v635_v18  ;;  %v644_v36 = vcombine.high %v620_v0, %v635_v18 }
 0x2f7   :  { %v993_v37 = vrot.slane %v986_v13, %v5101_v60  ;;  %v601_v38 = vrot.slane %v593_v28, %v5101_v60  ;;  %v679_v40 = vcombine.low %v585_v23, %v592_v26  ;;  %v4210_v42 = vcombine.high %v585_v23, %v592_v26  ;;  %v5166_v6 = vpop.f32.mrf.mxu0  ;;  %v4400_v13 = vpop.f32.mrf.mxu1 }
 0x2f8   :  { %v608_v39 = vrot.slane %v594_v32, %v5101_v60  ;;  %v651_v43 = vrot.slane %v643_v35, %v5101_v60  ;;  %v658_v44 = vrot.slane %v644_v36, %v5101_v60  ;;  %v659_v45 = vcombine.low %v627_v11, %v642_v33 }
 0x2f9   :  { %v660_v46 = vcombine.high %v627_v11, %v642_v33  ;;  %v686_v48 = vrot.slane %v679_v40, %v5096_v54  ;;  %v1027_v52 = vrot.slane %v4217_v4, %v5096_v54  ;;  %v694_v59 = vrot.slane %v4210_v42, %v5096_v54  ;;  %v458_v32 = vpop.f32.mrf.mxu0  ;;  %v5177_v35 = vpop.f32.mrf.mxu1 }
 0x2fa   :  { %v695_v50 = vcombine.low %v601_v38, %v608_v39  ;;  %v4211_v51 = vcombine.high %v601_v38, %v608_v39  ;;  %v667_v55 = vrot.slane %v659_v45, %v5101_v60  ;;  %v729_v57 = vcombine.low %v651_v43, %v658_v44 }
 0x2fb   :  { %v674_v56 = vrot.slane %v660_v46, %v5101_v60  ;;  %v4212_v58 = vcombine.high %v651_v43, %v658_v44  ;;  %v1028_v62 = vcombine.low %v1003_v20, %v1011_v21  ;;  %v1036_v4 = vcombine.low %v1019_v22, %v1027_v52 }
 0x2fc   :  { %v702_v27 = vrot.slane %v695_v50, %v5096_v54  ;;  %v710_v61 = vrot.slane %v4211_v51, %v5096_v54  ;;  %v736_v63 = vrot.slane %v729_v57, %v5096_v54  ;;  %v985_v11 = vrot.slane %v978_v12, %v5101_v60  ;;  %v4401_v50 = vpop.f32.mrf.mxu1 }
 0x2fd   :  { %v744_v0 = vrot.slane %v4212_v58, %v5096_v54  ;;  %v745_v1 = vcombine.low %v667_v55, %v674_v56  ;;  %v4213_v2 = vcombine.high %v667_v55, %v674_v56  ;;  %v1035_v15 = vrot.slane %v1028_v62, %v5101_v60 }
 0x2fe   :  { %v719_v14 = vcombine.low %v702_v27, %v710_v61  ;;  %v1043_v16 = vrot.slane %v1036_v4, %v5101_v60  ;;  %v711_v17 = vcombine.low %v686_v48, %v694_v59  ;;  %v994_v20 = vcombine.low %v985_v11, %v993_v37 }
 0x2ff   :  { %v752_v8 = vrot.slane %v745_v1, %v5096_v54  ;;  %v760_v9 = vrot.slane %v4213_v2, %v5096_v54  ;;  %v761_v10 = vcombine.low %v736_v63, %v744_v0  ;;  %v506_v21 = vadd.f32 %v4400_v13, %v5121_v49 }
 0x300   :  { %v1044_v22 = vcombine.low %v1035_v15, %v1043_v16  ;;  %v995_v23 = vcombine.high %v985_v11, %v993_v37  ;;  %v1045_v26 = vcombine.high %v1035_v15, %v1043_v16  ;;  %v455_v28 = vadd.f32 %v454_v53, %v5073_v34  ;;  %v500_v11 = vpop.f32.mrf.mxu1 }
 0x301   :  { %v769_v18 = vcombine.low %v752_v8, %v760_v9  ;;  %v768_v33 = vrot.slane %v761_v10, %v5101_v60  ;;  %v459_v36 = vadd.f32 %v458_v32, %v5073_v34  ;;  %v726_v38 = vrot.slane %v719_v14, %v5101_v60  ;;  %v460_v10 = vpop.f32.mrf.mxu0 }
 0x302   :  { %v1048_v39 = vpack.i.b16 %v1044_v22, %v994_v20  ;;  %v1054_v40 = vpack.i.b16 %v1045_v26, %v995_v23  ;;  %v718_v42 = vrot.slane %v711_v17, %v5101_v60  ;;  %v1050_v43 = vshrl.u32 %v1044_v22, 16 }
 0x303   :  { %v776_v12 = vrot.slane %v769_v18, %v5101_v60  ;;  %v5184_v48 = vpack.c.bf16 %v459_v36, %v455_v28  ;;  %v1049_v52 = vshrl.u32 %v994_v20, 16  ;;  %v509_v53 = vadd.f32 %v4401_v50, %v5121_v49 }
 0x304   :  { %v1334_v44 = vsel %vm1329_vm1, %v1048_v39, 0  ;;  %v1428_v45 = vsel %vm1329_vm1, %v1054_v40, 0  ;;  %v727_v51 = vcombine.low %v718_v42, %v726_v38  ;;  %v728_v34 = vcombine.high %v718_v42, %v726_v38 }
 0x305   :  { %v777_v37 = vcombine.low %v768_v33, %v776_v12  ;;  %v778_v46 = vcombine.high %v768_v33, %v776_v12  ;;  %4403 = vmatpush3.bf16.xpose.msra.mxu0 %v1334_v44  ;;  %4415 = vmatpush3.bf16.xpose.msra.mxu1 %v1428_v45  ;;  %v1051_v57 = vpack.i.b16 %v1050_v43, %v1049_v52  ;;  %v1056_v27 = vshrl.u32 %v1045_v26, 16 }
 0x306   :  { %4408 = vmatprep.subr.bf16.mxu0 %v4909_v41  ;;  %4426 = vmatprep.subr.bf16.mxu1 %v4909_v41  ;;  %v5189_v58 = vpack.c.bf16 %v509_v53, %v506_v21  ;;  %v1055_v62 = vshrl.u32 %v995_v23, 16  ;;  %v782_v63 = vshrl.u32 %v727_v51, 16  ;;  %v788_v8 = vshrl.u32 %v728_v34, 16 }
 0x307   :  { %v781_v55 = vpack.i.b16 %v777_v37, %v727_v51  ;;  %v787_v56 = vpack.i.b16 %v778_v46, %v728_v34  ;;  %v1381_v59 = vsel %vm1329_vm1, %v1051_v57, 0  ;;  %v783_v61 = vshrl.u32 %v777_v37, 16 }
 0x308   :  { %v1057_v0 = vpack.i.b16 %v1056_v27, %v1055_v62  ;;  %v789_v4 = vshrl.u32 %v778_v46, 16  ;;  %v498_v43 = vadd.f32 %v5177_v35, %v5121_v49  ;;  %v501_v44 = vadd.f32 %v500_v11, %v5121_v49 }
 0x309   :  { %v784_v1 = vpack.i.b16 %v783_v61, %v782_v63  ;;  %v457_v51 = vadd.f32 %v5166_v6, %v5068_v31  ;;  %v461_v34 = vadd.f32 %v460_v10, %v5068_v31 }
 0x30a   :  { %v1475_v2 = vsel %vm1329_vm1, %v1057_v0, 0  ;;  %v790_v9 = vpack.i.b16 %v789_v4, %v788_v8  ;;  %v516_v50 = vpack.c.bf16 %v501_v44, %v498_v43 }
 0x30b   :  { %v5230_v52 = vpack.c.bf16 %v461_v34, %v457_v51 }
 0x30c   :  { %4405 = vmatmul.mubr.msk.bf16.vlgmr.msra.gmra.mxu0 %vm1329_vm1, %v781_v55  ;;  %4417 = vmatmul.mubr.msk.bf16.vlgmr.msra.gmra.mxu1 %vm1329_vm1, %v787_v56 }
 0x30d   :  { %4409 = vmatpush3.bf16.xpose.msra.mxu0 %v1381_v59  ;;  %4410 = vmatprep.mubr.msk.bf16.mxu0 %vm4910_vm0, %v4909_v41 }
 0x30e   :  { %4420 = vmatprep.subr.bf16.mxu0 %v4909_v41  ;;  %4428 = vmatprep.mubr.msk.bf16.mxu1 %vm4910_vm0, %v4909_v41 }
 0x314   :  { %4411 = vmatmul.mubr.msk.bf16.vlgmr.msra.gmra.mxu0 %vm1329_vm1, %v784_v1 }
 0x315   :  { %4421 = vmatpush3.bf16.xpose.msra.mxu0 %v1475_v2  ;;  %4422 = vmatprep.mubr.msk.bf16.mxu0 %vm4910_vm0, %v4909_v41 }
 0x316   :  { %4432 = vmatprep.subr.bf16.mxu0 %v4909_v41 }
 0x31c   :  { %4423 = vmatmul.mubr.msk.bf16.vlgmr.msra.gmra.mxu0 %vm1329_vm1, %v790_v9 }
 0x31d   :  { %4434 = vmatprep.mubr.msk.bf16.mxu0 %vm4910_vm0, %v4909_v41 }
 0x3cc   :  { %v1370_v13 = vpop.f32.mrf.mxu0  ;;  %v5207_v14 = vpop.f32.mrf.mxu1 }
 0x3cd   :  { %v1519_v15 = vsel %vm1518_vm2, %v1370_v13, -inf  ;;  %v1531_v40 = vsel %vm1518_vm2, %v5207_v14, -inf }
 0x3ce   :  { %v4418_v16 = vpop.f32.mrf.mxu1  ;;  %1520 = vmax.xlane.f32.xlu0 %v1519_v15  ;;  %v4406_v17 = vpop.f32.mrf.mxu0 }
 0x3d0   :  { %v5210_v18 = vpop.f32.mrf.mxu0  ;;  %v1467_v20 = vpop.f32.mrf.mxu1 }
 0x3d1   :  { %v1522_v21 = vsel %vm1518_vm2, %v5210_v18, -inf  ;;  %v1534_v28 = vsel %vm1518_vm2, %v1467_v20, -inf }
 0x3d2   :  { %v4419_v22 = vpop.f32.mrf.mxu1  ;;  %1523 = vmax.xlane.f32.xlu1 %v1522_v21  ;;  %v4407_v23 = vpop.f32.mrf.mxu0 }
 0x3d4   :  { %v1417_v26 = vpop.f32.mrf.mxu0 }
 0x3d5   :  { %v1525_v32 = vsel %vm1518_vm2, %v1417_v26, -inf }
 0x3d6   :  { %1535 = vmax.xlane.f32.xlu1 %v1534_v28  ;;  %1526 = vmax.xlane.f32.xlu0 %v1525_v32  ;;  %v4412_v33 = vpop.f32.mrf.mxu0  ;;  %v1069_v28 = vshrl.u32 %v516_v50, 16 }
 0x3d8   :  { %v1420_v12 = vpop.f32.mrf.mxu0 }
 0x3d9   :  { %v1528_v36 = vsel %vm1518_vm2, %v1420_v12, -inf }
 0x3da   :  { %1529 = vmax.xlane.f32.xlu0 %v1528_v36  ;;  %v4413_v38 = vpop.f32.mrf.mxu0 }
 0x3dc   :  { %v1511_v39 = vpop.f32.mrf.mxu0 }
 0x3dd   :  { %v1537_v45 = vsel %vm1518_vm2, %v1511_v39, -inf }
 0x3de   :  { %1532 = vmax.xlane.f32.xlu0 %v1531_v40  ;;  %v4424_v42 = vpop.f32.mrf.mxu0 }
 0x3e0   :  { %v5219_v37 = vpop.f32.mrf.mxu0 }
 0x3e1   :  { %v1540_v49 = vsel %vm1518_vm2, %v5219_v37, -inf }
 0x3e2   :  { %1538 = vmax.xlane.f32.xlu0 %v1537_v45  ;;  %v4425_v46 = vpop.f32.mrf.mxu0 }
 0x3e7   :  { %1061 = vrot.lane.b32.xlu1 %v516_v50, %s4897_s1 }
 0x3eb   :  { %1063 = vrot.lane.b32.xlu1 %v516_v50, %s4908_s29 }
 0x3ef   :  { %2335 = vrot.lane.b32.xlu1 %v5230_v52, %s4907_s5 }
 0x3f8   :  { %1059 = vrot.lane.b32.xlu0 %v516_v50, %s4907_s5 }
 0x3fc   :  { %2337 = vrot.lane.b32.xlu0 %v5230_v52, %s4897_s1 }
 0x413   :  { %1541 = vmax.xlane.f32.xlu1 %v1540_v49 }
 0x424   :  { %2339 = vrot.lane.b32.xlu1 %v5230_v52, %s4908_s29 }
 0x428   :  { %2068 = vrot.lane.b32.xlu1 %v5184_v48, %s4907_s5 }
 0x457   :  { %v1521_v31 = vpop.xlane.xlu0 %1520 }
 0x458   :  { %v1543_v6 = vsub.f32 %v1370_v13, %v1521_v31 }
 0x45a   :  { %v1551_v35 = vmul.f32 1.442695, %v1543_v6 }
 0x45b   :  { %v1524_v53 = vpop.xlane.xlu1 %1523 }
 0x45c   :  { %4628 = vpow2.f32 %v1551_v35  ;;  %v1544_v1 = vsub.f32 %v5210_v18, %v1524_v53 }
 0x45e   :  { %v1553_v17 = vmul.f32 1.442695, %v1544_v1 }
 0x45f   :  { %v1536_v55 = vpop.xlane.xlu1 %1535  ;;  %v1527_v56 = vpop.xlane.xlu0 %1526 }
 0x460   :  { %v1548_v57 = vsub.f32 %v1467_v20, %v1536_v55  ;;  %v1545_v59 = vsub.f32 %v1417_v26, %v1527_v56 }
 0x462   :  { %v1561_v27 = vmul.f32 1.442695, %v1548_v57  ;;  %v1555_v61 = vmul.f32 1.442695, %v1545_v59 }
 0x463   :  { %v1062_v62 = vpop.permute.xlu1 %1061  ;;  %v1530_v63 = vpop.xlane.xlu0 %1529 }
 0x464   :  { %4630 = vpow2.f32 %v1561_v27  ;;  %v1546_v10 = vsub.f32 %v1420_v12, %v1530_v63  ;;  %v1077_v20 = vshrl.u32 %v1062_v62, 16 }
 0x465   :  { %4632 = vpow2.f32 %v1555_v61 }
 0x466   :  { %v1557_v22 = vmul.f32 1.442695, %v1546_v10 }
 0x467   :  { %v1533_v0 = vpop.xlane.xlu0 %1532  ;;  %v1064_v2 = vpop.permute.xlu1 %1063 }
 0x468   :  { %v1547_v4 = vsub.f32 %v5207_v14, %v1533_v0  ;;  %v1075_v11 = vpack.i.b16 %v1064_v2, %v1062_v62  ;;  %v1078_v13 = vshrl.u32 %v1064_v2, 16 }
 0x469   :  { %v5245_v8 = vpop.eup %4628 }
 0x46a   :  { %v1559_v9 = vmul.f32 1.442695, %v1547_v4  ;;  %v1567_v15 = vsel %vm1518_vm2, %v5245_v8, 0.0  ;;  %v1079_v18 = vpack.i.b16 %v1078_v13, %v1077_v20  ;;  %v1096_v23 = vcombine.high %v1075_v11, %v5093_v47 }
 0x46b   :  { %v1539_v16 = vpop.xlane.xlu0 %1538  ;;  %1568 = vadd.xlane.f32.xlu0 %v1567_v15  ;;  %v1103_v36 = vrot.slane %v1075_v11, %v5096_v54 }
 0x46c   :  { %4634 = vpow2.f32 %v1559_v9  ;;  %v1549_v21 = vsub.f32 %v1511_v39, %v1539_v16  ;;  %v1110_v44 = vrot.slane %v1096_v23, %v5096_v54  ;;  %v1162_v45 = vcombine.high %v1079_v18, %v5093_v47 }
 0x46d   :  { %4636 = vpow2.f32 %v1553_v17  ;;  %v1169_v49 = vrot.slane %v1079_v18, %v5096_v54 }
 0x46e   :  { %v1563_v14 = vmul.f32 1.442695, %v1549_v21  ;;  %v1176_v57 = vrot.slane %v1162_v45, %v5096_v54 }
 0x46f   :  { %v1060_v26 = vpop.permute.xlu0 %1059 }
 0x470   :  { %v1067_v32 = vpack.i.b16 %v1060_v26, %v516_v50  ;;  %v1070_v33 = vshrl.u32 %v1060_v26, 16  ;;  %4638 = vpow2.f32 %v1563_v14 }
 0x471   :  { %v5250_v12 = vpop.eup %4630  ;;  %4640 = vpow2.f32 %v1557_v22 }
 0x472   :  { %v5253_v38 = vpop.eup %4632  ;;  %v1071_v40 = vpack.i.b16 %v1070_v33, %v1069_v28  ;;  %v1081_v39 = vcombine.high %v1067_v32, %v5093_v47  ;;  %v1088_v42 = vrot.slane %v1067_v32, %v5096_v54  ;;  %v1582_v43 = vsel %vm1518_vm2, %v5250_v12, 0.0 }
 0x473   :  { %1583 = vadd.xlane.f32.xlu0 %v1582_v43  ;;  %v1573_v6 = vsel %vm1518_vm2, %v5253_v38, 0.0 }
 0x474   :  { %v1095_v46 = vrot.slane %v1081_v39, %v5096_v54  ;;  %v1111_v50 = vcombine.low %v1088_v42, %v1103_v36  ;;  %v1112_v51 = vcombine.high %v1088_v42, %v1103_v36  ;;  %v1147_v34 = vcombine.high %v1071_v40, %v5093_v47 }
 0x475   :  { %v1154_v31 = vrot.slane %v1071_v40, %v5096_v54 }
 0x476   :  { %v1119_v35 = vrot.slane %v1111_v50, %v5101_v60  ;;  %v1126_v53 = vrot.slane %v1112_v51, %v5101_v60  ;;  %v1127_v55 = vcombine.low %v1095_v46, %v1110_v44  ;;  %v1128_v56 = vcombine.high %v1095_v46, %v1110_v44 }
 0x477   :  { %v1161_v59 = vrot.slane %v1147_v34, %v5096_v54  ;;  %v1177_v27 = vcombine.low %v1154_v31, %v1169_v49  ;;  %v1178_v61 = vcombine.high %v1154_v31, %v1169_v49  ;;  %1574 = vadd.xlane.f32.xlu0 %v1573_v6 }
 0x478   :  { %v1135_v62 = vrot.slane %v1127_v55, %v5101_v60  ;;  %v1142_v63 = vrot.slane %v1128_v56, %v5101_v60  ;;  %v1213_v0 = vcombine.low %v1119_v35, %v1126_v53  ;;  %v4218_v1 = vcombine.high %v1119_v35, %v1126_v53 }
 0x479   :  { %v5273_v2 = vpop.eup %4634  ;;  %v1185_v4 = vrot.slane %v1177_v27, %v5101_v60  ;;  %v1192_v9 = vrot.slane %v1178_v61, %v5101_v60  ;;  %v1193_v10 = vcombine.low %v1161_v59, %v1176_v57  ;;  %v1194_v11 = vcombine.high %v1161_v59, %v1176_v57 }
 0x47a   :  { %v1220_v13 = vrot.slane %v1213_v0, %v5096_v54  ;;  %v1228_v15 = vrot.slane %v4218_v1, %v5096_v54  ;;  %v1229_v16 = vcombine.low %v1135_v62, %v1142_v63  ;;  %v4219_v17 = vcombine.high %v1135_v62, %v1142_v63  ;;  %v5285_v32 = vpop.eup %4636 }
 0x47b   :  { %v1201_v20 = vrot.slane %v1193_v10, %v5101_v60  ;;  %v1208_v21 = vrot.slane %v1194_v11, %v5101_v60  ;;  %v1263_v22 = vcombine.low %v1185_v4, %v1192_v9  ;;  %v4220_v18 = vcombine.high %v1185_v4, %v1192_v9  ;;  %v2336_v11 = vpop.permute.xlu1 %2335 }
 0x47c   :  { %v1236_v23 = vrot.slane %v1229_v16, %v5096_v54  ;;  %v1244_v14 = vrot.slane %v4219_v17, %v5096_v54  ;;  %v1579_v26 = vsel %vm1518_vm2, %v5273_v2, 0.0  ;;  %v1245_v28 = vcombine.low %v1220_v13, %v1228_v15 }
 0x47d   :  { %v1270_v33 = vrot.slane %v1263_v22, %v5096_v54  ;;  %v1278_v36 = vrot.slane %v4220_v18, %v5096_v54  ;;  %v1279_v40 = vcombine.low %v1201_v20, %v1208_v21  ;;  %v4221_v39 = vcombine.high %v1201_v20, %v1208_v21  ;;  %1580 = vadd.xlane.f32.xlu1 %v1579_v26  ;;  %v5289_v42 = vpop.eup %4638  ;;  %v2338_v22 = vpop.permute.xlu0 %2337 }
 0x47e   :  { %v1253_v43 = vcombine.low %v1236_v23, %v1244_v14  ;;  %v1585_v44 = vsel %vm1518_vm2, %v5289_v42, 0.0  ;;  %v5295_v51 = vpop.eup %4640  ;;  %v1570_v34 = vsel %vm1518_vm2, %v5285_v32, 0.0  ;;  %v1252_v49 = vrot.slane %v1245_v28, %v5101_v60 }
 0x47f   :  { %v1286_v45 = vrot.slane %v1279_v40, %v5096_v54  ;;  %v1294_v46 = vrot.slane %v4221_v39, %v5096_v54  ;;  %v1295_v50 = vcombine.low %v1270_v33, %v1278_v36  ;;  %1586 = vadd.xlane.f32.xlu0 %v1585_v44  ;;  %v1576_v57 = vsel %vm1518_vm2, %v5295_v51, 0.0 }
 0x480   :  { %v1260_v31 = vrot.slane %v1253_v43, %v5101_v60  ;;  %v2346_v23 = vshrl.u32 %v2336_v11, 16  ;;  %v2353_v14 = vshrl.u32 %v2338_v22, 16  ;;  %v2345_v26 = vshrl.u32 %v5230_v52, 16 }
 0x481   :  { %1571 = vadd.xlane.f32.xlu1 %v1570_v34  ;;  %v1303_v6 = vcombine.low %v1286_v45, %v1294_v46  ;;  %v1302_v55 = vrot.slane %v1295_v50, %v5101_v60  ;;  %v2343_v36 = vpack.i.b16 %v2336_v11, %v5230_v52 }
 0x482   :  { %v1261_v35 = vcombine.low %v1252_v49, %v1260_v31  ;;  %v5301_v53 = vcombine.high %v1252_v49, %v1260_v31  ;;  %v2347_v33 = vpack.i.b16 %v2346_v23, %v2345_v26 }
 0x483   :  { %v1310_v56 = vrot.slane %v1303_v6, %v5101_v60  ;;  %v2357_v44 = vcombine.high %v2343_v36, %v5093_v47 }
 0x484   :  { %v1317_v61 = vshrl.u32 %v1261_v35, 16  ;;  %v1325_v62 = vshrl.u32 %v5301_v53, 16  ;;  %v2423_v43 = vcombine.high %v2347_v33, %v5093_v47 }
 0x485   :  { %1577 = vadd.xlane.f32.xlu1 %v1576_v57  ;;  %v1311_v59 = vcombine.low %v1302_v55, %v1310_v56  ;;  %v5307_v27 = vcombine.high %v1302_v55, %v1310_v56  ;;  %v2371_v52 = vrot.slane %v2357_v44, %v5096_v54  ;;  %v2430_v55 = vrot.slane %v2347_v33, %v5096_v54 }
 0x486   :  { %v2437_v49 = vrot.slane %v2423_v43, %v5096_v54 }
 0x487   :  { %v1315_v63 = vpack.i.b16 %v1311_v59, %v1261_v35  ;;  %v1318_v0 = vshrl.u32 %v1311_v59, 16  ;;  %v1323_v1 = vpack.i.b16 %v5307_v27, %v5301_v53  ;;  %v1326_v4 = vshrl.u32 %v5307_v27, 16 }
 0x488   :  { %v2364_v59 = vrot.slane %v2343_v36, %v5096_v54 }
 0x489   :  { %4427 = vmatpush3.bf16.msra.mxu1 %v1315_v63  ;;  %v1319_v9 = vpack.i.b16 %v1318_v0, %v1317_v61  ;;  %v5313_v10 = vpack.i.b16 %v1326_v4, %v1325_v62 }
 0x48a   :  { %4438 = vmatprep.subr.bf16.mxu1 %v4909_v41 }
 0x48b   :  { %4433 = vmatpush3.bf16.msra.mxu0 %v1319_v9 }
 0x48c   :  { %4444 = vmatprep.subr.bf16.mxu0 %v4909_v41 }
 0x496   :  { %2070 = vrot.lane.b32.xlu1 %v5184_v48, %s4897_s1 }
 0x49c   :  { %v1542_v13 = vpop.xlane.xlu1 %1541 }
 0x49d   :  { %v1550_v15 = vsub.f32 %v5219_v37, %v1542_v13 }
 0x49f   :  { %v1565_v16 = vmul.f32 1.442695, %v1550_v15 }
 0x4a0   :  { %v2340_v21 = vpop.permute.xlu1 %2339 }
 0x4a1   :  { %4642 = vpow2.f32 %v1565_v16  ;;  %v2354_v18 = vshrl.u32 %v2340_v21, 16  ;;  %v2351_v37 = vpack.i.b16 %v2340_v21, %v2338_v22 }
 0x4a3   :  { %v2355_v28 = vpack.i.b16 %v2354_v18, %v2353_v14  ;;  %v2372_v39 = vcombine.high %v2351_v37, %v5093_v47  ;;  %v2379_v6 = vrot.slane %v2351_v37, %v5096_v54 }
 0x4a4   :  { %v5334_v34 = vpop.permute.xlu1 %2068 }
 0x4a5   :  { %v2438_v40 = vcombine.high %v2355_v28, %v5093_v47  ;;  %v2386_v50 = vrot.slane %v2372_v39, %v5096_v54  ;;  %v2445_v31 = vrot.slane %v2355_v28, %v5096_v54  ;;  %v2387_v9 = vcombine.low %v2364_v59, %v2379_v6 }
 0x4a6   :  { %v2388_v11 = vcombine.high %v2364_v59, %v2379_v6  ;;  %v2079_v27 = vshrl.u32 %v5334_v34, 16 }
 0x4a7   :  { %v2452_v46 = vrot.slane %v2438_v40, %v5096_v54  ;;  %v2403_v61 = vcombine.low %v2371_v52, %v2386_v50  ;;  %v2404_v62 = vcombine.high %v2371_v52, %v2386_v50  ;;  %v2453_v0 = vcombine.low %v2430_v55, %v2445_v31 }
 0x4a8   :  { %v2454_v4 = vcombine.high %v2430_v55, %v2445_v31  ;;  %v2395_v14 = vrot.slane %v2387_v9, %v5101_v60  ;;  %v2402_v26 = vrot.slane %v2388_v11, %v5101_v60 }
 0x4a9   :  { %v2469_v56 = vcombine.low %v2437_v49, %v2452_v46  ;;  %v2470_v57 = vcombine.high %v2437_v49, %v2452_v46  ;;  %v2411_v16 = vrot.slane %v2403_v61, %v5101_v60  ;;  %v2461_v18 = vrot.slane %v2453_v0, %v5101_v60 }
 0x4aa   :  { %v2468_v23 = vrot.slane %v2454_v4, %v5101_v60  ;;  %v2489_v44 = vcombine.low %v2395_v14, %v2402_v26 }
 0x4ab   :  { %v2477_v13 = vrot.slane %v2469_v56, %v5101_v60  ;;  %v2484_v15 = vrot.slane %v2470_v57, %v5101_v60 }
 0x4ac   :  { %v2539_v39 = vcombine.low %v2461_v18, %v2468_v23  ;;  %v4240_v43 = vcombine.high %v2461_v18, %v2468_v23  ;;  %v2496_v55 = vrot.slane %v2489_v44, %v5096_v54 }
 0x4ad   :  { %v2555_v28 = vcombine.low %v2477_v13, %v2484_v15  ;;  %v4241_v37 = vcombine.high %v2477_v13, %v2484_v15 }
 0x4ae   :  { %v5320_v17 = vpop.eup %4642  ;;  %v2546_v52 = vrot.slane %v2539_v39, %v5096_v54  ;;  %v2554_v6 = vrot.slane %v4240_v43, %v5096_v54 }
 0x4af   :  { %v1588_v20 = vsel %vm1518_vm2, %v5320_v17, 0.0  ;;  %v2562_v46 = vrot.slane %v2555_v28, %v5096_v54  ;;  %v2570_v50 = vrot.slane %v4241_v37, %v5096_v54 }
 0x4b0   :  { %1589 = vadd.xlane.f32.xlu0 %v1588_v20  ;;  %v2418_v20 = vrot.slane %v2404_v62, %v5101_v60 }
 0x4b1   :  { %v2579_v57 = vcombine.low %v2562_v46, %v2570_v50 }
 0x4b2   :  { %v2505_v33 = vcombine.low %v2411_v16, %v2418_v20  ;;  %v4239_v40 = vcombine.high %v2411_v16, %v2418_v20 }
 0x4b3   :  { %v5361_v9 = vrot.slane %v2579_v57, %v5101_v60 }
 0x4b4   :  { %v2512_v49 = vrot.slane %v2505_v33, %v5096_v54  ;;  %v2520_v31 = vrot.slane %v4239_v40, %v5096_v54 }
 0x4b6   :  { %v2529_v61 = vcombine.low %v2512_v49, %v2520_v31 }
 0x4b8   :  { %v5364_v16 = vrot.slane %v2529_v61, %v5101_v60 }
 0x4c6   :  { %2072 = vrot.lane.b32.xlu0 %v5184_v48, %s4908_s29 }
 0x4f4   :  { %v1569_v45 = vpop.xlane.xlu0 %1568 }
 0x4f5   :  { %4644 = vrcp.f32 %v1569_v45  ;;  %v4238_v45 = vcombine.high %v2395_v14, %v2402_v26 }
 0x4f7   :  { %v2504_v56 = vrot.slane %v4238_v45, %v5096_v54 }
 0x4f9   :  { %v2521_v4 = vcombine.low %v2496_v55, %v2504_v56 }
 0x4fc   :  { %v1584_v35 = vpop.xlane.xlu0 %1583 }
 0x500   :  { %v1575_v21 = vpop.xlane.xlu0 %1574 }
 0x502   :  { %v4645_v59 = vpop.eup %4644 }
 0x506   :  { %v1581_v63 = vpop.xlane.xlu1 %1580 }
 0x50a   :  { %v1572_v22 = vpop.xlane.xlu1 %1571 }
 0x50b   :  { %4646 = vrcp.f32 %v1572_v22  ;;  %v5373_v22 = vrot.slane %v2521_v4, %v5101_v60 }
 0x50c   :  { %4648 = vrcp.f32 %v1575_v21 }
 0x50d   :  { %4650 = vrcp.f32 %v1581_v63  ;;  %v1599_v63 = vmul.f32 %v4645_v59, %v5245_v8 }
 0x50e   :  { %v1578_v36 = vpop.xlane.xlu1 %1577 }
 0x50f   :  { %4652 = vrcp.f32 %v1578_v36 }
 0x510   :  { %4654 = vrcp.f32 %v1584_v35  ;;  %v2571_v35 = vcombine.low %v2546_v52, %v2554_v6 }
 0x512   :  { %v5367_v20 = vrot.slane %v2571_v35, %v5101_v60  ;;  %v2071_v36 = vpop.permute.xlu1 %2070 }
 0x513   :  { %v2086_v43 = vshrl.u32 %v2071_v36, 16 }
 0x514   :  { %v2587_v18 = vcombine.low %v5367_v20, %v5361_v9 }
 0x516   :  { %v2593_v50 = vshrl.u32 %v2587_v18, 16 }
 0x518   :  { %v4647_v62 = vpop.eup %4646 }
 0x519   :  { %v1600_v0 = vmul.f32 %v4647_v62, %v5285_v32  ;;  %v4649_v11 = vpop.eup %4648 }
 0x51a   :  { %v4651_v13 = vpop.eup %4650  ;;  %v1601_v8 = vmul.f32 %v4649_v11, %v5253_v38 }
 0x51b   :  { %v1607_v15 = vpack.c.bf16 %v1600_v0, %v1599_v63  ;;  %v1603_v38 = vmul.f32 %v4651_v13, %v5273_v2 }
 0x51c   :  { %v4653_v21 = vpop.eup %4652 }
 0x51d   :  { %4429 = vmatmul.mubr.msk.bf16.vlgmr.msra.gmra.mxu1 %vm1518_vm2, %v1607_v15  ;;  %v1602_v32 = vmul.f32 %v4653_v21, %v5295_v51  ;;  %v4655_v23 = vpop.eup %4654  ;;  %v2537_v51 = vcombine.low %v5373_v22, %v5364_v16 }
 0x51e   :  { %4439 = vmatpush3.bf16.msra.mxu1 %v1323_v1  ;;  %4440 = vmatprep.mubr.msk.bf16.mxu1 %vm4910_vm0, %v4909_v41  ;;  %v1604_v26 = vmul.f32 %v4655_v23, %v5250_v12  ;;  %v1587_v12 = vpop.xlane.xlu0 %1586  ;;  %v2078_v1 = vshrl.u32 %v5184_v48, 16 }
 0x51f   :  { %v1608_v14 = vpack.c.bf16 %v1602_v32, %v1601_v8  ;;  %4450 = vmatprep.subr.bf16.mxu1 %v4909_v41  ;;  %v2591_v28 = vpack.i.b16 %v2587_v18, %v2537_v51  ;;  %4656 = vrcp.f32 %v1587_v12  ;;  %v2592_v6 = vshrl.u32 %v2537_v51, 16 }
 0x520   :  { %v1609_v53 = vpack.c.bf16 %v1604_v26, %v1603_v38  ;;  %v2080_v33 = vpack.i.b16 %v2079_v27, %v2078_v1 }
 0x521   :  { %4435 = vmatmul.mubr.msk.bf16.vlgmr.msra.gmra.mxu0 %vm1518_vm2, %v1608_v14  ;;  %v2876_v2 = vsel %vm1329_vm1, %v2591_v28, 0  ;;  %v2594_v0 = vpack.i.b16 %v2593_v50, %v2592_v6 }
 0x522   :  { %4445 = vmatpush3.bf16.msra.mxu0 %v5313_v10  ;;  %4446 = vmatprep.mubr.msk.bf16.mxu0 %vm4910_vm0, %v4909_v41  ;;  %v2076_v10 = vpack.i.b16 %v5334_v34, %v5184_v48  ;;  %v2156_v46 = vcombine.high %v2080_v33, %v5093_v47  ;;  %v2163_v35 = vrot.slane %v2080_v33, %v5096_v54 }
 0x523   :  { %4456 = vmatprep.subr.bf16.mxu0 %v4909_v41 }
 0x524   :  { %v2090_v40 = vcombine.high %v2076_v10, %v5093_v47  ;;  %v2097_v49 = vrot.slane %v2076_v10, %v5096_v54  ;;  %v2170_v62 = vrot.slane %v2156_v46, %v5096_v54 }
 0x525   :  { %4441 = vmatmul.mubr.msk.bf16.vlgmr.msra.gmra.mxu1 %vm1518_vm2, %v1609_v53 }
 0x526   :  { %4451 = vmatpush3.bf16.xpose.msra.mxu1 %v2876_v2  ;;  %4452 = vmatprep.mubr.msk.bf16.mxu1 %vm4910_vm0, %v4909_v41  ;;  %v2104_v34 = vrot.slane %v2090_v40, %v5096_v54 }
 0x527   :  { %4462 = vmatprep.subr.bf16.mxu1 %v4909_v41 }
 0x52c   :  { %v4657_v55 = vpop.eup %4656 }
 0x52d   :  { %v1605_v18 = vmul.f32 %v4657_v55, %v5289_v42 }
 0x539   :  { %v1590_v37 = vpop.xlane.xlu0 %1589 }
 0x53a   :  { %4658 = vrcp.f32 %v1590_v37 }
 0x53d   :  { %v2073_v39 = vpop.permute.xlu0 %2072 }
 0x53e   :  { %v2084_v44 = vpack.i.b16 %v2073_v39, %v2071_v36  ;;  %v2087_v45 = vshrl.u32 %v2073_v39, 16 }
 0x540   :  { %v2088_v31 = vpack.i.b16 %v2087_v45, %v2086_v43  ;;  %v2105_v52 = vcombine.high %v2084_v44, %v5093_v47  ;;  %v2112_v48 = vrot.slane %v2084_v44, %v5096_v54 }
 0x542   :  { %v2119_v56 = vrot.slane %v2105_v52, %v5096_v54  ;;  %v2120_v57 = vcombine.low %v2097_v49, %v2112_v48  ;;  %v2121_v59 = vcombine.high %v2097_v49, %v2112_v48  ;;  %v2171_v61 = vcombine.high %v2088_v31, %v5093_v47 }
 0x543   :  { %v2178_v63 = vrot.slane %v2088_v31, %v5096_v54 }
 0x544   :  { %v2128_v4 = vrot.slane %v2120_v57, %v5101_v60  ;;  %v2135_v11 = vrot.slane %v2121_v59, %v5101_v60  ;;  %v2136_v13 = vcombine.low %v2104_v34, %v2119_v56  ;;  %v2137_v15 = vcombine.high %v2104_v34, %v2119_v56 }
 0x545   :  { %v2185_v21 = vrot.slane %v2171_v61, %v5096_v54  ;;  %v2186_v8 = vcombine.low %v2163_v35, %v2178_v63  ;;  %v2187_v32 = vcombine.high %v2163_v35, %v2178_v63  ;;  %v2588_v56 = vcombine.high %v5367_v20, %v5361_v9 }
 0x546   :  { %v2144_v23 = vrot.slane %v2136_v13, %v5101_v60  ;;  %v2151_v14 = vrot.slane %v2137_v15, %v5101_v60  ;;  %v2222_v38 = vcombine.low %v2128_v4, %v2135_v11  ;;  %v4234_v51 = vcombine.high %v2128_v4, %v2135_v11 }
 0x547   :  { %v4659_v26 = vpop.eup %4658  ;;  %v2194_v28 = vrot.slane %v2186_v8, %v5101_v60  ;;  %v2201_v53 = vrot.slane %v2187_v32, %v5101_v60  ;;  %v2202_v2 = vcombine.low %v2170_v62, %v2185_v21  ;;  %v2203_v12 = vcombine.high %v2170_v62, %v2185_v21 }
 0x548   :  { %v2229_v27 = vrot.slane %v2222_v38, %v5096_v54  ;;  %v2237_v1 = vrot.slane %v4234_v51, %v5096_v54  ;;  %v2238_v10 = vcombine.low %v2144_v23, %v2151_v14  ;;  %v4235_v37 = vcombine.high %v2144_v23, %v2151_v14 }
 0x549   :  { %v2210_v42 = vrot.slane %v2202_v2, %v5101_v60  ;;  %v2217_v33 = vrot.slane %v2203_v12, %v5101_v60  ;;  %v2272_v36 = vcombine.low %v2194_v28, %v2201_v53  ;;  %v4236_v40 = vcombine.high %v2194_v28, %v2201_v53 }
 0x54a   :  { %v2245_v39 = vrot.slane %v2238_v10, %v5096_v54  ;;  %v2253_v43 = vrot.slane %v4235_v37, %v5096_v54  ;;  %v2254_v44 = vcombine.low %v2229_v27, %v2237_v1  ;;  %v1606_v45 = vmul.f32 %v4659_v26, %v5320_v17 }
 0x54b   :  { %v2279_v46 = vrot.slane %v2272_v36, %v5096_v54  ;;  %v2287_v50 = vrot.slane %v4236_v40, %v5096_v54  ;;  %v2288_v49 = vcombine.low %v2210_v42, %v2217_v33  ;;  %v4237_v31 = vcombine.high %v2210_v42, %v2217_v33 }
 0x54c   :  { %v2262_v52 = vcombine.low %v2245_v39, %v2253_v43  ;;  %v1610_v48 = vpack.c.bf16 %v1606_v45, %v1605_v18  ;;  %v2923_v17 = vsel %vm1329_vm1, %v2594_v0, 0  ;;  %v2261_v59 = vrot.slane %v2254_v44, %v5101_v60 }
 0x54d   :  { %v2295_v34 = vrot.slane %v2288_v49, %v5096_v54  ;;  %v2303_v6 = vrot.slane %v4237_v31, %v5096_v54  ;;  %v2304_v55 = vcombine.low %v2279_v46, %v2287_v50  ;;  %v2538_v35 = vcombine.high %v5373_v22, %v5364_v16 }
 0x54e   :  { %4447 = vmatmul.mubr.msk.bf16.vlgmr.msra.gmra.mxu0 %vm1518_vm2, %v1610_v48  ;;  %v2269_v57 = vrot.slane %v2262_v52, %v5101_v60  ;;  %v2599_v63 = vshrl.u32 %v2588_v56, 16 }
 0x54f   :  { %v2312_v61 = vcombine.low %v2295_v34, %v2303_v6  ;;  %4457 = vmatpush3.bf16.xpose.msra.mxu0 %v2923_v17  ;;  %4458 = vmatprep.mubr.msk.bf16.mxu0 %vm4910_vm0, %v4909_v41  ;;  %v2311_v9 = vrot.slane %v2304_v55, %v5101_v60  ;;  %v2597_v4 = vpack.i.b16 %v2588_v56, %v2538_v35  ;;  %v2598_v11 = vshrl.u32 %v2538_v35, 16 }
 0x550   :  { %4468 = vmatprep.subr.bf16.mxu0 %v4909_v41  ;;  %v2270_v62 = vcombine.low %v2261_v59, %v2269_v57  ;;  %v2271_v23 = vcombine.high %v2261_v59, %v2269_v57 }
 0x551   :  { %v2319_v20 = vrot.slane %v2312_v61, %v5101_v60  ;;  %v2600_v8 = vpack.i.b16 %v2599_v63, %v2598_v11  ;;  %v2970_v16 = vsel %vm1329_vm1, %v2597_v4, 0 }
 0x552   :  { %v2325_v15 = vshrl.u32 %v2270_v62, 16  ;;  %v2331_v51 = vshrl.u32 %v2271_v23, 16 }
 0x553   :  { %v2320_v0 = vcombine.low %v2311_v9, %v2319_v20  ;;  %v2321_v32 = vcombine.high %v2311_v9, %v2319_v20  ;;  %v3017_v18 = vsel %vm1329_vm1, %v2600_v8, 0 }
 0x555   :  { %v2324_v13 = vpack.i.b16 %v2320_v0, %v2270_v62  ;;  %v2326_v21 = vshrl.u32 %v2320_v0, 16  ;;  %v2332_v14 = vshrl.u32 %v2321_v32, 16  ;;  %v2330_v38 = vpack.i.b16 %v2321_v32, %v2271_v23 }
 0x557   :  { %4453 = vmatmul.mubr.msk.bf16.vlgmr.msra.gmra.mxu1 %vm1329_vm1, %v2324_v13  ;;  %v2327_v22 = vpack.i.b16 %v2326_v21, %v2325_v15  ;;  %v2333_v26 = vpack.i.b16 %v2332_v14, %v2331_v51 }
 0x558   :  { %4463 = vmatpush3.bf16.xpose.msra.mxu1 %v2970_v16  ;;  %4464 = vmatprep.mubr.msk.bf16.mxu1 %vm4910_vm0, %v4909_v41 }
 0x559   :  { %4459 = vmatmul.mubr.msk.bf16.vlgmr.msra.gmra.mxu0 %vm1329_vm1, %v2327_v22  ;;  %4474 = vmatprep.subr.bf16.mxu1 %v4909_v41 }
 0x55a   :  { %4469 = vmatpush3.bf16.xpose.msra.mxu0 %v3017_v18  ;;  %4470 = vmatprep.mubr.msk.bf16.mxu0 %vm4910_vm0, %v4909_v41 }
 0x55b   :  { %4480 = vmatprep.subr.bf16.mxu0 %v4909_v41 }
 0x55f   :  { %4465 = vmatmul.mubr.msk.bf16.vlgmr.msra.gmra.mxu1 %vm1329_vm1, %v2330_v38 }
 0x560   :  { %4476 = vmatprep.mubr.msk.bf16.mxu1 %vm4910_vm0, %v4909_v41 }
 0x561   :  { %4471 = vmatmul.mubr.msk.bf16.vlgmr.msra.gmra.mxu0 %vm1329_vm1, %v2333_v26 }
 0x562   :  { %4482 = vmatprep.mubr.msk.bf16.mxu0 %vm4910_vm0, %v4909_v41 }
 0x5dd   :  { %v1648_v28 = vpop.f32.mrf.mxu1 }
 0x5df   :  { %v4430_v53 = vpop.f32.mrf.mxu1 }
 0x5e1   :  { %v1651_v2 = vpop.f32.mrf.mxu1  ;;  %v1692_v12 = vpop.f32.mrf.mxu0 }
 0x5e2   :  { %v1787_v27 = vpack.c.bf16 %v1651_v2, %v1648_v28 }
 0x5e3   :  { %v4431_v1 = vpop.f32.mrf.mxu1  ;;  %v4436_v10 = vpop.f32.mrf.mxu0 }
 0x5e4   :  { %v1795_v39 = vshrl.u32 %v1787_v27, 16 }
 0x5e5   :  { %v1695_v37 = vpop.f32.mrf.mxu0  ;;  %v1736_v42 = vpop.f32.mrf.mxu1 }
 0x5e6   :  { %v1788_v33 = vpack.c.bf16 %v1695_v37, %v1692_v12 }
 0x5e7   :  { %v4437_v36 = vpop.f32.mrf.mxu0  ;;  %v4442_v40 = vpop.f32.mrf.mxu1 }
 0x5e8   :  { %v1793_v43 = vpack.i.b16 %v1788_v33, %v1787_v27  ;;  %v1796_v44 = vshrl.u32 %v1788_v33, 16 }
 0x5e9   :  { %v1739_v45 = vpop.f32.mrf.mxu1 }
 0x5ea   :  { %v1797_v46 = vpack.i.b16 %v1796_v44, %v1795_v39  ;;  %v1789_v50 = vpack.c.bf16 %v1739_v45, %v1736_v42  ;;  %v1807_v6 = vcombine.high %v1793_v43, %v5093_v47  ;;  %v1814_v61 = vrot.slane %v1793_v43, %v5096_v54 }
 0x5eb   :  { %v4443_v49 = vpop.f32.mrf.mxu1 }
 0x5ec   :  { %v1803_v56 = vshrl.u32 %v1789_v50, 16  ;;  %v1873_v59 = vcombine.high %v1797_v46, %v5093_v47  ;;  %v1821_v63 = vrot.slane %v1807_v6, %v5096_v54  ;;  %v1880_v16 = vrot.slane %v1797_v46, %v5096_v54 }
 0x5ee   :  { %v1887_v22 = vrot.slane %v1873_v59, %v5096_v54 }
 0x60e   :  { %v1780_v31 = vpop.f32.mrf.mxu0 }
 0x610   :  { %v4448_v52 = vpop.f32.mrf.mxu0 }
 0x612   :  { %v1783_v48 = vpop.f32.mrf.mxu0 }
 0x613   :  { %v1790_v34 = vpack.c.bf16 %v1783_v48, %v1780_v31 }
 0x614   :  { %v4449_v55 = vpop.f32.mrf.mxu0 }
 0x615   :  { %v1801_v17 = vpack.i.b16 %v1790_v34, %v1789_v50  ;;  %v1804_v57 = vshrl.u32 %v1790_v34, 16 }
 0x617   :  { %v1805_v35 = vpack.i.b16 %v1804_v57, %v1803_v56  ;;  %v1822_v62 = vcombine.high %v1801_v17, %v5093_v47  ;;  %v1829_v9 = vrot.slane %v1801_v17, %v5096_v54  ;;  %v5465_v20 = vpop.f32.mrf.mxu1 }
 0x618   :  { %v3060_v0 = vsel %vm1518_vm2, %v5465_v20, -inf }
 0x619   :  { %v1836_v4 = vrot.slane %v1822_v62, %v5096_v54  ;;  %v1837_v11 = vcombine.low %v1814_v61, %v1829_v9  ;;  %v1838_v13 = vcombine.high %v1814_v61, %v1829_v9  ;;  %v1888_v15 = vcombine.high %v1805_v35, %v5093_v47  ;;  %3061 = vmax.xlane.f32.xlu1 %v3060_v0  ;;  %v4454_v21 = vpop.f32.mrf.mxu1  ;;  %v5472_v8 = vpop.f32.mrf.mxu0 }
 0x61a   :  { %v1895_v32 = vrot.slane %v1805_v35, %v5096_v54  ;;  %v3066_v46 = vsel %vm1518_vm2, %v5472_v8, -inf }
 0x61b   :  { %v1845_v18 = vrot.slane %v1837_v11, %v5101_v60  ;;  %v1852_v23 = vrot.slane %v1838_v13, %v5101_v60  ;;  %v1853_v14 = vcombine.low %v1821_v63, %v1836_v4  ;;  %v1854_v38 = vcombine.high %v1821_v63, %v1836_v4  ;;  %v5479_v51 = vpop.f32.mrf.mxu1  ;;  %v4460_v26 = vpop.f32.mrf.mxu0 }
 0x61c   :  { %v1902_v28 = vrot.slane %v1888_v15, %v5096_v54  ;;  %v1903_v53 = vcombine.low %v1880_v16, %v1895_v32  ;;  %v1904_v2 = vcombine.high %v1880_v16, %v1895_v32  ;;  %v3063_v12 = vsel %vm1518_vm2, %v5479_v51, -inf }
 0x61d   :  { %v1861_v27 = vrot.slane %v1853_v14, %v5101_v60  ;;  %v1868_v1 = vrot.slane %v1854_v38, %v5101_v60  ;;  %v1939_v10 = vcombine.low %v1845_v18, %v1852_v23  ;;  %v4230_v37 = vcombine.high %v1845_v18, %v1852_v23  ;;  %3064 = vmax.xlane.f32.xlu0 %v3063_v12  ;;  %v4455_v42 = vpop.f32.mrf.mxu1  ;;  %v5486_v33 = vpop.f32.mrf.mxu0 }
 0x61e   :  { %v1911_v36 = vrot.slane %v1903_v53, %v5101_v60  ;;  %v1918_v40 = vrot.slane %v1904_v2, %v5101_v60  ;;  %v1919_v39 = vcombine.low %v1887_v22, %v1902_v28  ;;  %v1920_v43 = vcombine.high %v1887_v22, %v1902_v28 }
 0x61f   :  { %v4461_v44 = vpop.f32.mrf.mxu0  ;;  %v5490_v45 = vpop.f32.mrf.mxu1  ;;  %v1946_v50 = vrot.slane %v1939_v10, %v5096_v54  ;;  %v1954_v49 = vrot.slane %v4230_v37, %v5096_v54  ;;  %v1955_v31 = vcombine.low %v1861_v27, %v1868_v1  ;;  %v4231_v6 = vcombine.high %v1861_v27, %v1868_v1 }
 0x620   :  { %v1927_v52 = vrot.slane %v1919_v39, %v5101_v60  ;;  %v1934_v48 = vrot.slane %v1920_v43, %v5101_v60  ;;  %v3072_v34 = vsel %vm1518_vm2, %v5490_v45, -inf  ;;  %v1989_v59 = vcombine.low %v1911_v36, %v1918_v40 }
 0x621   :  { %3073 = vmax.xlane.f32.xlu1 %v3072_v34  ;;  %v4466_v55 = vpop.f32.mrf.mxu1  ;;  %3067 = vmax.xlane.f32.xlu0 %v3066_v46  ;;  %v5500_v56 = vpop.f32.mrf.mxu0  ;;  %v1962_v17 = vrot.slane %v1955_v31, %v5096_v54  ;;  %v1971_v57 = vcombine.low %v1946_v50, %v1954_v49  ;;  %v1970_v61 = vrot.slane %v4231_v6, %v5096_v54  ;;  %v3069_v0 = vsel %vm1518_vm2, %v5486_v33, -inf }
 0x622   :  { %v4232_v35 = vcombine.high %v1911_v36, %v1918_v40  ;;  %v2005_v62 = vcombine.low %v1927_v52, %v1934_v48  ;;  %v1996_v4 = vrot.slane %v1989_v59, %v5096_v54  ;;  %v4233_v11 = vcombine.high %v1927_v52, %v1934_v48 }
 0x623   :  { %v5504_v9 = vpop.f32.mrf.mxu1  ;;  %v4472_v63 = vpop.f32.mrf.mxu0  ;;  %v3078_v13 = vsel %vm1518_vm2, %v5500_v56, -inf  ;;  %v1979_v15 = vcombine.low %v1962_v17, %v1970_v61  ;;  %v1978_v23 = vrot.slane %v1971_v57, %v5101_v60 }
 0x624   :  { %v2004_v21 = vrot.slane %v4232_v35, %v5096_v54  ;;  %v2012_v16 = vrot.slane %v2005_v62, %v5096_v54  ;;  %v2020_v18 = vrot.slane %v4233_v11, %v5096_v54  ;;  %v3075_v53 = vsel %vm1518_vm2, %v5504_v9, -inf }
 0x625   :  { %v4467_v22 = vpop.f32.mrf.mxu1  ;;  %3070 = vmax.xlane.f32.xlu0 %v3069_v0  ;;  %3079 = vmax.xlane.f32.xlu1 %v3078_v13  ;;  %v5513_v32 = vpop.f32.mrf.mxu0  ;;  %v1986_v14 = vrot.slane %v1979_v15, %v5101_v60 }
 0x626   :  { %v2021_v38 = vcombine.low %v1996_v4, %v2004_v21  ;;  %v2029_v28 = vcombine.low %v2012_v16, %v2020_v18  ;;  %v3081_v42 = vsel %vm1518_vm2, %v5513_v32, -inf  ;;  %v2612_v16 = vshrl.u32 %v5189_v58, 16 }
 0x627   :  { %v4473_v26 = vpop.f32.mrf.mxu0  ;;  %v5520_v2 = vcombine.low %v1978_v23, %v1986_v14  ;;  %v5522_v12 = vcombine.high %v1978_v23, %v1986_v14 }
 0x628   :  { %v2028_v27 = vrot.slane %v2021_v38, %v5101_v60  ;;  %v2036_v1 = vrot.slane %v2029_v28, %v5101_v60 }
 0x629   :  { %3076 = vmax.xlane.f32.xlu0 %v3075_v53  ;;  %v2048_v36 = vshrl.u32 %v5522_v12, 16  ;;  %v2042_v40 = vshrl.u32 %v5520_v2, 16 }
 0x62a   :  { %v5526_v10 = vcombine.low %v2028_v27, %v2036_v1  ;;  %v5528_v37 = vcombine.high %v2028_v27, %v2036_v1 }
 0x62c   :  { %v2047_v39 = vpack.i.b16 %v5528_v37, %v5522_v12  ;;  %v2049_v43 = vshrl.u32 %v5528_v37, 16  ;;  %v2043_v44 = vshrl.u32 %v5526_v10, 16  ;;  %v2041_v46 = vpack.i.b16 %v5526_v10, %v5520_v2 }
 0x62d   :  { %3082 = vmax.xlane.f32.xlu0 %v3081_v42 }
 0x62e   :  { %v5540_v50 = vpack.i.b16 %v2049_v43, %v2048_v36  ;;  %v5542_v49 = vpack.i.b16 %v2043_v44, %v2042_v40 }
 0x636   :  { %2602 = vrot.lane.b32.xlu1 %v5189_v58, %s4907_s5 }
 0x63a   :  { %2606 = vrot.lane.b32.xlu1 %v5189_v58, %s4908_s29 }
 0x643   :  { %2604 = vrot.lane.b32.xlu0 %v5189_v58, %s4897_s1 }
 0x6a2   :  { %v3062_v31 = vpop.xlane.xlu1 %3061 }
 0x6a3   :  { %v3084_v52 = vsub.f32 %v5465_v20, %v3062_v31 }
 0x6a5   :  { %v3092_v48 = vmul.f32 1.442695, %v3084_v52 }
 0x6a6   :  { %v3065_v34 = vpop.xlane.xlu0 %3064 }
 0x6a7   :  { %4660 = vpow2.f32 %v3092_v48  ;;  %v3085_v6 = vsub.f32 %v5479_v51, %v3065_v34 }
 0x6a9   :  { %v3094_v55 = vmul.f32 1.442695, %v3085_v6 }
 0x6aa   :  { %v3074_v17 = vpop.xlane.xlu1 %3073  ;;  %v3068_v57 = vpop.xlane.xlu0 %3067 }
 0x6ab   :  { %4662 = vpow2.f32 %v3094_v55  ;;  %v3088_v59 = vsub.f32 %v5490_v45, %v3074_v17  ;;  %v3086_v61 = vsub.f32 %v5472_v8, %v3068_v57 }
 0x6ad   :  { %v3100_v35 = vmul.f32 1.442695, %v3088_v59  ;;  %v3096_v62 = vmul.f32 1.442695, %v3086_v61 }
 0x6ae   :  { %v3071_v63 = vpop.xlane.xlu0 %3070  ;;  %v3080_v0 = vpop.xlane.xlu1 %3079 }
 0x6af   :  { %4664 = vpow2.f32 %v3100_v35  ;;  %v3087_v20 = vsub.f32 %v5486_v33, %v3071_v63  ;;  %v3090_v51 = vsub.f32 %v5500_v56, %v3080_v0 }
 0x6b0   :  { %4666 = vpow2.f32 %v3096_v62 }
 0x6b1   :  { %v3098_v4 = vmul.f32 1.442695, %v3087_v20  ;;  %v3104_v23 = vmul.f32 1.442695, %v3090_v51 }
 0x6b2   :  { %v3077_v11 = vpop.xlane.xlu0 %3076  ;;  %v2603_v13 = vpop.permute.xlu1 %2602 }
 0x6b3   :  { %4668 = vpow2.f32 %v3098_v4  ;;  %v3089_v15 = vsub.f32 %v5504_v9, %v3077_v11  ;;  %v2613_v45 = vshrl.u32 %v2603_v13, 16  ;;  %v2610_v22 = vpack.i.b16 %v2603_v13, %v5189_v58 }
 0x6b4   :  { %v5557_v21 = vpop.eup %4660 }
 0x6b5   :  { %v3102_v8 = vmul.f32 1.442695, %v3089_v15  ;;  %v3108_v33 = vsel %vm1518_vm2, %v5557_v21, 0.0  ;;  %v2614_v56 = vpack.i.b16 %v2613_v45, %v2612_v16  ;;  %v2624_v28 = vcombine.high %v2610_v22, %v5093_v47 }
 0x6b6   :  { %v3083_v18 = vpop.xlane.xlu0 %3082  ;;  %3109 = vadd.xlane.f32.xlu1 %v3108_v33  ;;  %v2607_v38 = vpop.permute.xlu1 %2606 }
 0x6b7   :  { %4670 = vpow2.f32 %v3102_v8  ;;  %v3091_v9 = vsub.f32 %v5513_v32, %v3083_v18  ;;  %v2621_v27 = vshrl.u32 %v2607_v38, 16  ;;  %v2690_v40 = vcombine.high %v2614_v56, %v5093_v47 }
 0x6b8   :  { %v5563_v14 = vpop.eup %4662  ;;  %4672 = vpow2.f32 %v3104_v23  ;;  %v2631_v32 = vrot.slane %v2610_v22, %v5096_v54  ;;  %v2638_v48 = vrot.slane %v2624_v28, %v5096_v54  ;;  %v2697_v61 = vrot.slane %v2614_v56, %v5096_v54 }
 0x6b9   :  { %v3111_v26 = vsel %vm1518_vm2, %v5563_v14, 0.0  ;;  %v3106_v53 = vmul.f32 1.442695, %v3091_v9  ;;  %v2704_v35 = vrot.slane %v2690_v40, %v5096_v54 }
 0x6ba   :  { %3112 = vadd.xlane.f32.xlu0 %v3111_v26  ;;  %v2605_v58 = vpop.permute.xlu0 %2604 }
 0x6bb   :  { %v2618_v1 = vpack.i.b16 %v2607_v38, %v2605_v58  ;;  %v2620_v42 = vshrl.u32 %v2605_v58, 16  ;;  %4674 = vpow2.f32 %v3106_v53 }
 0x6bc   :  { %v5569_v36 = vpop.eup %4664 }
 0x6bd   :  { %v5572_v43 = vpop.eup %4666  ;;  %v2622_v44 = vpack.i.b16 %v2621_v27, %v2620_v42  ;;  %v2639_v31 = vcombine.high %v2618_v1, %v5093_v47  ;;  %v2646_v52 = vrot.slane %v2618_v1, %v5096_v54  ;;  %v3120_v63 = vsel %vm1518_vm2, %v5569_v36, 0.0 }
 0x6be   :  { %v3114_v34 = vsel %vm1518_vm2, %v5572_v43, 0.0 }
 0x6bf   :  { %v2653_v6 = vrot.slane %v2639_v31, %v5096_v54  ;;  %v2654_v55 = vcombine.low %v2631_v32, %v2646_v52  ;;  %v2655_v17 = vcombine.high %v2631_v32, %v2646_v52  ;;  %v2705_v57 = vcombine.high %v2622_v44, %v5093_v47  ;;  %3115 = vadd.xlane.f32.xlu1 %v3114_v34 }
 0x6c0   :  { %v5582_v59 = vpop.eup %4668  ;;  %v2712_v62 = vrot.slane %v2622_v44, %v5096_v54 }
 0x6c1   :  { %v2662_v0 = vrot.slane %v2654_v55, %v5101_v60  ;;  %v2669_v20 = vrot.slane %v2655_v17, %v5101_v60  ;;  %v2670_v4 = vcombine.low %v2638_v48, %v2653_v6  ;;  %v2671_v11 = vcombine.high %v2638_v48, %v2653_v6 }
 0x6c2   :  { %v2719_v13 = vrot.slane %v2705_v57, %v5096_v54  ;;  %v2720_v51 = vcombine.low %v2697_v61, %v2712_v62  ;;  %v2721_v15 = vcombine.high %v2697_v61, %v2712_v62  ;;  %v3117_v45 = vsel %vm1518_vm2, %v5582_v59, 0.0 }
 0x6c3   :  { %v2678_v8 = vrot.slane %v2670_v4, %v5101_v60  ;;  %v2685_v16 = vrot.slane %v2671_v11, %v5101_v60  ;;  %v2756_v22 = vcombine.low %v2662_v0, %v2669_v20  ;;  %v4242_v33 = vcombine.high %v2662_v0, %v2669_v20  ;;  %3121 = vadd.xlane.f32.xlu1 %v3120_v63 }
 0x6c4   :  { %v5596_v18 = vpop.eup %4670  ;;  %v2728_v23 = vrot.slane %v2720_v51, %v5101_v60  ;;  %v2735_v56 = vrot.slane %v2721_v15, %v5101_v60  ;;  %v2736_v38 = vcombine.low %v2704_v35, %v2719_v13  ;;  %v2737_v9 = vcombine.high %v2704_v35, %v2719_v13  ;;  %3118 = vadd.xlane.f32.xlu0 %v3117_v45 }
 0x6c5   :  { %v2763_v26 = vrot.slane %v2756_v22, %v5096_v54  ;;  %v2771_v28 = vrot.slane %v4242_v33, %v5096_v54  ;;  %v2772_v53 = vcombine.low %v2678_v8, %v2685_v16  ;;  %v4243_v58 = vcombine.high %v2678_v8, %v2685_v16  ;;  %v5608_v52 = vpop.eup %4672 }
 0x6c6   :  { %v2744_v27 = vrot.slane %v2736_v38, %v5101_v60  ;;  %v2751_v1 = vrot.slane %v2737_v9, %v5101_v60  ;;  %v2806_v42 = vcombine.low %v2728_v23, %v2735_v56  ;;  %v4244_v40 = vcombine.high %v2728_v23, %v2735_v56 }
 0x6c7   :  { %v2779_v32 = vrot.slane %v2772_v53, %v5096_v54  ;;  %v2787_v44 = vrot.slane %v4243_v58, %v5096_v54  ;;  %v3123_v31 = vsel %vm1518_vm2, %v5596_v18, 0.0  ;;  %v2788_v57 = vcombine.low %v2763_v26, %v2771_v28 }
 0x6c8   :  { %v2813_v48 = vrot.slane %v2806_v42, %v5096_v54  ;;  %v2821_v34 = vrot.slane %v4244_v40, %v5096_v54  ;;  %v2822_v6 = vcombine.low %v2744_v27, %v2751_v1  ;;  %v4245_v55 = vcombine.high %v2744_v27, %v2751_v1  ;;  %3124 = vadd.xlane.f32.xlu0 %v3123_v31  ;;  %v5612_v17 = vpop.eup %4674 }
 0x6c9   :  { %v2796_v61 = vcombine.low %v2779_v32, %v2787_v44  ;;  %v3129_v35 = vsel %vm1518_vm2, %v5612_v17, 0.0  ;;  %v3126_v20 = vsel %vm1518_vm2, %v5608_v52, 0.0  ;;  %v2795_v4 = vrot.slane %v2788_v57, %v5101_v60 }
 0x6ca   :  { %v2829_v62 = vrot.slane %v2822_v6, %v5096_v54  ;;  %v2837_v63 = vrot.slane %v4245_v55, %v5096_v54  ;;  %v2838_v0 = vcombine.low %v2813_v48, %v2821_v34  ;;  %3130 = vadd.xlane.f32.xlu1 %v3129_v35 }
 0x6cb   :  { %v2803_v11 = vrot.slane %v2796_v61, %v5101_v60 }
 0x6cc   :  { %3127 = vadd.xlane.f32.xlu0 %v3126_v20  ;;  %v2846_v13 = vcombine.low %v2829_v62, %v2837_v63  ;;  %v2845_v45 = vrot.slane %v2838_v0, %v5101_v60 }
 0x6cd   :  { %v2804_v51 = vcombine.low %v2795_v4, %v2803_v11  ;;  %v2805_v15 = vcombine.high %v2795_v4, %v2803_v11  ;;  %v4573_v11 = vld [vmem:[#allocation11 + $0x30] sm:$0xff]  }
 0x6ce   :  { %v2853_v8 = vrot.slane %v2846_v13, %v5101_v60  ;;  %v4574_v13 = vld [vmem:[#allocation11 + $0x28] sm:$0xff]  }
 0x6cf   :  { %v2860_v33 = vshrl.u32 %v2804_v51, 16  ;;  %v2868_v23 = vshrl.u32 %v2805_v15, 16 }
 0x6d0   :  { %v2854_v16 = vcombine.low %v2845_v45, %v2853_v8  ;;  %v2855_v22 = vcombine.high %v2845_v45, %v2853_v8 }
 0x6d2   :  { %v2858_v56 = vpack.i.b16 %v2854_v16, %v2804_v51  ;;  %v2861_v38 = vshrl.u32 %v2854_v16, 16  ;;  %v2866_v9 = vpack.i.b16 %v2855_v22, %v2805_v15  ;;  %v2869_v26 = vshrl.u32 %v2855_v22, 16  ;;  %v4576_v51 = vld [vmem:[#allocation11 + $0x18] sm:$0xff]   ;;  %v4578_v15 = vld [vmem:[#allocation11 + $0x8] sm:$0xff]  }
 0x6d4   :  { %4475 = vmatpush3.bf16.msra.mxu1 %v2858_v56  ;;  %v2862_v28 = vpack.i.b16 %v2861_v38, %v2860_v33  ;;  %v2870_v53 = vpack.i.b16 %v2869_v26, %v2868_v23 }
 0x6d5   :  { %4486 = vmatprep.subr.bf16.mxu1 %v4909_v41 }
 0x6d6   :  { %4481 = vmatpush3.bf16.msra.mxu0 %v2862_v28 }
 0x6d7   :  { %4492 = vmatprep.subr.bf16.mxu0 %v4909_v41 }
 0x6db   :  { %2053 = vrot.lane.b32.xlu1 %v2047_v39, %s4897_s1 }
 0x6df   :  { %2055 = vrot.lane.b32.xlu1 %v5540_v50, %s4907_s5 }
 0x6e2   :  { %2051 = vrot.lane.b32.xlu0 %v5542_v49, %s4908_s29 }
 0x73f   :  { %v3110_v58 = vpop.xlane.xlu1 %3109 }
 0x740   :  { %4676 = vrcp.f32 %v3110_v58 }
 0x743   :  { %v3113_v27 = vpop.xlane.xlu0 %3112 }
 0x744   :  { %4678 = vrcp.f32 %v3113_v27 }
 0x748   :  { %v3116_v1 = vpop.xlane.xlu1 %3115 }
 0x749   :  { %4680 = vrcp.f32 %v3116_v1 }
 0x74c   :  { %v3122_v42 = vpop.xlane.xlu1 %3121 }
 0x74d   :  { %v3119_v40 = vpop.xlane.xlu0 %3118  ;;  %v4677_v32 = vpop.eup %4676 }
 0x74e   :  { %4682 = vrcp.f32 %v3119_v40  ;;  %v3140_v37 = vmul.f32 %v4677_v32, %v5557_v21 }
 0x74f   :  { %4684 = vrcp.f32 %v3122_v42 }
 0x751   :  { %v4679_v44 = vpop.eup %4678  ;;  %v3125_v12 = vpop.xlane.xlu0 %3124 }
 0x752   :  { %4686 = vrcp.f32 %v3125_v12  ;;  %v3141_v39 = vmul.f32 %v4679_v44, %v5563_v14 }
 0x753   :  { %v3131_v50 = vpop.xlane.xlu1 %3130 }
 0x754   :  { %v3148_v49 = vpack.c.bf16 %v3141_v39, %v3140_v37  ;;  %4688 = vrcp.f32 %v3131_v50 }
 0x755   :  { %v3128_v31 = vpop.xlane.xlu0 %3127 }
 0x756   :  { %4690 = vrcp.f32 %v3128_v31  ;;  %4477 = vmatmul.mubr.msk.bf16.vlgmr.msra.gmra.mxu1 %vm1518_vm2, %v3148_v49  ;;  %v4681_v48 = vpop.eup %4680 }
 0x757   :  { %4487 = vmatpush3.bf16.msra.mxu1 %v2866_v9  ;;  %4488 = vmatprep.mubr.msk.bf16.mxu1 %vm4910_vm0, %v4909_v41  ;;  %v2054_v6 = vpop.permute.xlu1 %2053  ;;  %v3142_v55 = vmul.f32 %v4681_v48, %v5572_v43 }
 0x759   :  { %v2052_v14 = vpop.permute.xlu0 %2051 }
 0x75a   :  { %v2059_v62 = vsel %vm1329_vm1, %v2041_v46, %v2052_v14 }
 0x75b   :  { %v4683_v34 = vpop.eup %4682  ;;  %v2056_v20 = vpop.permute.xlu1 %2055  ;;  %v2062_v2 = vsel %vm2060_vm3, %v2059_v62, %v2054_v6 }
 0x75c   :  { %v3143_v21 = vmul.f32 %v4683_v34, %v5582_v59  ;;  %v4685_v57 = vpop.eup %4684  ;;  %v2065_v46 = vsel %vm2063_vm4, %v2062_v2, %v2056_v20 }
 0x75d   :  { %v3144_v63 = vmul.f32 %v4685_v57, %v5569_v36 }
 0x75e   :  { %v3149_v61 = vpack.c.bf16 %v3143_v21, %v3142_v55 }
 0x75f   :  { %v4687_v35 = vpop.eup %4686 }
 0x760   :  { %4483 = vmatmul.mubr.msk.bf16.vlgmr.msra.gmra.mxu0 %vm1518_vm2, %v3149_v61  ;;  %v3145_v0 = vmul.f32 %v4687_v35, %v5596_v18 }
 0x761   :  { %4493 = vmatpush3.bf16.msra.mxu0 %v2870_v53  ;;  %4494 = vmatprep.mubr.msk.bf16.mxu0 %vm4910_vm0, %v4909_v41  ;;  %v4689_v43 = vpop.eup %4688  ;;  %v4572_v41 = vld [vmem:[#allocation11 + $0x38] sm:$0xff]  }
 0x762   :  { %v3150_v59 = vpack.c.bf16 %v3145_v0, %v3144_v63  ;;  %v3147_v10 = vmul.f32 %v4689_v43, %v5612_v17  ;;  %4498 = vmatprep.subr.bf16.mxu1 %v4572_v41  ;;  %v4575_v17 = vld [vmem:[#allocation11 + $0x20] sm:$0xff]  }
 0x763   :  { %v4691_v4 = vpop.eup %4690 }
 0x764   :  { %4489 = vmatmul.mubr.msk.bf16.vlgmr.msra.gmra.mxu1 %vm1518_vm2, %v3150_v59  ;;  %v3146_v36 = vmul.f32 %v4691_v4, %v5608_v52  ;;  %v4577_v52 = vld [vmem:[#allocation11 + $0x10] sm:$0xff]  }
 0x765   :  { %4514 = vmatprep.mubr.bf16.mxu1 %v2065_v46  ;;  %4499 = vmatpush3.bf16.msra.mxu1 %v4572_v41 }
 0x766   :  { %v3151_v18 = vpack.c.bf16 %v3147_v10, %v3146_v36  ;;  %4500 = vmatprep.subr.bf16.mxu1 %v4573_v11 }
 0x768   :  { %4495 = vmatmul.mubr.msk.bf16.vlgmr.msra.gmra.mxu0 %vm1518_vm2, %v3151_v18 }
 0x769   :  { %3938 = vmatprep.mubr.bf16.mxu0 %v4906_v29  ;;  %4501 = vmatpush3.bf16.msra.mxu1 %v4573_v11 }
 0x76a   :  { %4502 = vmatprep.subr.bf16.mxu1 %v4574_v13 }
 0x76d   :  { %4503 = vmatpush3.bf16.msra.mxu1 %v4574_v13 }
 0x76e   :  { %4504 = vmatprep.subr.bf16.mxu1 %v4575_v17 }
 0x771   :  { %4505 = vmatpush3.bf16.msra.mxu1 %v4575_v17 }
 0x772   :  { %4506 = vmatprep.subr.bf16.mxu1 %v4576_v51 }
 0x775   :  { %4507 = vmatpush3.bf16.msra.mxu1 %v4576_v51 }
 0x776   :  { %4508 = vmatprep.subr.bf16.mxu1 %v4577_v52 }
 0x779   :  { %4509 = vmatpush3.bf16.msra.mxu1 %v4577_v52 }
 0x77a   :  { %4510 = vmatprep.subr.bf16.mxu1 %v4578_v15 }
 0x77d   :  { %4511 = vmatpush3.bf16.msra.mxu1 %v4578_v15 }
 0x816   :  { %v3189_v45 = vpop.f32.mrf.mxu1 }
 0x818   :  { %v4478_v8 = vpop.f32.mrf.mxu1 }
 0x81a   :  { %v3192_v16 = vpop.f32.mrf.mxu1 }
 0x81b   :  { %v3328_v53 = vpack.c.bf16 %v3192_v16, %v3189_v45 }
 0x81c   :  { %v4479_v22 = vpop.f32.mrf.mxu1 }
 0x81d   :  { %v3336_v12 = vshrl.u32 %v3328_v53, 16 }
 0x820   :  { %v3233_v33 = vpop.f32.mrf.mxu0 }
 0x822   :  { %v4484_v23 = vpop.f32.mrf.mxu0 }
 0x824   :  { %v3236_v56 = vpop.f32.mrf.mxu0  ;;  %v3277_v38 = vpop.f32.mrf.mxu1 }
 0x825   :  { %v3329_v9 = vpack.c.bf16 %v3236_v56, %v3233_v33 }
 0x826   :  { %v4485_v26 = vpop.f32.mrf.mxu0  ;;  %v4490_v28 = vpop.f32.mrf.mxu1 }
 0x827   :  { %v3334_v1 = vpack.i.b16 %v3329_v9, %v3328_v53  ;;  %v3337_v42 = vshrl.u32 %v3329_v9, 16 }
 0x828   :  { %v3280_v58 = vpop.f32.mrf.mxu1  ;;  %v3321_v27 = vpop.f32.mrf.mxu0 }
 0x829   :  { %v3330_v44 = vpack.c.bf16 %v3280_v58, %v3277_v38  ;;  %v3338_v50 = vpack.i.b16 %v3337_v42, %v3336_v12  ;;  %v3348_v49 = vcombine.high %v3334_v1, %v5093_v47  ;;  %v3355_v55 = vrot.slane %v3334_v1, %v5096_v54 }
 0x82a   :  { %v4491_v40 = vpop.f32.mrf.mxu1  ;;  %v4496_v32 = vpop.f32.mrf.mxu0 }
 0x82b   :  { %v3344_v48 = vshrl.u32 %v3330_v44, 16  ;;  %v3362_v61 = vrot.slane %v3348_v49, %v5096_v54  ;;  %v3414_v35 = vcombine.high %v3338_v50, %v5093_v47  ;;  %v3421_v43 = vrot.slane %v3338_v50, %v5096_v54 }
 0x82c   :  { %v3324_v37 = vpop.f32.mrf.mxu0 }
 0x82d   :  { %v3331_v39 = vpack.c.bf16 %v3324_v37, %v3321_v27  ;;  %v3428_v36 = vrot.slane %v3414_v35, %v5096_v54 }
 0x82e   :  { %v4497_v31 = vpop.f32.mrf.mxu0 }
 0x82f   :  { %v3342_v34 = vpack.i.b16 %v3331_v39, %v3330_v44  ;;  %v3345_v6 = vshrl.u32 %v3331_v39, 16  ;;  %v4579_v44 = vld [vmem:[#allocation11] sm:$0xff]  }
 0x830   :  { %4512 = vmatprep.subr.bf16.mxu1 %v4579_v44 }
 0x831   :  { %v3346_v21 = vpack.i.b16 %v3345_v6, %v3344_v48  ;;  %v3363_v57 = vcombine.high %v3342_v34, %v5093_v47  ;;  %v3370_v14 = vrot.slane %v3342_v34, %v5096_v54  ;;  %4513 = vmatpush3.bf16.msra.mxu1 %v4579_v44  ;;  %v4588_v44 = vld [vmem:[#allocation13 + $0x54] ss:$8 sps:$4 sm:$0xff]  }
 0x833   :  { %v3377_v62 = vrot.slane %v3363_v57, %v5096_v54  ;;  %v3378_v63 = vcombine.low %v3355_v55, %v3370_v14  ;;  %v3379_v0 = vcombine.high %v3355_v55, %v3370_v14  ;;  %v3429_v20 = vcombine.high %v3346_v21, %v5093_v47 }
 0x834   :  { %v3436_v59 = vrot.slane %v3346_v21, %v5096_v54 }
 0x835   :  { %v3386_v4 = vrot.slane %v3378_v63, %v5101_v60  ;;  %v3393_v2 = vrot.slane %v3379_v0, %v5101_v60  ;;  %v3394_v10 = vcombine.low %v3362_v61, %v3377_v62  ;;  %v3395_v46 = vcombine.high %v3362_v61, %v3377_v62 }
 0x836   :  { %v3443_v18 = vrot.slane %v3429_v20, %v5096_v54  ;;  %v3444_v41 = vcombine.low %v3421_v43, %v3436_v59  ;;  %v3445_v11 = vcombine.high %v3421_v43, %v3436_v59 }
 0x837   :  { %v3402_v13 = vrot.slane %v3394_v10, %v5101_v60  ;;  %v3409_v47 = vrot.slane %v3395_v46, %v5101_v60  ;;  %v3480_v17 = vcombine.low %v3386_v4, %v3393_v2  ;;  %v4254_v51 = vcombine.high %v3386_v4, %v3393_v2 }
 0x838   :  { %v3452_v52 = vrot.slane %v3444_v41, %v5101_v60  ;;  %v3459_v15 = vrot.slane %v3445_v11, %v5101_v60  ;;  %v3460_v45 = vcombine.low %v3428_v36, %v3443_v18  ;;  %v3461_v8 = vcombine.high %v3428_v36, %v3443_v18  ;;  %v4258_v36 = vld [vmem:[%s5772_s7] ss:$0 sm:$0xff] }
 0x839   :  { %v3487_v16 = vrot.slane %v3480_v17, %v5096_v54  ;;  %v3495_v22 = vrot.slane %v4254_v51, %v5096_v54  ;;  %v3496_v33 = vcombine.low %v3402_v13, %v3409_v47  ;;  %v4255_v23 = vcombine.high %v3402_v13, %v3409_v47 }
 0x83a   :  { %v3468_v56 = vrot.slane %v3460_v45, %v5101_v60  ;;  %v3475_v38 = vrot.slane %v3461_v8, %v5101_v60  ;;  %v3530_v9 = vcombine.low %v3452_v52, %v3459_v15  ;;  %v4256_v26 = vcombine.high %v3452_v52, %v3459_v15 }
 0x83b   :  { %v3503_v28 = vrot.slane %v3496_v33, %v5096_v54  ;;  %v3511_v53 = vrot.slane %v4255_v23, %v5096_v54  ;;  %v3512_v58 = vcombine.low %v3487_v16, %v3495_v22  ;;  %v4582_v16 = vld [vmem:[#allocation13 + $0x74] ss:$8 sps:$4 sm:$0xff]  }
 0x83c   :  { %v3537_v27 = vrot.slane %v3530_v9, %v5096_v54  ;;  %v3545_v1 = vrot.slane %v4256_v26, %v5096_v54  ;;  %v3546_v42 = vcombine.low %v3468_v56, %v3475_v38  ;;  %v4257_v40 = vcombine.high %v3468_v56, %v3475_v38  ;;  %3906 = vmatprep.subr.bf16.mxu0 %v4582_v16 }
 0x83d   :  { %v3520_v32 = vcombine.low %v3503_v28, %v3511_v53  ;;  %v3519_v49 = vrot.slane %v3512_v58, %v5101_v60 }
 0x83e   :  { %v3553_v12 = vrot.slane %v3546_v42, %v5096_v54  ;;  %v3561_v37 = vrot.slane %v4257_v40, %v5096_v54  ;;  %v3562_v39 = vcombine.low %v3537_v27, %v3545_v1  ;;  %v4585_v40 = vld [vmem:[#allocation13 + $0x64] ss:$8 sps:$4 sm:$0xff]  }
 0x83f   :  { %v3527_v50 = vrot.slane %v3520_v32, %v5101_v60  ;;  %v4583_v32 = vld [vmem:[#allocation13 + $0x60] ss:$8 sps:$4 sm:$0xff]  }
 0x840   :  { %v3570_v31 = vcombine.low %v3553_v12, %v3561_v37  ;;  %v3569_v48 = vrot.slane %v3562_v39, %v5101_v60  ;;  %v4586_v12 = vld [vmem:[#allocation13 + $0x50] ss:$8 sps:$4 sm:$0xff]   ;;  %v4591_v37 = vld [vmem:[#allocation13 + $0x44] ss:$8 sps:$4 sm:$0xff]   ;;  %v4589_v39 = vld [vmem:[#allocation13 + $0x40] ss:$8 sps:$4 sm:$0xff]  }
 0x841   :  { %v3528_v6 = vcombine.low %v3519_v49, %v3527_v50  ;;  %v3529_v55 = vcombine.high %v3519_v49, %v3527_v50  ;;  %v4594_v50 = vld [vmem:[#allocation13 + $0x34] ss:$8 sps:$4 sm:$0xff]   ;;  %v4592_v49 = vld [vmem:[#allocation13 + $0x30] ss:$8 sps:$4 sm:$0xff]  }
 0x842   :  { %v3577_v34 = vrot.slane %v3570_v31, %v5101_v60  ;;  %v4597_v31 = vld [vmem:[#allocation13 + $0x24] ss:$8 sps:$4 sm:$0xff]  }
 0x843   :  { %v3583_v61 = vshrl.u32 %v3528_v6, 16  ;;  %v3589_v0 = vshrl.u32 %v3529_v55, 16 }
 0x844   :  { %v3578_v21 = vcombine.low %v3569_v48, %v3577_v34  ;;  %v3579_v57 = vcombine.high %v3569_v48, %v3577_v34  ;;  %v4595_v48 = vld [vmem:[#allocation13 + $0x20] ss:$8 sps:$4 sm:$0xff]   ;;  %v4600_v34 = vld [vmem:[#allocation13 + $0x14] ss:$8 sps:$4 sm:$0xff]  }
 0x846   :  { %v3588_v14 = vpack.i.b16 %v3579_v57, %v3529_v55  ;;  %v3584_v35 = vshrl.u32 %v3578_v21, 16  ;;  %v3582_v54 = vpack.i.b16 %v3578_v21, %v3528_v6  ;;  %v3590_v62 = vshrl.u32 %v3579_v57, 16  ;;  %v4598_v6 = vld [vmem:[#allocation13 + $0x10] ss:$8 sps:$4 sm:$0xff]   ;;  %v4603_v55 = vld [vmem:[#allocation13 + $0x4] ss:$8 sps:$4 sm:$0xff]  }
 0x847   :  { %v4601_v21 = vld [vmem:[#allocation13] ss:$8 sps:$4 sm:$0xff]   ;;  %v4604_v57 = vld [vmem:[#allocation14 + $0x78] sm:$0xff]  }
 0x848   :  { %3594 = vrot.lane.b32.xlu0 %v3588_v14, %s4897_s1  ;;  %v3585_v63 = vpack.i.b16 %v3584_v35, %v3583_v61  ;;  %v3591_v20 = vpack.i.b16 %v3590_v62, %v3589_v0  ;;  %v4605_v14 = vld [vmem:[#allocation14 + $0x38] sm:$0xff]   ;;  %v4606_v61 = vld [vmem:[#allocation14 + $0x70] sm:$0xff]   ;;  %4354 = vmatprep.subr.bf16.mxu1 %v4604_v57  ;;  %v4609_v62 = vld [vmem:[#allocation14 + $0x28] sm:$0xff]  }
 0x849   :  { %v4607_v35 = vld [vmem:[#allocation14 + $0x30] sm:$0xff]   ;;  %v4611_v0 = vld [vmem:[#allocation14 + $0x20] sm:$0xff]  }
 0x84a   :  { %3592 = vrot.lane.b32.xlu1 %v3585_v63, %s4908_s29  ;;  %v4610_v63 = vld [vmem:[#allocation14 + $0x60] sm:$0xff]  }
 0x84e   :  { %3596 = vrot.lane.b32.xlu1 %v3591_v20, %s4907_s5  ;;  %v4612_v20 = vld [vmem:[#allocation14 + $0x58] sm:$0xff]  }
 0x8ba   :  { %v3595_v59 = vpop.permute.xlu0 %3594 }
 0x8bc   :  { %v3593_v43 = vpop.permute.xlu1 %3592 }
 0x8bd   :  { %v3600_v60 = vsel %vm1329_vm1, %v3582_v54, %v3593_v43  ;;  %v4608_v54 = vld [vmem:[#allocation14 + $0x68] sm:$0xff]   ;;  %v4613_v43 = vld [vmem:[#allocation14 + $0x18] sm:$0xff]  }
 0x8be   :  { %v3602_v2 = vsel %vm2060_vm3, %v3600_v60, %v3595_v59 }
 0x8c0   :  { %v3597_v4 = vpop.permute.xlu1 %3596 }
 0x8c1   :  { %v3604_v10 = vsel %vm2063_vm4, %v3602_v2, %v3597_v4 }
 0x8c2   :  { %4515 = vmatmul.mubr.bf16.vlgmr.msra.gmra.mxu1 %v3604_v10 }
 0x8c3   :  { %4355 = vmatpush3.bf16.msra.mxu1 %v4605_v14 }
 0x8c4   :  { %4356 = vmatprep.subr.bf16.mxu1 %v4606_v61 }
 0x8c7   :  { %4357 = vmatpush3.bf16.msra.mxu1 %v4607_v35 }
 0x8c8   :  { %4358 = vmatprep.subr.bf16.mxu1 %v4608_v54 }
 0x8cb   :  { %4359 = vmatpush3.bf16.msra.mxu1 %v4609_v62 }
 0x8cc   :  { %4360 = vmatprep.subr.bf16.mxu1 %v4610_v63 }
 0x8cf   :  { %4361 = vmatpush3.bf16.msra.mxu1 %v4611_v0 }
 0x8d0   :  { %4362 = vmatprep.subr.bf16.mxu1 %v4612_v20 }
 0x8d3   :  { %4363 = vmatpush3.bf16.msra.mxu1 %v4613_v43 }
 0x982   :  { %v4516_v46 = vpop.f32.mrf.mxu1 }
 0x983   :  { %v3720_v13 = vadd.f32 %v4516_v46, %v4258_v36 }
 0x984   :  { %v3711_v18 = vpop.f32.mrf.mxu1 }
 0x985   :  { %v3712_v41 = vadd.f32 %v4258_v36, %v3711_v18  ;;  %v5703_v52 = vadd.f32 %v3720_v13, %v5034_v7 }
 0x986   :  { %v4517_v11 = vpop.f32.mrf.mxu1 }
 0x987   :  { %v5699_v47 = vadd.f32 %v3712_v41, %v5028_v3  ;;  %v3723_v15 = vadd.f32 %v4517_v11, %v4258_v36  ;;  %v4580_v3 = vld [vmem:[#allocation13 + $0x70] ss:$8 sps:$4 sm:$0xff]  }
 0x988   :  { %v3714_v17 = vpop.f32.mrf.mxu1  ;;  %3907 = vmatpush1.bf16.msra.mxu0 %v4580_v3  ;;  %v4267_v3 = vld [vmem:[%s5773_s8] ss:$0 sm:$0xff] }
 0x989   :  { %v3715_v51 = vadd.f32 %v4258_v36, %v3714_v17  ;;  %3732 = vadd.xlane.f32.xlu0 %v5699_v47  ;;  %v5711_v8 = vadd.f32 %v3723_v15, %v5047_v19  ;;  %3908 = vmatprep.subr.bf16.mxu0 %v4585_v40 }
 0x98b   :  { %v5706_v45 = vadd.f32 %v3715_v51, %v5031_v5 }
 0x98c   :  { %3909 = vmatpush1.bf16.msra.mxu0 %v4583_v32 }
 0x98d   :  { %3734 = vadd.xlane.f32.xlu1 %v5706_v45  ;;  %3736 = vadd.xlane.f32.xlu0 %v5703_v52 }
 0x98e   :  { %3910 = vmatprep.subr.bf16.mxu0 %v4588_v44  ;;  %v4614_v44 = vld [vmem:[#allocation14 + $0x50] sm:$0xff]  }
 0x98f   :  { %4364 = vmatprep.subr.bf16.mxu1 %v4614_v44 }
 0x990   :  { %3911 = vmatpush1.bf16.msra.mxu0 %v4586_v12  ;;  %v4615_v12 = vld [vmem:[#allocation14 + $0x10] sm:$0xff]  }
 0x991   :  { %3738 = vadd.xlane.f32.xlu0 %v5711_v8  ;;  %3912 = vmatprep.subr.bf16.mxu0 %v4591_v37  ;;  %v4616_v37 = vld [vmem:[#allocation14 + $0x48] sm:$0xff]  }
 0x992   :  { %4365 = vmatpush3.bf16.msra.mxu1 %v4615_v12 }
 0x993   :  { %4366 = vmatprep.subr.bf16.mxu1 %v4616_v37 }
 0x994   :  { %3913 = vmatpush1.bf16.msra.mxu0 %v4589_v39  ;;  %v4617_v39 = vld [vmem:[#allocation14 + $0x8] sm:$0xff]  }
 0x995   :  { %3914 = vmatprep.subr.bf16.mxu0 %v4594_v50 }
 0x996   :  { %4367 = vmatpush3.bf16.msra.mxu1 %v4617_v39 }
 0x998   :  { %3915 = vmatpush1.bf16.msra.mxu0 %v4592_v49 }
 0x999   :  { %3916 = vmatprep.subr.bf16.mxu0 %v4597_v31 }
 0x99c   :  { %3917 = vmatpush1.bf16.msra.mxu0 %v4595_v48 }
 0x99d   :  { %3918 = vmatprep.subr.bf16.mxu0 %v4600_v34 }
 0x9a0   :  { %3919 = vmatpush1.bf16.msra.mxu0 %v4598_v6 }
 0x9a1   :  { %3920 = vmatprep.subr.bf16.mxu0 %v4603_v55 }
 0x9a4   :  { %3921 = vmatpush1.bf16.msra.mxu0 %v4601_v21 }
 0xa12   :  { %v3733_v22 = vpop.xlane.xlu0 %3732 }
 0xa13   :  { %v3740_v7 = vmul.f32 0.0078125, %v3733_v22 }
 0xa15   :  { %v5715_v33 = vsub.f32 %v5699_v47, %v3740_v7 }
 0xa16   :  { %v3735_v5 = vpop.xlane.xlu1 %3734  ;;  %v3737_v23 = vpop.xlane.xlu0 %3736 }
 0xa17   :  { %v3741_v56 = vmul.f32 0.0078125, %v3735_v5  ;;  %v3742_v38 = vmul.f32 0.0078125, %v3737_v23  ;;  %v3748_v9 = vmul.f32 %v5715_v33, %v5715_v33  ;;  %v4268_v23 = vld [vmem:[%s5774_s9] ss:$0 sm:$0xff] }
 0xa19   :  { %v5720_v19 = vsub.f32 %v5706_v45, %v3741_v56  ;;  %v5723_v26 = vsub.f32 %v5703_v52, %v3742_v38  ;;  %3752 = vadd.xlane.f32.xlu0 %v3748_v9 }
 0xa1a   :  { %v3739_v28 = vpop.xlane.xlu0 %3738 }
 0xa1b   :  { %v3743_v53 = vmul.f32 0.0078125, %v3739_v28  ;;  %v3749_v58 = vmul.f32 %v5720_v19, %v5720_v19  ;;  %v3750_v27 = vmul.f32 %v5723_v26, %v5723_v26 }
 0xa1d   :  { %v5730_v1 = vsub.f32 %v5711_v8, %v3743_v53  ;;  %3754 = vadd.xlane.f32.xlu1 %v3749_v58  ;;  %3756 = vadd.xlane.f32.xlu0 %v3750_v27 }
 0xa1f   :  { %v3751_v42 = vmul.f32 %v5730_v1, %v5730_v1 }
 0xa21   :  { %3758 = vadd.xlane.f32.xlu1 %v3751_v42 }
 0xaa2   :  { %v3753_v60 = vpop.xlane.xlu0 %3752 }
 0xaa3   :  { %v3760_v59 = vmul.f32 0.0078125, %v3753_v60 }
 0xaa5   :  { %v3764_v4 = vadd.f32 1e-05, %v3760_v59 }
 0xaa6   :  { %v3755_v2 = vpop.xlane.xlu1 %3754  ;;  %v3757_v10 = vpop.xlane.xlu0 %3756 }
 0xaa7   :  { %4692 = vrsqrt.f32 %v3764_v4  ;;  %v3761_v46 = vmul.f32 0.0078125, %v3755_v2  ;;  %v3762_v36 = vmul.f32 0.0078125, %v3757_v10 }
 0xaa9   :  { %v3765_v18 = vadd.f32 1e-05, %v3761_v46  ;;  %v3766_v41 = vadd.f32 1e-05, %v3762_v36 }
 0xaaa   :  { %v3759_v11 = vpop.xlane.xlu1 %3758 }
 0xaab   :  { %4694 = vrsqrt.f32 %v3765_v18  ;;  %v3763_v13 = vmul.f32 0.0078125, %v3759_v11 }
 0xaac   :  { %4696 = vrsqrt.f32 %v3766_v41 }
 0xaad   :  { %v3767_v17 = vadd.f32 1e-05, %v3763_v13  ;;  %v4285_v13 = vld [vmem:[%s5778_s13] ss:$0 sm:$0xff]  ;;  %s4913_s13 = smov [#allocation16]  }
 0xaae   :  { %s4168_s15 = sshll.u32 %s4913_s13, 4  ;;  %s4169_s15 = int_to_ptr.vmem [resolvable:$true] %s4168_s15 }
 0xaaf   :  { %4698 = vrsqrt.f32 %v3767_v17  ;;  %s4860_s3 = scalar_lea.vmem %s4169_s15, 512  ;;  %p4865_p13 = scmp.lt.s32.totalorder %s4169_s15, %s4169_s15 }
 0xab0   :  { %p4861_p12 = scmp.ne.s32.totalorder %s4169_s15, %s4860_s3  ;;  %p4866_p0 = scmp.lt.s32.totalorder %s4860_s3, %s4860_s3 }
 0xab2   :  { %p4867_p1 = por %p4866_p0, %p4865_p13 }
 0xab4   :  { %v4693_v51 = vpop.eup %4692  ;;  %p4868_p2 = pnand %p4867_p1, %p4861_p12 }
 0xab5   :  { %v3772_v15 = vmul.f32 %v4693_v51, %v5715_v33 }
 0xab7   :  { %v3782_v7 = vmul.f32 %v4267_v3, %v3772_v15 }
 0xab8   :  { %v4695_v16 = vpop.eup %4694 }
 0xab9   :  { %v3773_v22 = vmul.f32 %v4695_v16, %v5720_v19  ;;  %v4697_v5 = vpop.eup %4696  ;;  %v3792_v9 = vadd.f32 %v4268_v23, %v3782_v7 }
 0xaba   :  { %v3774_v53 = vmul.f32 %v4697_v5, %v5723_v26  ;;  %v4618_v26 = vld [vmem:[#allocation14 + $0x40] sm:$0xff]  }
 0xabb   :  { %v3783_v56 = vmul.f32 %v4267_v3, %v3773_v22  ;;  %4368 = vmatprep.subr.bf16.mxu1 %v4618_v26 }
 0xabc   :  { %v4699_v38 = vpop.eup %4698  ;;  %v3784_v42 = vmul.f32 %v4267_v3, %v3774_v53 }
 0xabd   :  { %v3793_v28 = vadd.f32 %v4268_v23, %v3783_v56  ;;  %v3775_v33 = vmul.f32 %v4699_v38, %v5730_v1  ;;  %v4619_v1 = vld [vmem:[#allocation14] sm:$0xff]  }
 0xabe   :  { %v3794_v40 = vadd.f32 %v4268_v23, %v3784_v42  ;;  %4369 = vmatpush3.bf16.msra.mxu1 %v4619_v1 }
 0xabf   :  { %v3796_v58 = vpack.c.bf16 %v3793_v28, %v3792_v9  ;;  %v3785_v27 = vmul.f32 %v4267_v3, %v3775_v33 }
 0xac1   :  { %3939 = vmatmul.mubr.bf16.vlgmr.msra.gmra.mxu0 %v3796_v58  ;;  %v3795_v19 = vadd.f32 %v4268_v23, %v3785_v27 }
 0xac2   :  { %3948 = vmatprep.mubr.bf16.mxu0 %v4906_v29  ;;  %v3814_v29 = vld [vmem:[%s5776_s11] sm:$0x3] }
 0xac3   :  { %v3797_v32 = vpack.c.bf16 %v3795_v19, %v3794_v40  ;;  %v3823_v49 = vrot.slane %v3814_v29, %v273_v25  ;;  %v3819_v31 = vrot.slane %v3814_v29, %v269_v30 }
 0xac9   :  { %3949 = vmatmul.mubr.bf16.gmra.mxu0 %v3797_v32 }
 0xb81   :  { %v3940_v50 = vpop.f32.mrf.mxu0 }
 0xb82   :  { %v3941_v21 = vadd.f32 %v3940_v50, %v3819_v31 }
 0xb83   :  { %v3942_v48 = vpop.f32.mrf.mxu0 }
 0xb84   :  { %v3943_v6 = vadd.f32 %v3942_v48, %v3823_v49  ;;  %v3959_v63 = vmax.f32 %v3941_v21, 0.0 }
 0xb85   :  { %v3944_v34 = vpop.f32.mrf.mxu0 }
 0xb86   :  { %v3945_v55 = vadd.f32 %v3944_v34, %v3819_v31  ;;  %v3960_v54 = vmax.f32 %v3943_v6, 0.0 }
 0xb87   :  { %v3946_v57 = vpop.f32.mrf.mxu0 }
 0xb88   :  { %v3947_v14 = vadd.f32 %v3946_v57, %v3823_v49  ;;  %v3961_v61 = vmax.f32 %v3945_v55, 0.0 }
 0xb89   :  { %v3950_v35 = vpop.f32.mrf.mxu0 }
 0xb8a   :  { %v3962_v62 = vmax.f32 %v3947_v14, 0.0  ;;  %v3967_v43 = vpack.c.bf16 %v3961_v61, %v3959_v63  ;;  %v3951_v24 = vadd.f32 %v3950_v35, %v3819_v31 }
 0xb8b   :  { %v3952_v0 = vpop.f32.mrf.mxu0 }
 0xb8c   :  { %v3968_v20 = vpack.c.bf16 %v3962_v62, %v3960_v54  ;;  %v3953_v25 = vadd.f32 %v3952_v0, %v3823_v49  ;;  %v3963_v36 = vmax.f32 %v3951_v24, 0.0 }
 0xb8d   :  { %v3954_v60 = vpop.f32.mrf.mxu0 }
 0xb8e   :  { %v3955_v59 = vadd.f32 %v3954_v60, %v3819_v31  ;;  %4138 = vmatprep.mubr.bf16.mxu1 %v3968_v20  ;;  %v3964_v10 = vmax.f32 %v3953_v25, 0.0 }
 0xb8f   :  { %v3956_v30 = vpop.f32.mrf.mxu0  ;;  %4139 = vmatmul.mubr.bf16.vlgmr.msra.gmra.mxu1 %v3967_v43 }
 0xb90   :  { %v3957_v4 = vadd.f32 %v3956_v30, %v3823_v49  ;;  %v3965_v2 = vmax.f32 %v3955_v59, 0.0 }
 0xb92   :  { %v3966_v46 = vmax.f32 %v3957_v4, 0.0  ;;  %v3969_v41 = vpack.c.bf16 %v3965_v2, %v3963_v36 }
 0xb94   :  { %v3970_v18 = vpack.c.bf16 %v3966_v46, %v3964_v10 }
 0xb96   :  { %4146 = vmatprep.mubr.bf16.mxu1 %v3970_v18 }
 0xb97   :  { %4147 = vmatmul.mubr.bf16.gmra.mxu1 %v3969_v41 }
 0xc4f   :  { %v4370_v11 = vpop.f32.mrf.mxu1 }
 0xc51   :  { %v4371_v17 = vpop.f32.mrf.mxu1 }
 0xc52   :  { %v4372_v51 = vadd.f32 %v4371_v17, %v4370_v11 }
 0xc53   :  { %v4373_v15 = vpop.f32.mrf.mxu1 }
 0xc54   :  { %v4141_v3 = vadd.f32 %v4372_v51, %v4285_v13 }
 0xc55   :  { %v4374_v16 = vpop.f32.mrf.mxu1 }
 0xc56   :  { %v4155_v22 = vadd.f32 %v4141_v3, %v5699_v47  ;;  %v4375_v7 = vadd.f32 %v4374_v16, %v4373_v15 }
 0xc57   :  { %v4376_v5 = vpop.f32.mrf.mxu1 }
 0xc58   :  { %4159 = vst [vmem:[#allocation16] sm:$0xff] %v4155_v22  ;;  %v4144_v23 = vadd.f32 %v4375_v7, %v4285_v13 }
 0xc59   :  { %v4377_v56 = vpop.f32.mrf.mxu1 }
 0xc5a   :  { %v4156_v38 = vadd.f32 %v4144_v23, %v5706_v45  ;;  %v4378_v9 = vadd.f32 %v4377_v56, %v4376_v5 }
 0xc5b   :  { %v4379_v28 = vpop.f32.mrf.mxu1 }
 0xc5c   :  { %4160 = vst [vmem:[#allocation16 + $0x8] sm:$0xff] %v4156_v38  ;;  %v4149_v53 = vadd.f32 %v4378_v9, %v4285_v13 }
 0xc5d   :  { %v4380_v33 = vpop.f32.mrf.mxu1 }
 0xc5e   :  { %v4157_v58 = vadd.f32 %v4149_v53, %v5703_v52  ;;  %v4381_v27 = vadd.f32 %v4380_v33, %v4379_v28 }
 0xc60   :  { %4161 = vst [vmem:[#allocation16 + $0x10] sm:$0xff] %v4157_v58  ;;  %v4152_v42 = vadd.f32 %v4381_v27, %v4285_v13 }
 0xc62   :  { %v4158_v47 = vadd.f32 %v4152_v42, %v5711_v8 }
 0xc64   :  { %4162 = vst [vmem:[#allocation16 + $0x18] sm:$0xff] %v4158_v47 }
 0xc65   :  { %4871 = shalt.err (!%p4868_p2)
}
 0xc66   :  { %4174 = dma.vmem_to_hbm [thread:$0]  %s4169_s15, 512, %s5779_s14, [#allocation4], %s4894_s18, %s4894_s18, %s4895_s19  }
 0xc67   :  { %4890 = dma.done.wait [#allocation4], 512  }
 0xc68   :  { %4891 = vsyncadd [#allocation4], 4294966784 }
 0xc69   :  { %4178 = vsyncpa [#allocation3], 1 }
 0xc6a   :  { %4179 = vsyncpa [#allocation6], 1 }
 0xc6b   :  { %4180 = vsyncpa [#allocation9], 1 }
 0xc6c   :  { %4181 = vsyncpa [#allocation12], 1 }
 0xc6d   :  { %4182 = vsyncpa [#allocation15], 1 }
 0xc6e   :  { %4183 = vsyncpa [#allocation4], 1 }

// kernel: tpu_custom_call.1
= control target key start
LH: loop header
LB: loop body
LE: loop exit
PB: predicated region body
PF: predicated region fallthrough
CT: control target
= control target key end

     0   :  { %19 = vsyncpa [#allocation3], 0  ;;  %s3232_s0 = inlined_call_operand.hbm [shape: f32[2,16,128], index: 0, kind: input, shape index: {}]   ;;  %s3233_s1 = inlined_call_operand.hbm [shape: f32[1,16,128], index: 1, kind: input, shape index: {}]   ;;  %s3234_s2 = inlined_call_operand.hbm [shape: f32[1,128], index: 2, kind: input, shape index: {}]   ;;  %s3235_s3 = inlined_call_operand.hbm [shape: f32[1,128], index: 3, kind: input, shape index: {}]   ;;  %s3236_s4 = inlined_call_operand.hbm [shape: bf16[128,384], index: 4, kind: input, shape index: {}]   ;;  %s3237_s5 = inlined_call_operand.vmem [shape: f32[1,384], index: 5, kind: input, shape index: {}]   ;;  %s3238_s6 = inlined_call_operand.hbm [shape: bf16[128,128], index: 6, kind: input, shape index: {}]   ;;  %s3239_s7 = inlined_call_operand.vmem [shape: f32[1,128], index: 7, kind: input, shape index: {}]   ;;  %s3240_s8 = inlined_call_operand.vmem [shape: f32[1,128], index: 8, kind: input, shape index: {}]   ;;  %s3241_s9 = inlined_call_operand.vmem [shape: f32[1,128], index: 9, kind: input, shape index: {}]   ;;  %s3242_s10 = inlined_call_operand.hbm [shape: bf16[1,128,256], index: 10, kind: input, shape index: {}]   ;;  %s3243_s11 = inlined_call_operand.vmem [shape: f32[1,1,256], index: 11, kind: input, shape index: {}]   ;;  %s3244_s12 = inlined_call_operand.hbm [shape: bf16[1,256,128], index: 12, kind: input, shape index: {}]   ;;  %s3245_s13 = inlined_call_operand.vmem [shape: f32[1,128], index: 13, kind: input, shape index: {}]   ;;  %s3246_s14 = inlined_call_operand.hbm [shape: f32[2,16,128], index: 14, kind: output, shape index: {}]  }
   0x1   :  { %20 = vsyncpa [#allocation6], 0 }
   0x2   :  { %21 = vsyncpa [#allocation9], 0 }
   0x3   :  { %22 = vsyncpa [#allocation12], 0 }
   0x4   :  { %23 = vsyncpa [#allocation15], 0 }
   0x5   :  { %24 = vsyncpa [#allocation4], 0  ;;  %s2776_s29 = smov [#allocation5]   ;;  %s2777_s15 = smov [#allocation8]  }
   0x6   :  { %s42_s30 = sshll.u32 %s2776_s29, 4  ;;  %s65_s16 = sshll.u32 %s2777_s15, 4  ;;  %s43_s30 = int_to_ptr.vmem [resolvable:$true] %s42_s30  ;;  %s66_s16 = int_to_ptr.vmem [resolvable:$true] %s65_s16 }
   0x7   :  { %s2592_s17 = scalar_lea.vmem %s43_s30, 256  ;;  %p2597_p1 = scmp.lt.s32.totalorder %s43_s30, %s43_s30 }
   0x8   :  { %p2593_p0 = scmp.ne.s32.totalorder %s43_s30, %s2592_s17  ;;  %p2598_p2 = scmp.lt.s32.totalorder %s2592_s17, %s2592_s17 }
   0xa   :  { %p2599_p3 = por %p2598_p2, %p2597_p1 }
   0xc   :  { %p2600_p4 = pnand %p2599_p3, %p2593_p0 }
   0xe   :  { %2603 = shalt.err (!%p2600_p4)
}
   0xf   :  { %s2778_s18 = smov 128   ;;  %s2779_s19 = smov 8  }
  0x10   :  { %48 = dma.hbm_to_vmem [thread:$0]  %s3233_s1, 256, %s43_s30, [#allocation6], %s2778_s18, %s2778_s18, %s2779_s19  }
  0x11   :  { %s2612_s22 = scalar_lea.vmem %s66_s16, 16  ;;  %s2616_s23 = scalar_lea.vmem %s66_s16, 32 }
  0x12   :  { %p2613_p5 = scmp.ne.s32.totalorder %s66_s16, %s2612_s22  ;;  %p2617_p6 = scmp.lt.s32.totalorder %s66_s16, %s66_s16 }
  0x13   :  { %p2618_p7 = scmp.lt.s32.totalorder %s2616_s23, %s2612_s22 }
  0x15   :  { %p2619_p8 = por %p2618_p7, %p2617_p6 }
  0x17   :  { %p2620_p9 = pnand %p2619_p8, %p2613_p5 }
  0x19   :  { %2623 = shalt.err (!%p2620_p9)
}
  0x1a   :  { %68 = dma.hbm_to_vmem [thread:$0]  %s3235_s3, 16, %s66_s16, [#allocation9]  }
  0x1b   :  { %s2780_s26 = smov [#allocation11]  }
  0x1c   :  { %s88_s27 = sshll.u32 %s2780_s26, 4  ;;  %s89_s27 = int_to_ptr.vmem [resolvable:$true] %s88_s27 }
  0x1d   :  { %s2632_s28 = scalar_lea.vmem %s89_s27, 1024  ;;  %p2637_p11 = scmp.lt.s32.totalorder %s89_s27, %s89_s27 }
  0x1e   :  { %p2633_p10 = scmp.ne.s32.totalorder %s89_s27, %s2632_s28  ;;  %p2638_p12 = scmp.lt.s32.totalorder %s2632_s28, %s2632_s28 }
  0x20   :  { %p2639_p13 = por %p2638_p12, %p2637_p11 }
  0x22   :  { %p2640_p0 = pnand %p2639_p13, %p2633_p10 }
  0x24   :  { %2643 = shalt.err (!%p2640_p0)
}
  0x25   :  { %s2781_s1 = smov 64   ;;  %s2782_s29 = smov 4  }
  0x26   :  { %94 = dma.hbm_to_vmem [thread:$0]  %s3238_s6, 1024, %s89_s27, [#allocation12], %s2781_s1, %s2781_s1, %s2782_s29  }
  0x27   :  { %s2783_s3 = smov [#allocation2]   ;;  %s2784_s17 = smov [#allocation7]  }
  0x28   :  { %s30_s16 = sshll.u32 %s2783_s3, 4  ;;  %s55_s20 = sshll.u32 %s2784_s17, 4  ;;  %s31_s16 = int_to_ptr.vmem [resolvable:$true] %s30_s16  ;;  %s56_s20 = int_to_ptr.vmem [resolvable:$true] %s55_s20 }
  0x29   :  { %s2652_s21 = scalar_lea.vmem %s31_s16, 512  ;;  %p2657_p2 = scmp.lt.s32.totalorder %s31_s16, %s31_s16 }
  0x2a   :  { %p2653_p1 = scmp.ne.s32.totalorder %s31_s16, %s2652_s21  ;;  %p2658_p3 = scmp.lt.s32.totalorder %s2652_s21, %s2652_s21 }
  0x2c   :  { %p2659_p4 = por %p2658_p3, %p2657_p2 }
  0x2e   :  { %p2660_p5 = pnand %p2659_p4, %p2653_p1 }
  0x30   :  { %2663 = shalt.err (!%p2660_p5)
}
  0x31   :  { %36 = dma.hbm_to_vmem [thread:$0]  %s3232_s0, 512, %s31_s16, [#allocation3], %s2778_s18, %s2778_s18, %s2779_s19  }
  0x32   :  { %s2672_s6 = scalar_lea.vmem %s56_s20, 16  ;;  %s2676_s24 = scalar_lea.vmem %s56_s20, 32 }
  0x33   :  { %p2673_p6 = scmp.ne.s32.totalorder %s56_s20, %s2672_s6  ;;  %p2677_p7 = scmp.lt.s32.totalorder %s56_s20, %s56_s20 }
  0x34   :  { %p2678_p8 = scmp.lt.s32.totalorder %s2676_s24, %s2672_s6 }
  0x36   :  { %p2679_p9 = por %p2678_p8, %p2677_p7 }
  0x38   :  { %p2680_p10 = pnand %p2679_p9, %p2673_p6 }
  0x3a   :  { %2683 = shalt.err (!%p2680_p10)
}
  0x3b   :  { %58 = dma.hbm_to_vmem [thread:$0]  %s3234_s2, 16, %s56_s20, [#allocation6]  }
  0x3c   :  { %s2785_s27 = smov [#allocation10]  }
  0x3d   :  { %s74_s28 = sshll.u32 %s2785_s27, 4  ;;  %s75_s28 = int_to_ptr.vmem [resolvable:$true] %s74_s28 }
  0x3e   :  { %s2692_s30 = scalar_lea.vmem %s75_s28, 3072  ;;  %p2697_p12 = scmp.lt.s32.totalorder %s75_s28, %s75_s28 }
  0x3f   :  { %p2693_p11 = scmp.ne.s32.totalorder %s75_s28, %s2692_s30  ;;  %p2698_p13 = scmp.lt.s32.totalorder %s2692_s30, %s2692_s30 }
  0x41   :  { %p2699_p0 = por %p2698_p13, %p2697_p12 }
  0x43   :  { %p2700_p1 = pnand %p2699_p0, %p2693_p11 }
  0x45   :  { %2703 = shalt.err (!%p2700_p1)
}
  0x46   :  { %s2786_s0 = smov 192   ;;  %s2787_s15 = smov 12  }
  0x47   :  { %80 = dma.hbm_to_vmem [thread:$0]  %s3236_s4, 3072, %s75_s28, [#allocation9], %s2786_s0, %s2786_s0, %s2787_s15  }
  0x48   :  { %s2788_s17 = smov [#allocation13]   ;;  %s2789_s22 = smov [#allocation14]  }
  0x49   :  { %s106_s21 = sshll.u32 %s2788_s17, 4  ;;  %s120_s2 = sshll.u32 %s2789_s22, 4  ;;  %s107_s21 = int_to_ptr.vmem [resolvable:$true] %s106_s21  ;;  %s121_s2 = int_to_ptr.vmem [resolvable:$true] %s120_s2 }
  0x4a   :  { %s2712_s20 = scalar_lea.vmem %s107_s21, 2048  ;;  %p2717_p3 = scmp.lt.s32.totalorder %s107_s21, %s107_s21 }
  0x4b   :  { %p2713_p2 = scmp.ne.s32.totalorder %s107_s21, %s2712_s20  ;;  %p2718_p4 = scmp.lt.s32.totalorder %s2712_s20, %s2712_s20 }
  0x4d   :  { %p2719_p5 = por %p2718_p4, %p2717_p3 }
  0x4f   :  { %p2720_p6 = pnand %p2719_p5, %p2713_p2 }
  0x51   :  { %2723 = shalt.err (!%p2720_p6)
}
  0x52   :  { %112 = dma.hbm_to_vmem [thread:$0]  %s3242_s10, 2048, %s107_s21, [#allocation12], %s2778_s18, %s2778_s18, %s2779_s19  }
  0x53   :  { %s2732_s4 = scalar_lea.vmem %s121_s2, 2048  ;;  %p2737_p8 = scmp.lt.s32.totalorder %s121_s2, %s121_s2 }
  0x54   :  { %p2733_p7 = scmp.ne.s32.totalorder %s121_s2, %s2732_s4  ;;  %p2738_p9 = scmp.lt.s32.totalorder %s2732_s4, %s2732_s4 }
  0x56   :  { %p2739_p10 = por %p2738_p9, %p2737_p8 }
  0x58   :  { %p2740_p11 = pnand %p2739_p10, %p2733_p7 }
  0x5a   :  { %2743 = shalt.err (!%p2740_p11)
}
  0x5b   :  { %126 = dma.hbm_to_vmem [thread:$0]  %s3244_s12, 2048, %s121_s2, [#allocation15], %s2781_s1, %s2781_s1, %s2782_s29  }
  0x5c   :  { %2764 = dma.done.wait [#allocation3], 512  }
  0x5d   :  { %2765 = vsyncadd [#allocation3], 4294966784 }
  0x5e   :  { %2766 = dma.done.wait [#allocation6], 272  }
  0x5f   :  { %2767 = vsyncadd [#allocation6], 4294967024 }
  0x60   :  { %2768 = dma.done.wait [#allocation9], 3088  }
  0x61   :  { %2769 = vsyncadd [#allocation9], 4294964208 }
  0x62   :  { %2770 = dma.done.wait [#allocation12], 3072  }
  0x63   :  { %2771 = vsyncadd [#allocation12], 4294964224 }
  0x64   :  { %2772 = dma.done.wait [#allocation15], 2048  }
  0x65   :  { %2773 = vsyncadd [#allocation15], 4294965248  ;;  %v154_v0 = vld [vmem:[#allocation2] sm:$0xff]  ;;  %v155_v2 = vld [vmem:[#allocation2 + $0x8] sm:$0xff]  ;;  %v2790_v35 = vmov 0   ;;  %vm2792_vm0 = vmmov 0  }
  0x66   :  { %v158_v1 = vld [vmem:[#allocation5] sm:$0xff]  ;;  %v159_v4 = vld [vmem:[#allocation5 + $0x8] sm:$0xff]  ;;  %v156_v6 = vld [vmem:[#allocation2 + $0x10] sm:$0xff]  ;;  %442 = vmatprep.mubr.bf16.mxu0 %v2790_v35  ;;  %vm542_vm1 = vcmask 261120   ;;  %s2794_s29 = smov 32   ;;  %vm731_vm2 = vcmask 130048  }
  0x67   :  { %v2910_v3 = vadd.f32 %v158_v1, %v154_v0  ;;  %v2913_v5 = vadd.f32 %v159_v4, %v155_v2  ;;  %v2916_v7 = vadd.f32 %v158_v1, %v156_v6  ;;  %v2424_v8 = vld [vmem:[#allocation10 + $0xac] ss:$12 sps:$4 sm:$0xff]   ;;  %v2426_v9 = vld [vmem:[#allocation10 + $0xa8] ss:$12 sps:$4 sm:$0xff]   ;;  %v2429_v21 = vld [vmem:[#allocation10 + $0x90] ss:$12 sps:$4 sm:$0xff]  }
  0x68   :  { %410 = vmatprep.subr.bf16.mxu0 %v2424_v8  ;;  %v157_v17 = vld [vmem:[#allocation2 + $0x18] sm:$0xff]  ;;  %v2427_v20 = vld [vmem:[#allocation10 + $0x94] ss:$12 sps:$4 sm:$0xff]   ;;  %v2436_v29 = vld [vmem:[#allocation10 + $0x4c] ss:$12 sps:$4 sm:$0xff]   ;;  %v2791_v6 = vmov 0.0  }
  0x69   :  { %166 = vadd.xlane.f32.xlu0 %v2910_v3  ;;  %411 = vmatpush1.bf16.msra.mxu0 %v2426_v9  ;;  %v2929_v19 = vadd.f32 %v159_v4, %v157_v17  ;;  %v2430_v22 = vld [vmem:[#allocation10 + $0x7c] ss:$12 sps:$4 sm:$0xff]   ;;  %v2432_v23 = vld [vmem:[#allocation10 + $0x78] ss:$12 sps:$4 sm:$0xff]   ;;  %v2435_v27 = vld [vmem:[#allocation10 + $0x60] ss:$12 sps:$4 sm:$0xff]  }
  0x6a   :  { %412 = vmatprep.subr.bf16.mxu0 %v2427_v20  ;;  %v2433_v26 = vld [vmem:[#allocation10 + $0x64] ss:$12 sps:$4 sm:$0xff]   ;;  %v2438_v31 = vld [vmem:[#allocation10 + $0x48] ss:$12 sps:$4 sm:$0xff]   ;;  %v2447_v38 = vld [vmem:[#allocation10] ss:$12 sps:$4 sm:$0xff]  }
  0x6b   :  { %v2439_v32 = vld [vmem:[#allocation10 + $0x34] ss:$12 sps:$4 sm:$0xff]   ;;  %v2441_v33 = vld [vmem:[#allocation10 + $0x30] ss:$12 sps:$4 sm:$0xff]   ;;  %v2444_v36 = vld [vmem:[#allocation10 + $0x18] ss:$12 sps:$4 sm:$0xff]  }
  0x6c   :  { %v2442_v34 = vld [vmem:[#allocation10 + $0x1c] ss:$12 sps:$4 sm:$0xff]   ;;  %v2445_v37 = vld [vmem:[#allocation10 + $0x4] ss:$12 sps:$4 sm:$0xff]   ;;  %v2450_v59 = vld [vmem:[#allocation10 + $0x80] ss:$12 sps:$4 sm:$0xff]  }
  0x6d   :  { %168 = vadd.xlane.f32.xlu0 %v2913_v5  ;;  %413 = vmatpush1.bf16.msra.mxu0 %v2429_v21  ;;  %v2448_v39 = vld [vmem:[#allocation10 + $0xb0] ss:$12 sps:$4 sm:$0xff]   ;;  %v2449_v40 = vld [vmem:[#allocation10 + $0x98] ss:$12 sps:$4 sm:$0xff]   ;;  %v2451_v63 = vld [vmem:[#allocation10 + $0x68] ss:$12 sps:$4 sm:$0xff]  }
  0x6e   :  { %414 = vmatprep.subr.bf16.mxu0 %v2430_v22  ;;  %2268 = vmatprep.subr.bf16.mxu1 %v2448_v39  ;;  %v2102_v53 = vld [vmem:[#allocation7] ss:$0 sm:$0xff]  ;;  %v2103_v57 = vld [vmem:[#allocation8] ss:$0 sm:$0xff]  ;;  %v2453_v1 = vld [vmem:[#allocation10 + $0x38] ss:$12 sps:$4 sm:$0xff]  }
  0x6f   :  { %2269 = vmatpush3.bf16.msra.mxu1 %v2448_v39  ;;  %v2452_v0 = vld [vmem:[#allocation10 + $0x50] ss:$12 sps:$4 sm:$0xff]   ;;  %v2454_v2 = vld [vmem:[#allocation10 + $0x20] ss:$12 sps:$4 sm:$0xff]   ;;  %v2455_v4 = vld [vmem:[#allocation10 + $0x8] ss:$12 sps:$4 sm:$0xff]  }
  0x70   :  { %2270 = vmatprep.subr.bf16.mxu1 %v2449_v40  ;;  %vm1016_vm3 = vcmask 523264   ;;  %vm1019_vm4 = vcmask 785408  }
  0x71   :  { %170 = vadd.xlane.f32.xlu0 %v2916_v7  ;;  %415 = vmatpush1.bf16.msra.mxu0 %v2432_v23 }
  0x72   :  { %416 = vmatprep.subr.bf16.mxu0 %v2433_v26 }
  0x73   :  { %2271 = vmatpush3.bf16.msra.mxu1 %v2449_v40 }
  0x74   :  { %2272 = vmatprep.subr.bf16.mxu1 %v2450_v59 }
  0x75   :  { %417 = vmatpush1.bf16.msra.mxu0 %v2435_v27  ;;  %v265_v27 = vld [vmem:[%s3237_s5] sm:$0x7]  ;;  %s2793_s5 = smov 96  }
  0x76   :  { %418 = vmatprep.subr.bf16.mxu0 %v2436_v29 }
  0x77   :  { %2273 = vmatpush3.bf16.msra.mxu1 %v2450_v59 }
  0x78   :  { %2274 = vmatprep.subr.bf16.mxu1 %v2451_v63 }
  0x79   :  { %419 = vmatpush1.bf16.msra.mxu0 %v2438_v31 }
  0x7a   :  { %420 = vmatprep.subr.bf16.mxu0 %v2439_v32 }
  0x7b   :  { %2275 = vmatpush3.bf16.msra.mxu1 %v2451_v63 }
  0x7c   :  { %2276 = vmatprep.subr.bf16.mxu1 %v2452_v0 }
  0x7d   :  { %421 = vmatpush1.bf16.msra.mxu0 %v2441_v33 }
  0x7e   :  { %422 = vmatprep.subr.bf16.mxu0 %v2442_v34 }
  0x7f   :  { %2277 = vmatpush3.bf16.msra.mxu1 %v2452_v0 }
  0x80   :  { %2278 = vmatprep.subr.bf16.mxu1 %v2453_v1 }
  0x81   :  { %423 = vmatpush1.bf16.msra.mxu0 %v2444_v36 }
  0x82   :  { %424 = vmatprep.subr.bf16.mxu0 %v2445_v37 }
  0x83   :  { %2279 = vmatpush3.bf16.msra.mxu1 %v2453_v1 }
  0x84   :  { %2280 = vmatprep.subr.bf16.mxu1 %v2454_v2 }
  0x85   :  { %425 = vmatpush1.bf16.msra.mxu0 %v2447_v38 }
  0x86   :  { %2288 = vmatprep.subr.bf16.mxu0 %v2791_v6 }
  0x87   :  { %2281 = vmatpush3.bf16.msra.mxu1 %v2454_v2 }
  0x88   :  { %2282 = vmatprep.subr.bf16.mxu1 %v2455_v4 }
  0x8b   :  { %2283 = vmatpush3.bf16.msra.mxu1 %v2455_v4 }
  0x8c   :  { %2300 = vmatprep.subr.bf16.mxu1 %v2791_v6 }
  0xf2   :  { %v167_v10 = vpop.xlane.xlu0 %166 }
  0xf3   :  { %v175_v11 = vmul.f32 0.0078125, %v167_v10 }
  0xf5   :  { %v2920_v12 = vsub.f32 %v2910_v3, %v175_v11 }
  0xf6   :  { %v169_v13 = vpop.xlane.xlu0 %168 }
  0xf7   :  { %v176_v14 = vmul.f32 0.0078125, %v169_v13  ;;  %v183_v15 = vmul.f32 %v2920_v12, %v2920_v12 }
  0xf9   :  { %v2925_v16 = vsub.f32 %v2913_v5, %v176_v14  ;;  %187 = vadd.xlane.f32.xlu1 %v183_v15 }
  0xfa   :  { %v171_v24 = vpop.xlane.xlu0 %170 }
  0xfb   :  { %v184_v18 = vmul.f32 %v2925_v16, %v2925_v16  ;;  %v177_v25 = vmul.f32 0.0078125, %v171_v24  ;;  %v267_v24 = vlaneseq }
  0xfd   :  { %189 = vadd.xlane.f32.xlu1 %v184_v18  ;;  %v2933_v28 = vsub.f32 %v2916_v7, %v177_v25  ;;  %v2949_v25 = vshrl.u32 %v267_v24, 7 }
  0xff   :  { %v185_v30 = vmul.f32 %v2933_v28, %v2933_v28  ;;  %v269_v26 = vsub.s32 0, %v2949_v25 }
 0x101   :  { %172 = vadd.xlane.f32.xlu1 %v2929_v19  ;;  %191 = vadd.xlane.f32.xlu0 %v185_v30  ;;  %v270_v30 = vrot.slane %v265_v27, %v269_v26 }
 0x182   :  { %v188_v41 = vpop.xlane.xlu1 %187 }
 0x183   :  { %v195_v42 = vmul.f32 0.0078125, %v188_v41 }
 0x185   :  { %v199_v43 = vadd.f32 1e-05, %v195_v42 }
 0x186   :  { %v190_v44 = vpop.xlane.xlu1 %189 }
 0x187   :  { %2504 = vrsqrt.f32 %v199_v43  ;;  %v196_v45 = vmul.f32 0.0078125, %v190_v44 }
 0x189   :  { %v200_v46 = vadd.f32 1e-05, %v196_v45 }
 0x18a   :  { %v173_v47 = vpop.xlane.xlu1 %172  ;;  %v192_v8 = vpop.xlane.xlu0 %191 }
 0x18b   :  { %2506 = vrsqrt.f32 %v200_v46  ;;  %v178_v48 = vmul.f32 0.0078125, %v173_v47  ;;  %v197_v9 = vmul.f32 0.0078125, %v192_v8 }
 0x18d   :  { %v182_v49 = vsub.f32 %v2929_v19, %v178_v48  ;;  %v201_v10 = vadd.f32 1e-05, %v197_v9 }
 0x18f   :  { %v186_v50 = vmul.f32 %v182_v49, %v182_v49  ;;  %2508 = vrsqrt.f32 %v201_v10 }
 0x191   :  { %193 = vadd.xlane.f32.xlu1 %v186_v50 }
 0x194   :  { %v2505_v51 = vpop.eup %2504 }
 0x195   :  { %v207_v52 = vmul.f32 %v2505_v51, %v2920_v12 }
 0x197   :  { %v217_v56 = vmul.f32 %v2102_v53, %v207_v52  ;;  %v277_v52 = vsub.s32 2, %v2949_v25 }
 0x198   :  { %v2507_v54 = vpop.eup %2506 }
 0x199   :  { %v208_v55 = vmul.f32 %v2507_v54, %v2925_v16  ;;  %v227_v60 = vadd.f32 %v2103_v57, %v217_v56 }
 0x19b   :  { %v218_v58 = vmul.f32 %v2102_v53, %v208_v55 }
 0x19c   :  { %v2509_v14 = vpop.eup %2508 }
 0x19d   :  { %v228_v61 = vadd.f32 %v2103_v57, %v218_v58  ;;  %v209_v15 = vmul.f32 %v2509_v14, %v2933_v28  ;;  %v273_v28 = vsub.s32 1, %v2949_v25 }
 0x19f   :  { %v231_v62 = vpack.c.bf16 %v228_v61, %v227_v60  ;;  %v219_v16 = vmul.f32 %v2102_v53, %v209_v15  ;;  %v274_v32 = vrot.slane %v265_v27, %v273_v28 }
 0x1a1   :  { %443 = vmatmul.mubr.bf16.vlgmr.msra.gmra.mxu0 %v231_v62  ;;  %2284 = vmatprep.mubr.bf16.mxu1 %v231_v62  ;;  %v229_v21 = vadd.f32 %v2103_v57, %v219_v16 }
 0x1a2   :  { %452 = vmatprep.mubr.bf16.mxu0 %v2790_v35 }
 0x21a   :  { %v194_v11 = vpop.xlane.xlu1 %193 }
 0x21b   :  { %v198_v12 = vmul.f32 0.0078125, %v194_v11 }
 0x21d   :  { %v202_v13 = vadd.f32 1e-05, %v198_v12 }
 0x21f   :  { %2510 = vrsqrt.f32 %v202_v13 }
 0x22c   :  { %v2511_v17 = vpop.eup %2510 }
 0x22d   :  { %v210_v18 = vmul.f32 %v2511_v17, %v182_v49 }
 0x22f   :  { %v220_v20 = vmul.f32 %v2102_v53, %v210_v18  ;;  %v278_v53 = vrot.slane %v265_v27, %v277_v52 }
 0x231   :  { %v230_v22 = vadd.f32 %v2103_v57, %v220_v20 }
 0x233   :  { %v232_v23 = vpack.c.bf16 %v230_v22, %v229_v21 }
 0x235   :  { %453 = vmatmul.mubr.bf16.gmra.mxu0 %v232_v23  ;;  %2285 = vmatmul.mubr.bf16.vlgmr.msra.gmra.mxu1 %v232_v23 }
 0x236   :  { %2290 = vmatprep.mubr.msk.bf16.mxu0 %vm2792_vm0, %v2791_v6  ;;  %2302 = vmatprep.mubr.msk.bf16.mxu1 %vm2792_vm0, %v2791_v6 }
 0x261   :  { %v444_v29 = vpop.f32.mrf.mxu0 }
 0x262   :  { %v445_v34 = vadd.f32 %v444_v29, %v270_v30 }
 0x263   :  { %v446_v31 = vpop.f32.mrf.mxu0 }
 0x264   :  { %v447_v38 = vadd.f32 %v446_v31, %v274_v32 }
 0x265   :  { %v448_v33 = vpop.f32.mrf.mxu0 }
 0x266   :  { %v449_v36 = vadd.f32 %v448_v33, %v270_v30 }
 0x267   :  { %v450_v37 = vpop.f32.mrf.mxu0 }
 0x268   :  { %v512_v39 = vpack.c.bf16 %v449_v36, %v445_v34  ;;  %v451_v40 = vadd.f32 %v450_v37, %v274_v32 }
 0x26a   :  { %v514_v41 = vpack.c.bf16 %v451_v40, %v447_v38  ;;  %519 = vrot.lane.b32.xlu1 %v512_v39, %s2793_s5 }
 0x26c   :  { %526 = vrot.lane.b32.xlu0 %v514_v41, %s2793_s5  ;;  %v547_v42 = vsel %vm542_vm1, %v514_v41, 0 }
 0x26d   :  { %2289 = vmatpush3.bf16.xpose.msra.mxu0 %v547_v42 }
 0x26e   :  { %528 = vrot.lane.b32.xlu1 %v514_v41, %s2781_s1  ;;  %2294 = vmatprep.subr.bf16.mxu0 %v2791_v6 }
 0x270   :  { %521 = vrot.lane.b32.xlu0 %v512_v39, %s2781_s1 }
 0x272   :  { %530 = vrot.lane.b32.xlu1 %v514_v41, %s2794_s29 }
 0x274   :  { %2291 = vmatmul.mubr.msk.bf16.vlgmr.msra.gmra.mxu0 %vm542_vm1, %v512_v39 }
 0x275   :  { %2296 = vmatprep.mubr.msk.bf16.mxu0 %vm2792_vm0, %v2791_v6 }
 0x276   :  { %523 = vrot.lane.b32.xlu1 %v512_v39, %s2794_s29 }
 0x2dc   :  { %v520_v43 = vpop.permute.xlu1 %519 }
 0x2de   :  { %v527_v44 = vpop.permute.xlu0 %526 }
 0x2df   :  { %v594_v45 = vsel %vm542_vm1, %v527_v44, 0 }
 0x2e0   :  { %v529_v46 = vpop.permute.xlu1 %528  ;;  %2295 = vmatpush3.bf16.xpose.msra.mxu0 %v594_v45 }
 0x2e1   :  { %v641_v47 = vsel %vm542_vm1, %v529_v46, 0  ;;  %2306 = vmatprep.subr.bf16.mxu0 %v2791_v6 }
 0x2e2   :  { %2301 = vmatpush3.bf16.xpose.msra.mxu1 %v641_v47  ;;  %v522_v50 = vpop.permute.xlu0 %521 }
 0x2e3   :  { %2312 = vmatprep.subr.bf16.mxu1 %v2791_v6 }
 0x2e4   :  { %v531_v48 = vpop.permute.xlu1 %530 }
 0x2e5   :  { %v688_v49 = vsel %vm542_vm1, %v531_v48, 0 }
 0x2e7   :  { %2297 = vmatmul.mubr.msk.bf16.vlgmr.msra.gmra.mxu0 %vm542_vm1, %v520_v43 }
 0x2e8   :  { %2307 = vmatpush3.bf16.xpose.msra.mxu0 %v688_v49  ;;  %2308 = vmatprep.mubr.msk.bf16.mxu0 %vm2792_vm0, %v2791_v6  ;;  %v524_v51 = vpop.permute.xlu1 %523 }
 0x2e9   :  { %2303 = vmatmul.mubr.msk.bf16.vlgmr.msra.gmra.mxu1 %vm542_vm1, %v522_v50  ;;  %2318 = vmatprep.subr.bf16.mxu0 %v2791_v6 }
 0x2ea   :  { %2314 = vmatprep.mubr.msk.bf16.mxu1 %vm2792_vm0, %v2791_v6 }
 0x2ef   :  { %2309 = vmatmul.mubr.msk.bf16.vlgmr.msra.gmra.mxu0 %vm542_vm1, %v524_v51 }
 0x2f0   :  { %2320 = vmatprep.mubr.msk.bf16.mxu0 %vm2792_vm0, %v2791_v6 }
 0x2f5   :  { %v454_v54 = vpop.f32.mrf.mxu0  ;;  %v2286_v55 = vpop.f32.mrf.mxu1 }
 0x2f6   :  { %v506_v56 = vadd.f32 %v2286_v55, %v278_v53  ;;  %v455_v59 = vadd.f32 %v454_v54, %v270_v30 }
 0x2f7   :  { %v456_v57 = vpop.f32.mrf.mxu0  ;;  %v497_v58 = vpop.f32.mrf.mxu1 }
 0x2f8   :  { %v457_v0 = vadd.f32 %v456_v57, %v274_v32  ;;  %v498_v1 = vadd.f32 %v497_v58, %v278_v53 }
 0x2f9   :  { %v458_v60 = vpop.f32.mrf.mxu0  ;;  %v2287_v61 = vpop.f32.mrf.mxu1 }
 0x2fa   :  { %v459_v62 = vadd.f32 %v458_v60, %v270_v30  ;;  %v509_v63 = vadd.f32 %v2287_v61, %v278_v53 }
 0x2fb   :  { %v460_v2 = vpop.f32.mrf.mxu0  ;;  %v500_v4 = vpop.f32.mrf.mxu1 }
 0x2fc   :  { %v2987_v8 = vpack.c.bf16 %v459_v62, %v455_v59  ;;  %v2989_v9 = vpack.c.bf16 %v509_v63, %v506_v56  ;;  %v461_v10 = vadd.f32 %v460_v2, %v274_v32  ;;  %v501_v11 = vadd.f32 %v500_v4, %v278_v53 }
 0x2fe   :  { %v2991_v12 = vpack.c.bf16 %v461_v10, %v457_v0  ;;  %v2993_v13 = vpack.c.bf16 %v501_v11, %v498_v1 }
 0x300   :  { %2313 = vmatpush3.bf16.msra.mxu1 %v2993_v13 }
 0x301   :  { %2324 = vmatprep.subr.bf16.mxu1 %v2791_v6 }
 0x334   :  { %v583_v14 = vpop.f32.mrf.mxu0 }
 0x335   :  { %v732_v15 = vsel %vm731_vm2, %v583_v14, -inf }
 0x336   :  { %733 = vmax.xlane.f32.xlu0 %v732_v15  ;;  %v2292_v16 = vpop.f32.mrf.mxu0 }
 0x338   :  { %v586_v17 = vpop.f32.mrf.mxu0 }
 0x339   :  { %v735_v18 = vsel %vm731_vm2, %v586_v17, -inf }
 0x33a   :  { %736 = vmax.xlane.f32.xlu1 %v735_v18  ;;  %v2293_v20 = vpop.f32.mrf.mxu0 }
 0x3a7   :  { %v630_v21 = vpop.f32.mrf.mxu0 }
 0x3a8   :  { %v738_v22 = vsel %vm731_vm2, %v630_v21, -inf }
 0x3a9   :  { %739 = vmax.xlane.f32.xlu0 %v738_v22  ;;  %v2298_v23 = vpop.f32.mrf.mxu0  ;;  %v677_v24 = vpop.f32.mrf.mxu1 }
 0x3aa   :  { %v744_v37 = vsel %vm731_vm2, %v677_v24, -inf }
 0x3ab   :  { %v633_v27 = vpop.f32.mrf.mxu0  ;;  %v2304_v29 = vpop.f32.mrf.mxu1 }
 0x3ac   :  { %v741_v30 = vsel %vm731_vm2, %v633_v27, -inf }
 0x3ad   :  { %742 = vmax.xlane.f32.xlu0 %v741_v30  ;;  %v2299_v31 = vpop.f32.mrf.mxu0  ;;  %v680_v32 = vpop.f32.mrf.mxu1 }
 0x3ae   :  { %v747_v33 = vsel %vm731_vm2, %v680_v32, -inf }
 0x3af   :  { %v724_v34 = vpop.f32.mrf.mxu0  ;;  %748 = vmax.xlane.f32.xlu1 %v747_v33  ;;  %v2305_v36 = vpop.f32.mrf.mxu1 }
 0x3b0   :  { %v750_v40 = vsel %vm731_vm2, %v724_v34, -inf }
 0x3b1   :  { %v2310_v38 = vpop.f32.mrf.mxu0  ;;  %745 = vmax.xlane.f32.xlu0 %v744_v37 }
 0x3b3   :  { %v3003_v39 = vpop.f32.mrf.mxu0 }
 0x3b4   :  { %v753_v41 = vsel %vm731_vm2, %v3003_v39, -inf }
 0x3b5   :  { %v2311_v42 = vpop.f32.mrf.mxu0  ;;  %751 = vmax.xlane.f32.xlu0 %v750_v40  ;;  %754 = vmax.xlane.f32.xlu1 %v753_v41 }
 0x3bf   :  { %v734_v43 = vpop.xlane.xlu0 %733 }
 0x3c0   :  { %v756_v44 = vsub.f32 %v583_v14, %v734_v43 }
 0x3c2   :  { %v764_v45 = vmul.f32 1.442695, %v756_v44 }
 0x3c3   :  { %v737_v46 = vpop.xlane.xlu1 %736 }
 0x3c4   :  { %2512 = vpow2.f32 %v764_v45  ;;  %v757_v47 = vsub.f32 %v586_v17, %v737_v46 }
 0x3c6   :  { %v766_v48 = vmul.f32 1.442695, %v757_v47 }
 0x3c8   :  { %2514 = vpow2.f32 %v766_v48 }
 0x3d1   :  { %v2513_v49 = vpop.eup %2512 }
 0x3d2   :  { %v780_v50 = vsel %vm731_vm2, %v2513_v49, 0.0 }
 0x3d3   :  { %781 = vadd.xlane.f32.xlu0 %v780_v50 }
 0x3d5   :  { %v2515_v51 = vpop.eup %2514 }
 0x3d6   :  { %v783_v52 = vsel %vm731_vm2, %v2515_v51, 0.0 }
 0x3d7   :  { %784 = vadd.xlane.f32.xlu1 %v783_v52 }
 0x432   :  { %v740_v53 = vpop.xlane.xlu0 %739 }
 0x433   :  { %v758_v54 = vsub.f32 %v630_v21, %v740_v53 }
 0x435   :  { %v768_v55 = vmul.f32 1.442695, %v758_v54 }
 0x436   :  { %v743_v56 = vpop.xlane.xlu0 %742 }
 0x437   :  { %2516 = vpow2.f32 %v768_v55  ;;  %v759_v57 = vsub.f32 %v633_v27, %v743_v56  ;;  %v1051_v56 = vsel %vm542_vm1, %v2991_v12, 0 }
 0x438   :  { %v749_v58 = vpop.xlane.xlu1 %748 }
 0x439   :  { %v770_v59 = vmul.f32 1.442695, %v759_v57  ;;  %v761_v60 = vsub.f32 %v680_v32, %v749_v58 }
 0x43a   :  { %v746_v61 = vpop.xlane.xlu0 %745 }
 0x43b   :  { %2518 = vpow2.f32 %v770_v59  ;;  %v774_v62 = vmul.f32 1.442695, %v761_v60  ;;  %v760_v63 = vsub.f32 %v677_v24, %v746_v61 }
 0x43d   :  { %2520 = vpow2.f32 %v774_v62  ;;  %v772_v0 = vmul.f32 1.442695, %v760_v63 }
 0x43e   :  { %v752_v1 = vpop.xlane.xlu0 %751  ;;  %v755_v23 = vpop.xlane.xlu1 %754 }
 0x43f   :  { %2522 = vpow2.f32 %v772_v0  ;;  %v762_v2 = vsub.f32 %v724_v34, %v752_v1  ;;  %v763_v31 = vsub.f32 %v3003_v39, %v755_v23 }
 0x441   :  { %v776_v4 = vmul.f32 1.442695, %v762_v2  ;;  %v778_v36 = vmul.f32 1.442695, %v763_v31 }
 0x443   :  { %2524 = vpow2.f32 %v776_v4 }
 0x444   :  { %v2517_v10 = vpop.eup %2516 }
 0x445   :  { %v786_v11 = vsel %vm731_vm2, %v2517_v10, 0.0 }
 0x446   :  { %787 = vadd.xlane.f32.xlu0 %v786_v11 }
 0x448   :  { %v2519_v14 = vpop.eup %2518 }
 0x449   :  { %v789_v15 = vsel %vm731_vm2, %v2519_v14, 0.0 }
 0x44a   :  { %v2521_v16 = vpop.eup %2520  ;;  %790 = vadd.xlane.f32.xlu1 %v789_v15 }
 0x44b   :  { %v795_v18 = vsel %vm731_vm2, %v2521_v16, 0.0 }
 0x44c   :  { %v2523_v17 = vpop.eup %2522 }
 0x44d   :  { %v792_v20 = vsel %vm731_vm2, %v2523_v17, 0.0 }
 0x44e   :  { %796 = vadd.xlane.f32.xlu1 %v795_v18  ;;  %793 = vadd.xlane.f32.xlu0 %v792_v20 }
 0x450   :  { %v3014_v21 = vpop.eup %2524 }
 0x451   :  { %v798_v22 = vsel %vm731_vm2, %v3014_v21, 0.0 }
 0x452   :  { %799 = vadd.xlane.f32.xlu0 %v798_v22 }
 0x45c   :  { %v782_v24 = vpop.xlane.xlu0 %781 }
 0x45d   :  { %2526 = vrcp.f32 %v782_v24 }
 0x45f   :  { %536 = vrot.lane.b32.xlu1 %v2993_v13, %s2781_s1 }
 0x460   :  { %v785_v27 = vpop.xlane.xlu1 %784 }
 0x461   :  { %2528 = vrcp.f32 %v785_v27 }
 0x462   :  { %2530 = vpow2.f32 %v778_v36 }
 0x463   :  { %539 = vrot.lane.b32.xlu1 %v2993_v13, %s2794_s29 }
 0x468   :  { %533 = vrot.lane.b32.xlu0 %v2993_v13, %s2793_s5 }
 0x46a   :  { %v2527_v29 = vpop.eup %2526 }
 0x46b   :  { %v812_v32 = vmul.f32 %v2527_v29, %v2513_v49 }
 0x46c   :  { %1033 = vrot.lane.b32.xlu0 %v2991_v12, %s2781_s1 }
 0x46e   :  { %v2529_v30 = vpop.eup %2528 }
 0x46f   :  { %v813_v33 = vmul.f32 %v2529_v30, %v2515_v51  ;;  %v2531_v13 = vpop.eup %2530 }
 0x470   :  { %1035 = vrot.lane.b32.xlu0 %v2991_v12, %s2794_s29  ;;  %v801_v37 = vsel %vm731_vm2, %v2531_v13, 0.0 }
 0x471   :  { %v820_v34 = vpack.c.bf16 %v813_v33, %v812_v32 }
 0x473   :  { %2315 = vmatmul.mubr.msk.bf16.vlgmr.msra.gmra.mxu1 %vm731_vm2, %v820_v34 }
 0x474   :  { %2326 = vmatprep.mubr.msk.bf16.mxu1 %vm2792_vm0, %v2791_v6  ;;  %1028 = vrot.lane.b32.xlu0 %v2987_v8, %s2794_s29 }
 0x487   :  { %802 = vadd.xlane.f32.xlu1 %v801_v37 }
 0x498   :  { %1031 = vrot.lane.b32.xlu1 %v2991_v12, %s2793_s5 }
 0x49c   :  { %1024 = vrot.lane.b32.xlu1 %v2987_v8, %s2793_s5 }
 0x4a0   :  { %1026 = vrot.lane.b32.xlu1 %v2987_v8, %s2781_s1 }
 0x4cf   :  { %v788_v38 = vpop.xlane.xlu0 %787 }
 0x4d0   :  { %2532 = vrcp.f32 %v788_v38 }
 0x4d3   :  { %v791_v39 = vpop.xlane.xlu1 %790 }
 0x4d4   :  { %2534 = vrcp.f32 %v791_v39 }
 0x4d7   :  { %v797_v40 = vpop.xlane.xlu1 %796  ;;  %v794_v41 = vpop.xlane.xlu0 %793 }
 0x4d8   :  { %2536 = vrcp.f32 %v797_v40 }
 0x4d9   :  { %2538 = vrcp.f32 %v794_v41 }
 0x4db   :  { %v537_v42 = vpop.permute.xlu1 %536  ;;  %v800_v43 = vpop.xlane.xlu0 %799 }
 0x4dc   :  { %2325 = vmatpush3.bf16.msra.mxu1 %v537_v42  ;;  %2540 = vrcp.f32 %v800_v43 }
 0x4dd   :  { %2336 = vmatprep.subr.bf16.mxu1 %v2791_v6  ;;  %v2533_v44 = vpop.eup %2532 }
 0x4de   :  { %v814_v47 = vmul.f32 %v2533_v44, %v2517_v10 }
 0x4df   :  { %v534_v45 = vpop.permute.xlu0 %533  ;;  %v540_v52 = vpop.permute.xlu1 %539 }
 0x4e0   :  { %2319 = vmatpush3.bf16.msra.mxu0 %v534_v45 }
 0x4e1   :  { %v2535_v46 = vpop.eup %2534  ;;  %2330 = vmatprep.subr.bf16.mxu0 %v2791_v6 }
 0x4e2   :  { %v815_v48 = vmul.f32 %v2535_v46, %v2519_v14 }
 0x4e3   :  { %v1034_v57 = vpop.permute.xlu0 %1033 }
 0x4e4   :  { %v821_v49 = vpack.c.bf16 %v815_v48, %v814_v47  ;;  %v1145_v58 = vsel %vm542_vm1, %v1034_v57, 0 }
 0x4e5   :  { %v2537_v50 = vpop.eup %2536 }
 0x4e6   :  { %v2539_v51 = vpop.eup %2538  ;;  %2321 = vmatmul.mubr.msk.bf16.vlgmr.msra.gmra.mxu0 %vm731_vm2, %v821_v49  ;;  %v817_v53 = vmul.f32 %v2537_v50, %v2521_v16 }
 0x4e7   :  { %2331 = vmatpush3.bf16.msra.mxu0 %v540_v52  ;;  %v816_v54 = vmul.f32 %v2539_v51, %v2523_v17  ;;  %2332 = vmatprep.mubr.msk.bf16.mxu0 %vm2792_vm0, %v2791_v6  ;;  %v1036_v4 = vpop.permute.xlu0 %1035 }
 0x4e8   :  { %2342 = vmatprep.subr.bf16.mxu0 %v2791_v6  ;;  %v1192_v10 = vsel %vm542_vm1, %v1036_v4, 0 }
 0x4e9   :  { %v822_v55 = vpack.c.bf16 %v817_v53, %v816_v54  ;;  %v2541_v61 = vpop.eup %2540 }
 0x4eb   :  { %2327 = vmatmul.mubr.msk.bf16.vlgmr.msra.gmra.mxu1 %vm731_vm2, %v822_v55  ;;  %v1029_v11 = vpop.permute.xlu0 %1028 }
 0x4ec   :  { %2337 = vmatpush3.bf16.xpose.msra.mxu1 %v1051_v56  ;;  %2338 = vmatprep.mubr.msk.bf16.mxu1 %vm2792_vm0, %v2791_v6 }
 0x4ed   :  { %2348 = vmatprep.subr.bf16.mxu1 %v2791_v6 }
 0x4f3   :  { %2339 = vmatmul.mubr.msk.bf16.vlgmr.msra.gmra.mxu1 %vm542_vm1, %v2987_v8  ;;  %v818_v8 = vmul.f32 %v2541_v61, %v3014_v21 }
 0x4f4   :  { %2349 = vmatpush3.bf16.xpose.msra.mxu1 %v1145_v58  ;;  %2350 = vmatprep.mubr.msk.bf16.mxu1 %vm2792_vm0, %v2791_v6 }
 0x4f5   :  { %2360 = vmatprep.subr.bf16.mxu1 %v2791_v6 }
 0x510   :  { %v803_v12 = vpop.xlane.xlu1 %802 }
 0x511   :  { %2542 = vrcp.f32 %v803_v12 }
 0x514   :  { %v1032_v59 = vpop.permute.xlu1 %1031 }
 0x515   :  { %v1098_v2 = vsel %vm542_vm1, %v1032_v59, 0 }
 0x518   :  { %v1025_v60 = vpop.permute.xlu1 %1024 }
 0x51c   :  { %v1027_v62 = vpop.permute.xlu1 %1026 }
 0x51d   :  { %2351 = vmatmul.mubr.msk.bf16.vlgmr.msra.gmra.mxu1 %vm542_vm1, %v1027_v62 }
 0x51e   :  { %v2543_v63 = vpop.eup %2542  ;;  %2361 = vmatpush3.bf16.msra.mxu1 %v2989_v9  ;;  %2362 = vmatprep.mubr.msk.bf16.mxu1 %vm2792_vm0, %v2791_v6 }
 0x51f   :  { %v819_v0 = vmul.f32 %v2543_v63, %v2531_v13  ;;  %2372 = vmatprep.subr.bf16.mxu1 %v2791_v6 }
 0x521   :  { %v823_v1 = vpack.c.bf16 %v819_v0, %v818_v8 }
 0x523   :  { %2333 = vmatmul.mubr.msk.bf16.vlgmr.msra.gmra.mxu0 %vm731_vm2, %v823_v1 }
 0x524   :  { %2343 = vmatpush3.bf16.xpose.msra.mxu0 %v1098_v2  ;;  %2344 = vmatprep.mubr.msk.bf16.mxu0 %vm2792_vm0, %v2791_v6 }
 0x525   :  { %2354 = vmatprep.subr.bf16.mxu0 %v2791_v6 }
 0x52b   :  { %2345 = vmatmul.mubr.msk.bf16.vlgmr.msra.gmra.mxu0 %vm542_vm1, %v1025_v60 }
 0x52c   :  { %2355 = vmatpush3.bf16.xpose.msra.mxu0 %v1192_v10  ;;  %2356 = vmatprep.mubr.msk.bf16.mxu0 %vm2792_vm0, %v2791_v6 }
 0x52d   :  { %2366 = vmatprep.subr.bf16.mxu0 %v2791_v6 }
 0x533   :  { %v3075_v14 = vpop.f32.mrf.mxu1  ;;  %2357 = vmatmul.mubr.msk.bf16.vlgmr.msra.gmra.mxu0 %vm542_vm1, %v1029_v11 }
 0x534   :  { %2368 = vmatprep.mubr.msk.bf16.mxu0 %vm2792_vm0, %v2791_v6 }
 0x535   :  { %v2316_v15 = vpop.f32.mrf.mxu1 }
 0x537   :  { %v3080_v16 = vpop.f32.mrf.mxu1 }
 0x538   :  { %v1000_v17 = vpack.c.bf16 %v3080_v16, %v3075_v14  ;;  %v2457_v14 = vld [vmem:[#allocation11 + $0x30] sm:$0xff]   ;;  %v2458_v16 = vld [vmem:[#allocation11 + $0x28] sm:$0xff]  }
 0x539   :  { %v2317_v18 = vpop.f32.mrf.mxu1 }
 0x5a6   :  { %v3084_v20 = vpop.f32.mrf.mxu0 }
 0x5a8   :  { %v2322_v21 = vpop.f32.mrf.mxu0 }
 0x5aa   :  { %v3086_v22 = vpop.f32.mrf.mxu0 }
 0x5ab   :  { %v1001_v23 = vpack.c.bf16 %v3086_v22, %v3084_v20  ;;  %v3090_v24 = vpop.f32.mrf.mxu1 }
 0x5ac   :  { %v2323_v27 = vpop.f32.mrf.mxu0 }
 0x5ad   :  { %v2328_v29 = vpop.f32.mrf.mxu1 }
 0x5af   :  { %v3092_v30 = vpop.f32.mrf.mxu1 }
 0x5b0   :  { %v1002_v31 = vpack.c.bf16 %v3092_v30, %v3090_v24 }
 0x5b1   :  { %v2329_v32 = vpop.f32.mrf.mxu1 }
 0x5b3   :  { %v1087_v33 = vpop.f32.mrf.mxu1 }
 0x5b4   :  { %v1235_v34 = vsel %vm731_vm2, %v1087_v33, -inf }
 0x5b5   :  { %1236 = vmax.xlane.f32.xlu1 %v1235_v34  ;;  %v2340_v36 = vpop.f32.mrf.mxu1 }
 0x5b7   :  { %v1090_v13 = vpop.f32.mrf.mxu1 }
 0x5b8   :  { %v1238_v37 = vsel %vm731_vm2, %v1090_v13, -inf }
 0x5b9   :  { %1239 = vmax.xlane.f32.xlu0 %v1238_v37  ;;  %v2341_v38 = vpop.f32.mrf.mxu1 }
 0x5dd   :  { %v1181_v39 = vpop.f32.mrf.mxu1 }
 0x5de   :  { %v1247_v40 = vsel %vm731_vm2, %v1181_v39, -inf }
 0x5df   :  { %1248 = vmax.xlane.f32.xlu1 %v1247_v40  ;;  %v2352_v41 = vpop.f32.mrf.mxu1 }
 0x5e1   :  { %v1184_v42 = vpop.f32.mrf.mxu1 }
 0x5e2   :  { %v1250_v56 = vsel %vm731_vm2, %v1184_v42, -inf }
 0x5e3   :  { %v3099_v43 = vpop.f32.mrf.mxu0  ;;  %v2353_v44 = vpop.f32.mrf.mxu1 }
 0x5e5   :  { %v2334_v45 = vpop.f32.mrf.mxu0 }
 0x5e7   :  { %v3101_v46 = vpop.f32.mrf.mxu0 }
 0x5e8   :  { %v1003_v47 = vpack.c.bf16 %v3101_v46, %v3099_v43 }
 0x5e9   :  { %v2335_v48 = vpop.f32.mrf.mxu0 }
 0x5eb   :  { %v1134_v49 = vpop.f32.mrf.mxu0 }
 0x5ec   :  { %v1241_v50 = vsel %vm731_vm2, %v1134_v49, -inf }
 0x5ed   :  { %1242 = vmax.xlane.f32.xlu0 %v1241_v50  ;;  %v2346_v51 = vpop.f32.mrf.mxu0 }
 0x5ef   :  { %v1137_v52 = vpop.f32.mrf.mxu0 }
 0x5f0   :  { %v1244_v53 = vsel %vm731_vm2, %v1137_v52, -inf }
 0x5f1   :  { %1245 = vmax.xlane.f32.xlu0 %v1244_v53  ;;  %v2347_v54 = vpop.f32.mrf.mxu0 }
 0x5f3   :  { %v1228_v55 = vpop.f32.mrf.mxu0 }
 0x5f4   :  { %v1253_v57 = vsel %vm731_vm2, %v1228_v55, -inf }
 0x5f5   :  { %1251 = vmax.xlane.f32.xlu0 %v1250_v56  ;;  %1254 = vmax.xlane.f32.xlu1 %v1253_v57  ;;  %v2358_v58 = vpop.f32.mrf.mxu0 }
 0x5f7   :  { %v1231_v12 = vpop.f32.mrf.mxu0 }
 0x5f8   :  { %v1256_v59 = vsel %vm731_vm2, %v1231_v12, -inf }
 0x5f9   :  { %1257 = vmax.xlane.f32.xlu0 %v1256_v59  ;;  %v2359_v60 = vpop.f32.mrf.mxu0 }
 0x606   :  { %1038 = vrot.lane.b32.xlu1 %v2989_v9, %s2793_s5 }
 0x63e   :  { %v1237_v61 = vpop.xlane.xlu1 %1236 }
 0x63f   :  { %v1259_v62 = vsub.f32 %v1087_v33, %v1237_v61 }
 0x641   :  { %v1267_v63 = vmul.f32 1.442695, %v1259_v62 }
 0x642   :  { %v1240_v8 = vpop.xlane.xlu0 %1239 }
 0x643   :  { %2544 = vpow2.f32 %v1267_v63  ;;  %v1260_v0 = vsub.f32 %v1090_v13, %v1240_v8 }
 0x645   :  { %v1269_v1 = vmul.f32 1.442695, %v1260_v0 }
 0x647   :  { %2546 = vpow2.f32 %v1269_v1 }
 0x650   :  { %v2545_v2 = vpop.eup %2544 }
 0x651   :  { %v1283_v4 = vsel %vm731_vm2, %v2545_v2, 0.0 }
 0x652   :  { %1284 = vadd.xlane.f32.xlu1 %v1283_v4 }
 0x654   :  { %v2547_v10 = vpop.eup %2546 }
 0x655   :  { %v1286_v11 = vsel %vm731_vm2, %v2547_v10, 0.0 }
 0x656   :  { %1287 = vadd.xlane.f32.xlu0 %v1286_v11 }
 0x668   :  { %v1249_v15 = vpop.xlane.xlu1 %1248 }
 0x669   :  { %v1263_v18 = vsub.f32 %v1181_v39, %v1249_v15 }
 0x66b   :  { %v1275_v29 = vmul.f32 1.442695, %v1263_v18 }
 0x676   :  { %v1243_v21 = vpop.xlane.xlu0 %1242 }
 0x677   :  { %v1261_v27 = vsub.f32 %v1134_v49, %v1243_v21 }
 0x679   :  { %v1271_v32 = vmul.f32 1.442695, %v1261_v27 }
 0x67a   :  { %v1246_v33 = vpop.xlane.xlu0 %1245 }
 0x67b   :  { %2548 = vpow2.f32 %v1271_v32  ;;  %v1262_v34 = vsub.f32 %v1137_v52, %v1246_v33 }
 0x67c   :  { %2550 = vpow2.f32 %v1275_v29 }
 0x67d   :  { %v1273_v36 = vmul.f32 1.442695, %v1262_v34 }
 0x67e   :  { %v1255_v13 = vpop.xlane.xlu1 %1254  ;;  %v1252_v37 = vpop.xlane.xlu0 %1251 }
 0x67f   :  { %2552 = vpow2.f32 %v1273_v36  ;;  %v1265_v38 = vsub.f32 %v1228_v55, %v1255_v13  ;;  %v1264_v40 = vsub.f32 %v1184_v42, %v1252_v37 }
 0x681   :  { %v1279_v41 = vmul.f32 1.442695, %v1265_v38  ;;  %v1277_v44 = vmul.f32 1.442695, %v1264_v40 }
 0x682   :  { %v1039_v45 = vpop.permute.xlu1 %1038  ;;  %v1258_v48 = vpop.xlane.xlu0 %1257 }
 0x683   :  { %2554 = vpow2.f32 %v1279_v41  ;;  %v1266_v39 = vsub.f32 %v1231_v12, %v1258_v48  ;;  %2367 = vmatpush3.bf16.msra.mxu0 %v1039_v45  ;;  %v2460_v45 = vld [vmem:[#allocation11 + $0x18] sm:$0xff]   ;;  %v2461_v48 = vld [vmem:[#allocation11 + $0x10] sm:$0xff]  }
 0x684   :  { %2556 = vpow2.f32 %v1277_v44  ;;  %2378 = vmatprep.subr.bf16.mxu0 %v2791_v6 }
 0x685   :  { %v1281_v49 = vmul.f32 1.442695, %v1266_v39 }
 0x687   :  { %2558 = vpow2.f32 %v1281_v49 }
 0x688   :  { %v2549_v50 = vpop.eup %2548 }
 0x689   :  { %v1289_v51 = vsel %vm731_vm2, %v2549_v50, 0.0  ;;  %v2551_v52 = vpop.eup %2550 }
 0x68a   :  { %1290 = vadd.xlane.f32.xlu1 %v1289_v51  ;;  %v1295_v42 = vsel %vm731_vm2, %v2551_v52, 0.0 }
 0x68c   :  { %v2553_v53 = vpop.eup %2552 }
 0x68d   :  { %v1292_v54 = vsel %vm731_vm2, %v2553_v53, 0.0 }
 0x68e   :  { %1296 = vadd.xlane.f32.xlu1 %v1295_v42  ;;  %1293 = vadd.xlane.f32.xlu0 %v1292_v54  ;;  %v2463_v42 = vld [vmem:[#allocation11] sm:$0xff]  }
 0x690   :  { %v3118_v55 = vpop.eup %2554 }
 0x691   :  { %v2557_v56 = vpop.eup %2556  ;;  %v1301_v57 = vsel %vm731_vm2, %v3118_v55, 0.0 }
 0x692   :  { %1302 = vadd.xlane.f32.xlu1 %v1301_v57  ;;  %v1298_v58 = vsel %vm731_vm2, %v2557_v56, 0.0 }
 0x693   :  { %1299 = vadd.xlane.f32.xlu0 %v1298_v58 }
 0x694   :  { %v2559_v12 = vpop.eup %2558 }
 0x695   :  { %v1304_v59 = vsel %vm731_vm2, %v2559_v12, 0.0 }
 0x697   :  { %1305 = vadd.xlane.f32.xlu0 %v1304_v59 }
 0x6a3   :  { %1044 = vrot.lane.b32.xlu1 %v2989_v9, %s2794_s29 }
 0x6a7   :  { %1005 = vrot.lane.b32.xlu1 %v1001_v23, %s2794_s29 }
 0x6ab   :  { %1008 = vrot.lane.b32.xlu1 %v1002_v31, %s2781_s1 }
 0x6ad   :  { %1041 = vrot.lane.b32.xlu0 %v2989_v9, %s2781_s1 }
 0x6af   :  { %1011 = vrot.lane.b32.xlu1 %v1003_v47, %s2793_s5 }
 0x6db   :  { %v1285_v60 = vpop.xlane.xlu1 %1284 }
 0x6dc   :  { %2560 = vrcp.f32 %v1285_v60 }
 0x6df   :  { %v1288_v61 = vpop.xlane.xlu0 %1287 }
 0x6e0   :  { %2562 = vrcp.f32 %v1288_v61 }
 0x6e9   :  { %v2561_v62 = vpop.eup %2560 }
 0x6ea   :  { %v1315_v22 = vmul.f32 %v2561_v62, %v2545_v2 }
 0x6ed   :  { %v2563_v20 = vpop.eup %2562 }
 0x6ee   :  { %v1316_v23 = vmul.f32 %v2563_v20, %v2547_v10 }
 0x6f0   :  { %v1323_v63 = vpack.c.bf16 %v1316_v23, %v1315_v22 }
 0x6f2   :  { %2363 = vmatmul.mubr.msk.bf16.vlgmr.msra.gmra.mxu1 %vm731_vm2, %v1323_v63 }
 0x6f3   :  { %2374 = vmatprep.mubr.msk.bf16.mxu1 %vm2792_vm0, %v2791_v6 }
 0x713   :  { %v1291_v9 = vpop.xlane.xlu1 %1290 }
 0x714   :  { %2564 = vrcp.f32 %v1291_v9 }
 0x717   :  { %v1297_v24 = vpop.xlane.xlu1 %1296  ;;  %v1294_v30 = vpop.xlane.xlu0 %1293 }
 0x718   :  { %2566 = vrcp.f32 %v1294_v30 }
 0x719   :  { %2568 = vrcp.f32 %v1297_v24 }
 0x71b   :  { %v1303_v31 = vpop.xlane.xlu1 %1302 }
 0x71c   :  { %v1300_v43 = vpop.xlane.xlu0 %1299 }
 0x71d   :  { %2570 = vrcp.f32 %v1300_v43 }
 0x71e   :  { %2572 = vrcp.f32 %v1303_v31 }
 0x71f   :  { %v1045_v46 = vpop.permute.xlu1 %1044 }
 0x720   :  { %v1306_v47 = vpop.xlane.xlu0 %1305 }
 0x721   :  { %2574 = vrcp.f32 %v1306_v47  ;;  %v2565_v0 = vpop.eup %2564 }
 0x722   :  { %v1317_v10 = vmul.f32 %v2565_v0, %v2549_v50  ;;  %v2144_v0 = vld [vmem:[%s3239_s7] ss:$0 sm:$0xff] }
 0x723   :  { %v1006_v8 = vpop.permute.xlu1 %1005 }
 0x724   :  { %v1042_v1 = vpop.permute.xlu0 %1041  ;;  %v1015_v34 = vsel %vm542_vm1, %v1000_v17, %v1006_v8  ;;  %v2459_v17 = vld [vmem:[#allocation11 + $0x20] sm:$0xff]  }
 0x725   :  { %2373 = vmatpush3.bf16.msra.mxu1 %v1042_v1  ;;  %v2567_v2 = vpop.eup %2566 }
 0x726   :  { %v1318_v11 = vmul.f32 %v2567_v2, %v2553_v53  ;;  %v2569_v15 = vpop.eup %2568  ;;  %v2462_v53 = vld [vmem:[#allocation11 + $0x8] sm:$0xff]  }
 0x727   :  { %v1009_v4 = vpop.permute.xlu1 %1008  ;;  %v1319_v27 = vmul.f32 %v2569_v15, %v2551_v52 }
 0x728   :  { %v1324_v18 = vpack.c.bf16 %v1318_v11, %v1317_v10  ;;  %v1018_v37 = vsel %vm1016_vm3, %v1015_v34, %v1009_v4 }
 0x72a   :  { %v2571_v21 = vpop.eup %2570  ;;  %2369 = vmatmul.mubr.msk.bf16.vlgmr.msra.gmra.mxu0 %vm731_vm2, %v1324_v18 }
 0x72b   :  { %v1320_v29 = vmul.f32 %v2571_v21, %v2557_v56  ;;  %v2573_v32 = vpop.eup %2572  ;;  %2379 = vmatpush3.bf16.msra.mxu0 %v1045_v46  ;;  %v1012_v33 = vpop.permute.xlu1 %1011  ;;  %2380 = vmatprep.mubr.msk.bf16.mxu0 %vm2792_vm0, %v2791_v6  ;;  %v2456_v6 = vld [vmem:[#allocation11 + $0x38] sm:$0xff]  }
 0x72c   :  { %v1021_v38 = vsel %vm1019_vm4, %v1018_v37, %v1012_v33  ;;  %v1321_v40 = vmul.f32 %v2573_v32, %v3118_v55  ;;  %2384 = vmatprep.subr.bf16.mxu1 %v2456_v6  ;;  %v2466_v33 = vld [vmem:[#allocation13 + $0x74] ss:$8 sps:$4 sm:$0xff]  }
 0x72d   :  { %v1325_v36 = vpack.c.bf16 %v1320_v29, %v1319_v27  ;;  %1824 = vmatprep.subr.bf16.mxu0 %v2466_v33 }
 0x72e   :  { %v2575_v13 = vpop.eup %2574 }
 0x72f   :  { %2375 = vmatmul.mubr.msk.bf16.vlgmr.msra.gmra.mxu1 %vm731_vm2, %v1325_v36  ;;  %v1322_v41 = vmul.f32 %v2575_v13, %v2559_v12 }
 0x730   :  { %2400 = vmatprep.mubr.bf16.mxu1 %v1021_v38  ;;  %2385 = vmatpush3.bf16.msra.mxu1 %v2456_v6 }
 0x731   :  { %v1326_v44 = vpack.c.bf16 %v1322_v41, %v1321_v40  ;;  %2386 = vmatprep.subr.bf16.mxu1 %v2457_v14 }
 0x733   :  { %2381 = vmatmul.mubr.msk.bf16.vlgmr.msra.gmra.mxu0 %vm731_vm2, %v1326_v44 }
 0x734   :  { %1856 = vmatprep.mubr.bf16.mxu0 %v2790_v35  ;;  %2387 = vmatpush3.bf16.msra.mxu1 %v2457_v14 }
 0x735   :  { %2388 = vmatprep.subr.bf16.mxu1 %v2458_v16 }
 0x738   :  { %2389 = vmatpush3.bf16.msra.mxu1 %v2458_v16 }
 0x739   :  { %2390 = vmatprep.subr.bf16.mxu1 %v2459_v17 }
 0x73c   :  { %2391 = vmatpush3.bf16.msra.mxu1 %v2459_v17 }
 0x73d   :  { %2392 = vmatprep.subr.bf16.mxu1 %v2460_v45 }
 0x740   :  { %2393 = vmatpush3.bf16.msra.mxu1 %v2460_v45 }
 0x741   :  { %2394 = vmatprep.subr.bf16.mxu1 %v2461_v48 }
 0x744   :  { %2395 = vmatpush3.bf16.msra.mxu1 %v2461_v48  ;;  %v2469_v48 = vld [vmem:[#allocation13 + $0x64] ss:$8 sps:$4 sm:$0xff]  }
 0x745   :  { %2396 = vmatprep.subr.bf16.mxu1 %v2462_v53 }
 0x748   :  { %2397 = vmatpush3.bf16.msra.mxu1 %v2462_v53  ;;  %v2476_v53 = vld [vmem:[#allocation13 + $0x30] ss:$8 sps:$4 sm:$0xff]  }
 0x749   :  { %2398 = vmatprep.subr.bf16.mxu1 %v2463_v42 }
 0x74c   :  { %2399 = vmatpush3.bf16.msra.mxu1 %v2463_v42  ;;  %v2478_v42 = vld [vmem:[#allocation13 + $0x34] ss:$8 sps:$4 sm:$0xff]  }
 0x7b2   :  { %v1364_v39 = vpop.f32.mrf.mxu1 }
 0x7b4   :  { %v2364_v49 = vpop.f32.mrf.mxu1 }
 0x7b5   :  { %v2472_v49 = vld [vmem:[#allocation13 + $0x54] ss:$8 sps:$4 sm:$0xff]  }
 0x7b6   :  { %v1367_v50 = vpop.f32.mrf.mxu1 }
 0x7b7   :  { %v1503_v51 = vpack.c.bf16 %v1367_v50, %v1364_v39  ;;  %v2467_v39 = vld [vmem:[#allocation13 + $0x60] ss:$8 sps:$4 sm:$0xff]   ;;  %v2470_v50 = vld [vmem:[#allocation13 + $0x50] ss:$8 sps:$4 sm:$0xff]  }
 0x7b8   :  { %v2365_v52 = vpop.f32.mrf.mxu1 }
 0x7b9   :  { %v2473_v52 = vld [vmem:[#allocation13 + $0x40] ss:$8 sps:$4 sm:$0xff]  }
 0x7ea   :  { %v1408_v54 = vpop.f32.mrf.mxu0 }
 0x7ec   :  { %v2370_v55 = vpop.f32.mrf.mxu0 }
 0x7ed   :  { %v2479_v55 = vld [vmem:[#allocation13 + $0x20] ss:$8 sps:$4 sm:$0xff]  }
 0x7ee   :  { %v1411_v56 = vpop.f32.mrf.mxu0 }
 0x7ef   :  { %v1452_v57 = vpop.f32.mrf.mxu1  ;;  %v1504_v58 = vpack.c.bf16 %v1411_v56, %v1408_v54  ;;  %v2481_v54 = vld [vmem:[#allocation13 + $0x24] ss:$8 sps:$4 sm:$0xff]   ;;  %v2484_v56 = vld [vmem:[#allocation13 + $0x14] ss:$8 sps:$4 sm:$0xff]  }
 0x7f0   :  { %v2371_v12 = vpop.f32.mrf.mxu0 }
 0x7f1   :  { %v2376_v59 = vpop.f32.mrf.mxu1  ;;  %1508 = vrot.lane.b32.xlu0 %v1504_v58, %s2794_s29  ;;  %v2487_v58 = vld [vmem:[#allocation13 + $0x4] ss:$8 sps:$4 sm:$0xff]   ;;  %v2485_v12 = vld [vmem:[#allocation13] ss:$8 sps:$4 sm:$0xff]  }
 0x7f2   :  { %v2488_v59 = vld [vmem:[#allocation14 + $0x78] sm:$0xff]  }
 0x7f3   :  { %v1455_v60 = vpop.f32.mrf.mxu1  ;;  %v1496_v61 = vpop.f32.mrf.mxu0  ;;  %2240 = vmatprep.subr.bf16.mxu1 %v2488_v59 }
 0x7f4   :  { %v1505_v62 = vpack.c.bf16 %v1455_v60, %v1452_v57  ;;  %v2482_v57 = vld [vmem:[#allocation13 + $0x10] ss:$8 sps:$4 sm:$0xff]  }
 0x7f5   :  { %v2377_v20 = vpop.f32.mrf.mxu1  ;;  %v2382_v22 = vpop.f32.mrf.mxu0  ;;  %v2489_v60 = vld [vmem:[#allocation14 + $0x38] sm:$0xff]  }
 0x7f6   :  { %1511 = vrot.lane.b32.xlu0 %v1505_v62, %s2781_s1  ;;  %v2491_v62 = vld [vmem:[#allocation14 + $0x30] sm:$0xff]   ;;  %v2492_v20 = vld [vmem:[#allocation14 + $0x68] sm:$0xff]  }
 0x7f7   :  { %v1499_v23 = vpop.f32.mrf.mxu0  ;;  %v2493_v22 = vld [vmem:[#allocation14 + $0x28] sm:$0xff]  }
 0x7f8   :  { %v1506_v63 = vpack.c.bf16 %v1499_v23, %v1496_v61  ;;  %v2490_v61 = vld [vmem:[#allocation14 + $0x70] sm:$0xff]   ;;  %v2494_v23 = vld [vmem:[#allocation14 + $0x60] sm:$0xff]  }
 0x7f9   :  { %v2383_v9 = vpop.f32.mrf.mxu0 }
 0x7fa   :  { %1514 = vrot.lane.b32.xlu1 %v1506_v63, %s2793_s5  ;;  %v2495_v63 = vld [vmem:[#allocation14 + $0x20] sm:$0xff]   ;;  %v2496_v9 = vld [vmem:[#allocation14 + $0x58] sm:$0xff]  }
 0x863   :  { %v1509_v24 = vpop.permute.xlu0 %1508 }
 0x864   :  { %v1518_v31 = vsel %vm542_vm1, %v1503_v51, %v1509_v24  ;;  %v2475_v51 = vld [vmem:[#allocation13 + $0x44] ss:$8 sps:$4 sm:$0xff]   ;;  %v2497_v24 = vld [vmem:[#allocation14 + $0x18] sm:$0xff]  }
 0x868   :  { %v1512_v30 = vpop.permute.xlu0 %1511 }
 0x869   :  { %v1520_v43 = vsel %vm1016_vm3, %v1518_v31, %v1512_v30 }
 0x86c   :  { %v1515_v46 = vpop.permute.xlu1 %1514 }
 0x86d   :  { %v1522_v47 = vsel %vm1019_vm4, %v1520_v43, %v1515_v46 }
 0x86e   :  { %2401 = vmatmul.mubr.bf16.vlgmr.msra.gmra.mxu1 %v1522_v47 }
 0x86f   :  { %2241 = vmatpush3.bf16.msra.mxu1 %v2489_v60 }
 0x870   :  { %2242 = vmatprep.subr.bf16.mxu1 %v2490_v61 }
 0x873   :  { %2243 = vmatpush3.bf16.msra.mxu1 %v2491_v62 }
 0x874   :  { %2244 = vmatprep.subr.bf16.mxu1 %v2492_v20 }
 0x877   :  { %2245 = vmatpush3.bf16.msra.mxu1 %v2493_v22 }
 0x878   :  { %2246 = vmatprep.subr.bf16.mxu1 %v2494_v23 }
 0x87b   :  { %2247 = vmatpush3.bf16.msra.mxu1 %v2495_v63 }
 0x87c   :  { %2248 = vmatprep.subr.bf16.mxu1 %v2496_v9 }
 0x87f   :  { %2249 = vmatpush3.bf16.msra.mxu1 %v2497_v24 }
 0x92e   :  { %v2402_v8 = vpop.f32.mrf.mxu1 }
 0x92f   :  { %v1638_v10 = vadd.f32 %v2402_v8, %v2144_v0 }
 0x930   :  { %v1629_v1 = vpop.f32.mrf.mxu1 }
 0x931   :  { %v1630_v2 = vadd.f32 %v2144_v0, %v1629_v1  ;;  %v3170_v21 = vadd.f32 %v1638_v10, %v2916_v7 }
 0x932   :  { %v2403_v4 = vpop.f32.mrf.mxu1 }
 0x933   :  { %v3166_v11 = vadd.f32 %v1630_v2, %v2910_v3  ;;  %v1641_v27 = vadd.f32 %v2403_v4, %v2144_v0  ;;  %v2464_v3 = vld [vmem:[#allocation13 + $0x70] ss:$8 sps:$4 sm:$0xff]  }
 0x934   :  { %v1632_v15 = vpop.f32.mrf.mxu1  ;;  %1825 = vmatpush1.bf16.msra.mxu0 %v2464_v3  ;;  %v2153_v3 = vld [vmem:[%s3240_s8] ss:$0 sm:$0xff] }
 0x935   :  { %v1633_v18 = vadd.f32 %v2144_v0, %v1632_v15  ;;  %1650 = vadd.xlane.f32.xlu0 %v3166_v11  ;;  %v3178_v32 = vadd.f32 %v1641_v27, %v2929_v19  ;;  %1826 = vmatprep.subr.bf16.mxu0 %v2469_v48 }
 0x937   :  { %v3173_v29 = vadd.f32 %v1633_v18, %v2913_v5 }
 0x938   :  { %1827 = vmatpush1.bf16.msra.mxu0 %v2467_v39 }
 0x939   :  { %1652 = vadd.xlane.f32.xlu1 %v3173_v29  ;;  %1654 = vadd.xlane.f32.xlu0 %v3170_v21 }
 0x93a   :  { %1828 = vmatprep.subr.bf16.mxu0 %v2472_v49  ;;  %v2498_v49 = vld [vmem:[#allocation14 + $0x50] sm:$0xff]  }
 0x93b   :  { %2250 = vmatprep.subr.bf16.mxu1 %v2498_v49 }
 0x93c   :  { %1829 = vmatpush1.bf16.msra.mxu0 %v2470_v50  ;;  %v2499_v50 = vld [vmem:[#allocation14 + $0x10] sm:$0xff]  }
 0x93d   :  { %1656 = vadd.xlane.f32.xlu0 %v3178_v32  ;;  %1830 = vmatprep.subr.bf16.mxu0 %v2475_v51  ;;  %v2500_v51 = vld [vmem:[#allocation14 + $0x48] sm:$0xff]  }
 0x93e   :  { %2251 = vmatpush3.bf16.msra.mxu1 %v2499_v50 }
 0x93f   :  { %2252 = vmatprep.subr.bf16.mxu1 %v2500_v51 }
 0x940   :  { %1831 = vmatpush1.bf16.msra.mxu0 %v2473_v52  ;;  %v2501_v52 = vld [vmem:[#allocation14 + $0x8] sm:$0xff]  }
 0x941   :  { %1832 = vmatprep.subr.bf16.mxu0 %v2478_v42 }
 0x942   :  { %2253 = vmatpush3.bf16.msra.mxu1 %v2501_v52 }
 0x944   :  { %1833 = vmatpush1.bf16.msra.mxu0 %v2476_v53 }
 0x945   :  { %1834 = vmatprep.subr.bf16.mxu0 %v2481_v54 }
 0x948   :  { %1835 = vmatpush1.bf16.msra.mxu0 %v2479_v55 }
 0x949   :  { %1836 = vmatprep.subr.bf16.mxu0 %v2484_v56 }
 0x94c   :  { %1837 = vmatpush1.bf16.msra.mxu0 %v2482_v57 }
 0x94d   :  { %1838 = vmatprep.subr.bf16.mxu0 %v2487_v58 }
 0x950   :  { %1839 = vmatpush1.bf16.msra.mxu0 %v2485_v12 }
 0x9be   :  { %v1651_v34 = vpop.xlane.xlu0 %1650 }
 0x9bf   :  { %v1658_v7 = vmul.f32 0.0078125, %v1651_v34 }
 0x9c1   :  { %v3182_v36 = vsub.f32 %v3166_v11, %v1658_v7 }
 0x9c2   :  { %v1653_v5 = vpop.xlane.xlu1 %1652  ;;  %v1655_v13 = vpop.xlane.xlu0 %1654 }
 0x9c3   :  { %v1659_v37 = vmul.f32 0.0078125, %v1653_v5  ;;  %v1660_v38 = vmul.f32 0.0078125, %v1655_v13  ;;  %v1666_v40 = vmul.f32 %v3182_v36, %v3182_v36  ;;  %v2154_v13 = vld [vmem:[%s3241_s9] ss:$0 sm:$0xff] }
 0x9c5   :  { %v3187_v19 = vsub.f32 %v3173_v29, %v1659_v37  ;;  %v3190_v41 = vsub.f32 %v3170_v21, %v1660_v38  ;;  %1670 = vadd.xlane.f32.xlu0 %v1666_v40 }
 0x9c6   :  { %v1657_v44 = vpop.xlane.xlu0 %1656 }
 0x9c7   :  { %v1661_v6 = vmul.f32 0.0078125, %v1657_v44  ;;  %v1667_v14 = vmul.f32 %v3187_v19, %v3187_v19  ;;  %v1668_v16 = vmul.f32 %v3190_v41, %v3190_v41 }
 0x9c9   :  { %v3197_v17 = vsub.f32 %v3178_v32, %v1661_v6  ;;  %1672 = vadd.xlane.f32.xlu1 %v1667_v14  ;;  %1674 = vadd.xlane.f32.xlu0 %v1668_v16 }
 0x9cb   :  { %v1669_v45 = vmul.f32 %v3197_v17, %v3197_v17 }
 0x9cd   :  { %1676 = vadd.xlane.f32.xlu1 %v1669_v45 }
 0xa4e   :  { %v1671_v30 = vpop.xlane.xlu0 %1670 }
 0xa4f   :  { %v1678_v31 = vmul.f32 0.0078125, %v1671_v30 }
 0xa51   :  { %v1682_v43 = vadd.f32 1e-05, %v1678_v31 }
 0xa52   :  { %v1673_v46 = vpop.xlane.xlu1 %1672  ;;  %v1675_v47 = vpop.xlane.xlu0 %1674 }
 0xa53   :  { %2576 = vrsqrt.f32 %v1682_v43  ;;  %v1679_v8 = vmul.f32 0.0078125, %v1673_v46  ;;  %v1680_v0 = vmul.f32 0.0078125, %v1675_v47 }
 0xa55   :  { %v1683_v1 = vadd.f32 1e-05, %v1679_v8  ;;  %v1684_v2 = vadd.f32 1e-05, %v1680_v0 }
 0xa56   :  { %v1677_v4 = vpop.xlane.xlu1 %1676 }
 0xa57   :  { %2578 = vrsqrt.f32 %v1683_v1  ;;  %v1681_v10 = vmul.f32 0.0078125, %v1677_v4 }
 0xa58   :  { %2580 = vrsqrt.f32 %v1684_v2 }
 0xa59   :  { %v1685_v15 = vadd.f32 1e-05, %v1681_v10  ;;  %v2171_v10 = vld [vmem:[%s3245_s13] ss:$0 sm:$0xff]  ;;  %s2795_s13 = smov [#allocation16]  }
 0xa5a   :  { %s2086_s15 = sshll.u32 %s2795_s13, 4  ;;  %s2087_s15 = int_to_ptr.vmem [resolvable:$true] %s2086_s15 }
 0xa5b   :  { %2582 = vrsqrt.f32 %v1685_v15  ;;  %s2744_s3 = scalar_lea.vmem %s2087_s15, 512  ;;  %p2749_p13 = scmp.lt.s32.totalorder %s2087_s15, %s2087_s15 }
 0xa5c   :  { %p2745_p12 = scmp.ne.s32.totalorder %s2087_s15, %s2744_s3  ;;  %p2750_p0 = scmp.lt.s32.totalorder %s2744_s3, %s2744_s3 }
 0xa5e   :  { %p2751_p1 = por %p2750_p0, %p2749_p13 }
 0xa60   :  { %v2577_v18 = vpop.eup %2576  ;;  %p2752_p2 = pnand %p2751_p1, %p2745_p12 }
 0xa61   :  { %v1690_v27 = vmul.f32 %v2577_v18, %v3182_v36 }
 0xa63   :  { %v1700_v7 = vmul.f32 %v2153_v3, %v1690_v27 }
 0xa64   :  { %v2579_v33 = vpop.eup %2578 }
 0xa65   :  { %v1691_v34 = vmul.f32 %v2579_v33, %v3187_v19  ;;  %v2581_v5 = vpop.eup %2580  ;;  %v1710_v40 = vadd.f32 %v2154_v13, %v1700_v7 }
 0xa66   :  { %v1692_v6 = vmul.f32 %v2581_v5, %v3190_v41  ;;  %v2502_v41 = vld [vmem:[#allocation14 + $0x40] sm:$0xff]  }
 0xa67   :  { %v1701_v37 = vmul.f32 %v2153_v3, %v1691_v34  ;;  %2254 = vmatprep.subr.bf16.mxu1 %v2502_v41 }
 0xa68   :  { %v2583_v38 = vpop.eup %2582  ;;  %v1702_v45 = vmul.f32 %v2153_v3, %v1692_v6 }
 0xa69   :  { %v1711_v44 = vadd.f32 %v2154_v13, %v1701_v37  ;;  %v1693_v36 = vmul.f32 %v2583_v38, %v3197_v17  ;;  %v2503_v17 = vld [vmem:[#allocation14] sm:$0xff]  }
 0xa6a   :  { %v1712_v48 = vadd.f32 %v2154_v13, %v1702_v45  ;;  %2255 = vmatpush3.bf16.msra.mxu1 %v2503_v17 }
 0xa6b   :  { %v1714_v14 = vpack.c.bf16 %v1711_v44, %v1710_v40  ;;  %v1703_v16 = vmul.f32 %v2153_v3, %v1693_v36 }
 0xa6d   :  { %1857 = vmatmul.mubr.bf16.vlgmr.msra.gmra.mxu0 %v1714_v14  ;;  %v1713_v19 = vadd.f32 %v2154_v13, %v1703_v16 }
 0xa6e   :  { %1866 = vmatprep.mubr.bf16.mxu0 %v2790_v35  ;;  %v1732_v35 = vld [vmem:[%s3243_s11] sm:$0x3] }
 0xa6f   :  { %v1715_v39 = vpack.c.bf16 %v1713_v19, %v1712_v48  ;;  %v1741_v42 = vrot.slane %v1732_v35, %v273_v28  ;;  %v1737_v54 = vrot.slane %v1732_v35, %v269_v26 }
 0xa75   :  { %1867 = vmatmul.mubr.bf16.gmra.mxu0 %v1715_v39 }
 0xb2d   :  { %v1858_v53 = vpop.f32.mrf.mxu0 }
 0xb2e   :  { %v1859_v12 = vadd.f32 %v1858_v53, %v1737_v54 }
 0xb2f   :  { %v1860_v55 = vpop.f32.mrf.mxu0 }
 0xb30   :  { %v1861_v57 = vadd.f32 %v1860_v55, %v1741_v42  ;;  %v1877_v23 = vmax.f32 %v1859_v12, 0.0 }
 0xb31   :  { %v1862_v56 = vpop.f32.mrf.mxu0 }
 0xb32   :  { %v1863_v58 = vadd.f32 %v1862_v56, %v1737_v54  ;;  %v1878_v20 = vmax.f32 %v1861_v57, 0.0 }
 0xb33   :  { %v1864_v59 = vpop.f32.mrf.mxu0 }
 0xb34   :  { %v1865_v60 = vadd.f32 %v1864_v59, %v1741_v42  ;;  %v1879_v61 = vmax.f32 %v1863_v58, 0.0 }
 0xb35   :  { %v1868_v62 = vpop.f32.mrf.mxu0 }
 0xb36   :  { %v1880_v22 = vmax.f32 %v1865_v60, 0.0  ;;  %v1885_v24 = vpack.c.bf16 %v1879_v61, %v1877_v23  ;;  %v1869_v25 = vadd.f32 %v1868_v62, %v1737_v54 }
 0xb37   :  { %v1870_v63 = vpop.f32.mrf.mxu0 }
 0xb38   :  { %v1886_v9 = vpack.c.bf16 %v1880_v22, %v1878_v20  ;;  %v1871_v28 = vadd.f32 %v1870_v63, %v1741_v42  ;;  %v1881_v0 = vmax.f32 %v1869_v25, 0.0 }
 0xb39   :  { %v1872_v30 = vpop.f32.mrf.mxu0 }
 0xb3a   :  { %v1873_v31 = vadd.f32 %v1872_v30, %v1737_v54  ;;  %2056 = vmatprep.mubr.bf16.mxu1 %v1886_v9  ;;  %v1882_v47 = vmax.f32 %v1871_v28, 0.0 }
 0xb3b   :  { %v1874_v26 = vpop.f32.mrf.mxu0  ;;  %2057 = vmatmul.mubr.bf16.vlgmr.msra.gmra.mxu1 %v1885_v24 }
 0xb3c   :  { %v1875_v43 = vadd.f32 %v1874_v26, %v1741_v42  ;;  %v1883_v46 = vmax.f32 %v1873_v31, 0.0 }
 0xb3e   :  { %v1884_v8 = vmax.f32 %v1875_v43, 0.0  ;;  %v1887_v2 = vpack.c.bf16 %v1883_v46, %v1881_v0 }
 0xb40   :  { %v1888_v1 = vpack.c.bf16 %v1884_v8, %v1882_v47 }
 0xb42   :  { %2064 = vmatprep.mubr.bf16.mxu1 %v1888_v1 }
 0xb43   :  { %2065 = vmatmul.mubr.bf16.gmra.mxu1 %v1887_v2 }
 0xbfb   :  { %v2256_v4 = vpop.f32.mrf.mxu1 }
 0xbfd   :  { %v2257_v15 = vpop.f32.mrf.mxu1 }
 0xbfe   :  { %v2258_v18 = vadd.f32 %v2257_v15, %v2256_v4 }
 0xbff   :  { %v2259_v27 = vpop.f32.mrf.mxu1 }
 0xc00   :  { %v2059_v3 = vadd.f32 %v2258_v18, %v2171_v10 }
 0xc01   :  { %v2260_v33 = vpop.f32.mrf.mxu1 }
 0xc02   :  { %v2073_v34 = vadd.f32 %v2059_v3, %v3166_v11  ;;  %v2261_v7 = vadd.f32 %v2260_v33, %v2259_v27 }
 0xc03   :  { %v2262_v5 = vpop.f32.mrf.mxu1 }
 0xc04   :  { %2077 = vst [vmem:[#allocation16] sm:$0xff] %v2073_v34  ;;  %v2062_v13 = vadd.f32 %v2261_v7, %v2171_v10 }
 0xc05   :  { %v2263_v37 = vpop.f32.mrf.mxu1 }
 0xc06   :  { %v2074_v38 = vadd.f32 %v2062_v13, %v3173_v29  ;;  %v2264_v40 = vadd.f32 %v2263_v37, %v2262_v5 }
 0xc07   :  { %v2265_v44 = vpop.f32.mrf.mxu1 }
 0xc08   :  { %2078 = vst [vmem:[#allocation16 + $0x8] sm:$0xff] %v2074_v38  ;;  %v2067_v6 = vadd.f32 %v2264_v40, %v2171_v10 }
 0xc09   :  { %v2266_v36 = vpop.f32.mrf.mxu1 }
 0xc0a   :  { %v2075_v14 = vadd.f32 %v2067_v6, %v3170_v21  ;;  %v2267_v16 = vadd.f32 %v2266_v36, %v2265_v44 }
 0xc0c   :  { %2079 = vst [vmem:[#allocation16 + $0x10] sm:$0xff] %v2075_v14  ;;  %v2070_v45 = vadd.f32 %v2267_v16, %v2171_v10 }
 0xc0e   :  { %v2076_v11 = vadd.f32 %v2070_v45, %v3178_v32 }
 0xc10   :  { %2080 = vst [vmem:[#allocation16 + $0x18] sm:$0xff] %v2076_v11 }
 0xc11   :  { %2755 = shalt.err (!%p2752_p2)
}
 0xc12   :  { %2092 = dma.vmem_to_hbm [thread:$0]  %s2087_s15, 512, %s3246_s14, [#allocation4], %s2778_s18, %s2778_s18, %s2779_s19  }
 0xc13   :  { %2774 = dma.done.wait [#allocation4], 512  }
 0xc14   :  { %2775 = vsyncadd [#allocation4], 4294966784 }
 0xc15   :  { %2096 = vsyncpa [#allocation3], 1 }
 0xc16   :  { %2097 = vsyncpa [#allocation6], 1 }
 0xc17   :  { %2098 = vsyncpa [#allocation9], 1 }
 0xc18   :  { %2099 = vsyncpa [#allocation12], 1 }
 0xc19   :  { %2100 = vsyncpa [#allocation15], 1 }
 0xc1a   :  { %2101 = vsyncpa [#allocation4], 1 }

// kernel: tpu_custom_call.1
= control target key start
LH: loop header
LB: loop body
LE: loop exit
PB: predicated region body
PF: predicated region fallthrough
CT: control target
= control target key end

     0   :  { %19 = vsyncpa [#allocation3], 0  ;;  %s3232_s0 = inlined_call_operand.hbm [shape: f32[2,16,128], index: 0, kind: input, shape index: {}]   ;;  %s3233_s1 = inlined_call_operand.hbm [shape: f32[1,16,128], index: 1, kind: input, shape index: {}]   ;;  %s3234_s2 = inlined_call_operand.hbm [shape: f32[1,128], index: 2, kind: input, shape index: {}]   ;;  %s3235_s3 = inlined_call_operand.hbm [shape: f32[1,128], index: 3, kind: input, shape index: {}]   ;;  %s3236_s4 = inlined_call_operand.hbm [shape: bf16[128,384], index: 4, kind: input, shape index: {}]   ;;  %s3237_s5 = inlined_call_operand.vmem [shape: f32[1,384], index: 5, kind: input, shape index: {}]   ;;  %s3238_s6 = inlined_call_operand.hbm [shape: bf16[128,128], index: 6, kind: input, shape index: {}]   ;;  %s3239_s7 = inlined_call_operand.vmem [shape: f32[1,128], index: 7, kind: input, shape index: {}]   ;;  %s3240_s8 = inlined_call_operand.vmem [shape: f32[1,128], index: 8, kind: input, shape index: {}]   ;;  %s3241_s9 = inlined_call_operand.vmem [shape: f32[1,128], index: 9, kind: input, shape index: {}]   ;;  %s3242_s10 = inlined_call_operand.hbm [shape: bf16[1,128,256], index: 10, kind: input, shape index: {}]   ;;  %s3243_s11 = inlined_call_operand.vmem [shape: f32[1,1,256], index: 11, kind: input, shape index: {}]   ;;  %s3244_s12 = inlined_call_operand.hbm [shape: bf16[1,256,128], index: 12, kind: input, shape index: {}]   ;;  %s3245_s13 = inlined_call_operand.vmem [shape: f32[1,128], index: 13, kind: input, shape index: {}]   ;;  %s3246_s14 = inlined_call_operand.hbm [shape: f32[2,16,128], index: 14, kind: output, shape index: {}]  }
   0x1   :  { %20 = vsyncpa [#allocation6], 0 }
   0x2   :  { %21 = vsyncpa [#allocation9], 0 }
   0x3   :  { %22 = vsyncpa [#allocation12], 0 }
   0x4   :  { %23 = vsyncpa [#allocation15], 0 }
   0x5   :  { %24 = vsyncpa [#allocation4], 0  ;;  %s2776_s29 = smov [#allocation5]   ;;  %s2777_s15 = smov [#allocation8]  }
   0x6   :  { %s42_s30 = sshll.u32 %s2776_s29, 4  ;;  %s65_s16 = sshll.u32 %s2777_s15, 4  ;;  %s43_s30 = int_to_ptr.vmem [resolvable:$true] %s42_s30  ;;  %s66_s16 = int_to_ptr.vmem [resolvable:$true] %s65_s16 }
   0x7   :  { %s2592_s17 = scalar_lea.vmem %s43_s30, 256  ;;  %p2597_p1 = scmp.lt.s32.totalorder %s43_s30, %s43_s30 }
   0x8   :  { %p2593_p0 = scmp.ne.s32.totalorder %s43_s30, %s2592_s17  ;;  %p2598_p2 = scmp.lt.s32.totalorder %s2592_s17, %s2592_s17 }
   0xa   :  { %p2599_p3 = por %p2598_p2, %p2597_p1 }
   0xc   :  { %p2600_p4 = pnand %p2599_p3, %p2593_p0 }
   0xe   :  { %2603 = shalt.err (!%p2600_p4)
}
   0xf   :  { %s2778_s18 = smov 128   ;;  %s2779_s19 = smov 8  }
  0x10   :  { %48 = dma.hbm_to_vmem [thread:$0]  %s3233_s1, 256, %s43_s30, [#allocation6], %s2778_s18, %s2778_s18, %s2779_s19  }
  0x11   :  { %s2612_s22 = scalar_lea.vmem %s66_s16, 16  ;;  %s2616_s23 = scalar_lea.vmem %s66_s16, 32 }
  0x12   :  { %p2613_p5 = scmp.ne.s32.totalorder %s66_s16, %s2612_s22  ;;  %p2617_p6 = scmp.lt.s32.totalorder %s66_s16, %s66_s16 }
  0x13   :  { %p2618_p7 = scmp.lt.s32.totalorder %s2616_s23, %s2612_s22 }
  0x15   :  { %p2619_p8 = por %p2618_p7, %p2617_p6 }
  0x17   :  { %p2620_p9 = pnand %p2619_p8, %p2613_p5 }
  0x19   :  { %2623 = shalt.err (!%p2620_p9)
}
  0x1a   :  { %68 = dma.hbm_to_vmem [thread:$0]  %s3235_s3, 16, %s66_s16, [#allocation9]  }
  0x1b   :  { %s2780_s26 = smov [#allocation11]  }
  0x1c   :  { %s88_s27 = sshll.u32 %s2780_s26, 4  ;;  %s89_s27 = int_to_ptr.vmem [resolvable:$true] %s88_s27 }
  0x1d   :  { %s2632_s28 = scalar_lea.vmem %s89_s27, 1024  ;;  %p2637_p11 = scmp.lt.s32.totalorder %s89_s27, %s89_s27 }
  0x1e   :  { %p2633_p10 = scmp.ne.s32.totalorder %s89_s27, %s2632_s28  ;;  %p2638_p12 = scmp.lt.s32.totalorder %s2632_s28, %s2632_s28 }
  0x20   :  { %p2639_p13 = por %p2638_p12, %p2637_p11 }
  0x22   :  { %p2640_p0 = pnand %p2639_p13, %p2633_p10 }
  0x24   :  { %2643 = shalt.err (!%p2640_p0)
}
  0x25   :  { %s2781_s1 = smov 64   ;;  %s2782_s29 = smov 4  }
  0x26   :  { %94 = dma.hbm_to_vmem [thread:$0]  %s3238_s6, 1024, %s89_s27, [#allocation12], %s2781_s1, %s2781_s1, %s2782_s29  }
  0x27   :  { %s2783_s3 = smov [#allocation2]   ;;  %s2784_s17 = smov [#allocation7]  }
  0x28   :  { %s30_s16 = sshll.u32 %s2783_s3, 4  ;;  %s55_s20 = sshll.u32 %s2784_s17, 4  ;;  %s31_s16 = int_to_ptr.vmem [resolvable:$true] %s30_s16  ;;  %s56_s20 = int_to_ptr.vmem [resolvable:$true] %s55_s20 }
  0x29   :  { %s2652_s21 = scalar_lea.vmem %s31_s16, 512  ;;  %p2657_p2 = scmp.lt.s32.totalorder %s31_s16, %s31_s16 }
  0x2a   :  { %p2653_p1 = scmp.ne.s32.totalorder %s31_s16, %s2652_s21  ;;  %p2658_p3 = scmp.lt.s32.totalorder %s2652_s21, %s2652_s21 }
  0x2c   :  { %p2659_p4 = por %p2658_p3, %p2657_p2 }
  0x2e   :  { %p2660_p5 = pnand %p2659_p4, %p2653_p1 }
  0x30   :  { %2663 = shalt.err (!%p2660_p5)
}
  0x31   :  { %36 = dma.hbm_to_vmem [thread:$0]  %s3232_s0, 512, %s31_s16, [#allocation3], %s2778_s18, %s2778_s18, %s2779_s19  }
  0x32   :  { %s2672_s6 = scalar_lea.vmem %s56_s20, 16  ;;  %s2676_s24 = scalar_lea.vmem %s56_s20, 32 }
  0x33   :  { %p2673_p6 = scmp.ne.s32.totalorder %s56_s20, %s2672_s6  ;;  %p2677_p7 = scmp.lt.s32.totalorder %s56_s20, %s56_s20 }
  0x34   :  { %p2678_p8 = scmp.lt.s32.totalorder %s2676_s24, %s2672_s6 }
  0x36   :  { %p2679_p9 = por %p2678_p8, %p2677_p7 }
  0x38   :  { %p2680_p10 = pnand %p2679_p9, %p2673_p6 }
  0x3a   :  { %2683 = shalt.err (!%p2680_p10)
}
  0x3b   :  { %58 = dma.hbm_to_vmem [thread:$0]  %s3234_s2, 16, %s56_s20, [#allocation6]  }
  0x3c   :  { %s2785_s27 = smov [#allocation10]  }
  0x3d   :  { %s74_s28 = sshll.u32 %s2785_s27, 4  ;;  %s75_s28 = int_to_ptr.vmem [resolvable:$true] %s74_s28 }
  0x3e   :  { %s2692_s30 = scalar_lea.vmem %s75_s28, 3072  ;;  %p2697_p12 = scmp.lt.s32.totalorder %s75_s28, %s75_s28 }
  0x3f   :  { %p2693_p11 = scmp.ne.s32.totalorder %s75_s28, %s2692_s30  ;;  %p2698_p13 = scmp.lt.s32.totalorder %s2692_s30, %s2692_s30 }
  0x41   :  { %p2699_p0 = por %p2698_p13, %p2697_p12 }
  0x43   :  { %p2700_p1 = pnand %p2699_p0, %p2693_p11 }
  0x45   :  { %2703 = shalt.err (!%p2700_p1)
}
  0x46   :  { %s2786_s0 = smov 192   ;;  %s2787_s15 = smov 12  }
  0x47   :  { %80 = dma.hbm_to_vmem [thread:$0]  %s3236_s4, 3072, %s75_s28, [#allocation9], %s2786_s0, %s2786_s0, %s2787_s15  }
  0x48   :  { %s2788_s17 = smov [#allocation13]   ;;  %s2789_s22 = smov [#allocation14]  }
  0x49   :  { %s106_s21 = sshll.u32 %s2788_s17, 4  ;;  %s120_s2 = sshll.u32 %s2789_s22, 4  ;;  %s107_s21 = int_to_ptr.vmem [resolvable:$true] %s106_s21  ;;  %s121_s2 = int_to_ptr.vmem [resolvable:$true] %s120_s2 }
  0x4a   :  { %s2712_s20 = scalar_lea.vmem %s107_s21, 2048  ;;  %p2717_p3 = scmp.lt.s32.totalorder %s107_s21, %s107_s21 }
  0x4b   :  { %p2713_p2 = scmp.ne.s32.totalorder %s107_s21, %s2712_s20  ;;  %p2718_p4 = scmp.lt.s32.totalorder %s2712_s20, %s2712_s20 }
  0x4d   :  { %p2719_p5 = por %p2718_p4, %p2717_p3 }
  0x4f   :  { %p2720_p6 = pnand %p2719_p5, %p2713_p2 }
  0x51   :  { %2723 = shalt.err (!%p2720_p6)
}
  0x52   :  { %112 = dma.hbm_to_vmem [thread:$0]  %s3242_s10, 2048, %s107_s21, [#allocation12], %s2778_s18, %s2778_s18, %s2779_s19  }
  0x53   :  { %s2732_s4 = scalar_lea.vmem %s121_s2, 2048  ;;  %p2737_p8 = scmp.lt.s32.totalorder %s121_s2, %s121_s2 }
  0x54   :  { %p2733_p7 = scmp.ne.s32.totalorder %s121_s2, %s2732_s4  ;;  %p2738_p9 = scmp.lt.s32.totalorder %s2732_s4, %s2732_s4 }
  0x56   :  { %p2739_p10 = por %p2738_p9, %p2737_p8 }
  0x58   :  { %p2740_p11 = pnand %p2739_p10, %p2733_p7 }
  0x5a   :  { %2743 = shalt.err (!%p2740_p11)
}
  0x5b   :  { %126 = dma.hbm_to_vmem [thread:$0]  %s3244_s12, 2048, %s121_s2, [#allocation15], %s2781_s1, %s2781_s1, %s2782_s29  }
  0x5c   :  { %2764 = dma.done.wait [#allocation3], 512  }
  0x5d   :  { %2765 = vsyncadd [#allocation3], 4294966784 }
  0x5e   :  { %2766 = dma.done.wait [#allocation6], 272  }
  0x5f   :  { %2767 = vsyncadd [#allocation6], 4294967024 }
  0x60   :  { %2768 = dma.done.wait [#allocation9], 3088  }
  0x61   :  { %2769 = vsyncadd [#allocation9], 4294964208 }
  0x62   :  { %2770 = dma.done.wait [#allocation12], 3072  }
  0x63   :  { %2771 = vsyncadd [#allocation12], 4294964224 }
  0x64   :  { %2772 = dma.done.wait [#allocation15], 2048  }
  0x65   :  { %2773 = vsyncadd [#allocation15], 4294965248  ;;  %v154_v0 = vld [vmem:[#allocation2] sm:$0xff]  ;;  %v155_v2 = vld [vmem:[#allocation2 + $0x8] sm:$0xff]  ;;  %v2790_v35 = vmov 0   ;;  %vm2792_vm0 = vmmov 0  }
  0x66   :  { %v158_v1 = vld [vmem:[#allocation5] sm:$0xff]  ;;  %v159_v4 = vld [vmem:[#allocation5 + $0x8] sm:$0xff]  ;;  %v156_v6 = vld [vmem:[#allocation2 + $0x10] sm:$0xff]  ;;  %442 = vmatprep.mubr.bf16.mxu0 %v2790_v35  ;;  %vm542_vm1 = vcmask 261120   ;;  %s2794_s29 = smov 32   ;;  %vm731_vm2 = vcmask 130048  }
  0x67   :  { %v2910_v3 = vadd.f32 %v158_v1, %v154_v0  ;;  %v2913_v5 = vadd.f32 %v159_v4, %v155_v2  ;;  %v2916_v7 = vadd.f32 %v158_v1, %v156_v6  ;;  %v2424_v8 = vld [vmem:[#allocation10 + $0xac] ss:$12 sps:$4 sm:$0xff]   ;;  %v2426_v9 = vld [vmem:[#allocation10 + $0xa8] ss:$12 sps:$4 sm:$0xff]   ;;  %v2429_v21 = vld [vmem:[#allocation10 + $0x90] ss:$12 sps:$4 sm:$0xff]  }
  0x68   :  { %410 = vmatprep.subr.bf16.mxu0 %v2424_v8  ;;  %v157_v17 = vld [vmem:[#allocation2 + $0x18] sm:$0xff]  ;;  %v2427_v20 = vld [vmem:[#allocation10 + $0x94] ss:$12 sps:$4 sm:$0xff]   ;;  %v2436_v29 = vld [vmem:[#allocation10 + $0x4c] ss:$12 sps:$4 sm:$0xff]   ;;  %v2791_v6 = vmov 0.0  }
  0x69   :  { %166 = vadd.xlane.f32.xlu0 %v2910_v3  ;;  %411 = vmatpush1.bf16.msra.mxu0 %v2426_v9  ;;  %v2929_v19 = vadd.f32 %v159_v4, %v157_v17  ;;  %v2430_v22 = vld [vmem:[#allocation10 + $0x7c] ss:$12 sps:$4 sm:$0xff]   ;;  %v2432_v23 = vld [vmem:[#allocation10 + $0x78] ss:$12 sps:$4 sm:$0xff]   ;;  %v2435_v27 = vld [vmem:[#allocation10 + $0x60] ss:$12 sps:$4 sm:$0xff]  }
  0x6a   :  { %412 = vmatprep.subr.bf16.mxu0 %v2427_v20  ;;  %v2433_v26 = vld [vmem:[#allocation10 + $0x64] ss:$12 sps:$4 sm:$0xff]   ;;  %v2438_v31 = vld [vmem:[#allocation10 + $0x48] ss:$12 sps:$4 sm:$0xff]   ;;  %v2447_v38 = vld [vmem:[#allocation10] ss:$12 sps:$4 sm:$0xff]  }
  0x6b   :  { %v2439_v32 = vld [vmem:[#allocation10 + $0x34] ss:$12 sps:$4 sm:$0xff]   ;;  %v2441_v33 = vld [vmem:[#allocation10 + $0x30] ss:$12 sps:$4 sm:$0xff]   ;;  %v2444_v36 = vld [vmem:[#allocation10 + $0x18] ss:$12 sps:$4 sm:$0xff]  }
  0x6c   :  { %v2442_v34 = vld [vmem:[#allocation10 + $0x1c] ss:$12 sps:$4 sm:$0xff]   ;;  %v2445_v37 = vld [vmem:[#allocation10 + $0x4] ss:$12 sps:$4 sm:$0xff]   ;;  %v2450_v59 = vld [vmem:[#allocation10 + $0x80] ss:$12 sps:$4 sm:$0xff]  }
  0x6d   :  { %168 = vadd.xlane.f32.xlu0 %v2913_v5  ;;  %413 = vmatpush1.bf16.msra.mxu0 %v2429_v21  ;;  %v2448_v39 = vld [vmem:[#allocation10 + $0xb0] ss:$12 sps:$4 sm:$0xff]   ;;  %v2449_v40 = vld [vmem:[#allocation10 + $0x98] ss:$12 sps:$4 sm:$0xff]   ;;  %v2451_v63 = vld [vmem:[#allocation10 + $0x68] ss:$12 sps:$4 sm:$0xff]  }
  0x6e   :  { %414 = vmatprep.subr.bf16.mxu0 %v2430_v22  ;;  %2268 = vmatprep.subr.bf16.mxu1 %v2448_v39  ;;  %v2102_v53 = vld [vmem:[#allocation7] ss:$0 sm:$0xff]  ;;  %v2103_v57 = vld [vmem:[#allocation8] ss:$0 sm:$0xff]  ;;  %v2453_v1 = vld [vmem:[#allocation10 + $0x38] ss:$12 sps:$4 sm:$0xff]  }
  0x6f   :  { %2269 = vmatpush3.bf16.msra.mxu1 %v2448_v39  ;;  %v2452_v0 = vld [vmem:[#allocation10 + $0x50] ss:$12 sps:$4 sm:$0xff]   ;;  %v2454_v2 = vld [vmem:[#allocation10 + $0x20] ss:$12 sps:$4 sm:$0xff]   ;;  %v2455_v4 = vld [vmem:[#allocation10 + $0x8] ss:$12 sps:$4 sm:$0xff]  }
  0x70   :  { %2270 = vmatprep.subr.bf16.mxu1 %v2449_v40  ;;  %vm1016_vm3 = vcmask 523264   ;;  %vm1019_vm4 = vcmask 785408  }
  0x71   :  { %170 = vadd.xlane.f32.xlu0 %v2916_v7  ;;  %415 = vmatpush1.bf16.msra.mxu0 %v2432_v23 }
  0x72   :  { %416 = vmatprep.subr.bf16.mxu0 %v2433_v26 }
  0x73   :  { %2271 = vmatpush3.bf16.msra.mxu1 %v2449_v40 }
  0x74   :  { %2272 = vmatprep.subr.bf16.mxu1 %v2450_v59 }
  0x75   :  { %417 = vmatpush1.bf16.msra.mxu0 %v2435_v27  ;;  %v265_v27 = vld [vmem:[%s3237_s5] sm:$0x7]  ;;  %s2793_s5 = smov 96  }
  0x76   :  { %418 = vmatprep.subr.bf16.mxu0 %v2436_v29 }
  0x77   :  { %2273 = vmatpush3.bf16.msra.mxu1 %v2450_v59 }
  0x78   :  { %2274 = vmatprep.subr.bf16.mxu1 %v2451_v63 }
  0x79   :  { %419 = vmatpush1.bf16.msra.mxu0 %v2438_v31 }
  0x7a   :  { %420 = vmatprep.subr.bf16.mxu0 %v2439_v32 }
  0x7b   :  { %2275 = vmatpush3.bf16.msra.mxu1 %v2451_v63 }
  0x7c   :  { %2276 = vmatprep.subr.bf16.mxu1 %v2452_v0 }
  0x7d   :  { %421 = vmatpush1.bf16.msra.mxu0 %v2441_v33 }
  0x7e   :  { %422 = vmatprep.subr.bf16.mxu0 %v2442_v34 }
  0x7f   :  { %2277 = vmatpush3.bf16.msra.mxu1 %v2452_v0 }
  0x80   :  { %2278 = vmatprep.subr.bf16.mxu1 %v2453_v1 }
  0x81   :  { %423 = vmatpush1.bf16.msra.mxu0 %v2444_v36 }
  0x82   :  { %424 = vmatprep.subr.bf16.mxu0 %v2445_v37 }
  0x83   :  { %2279 = vmatpush3.bf16.msra.mxu1 %v2453_v1 }
  0x84   :  { %2280 = vmatprep.subr.bf16.mxu1 %v2454_v2 }
  0x85   :  { %425 = vmatpush1.bf16.msra.mxu0 %v2447_v38 }
  0x86   :  { %2288 = vmatprep.subr.bf16.mxu0 %v2791_v6 }
  0x87   :  { %2281 = vmatpush3.bf16.msra.mxu1 %v2454_v2 }
  0x88   :  { %2282 = vmatprep.subr.bf16.mxu1 %v2455_v4 }
  0x8b   :  { %2283 = vmatpush3.bf16.msra.mxu1 %v2455_v4 }
  0x8c   :  { %2300 = vmatprep.subr.bf16.mxu1 %v2791_v6 }
  0xf2   :  { %v167_v10 = vpop.xlane.xlu0 %166 }
  0xf3   :  { %v175_v11 = vmul.f32 0.0078125, %v167_v10 }
  0xf5   :  { %v2920_v12 = vsub.f32 %v2910_v3, %v175_v11 }
  0xf6   :  { %v169_v13 = vpop.xlane.xlu0 %168 }
  0xf7   :  { %v176_v14 = vmul.f32 0.0078125, %v169_v13  ;;  %v183_v15 = vmul.f32 %v2920_v12, %v2920_v12 }
  0xf9   :  { %v2925_v16 = vsub.f32 %v2913_v5, %v176_v14  ;;  %187 = vadd.xlane.f32.xlu1 %v183_v15 }
  0xfa   :  { %v171_v24 = vpop.xlane.xlu0 %170 }
  0xfb   :  { %v184_v18 = vmul.f32 %v2925_v16, %v2925_v16  ;;  %v177_v25 = vmul.f32 0.0078125, %v171_v24  ;;  %v267_v24 = vlaneseq }
  0xfd   :  { %189 = vadd.xlane.f32.xlu1 %v184_v18  ;;  %v2933_v28 = vsub.f32 %v2916_v7, %v177_v25  ;;  %v2949_v25 = vshrl.u32 %v267_v24, 7 }
  0xff   :  { %v185_v30 = vmul.f32 %v2933_v28, %v2933_v28  ;;  %v269_v26 = vsub.s32 0, %v2949_v25 }
 0x101   :  { %172 = vadd.xlane.f32.xlu1 %v2929_v19  ;;  %191 = vadd.xlane.f32.xlu0 %v185_v30  ;;  %v270_v30 = vrot.slane %v265_v27, %v269_v26 }
 0x182   :  { %v188_v41 = vpop.xlane.xlu1 %187 }
 0x183   :  { %v195_v42 = vmul.f32 0.0078125, %v188_v41 }
 0x185   :  { %v199_v43 = vadd.f32 1e-05, %v195_v42 }
 0x186   :  { %v190_v44 = vpop.xlane.xlu1 %189 }
 0x187   :  { %2504 = vrsqrt.f32 %v199_v43  ;;  %v196_v45 = vmul.f32 0.0078125, %v190_v44 }
 0x189   :  { %v200_v46 = vadd.f32 1e-05, %v196_v45 }
 0x18a   :  { %v173_v47 = vpop.xlane.xlu1 %172  ;;  %v192_v8 = vpop.xlane.xlu0 %191 }
 0x18b   :  { %2506 = vrsqrt.f32 %v200_v46  ;;  %v178_v48 = vmul.f32 0.0078125, %v173_v47  ;;  %v197_v9 = vmul.f32 0.0078125, %v192_v8 }
 0x18d   :  { %v182_v49 = vsub.f32 %v2929_v19, %v178_v48  ;;  %v201_v10 = vadd.f32 1e-05, %v197_v9 }
 0x18f   :  { %v186_v50 = vmul.f32 %v182_v49, %v182_v49  ;;  %2508 = vrsqrt.f32 %v201_v10 }
 0x191   :  { %193 = vadd.xlane.f32.xlu1 %v186_v50 }
 0x194   :  { %v2505_v51 = vpop.eup %2504 }
 0x195   :  { %v207_v52 = vmul.f32 %v2505_v51, %v2920_v12 }
 0x197   :  { %v217_v56 = vmul.f32 %v2102_v53, %v207_v52  ;;  %v277_v52 = vsub.s32 2, %v2949_v25 }
 0x198   :  { %v2507_v54 = vpop.eup %2506 }
 0x199   :  { %v208_v55 = vmul.f32 %v2507_v54, %v2925_v16  ;;  %v227_v60 = vadd.f32 %v2103_v57, %v217_v56 }
 0x19b   :  { %v218_v58 = vmul.f32 %v2102_v53, %v208_v55 }
 0x19c   :  { %v2509_v14 = vpop.eup %2508 }
 0x19d   :  { %v228_v61 = vadd.f32 %v2103_v57, %v218_v58  ;;  %v209_v15 = vmul.f32 %v2509_v14, %v2933_v28  ;;  %v273_v28 = vsub.s32 1, %v2949_v25 }
 0x19f   :  { %v231_v62 = vpack.c.bf16 %v228_v61, %v227_v60  ;;  %v219_v16 = vmul.f32 %v2102_v53, %v209_v15  ;;  %v274_v32 = vrot.slane %v265_v27, %v273_v28 }
 0x1a1   :  { %443 = vmatmul.mubr.bf16.vlgmr.msra.gmra.mxu0 %v231_v62  ;;  %2284 = vmatprep.mubr.bf16.mxu1 %v231_v62  ;;  %v229_v21 = vadd.f32 %v2103_v57, %v219_v16 }
 0x1a2   :  { %452 = vmatprep.mubr.bf16.mxu0 %v2790_v35 }
 0x21a   :  { %v194_v11 = vpop.xlane.xlu1 %193 }
 0x21b   :  { %v198_v12 = vmul.f32 0.0078125, %v194_v11 }
 0x21d   :  { %v202_v13 = vadd.f32 1e-05, %v198_v12 }
 0x21f   :  { %2510 = vrsqrt.f32 %v202_v13 }
 0x22c   :  { %v2511_v17 = vpop.eup %2510 }
 0x22d   :  { %v210_v18 = vmul.f32 %v2511_v17, %v182_v49 }
 0x22f   :  { %v220_v20 = vmul.f32 %v2102_v53, %v210_v18  ;;  %v278_v53 = vrot.slane %v265_v27, %v277_v52 }
 0x231   :  { %v230_v22 = vadd.f32 %v2103_v57, %v220_v20 }
 0x233   :  { %v232_v23 = vpack.c.bf16 %v230_v22, %v229_v21 }
 0x235   :  { %453 = vmatmul.mubr.bf16.gmra.mxu0 %v232_v23  ;;  %2285 = vmatmul.mubr.bf16.vlgmr.msra.gmra.mxu1 %v232_v23 }
 0x236   :  { %2290 = vmatprep.mubr.msk.bf16.mxu0 %vm2792_vm0, %v2791_v6  ;;  %2302 = vmatprep.mubr.msk.bf16.mxu1 %vm2792_vm0, %v2791_v6 }
 0x261   :  { %v444_v29 = vpop.f32.mrf.mxu0 }
 0x262   :  { %v445_v34 = vadd.f32 %v444_v29, %v270_v30 }
 0x263   :  { %v446_v31 = vpop.f32.mrf.mxu0 }
 0x264   :  { %v447_v38 = vadd.f32 %v446_v31, %v274_v32 }
 0x265   :  { %v448_v33 = vpop.f32.mrf.mxu0 }
 0x266   :  { %v449_v36 = vadd.f32 %v448_v33, %v270_v30 }
 0x267   :  { %v450_v37 = vpop.f32.mrf.mxu0 }
 0x268   :  { %v512_v39 = vpack.c.bf16 %v449_v36, %v445_v34  ;;  %v451_v40 = vadd.f32 %v450_v37, %v274_v32 }
 0x26a   :  { %v514_v41 = vpack.c.bf16 %v451_v40, %v447_v38  ;;  %519 = vrot.lane.b32.xlu1 %v512_v39, %s2793_s5 }
 0x26c   :  { %526 = vrot.lane.b32.xlu0 %v514_v41, %s2793_s5  ;;  %v547_v42 = vsel %vm542_vm1, %v514_v41, 0 }
 0x26d   :  { %2289 = vmatpush3.bf16.xpose.msra.mxu0 %v547_v42 }
 0x26e   :  { %528 = vrot.lane.b32.xlu1 %v514_v41, %s2781_s1  ;;  %2294 = vmatprep.subr.bf16.mxu0 %v2791_v6 }
 0x270   :  { %521 = vrot.lane.b32.xlu0 %v512_v39, %s2781_s1 }
 0x272   :  { %530 = vrot.lane.b32.xlu1 %v514_v41, %s2794_s29 }
 0x274   :  { %2291 = vmatmul.mubr.msk.bf16.vlgmr.msra.gmra.mxu0 %vm542_vm1, %v512_v39 }
 0x275   :  { %2296 = vmatprep.mubr.msk.bf16.mxu0 %vm2792_vm0, %v2791_v6 }
 0x276   :  { %523 = vrot.lane.b32.xlu1 %v512_v39, %s2794_s29 }
 0x2dc   :  { %v520_v43 = vpop.permute.xlu1 %519 }
 0x2de   :  { %v527_v44 = vpop.permute.xlu0 %526 }
 0x2df   :  { %v594_v45 = vsel %vm542_vm1, %v527_v44, 0 }
 0x2e0   :  { %v529_v46 = vpop.permute.xlu1 %528  ;;  %2295 = vmatpush3.bf16.xpose.msra.mxu0 %v594_v45 }
 0x2e1   :  { %v641_v47 = vsel %vm542_vm1, %v529_v46, 0  ;;  %2306 = vmatprep.subr.bf16.mxu0 %v2791_v6 }
 0x2e2   :  { %2301 = vmatpush3.bf16.xpose.msra.mxu1 %v641_v47  ;;  %v522_v50 = vpop.permute.xlu0 %521 }
 0x2e3   :  { %2312 = vmatprep.subr.bf16.mxu1 %v2791_v6 }
 0x2e4   :  { %v531_v48 = vpop.permute.xlu1 %530 }
 0x2e5   :  { %v688_v49 = vsel %vm542_vm1, %v531_v48, 0 }
 0x2e7   :  { %2297 = vmatmul.mubr.msk.bf16.vlgmr.msra.gmra.mxu0 %vm542_vm1, %v520_v43 }
 0x2e8   :  { %2307 = vmatpush3.bf16.xpose.msra.mxu0 %v688_v49  ;;  %2308 = vmatprep.mubr.msk.bf16.mxu0 %vm2792_vm0, %v2791_v6  ;;  %v524_v51 = vpop.permute.xlu1 %523 }
 0x2e9   :  { %2303 = vmatmul.mubr.msk.bf16.vlgmr.msra.gmra.mxu1 %vm542_vm1, %v522_v50  ;;  %2318 = vmatprep.subr.bf16.mxu0 %v2791_v6 }
 0x2ea   :  { %2314 = vmatprep.mubr.msk.bf16.mxu1 %vm2792_vm0, %v2791_v6 }
 0x2ef   :  { %2309 = vmatmul.mubr.msk.bf16.vlgmr.msra.gmra.mxu0 %vm542_vm1, %v524_v51 }
 0x2f0   :  { %2320 = vmatprep.mubr.msk.bf16.mxu0 %vm2792_vm0, %v2791_v6 }
 0x2f5   :  { %v454_v54 = vpop.f32.mrf.mxu0  ;;  %v2286_v55 = vpop.f32.mrf.mxu1 }
 0x2f6   :  { %v506_v56 = vadd.f32 %v2286_v55, %v278_v53  ;;  %v455_v59 = vadd.f32 %v454_v54, %v270_v30 }
 0x2f7   :  { %v456_v57 = vpop.f32.mrf.mxu0  ;;  %v497_v58 = vpop.f32.mrf.mxu1 }
 0x2f8   :  { %v457_v0 = vadd.f32 %v456_v57, %v274_v32  ;;  %v498_v1 = vadd.f32 %v497_v58, %v278_v53 }
 0x2f9   :  { %v458_v60 = vpop.f32.mrf.mxu0  ;;  %v2287_v61 = vpop.f32.mrf.mxu1 }
 0x2fa   :  { %v459_v62 = vadd.f32 %v458_v60, %v270_v30  ;;  %v509_v63 = vadd.f32 %v2287_v61, %v278_v53 }
 0x2fb   :  { %v460_v2 = vpop.f32.mrf.mxu0  ;;  %v500_v4 = vpop.f32.mrf.mxu1 }
 0x2fc   :  { %v2987_v8 = vpack.c.bf16 %v459_v62, %v455_v59  ;;  %v2989_v9 = vpack.c.bf16 %v509_v63, %v506_v56  ;;  %v461_v10 = vadd.f32 %v460_v2, %v274_v32  ;;  %v501_v11 = vadd.f32 %v500_v4, %v278_v53 }
 0x2fe   :  { %v2991_v12 = vpack.c.bf16 %v461_v10, %v457_v0  ;;  %v2993_v13 = vpack.c.bf16 %v501_v11, %v498_v1 }
 0x300   :  { %2313 = vmatpush3.bf16.msra.mxu1 %v2993_v13 }
 0x301   :  { %2324 = vmatprep.subr.bf16.mxu1 %v2791_v6 }
 0x334   :  { %v583_v14 = vpop.f32.mrf.mxu0 }
 0x335   :  { %v732_v15 = vsel %vm731_vm2, %v583_v14, -inf }
 0x336   :  { %733 = vmax.xlane.f32.xlu0 %v732_v15  ;;  %v2292_v16 = vpop.f32.mrf.mxu0 }
 0x338   :  { %v586_v17 = vpop.f32.mrf.mxu0 }
 0x339   :  { %v735_v18 = vsel %vm731_vm2, %v586_v17, -inf }
 0x33a   :  { %736 = vmax.xlane.f32.xlu1 %v735_v18  ;;  %v2293_v20 = vpop.f32.mrf.mxu0 }
 0x3a7   :  { %v630_v21 = vpop.f32.mrf.mxu0 }
 0x3a8   :  { %v738_v22 = vsel %vm731_vm2, %v630_v21, -inf }
 0x3a9   :  { %739 = vmax.xlane.f32.xlu0 %v738_v22  ;;  %v2298_v23 = vpop.f32.mrf.mxu0  ;;  %v677_v24 = vpop.f32.mrf.mxu1 }
 0x3aa   :  { %v744_v37 = vsel %vm731_vm2, %v677_v24, -inf }
 0x3ab   :  { %v633_v27 = vpop.f32.mrf.mxu0  ;;  %v2304_v29 = vpop.f32.mrf.mxu1 }
 0x3ac   :  { %v741_v30 = vsel %vm731_vm2, %v633_v27, -inf }
 0x3ad   :  { %742 = vmax.xlane.f32.xlu0 %v741_v30  ;;  %v2299_v31 = vpop.f32.mrf.mxu0  ;;  %v680_v32 = vpop.f32.mrf.mxu1 }
 0x3ae   :  { %v747_v33 = vsel %vm731_vm2, %v680_v32, -inf }
 0x3af   :  { %v724_v34 = vpop.f32.mrf.mxu0  ;;  %748 = vmax.xlane.f32.xlu1 %v747_v33  ;;  %v2305_v36 = vpop.f32.mrf.mxu1 }
 0x3b0   :  { %v750_v40 = vsel %vm731_vm2, %v724_v34, -inf }
 0x3b1   :  { %v2310_v38 = vpop.f32.mrf.mxu0  ;;  %745 = vmax.xlane.f32.xlu0 %v744_v37 }
 0x3b3   :  { %v3003_v39 = vpop.f32.mrf.mxu0 }
 0x3b4   :  { %v753_v41 = vsel %vm731_vm2, %v3003_v39, -inf }
 0x3b5   :  { %v2311_v42 = vpop.f32.mrf.mxu0  ;;  %751 = vmax.xlane.f32.xlu0 %v750_v40  ;;  %754 = vmax.xlane.f32.xlu1 %v753_v41 }
 0x3bf   :  { %v734_v43 = vpop.xlane.xlu0 %733 }
 0x3c0   :  { %v756_v44 = vsub.f32 %v583_v14, %v734_v43 }
 0x3c2   :  { %v764_v45 = vmul.f32 1.442695, %v756_v44 }
 0x3c3   :  { %v737_v46 = vpop.xlane.xlu1 %736 }
 0x3c4   :  { %2512 = vpow2.f32 %v764_v45  ;;  %v757_v47 = vsub.f32 %v586_v17, %v737_v46 }
 0x3c6   :  { %v766_v48 = vmul.f32 1.442695, %v757_v47 }
 0x3c8   :  { %2514 = vpow2.f32 %v766_v48 }
 0x3d1   :  { %v2513_v49 = vpop.eup %2512 }
 0x3d2   :  { %v780_v50 = vsel %vm731_vm2, %v2513_v49, 0.0 }
 0x3d3   :  { %781 = vadd.xlane.f32.xlu0 %v780_v50 }
 0x3d5   :  { %v2515_v51 = vpop.eup %2514 }
 0x3d6   :  { %v783_v52 = vsel %vm731_vm2, %v2515_v51, 0.0 }
 0x3d7   :  { %784 = vadd.xlane.f32.xlu1 %v783_v52 }
 0x432   :  { %v740_v53 = vpop.xlane.xlu0 %739 }
 0x433   :  { %v758_v54 = vsub.f32 %v630_v21, %v740_v53 }
 0x435   :  { %v768_v55 = vmul.f32 1.442695, %v758_v54 }
 0x436   :  { %v743_v56 = vpop.xlane.xlu0 %742 }
 0x437   :  { %2516 = vpow2.f32 %v768_v55  ;;  %v759_v57 = vsub.f32 %v633_v27, %v743_v56  ;;  %v1051_v56 = vsel %vm542_vm1, %v2991_v12, 0 }
 0x438   :  { %v749_v58 = vpop.xlane.xlu1 %748 }
 0x439   :  { %v770_v59 = vmul.f32 1.442695, %v759_v57  ;;  %v761_v60 = vsub.f32 %v680_v32, %v749_v58 }
 0x43a   :  { %v746_v61 = vpop.xlane.xlu0 %745 }
 0x43b   :  { %2518 = vpow2.f32 %v770_v59  ;;  %v774_v62 = vmul.f32 1.442695, %v761_v60  ;;  %v760_v63 = vsub.f32 %v677_v24, %v746_v61 }
 0x43d   :  { %2520 = vpow2.f32 %v774_v62  ;;  %v772_v0 = vmul.f32 1.442695, %v760_v63 }
 0x43e   :  { %v752_v1 = vpop.xlane.xlu0 %751  ;;  %v755_v23 = vpop.xlane.xlu1 %754 }
 0x43f   :  { %2522 = vpow2.f32 %v772_v0  ;;  %v762_v2 = vsub.f32 %v724_v34, %v752_v1  ;;  %v763_v31 = vsub.f32 %v3003_v39, %v755_v23 }
 0x441   :  { %v776_v4 = vmul.f32 1.442695, %v762_v2  ;;  %v778_v36 = vmul.f32 1.442695, %v763_v31 }
 0x443   :  { %2524 = vpow2.f32 %v776_v4 }
 0x444   :  { %v2517_v10 = vpop.eup %2516 }
 0x445   :  { %v786_v11 = vsel %vm731_vm2, %v2517_v10, 0.0 }
 0x446   :  { %787 = vadd.xlane.f32.xlu0 %v786_v11 }
 0x448   :  { %v2519_v14 = vpop.eup %2518 }
 0x449   :  { %v789_v15 = vsel %vm731_vm2, %v2519_v14, 0.0 }
 0x44a   :  { %v2521_v16 = vpop.eup %2520  ;;  %790 = vadd.xlane.f32.xlu1 %v789_v15 }
 0x44b   :  { %v795_v18 = vsel %vm731_vm2, %v2521_v16, 0.0 }
 0x44c   :  { %v2523_v17 = vpop.eup %2522 }
 0x44d   :  { %v792_v20 = vsel %vm731_vm2, %v2523_v17, 0.0 }
 0x44e   :  { %796 = vadd.xlane.f32.xlu1 %v795_v18  ;;  %793 = vadd.xlane.f32.xlu0 %v792_v20 }
 0x450   :  { %v3014_v21 = vpop.eup %2524 }
 0x451   :  { %v798_v22 = vsel %vm731_vm2, %v3014_v21, 0.0 }
 0x452   :  { %799 = vadd.xlane.f32.xlu0 %v798_v22 }
 0x45c   :  { %v782_v24 = vpop.xlane.xlu0 %781 }
 0x45d   :  { %2526 = vrcp.f32 %v782_v24 }
 0x45f   :  { %536 = vrot.lane.b32.xlu1 %v2993_v13, %s2781_s1 }
 0x460   :  { %v785_v27 = vpop.xlane.xlu1 %784 }
 0x461   :  { %2528 = vrcp.f32 %v785_v27 }
 0x462   :  { %2530 = vpow2.f32 %v778_v36 }
 0x463   :  { %539 = vrot.lane.b32.xlu1 %v2993_v13, %s2794_s29 }
 0x468   :  { %533 = vrot.lane.b32.xlu0 %v2993_v13, %s2793_s5 }
 0x46a   :  { %v2527_v29 = vpop.eup %2526 }
 0x46b   :  { %v812_v32 = vmul.f32 %v2527_v29, %v2513_v49 }
 0x46c   :  { %1033 = vrot.lane.b32.xlu0 %v2991_v12, %s2781_s1 }
 0x46e   :  { %v2529_v30 = vpop.eup %2528 }
 0x46f   :  { %v813_v33 = vmul.f32 %v2529_v30, %v2515_v51  ;;  %v2531_v13 = vpop.eup %2530 }
 0x470   :  { %1035 = vrot.lane.b32.xlu0 %v2991_v12, %s2794_s29  ;;  %v801_v37 = vsel %vm731_vm2, %v2531_v13, 0.0 }
 0x471   :  { %v820_v34 = vpack.c.bf16 %v813_v33, %v812_v32 }
 0x473   :  { %2315 = vmatmul.mubr.msk.bf16.vlgmr.msra.gmra.mxu1 %vm731_vm2, %v820_v34 }
 0x474   :  { %2326 = vmatprep.mubr.msk.bf16.mxu1 %vm2792_vm0, %v2791_v6  ;;  %1028 = vrot.lane.b32.xlu0 %v2987_v8, %s2794_s29 }
 0x487   :  { %802 = vadd.xlane.f32.xlu1 %v801_v37 }
 0x498   :  { %1031 = vrot.lane.b32.xlu1 %v2991_v12, %s2793_s5 }
 0x49c   :  { %1024 = vrot.lane.b32.xlu1 %v2987_v8, %s2793_s5 }
 0x4a0   :  { %1026 = vrot.lane.b32.xlu1 %v2987_v8, %s2781_s1 }
 0x4cf   :  { %v788_v38 = vpop.xlane.xlu0 %787 }
 0x4d0   :  { %2532 = vrcp.f32 %v788_v38 }
 0x4d3   :  { %v791_v39 = vpop.xlane.xlu1 %790 }
 0x4d4   :  { %2534 = vrcp.f32 %v791_v39 }
 0x4d7   :  { %v797_v40 = vpop.xlane.xlu1 %796  ;;  %v794_v41 = vpop.xlane.xlu0 %793 }
 0x4d8   :  { %2536 = vrcp.f32 %v797_v40 }
 0x4d9   :  { %2538 = vrcp.f32 %v794_v41 }
 0x4db   :  { %v537_v42 = vpop.permute.xlu1 %536  ;;  %v800_v43 = vpop.xlane.xlu0 %799 }
 0x4dc   :  { %2325 = vmatpush3.bf16.msra.mxu1 %v537_v42  ;;  %2540 = vrcp.f32 %v800_v43 }
 0x4dd   :  { %2336 = vmatprep.subr.bf16.mxu1 %v2791_v6  ;;  %v2533_v44 = vpop.eup %2532 }
 0x4de   :  { %v814_v47 = vmul.f32 %v2533_v44, %v2517_v10 }
 0x4df   :  { %v534_v45 = vpop.permute.xlu0 %533  ;;  %v540_v52 = vpop.permute.xlu1 %539 }
 0x4e0   :  { %2319 = vmatpush3.bf16.msra.mxu0 %v534_v45 }
 0x4e1   :  { %v2535_v46 = vpop.eup %2534  ;;  %2330 = vmatprep.subr.bf16.mxu0 %v2791_v6 }
 0x4e2   :  { %v815_v48 = vmul.f32 %v2535_v46, %v2519_v14 }
 0x4e3   :  { %v1034_v57 = vpop.permute.xlu0 %1033 }
 0x4e4   :  { %v821_v49 = vpack.c.bf16 %v815_v48, %v814_v47  ;;  %v1145_v58 = vsel %vm542_vm1, %v1034_v57, 0 }
 0x4e5   :  { %v2537_v50 = vpop.eup %2536 }
 0x4e6   :  { %v2539_v51 = vpop.eup %2538  ;;  %2321 = vmatmul.mubr.msk.bf16.vlgmr.msra.gmra.mxu0 %vm731_vm2, %v821_v49  ;;  %v817_v53 = vmul.f32 %v2537_v50, %v2521_v16 }
 0x4e7   :  { %2331 = vmatpush3.bf16.msra.mxu0 %v540_v52  ;;  %v816_v54 = vmul.f32 %v2539_v51, %v2523_v17  ;;  %2332 = vmatprep.mubr.msk.bf16.mxu0 %vm2792_vm0, %v2791_v6  ;;  %v1036_v4 = vpop.permute.xlu0 %1035 }
 0x4e8   :  { %2342 = vmatprep.subr.bf16.mxu0 %v2791_v6  ;;  %v1192_v10 = vsel %vm542_vm1, %v1036_v4, 0 }
 0x4e9   :  { %v822_v55 = vpack.c.bf16 %v817_v53, %v816_v54  ;;  %v2541_v61 = vpop.eup %2540 }
 0x4eb   :  { %2327 = vmatmul.mubr.msk.bf16.vlgmr.msra.gmra.mxu1 %vm731_vm2, %v822_v55  ;;  %v1029_v11 = vpop.permute.xlu0 %1028 }
 0x4ec   :  { %2337 = vmatpush3.bf16.xpose.msra.mxu1 %v1051_v56  ;;  %2338 = vmatprep.mubr.msk.bf16.mxu1 %vm2792_vm0, %v2791_v6 }
 0x4ed   :  { %2348 = vmatprep.subr.bf16.mxu1 %v2791_v6 }
 0x4f3   :  { %2339 = vmatmul.mubr.msk.bf16.vlgmr.msra.gmra.mxu1 %vm542_vm1, %v2987_v8  ;;  %v818_v8 = vmul.f32 %v2541_v61, %v3014_v21 }
 0x4f4   :  { %2349 = vmatpush3.bf16.xpose.msra.mxu1 %v1145_v58  ;;  %2350 = vmatprep.mubr.msk.bf16.mxu1 %vm2792_vm0, %v2791_v6 }
 0x4f5   :  { %2360 = vmatprep.subr.bf16.mxu1 %v2791_v6 }
 0x510   :  { %v803_v12 = vpop.xlane.xlu1 %802 }
 0x511   :  { %2542 = vrcp.f32 %v803_v12 }
 0x514   :  { %v1032_v59 = vpop.permute.xlu1 %1031 }
 0x515   :  { %v1098_v2 = vsel %vm542_vm1, %v1032_v59, 0 }
 0x518   :  { %v1025_v60 = vpop.permute.xlu1 %1024 }
 0x51c   :  { %v1027_v62 = vpop.permute.xlu1 %1026 }
 0x51d   :  { %2351 = vmatmul.mubr.msk.bf16.vlgmr.msra.gmra.mxu1 %vm542_vm1, %v1027_v62 }
 0x51e   :  { %v2543_v63 = vpop.eup %2542  ;;  %2361 = vmatpush3.bf16.msra.mxu1 %v2989_v9  ;;  %2362 = vmatprep.mubr.msk.bf16.mxu1 %vm2792_vm0, %v2791_v6 }
 0x51f   :  { %v819_v0 = vmul.f32 %v2543_v63, %v2531_v13  ;;  %2372 = vmatprep.subr.bf16.mxu1 %v2791_v6 }
 0x521   :  { %v823_v1 = vpack.c.bf16 %v819_v0, %v818_v8 }
 0x523   :  { %2333 = vmatmul.mubr.msk.bf16.vlgmr.msra.gmra.mxu0 %vm731_vm2, %v823_v1 }
 0x524   :  { %2343 = vmatpush3.bf16.xpose.msra.mxu0 %v1098_v2  ;;  %2344 = vmatprep.mubr.msk.bf16.mxu0 %vm2792_vm0, %v2791_v6 }
 0x525   :  { %2354 = vmatprep.subr.bf16.mxu0 %v2791_v6 }
 0x52b   :  { %2345 = vmatmul.mubr.msk.bf16.vlgmr.msra.gmra.mxu0 %vm542_vm1, %v1025_v60 }
 0x52c   :  { %2355 = vmatpush3.bf16.xpose.msra.mxu0 %v1192_v10  ;;  %2356 = vmatprep.mubr.msk.bf16.mxu0 %vm2792_vm0, %v2791_v6 }
 0x52d   :  { %2366 = vmatprep.subr.bf16.mxu0 %v2791_v6 }
 0x533   :  { %v3075_v14 = vpop.f32.mrf.mxu1  ;;  %2357 = vmatmul.mubr.msk.bf16.vlgmr.msra.gmra.mxu0 %vm542_vm1, %v1029_v11 }
 0x534   :  { %2368 = vmatprep.mubr.msk.bf16.mxu0 %vm2792_vm0, %v2791_v6 }
 0x535   :  { %v2316_v15 = vpop.f32.mrf.mxu1 }
 0x537   :  { %v3080_v16 = vpop.f32.mrf.mxu1 }
 0x538   :  { %v1000_v17 = vpack.c.bf16 %v3080_v16, %v3075_v14  ;;  %v2457_v14 = vld [vmem:[#allocation11 + $0x30] sm:$0xff]   ;;  %v2458_v16 = vld [vmem:[#allocation11 + $0x28] sm:$0xff]  }
 0x539   :  { %v2317_v18 = vpop.f32.mrf.mxu1 }
 0x5a6   :  { %v3084_v20 = vpop.f32.mrf.mxu0 }
 0x5a8   :  { %v2322_v21 = vpop.f32.mrf.mxu0 }
 0x5aa   :  { %v3086_v22 = vpop.f32.mrf.mxu0 }
 0x5ab   :  { %v1001_v23 = vpack.c.bf16 %v3086_v22, %v3084_v20  ;;  %v3090_v24 = vpop.f32.mrf.mxu1 }
 0x5ac   :  { %v2323_v27 = vpop.f32.mrf.mxu0 }
 0x5ad   :  { %v2328_v29 = vpop.f32.mrf.mxu1 }
 0x5af   :  { %v3092_v30 = vpop.f32.mrf.mxu1 }
 0x5b0   :  { %v1002_v31 = vpack.c.bf16 %v3092_v30, %v3090_v24 }
 0x5b1   :  { %v2329_v32 = vpop.f32.mrf.mxu1 }
 0x5b3   :  { %v1087_v33 = vpop.f32.mrf.mxu1 }
 0x5b4   :  { %v1235_v34 = vsel %vm731_vm2, %v1087_v33, -inf }
 0x5b5   :  { %1236 = vmax.xlane.f32.xlu1 %v1235_v34  ;;  %v2340_v36 = vpop.f32.mrf.mxu1 }
 0x5b7   :  { %v1090_v13 = vpop.f32.mrf.mxu1 }
 0x5b8   :  { %v1238_v37 = vsel %vm731_vm2, %v1090_v13, -inf }
 0x5b9   :  { %1239 = vmax.xlane.f32.xlu0 %v1238_v37  ;;  %v2341_v38 = vpop.f32.mrf.mxu1 }
 0x5dd   :  { %v1181_v39 = vpop.f32.mrf.mxu1 }
 0x5de   :  { %v1247_v40 = vsel %vm731_vm2, %v1181_v39, -inf }
 0x5df   :  { %1248 = vmax.xlane.f32.xlu1 %v1247_v40  ;;  %v2352_v41 = vpop.f32.mrf.mxu1 }
 0x5e1   :  { %v1184_v42 = vpop.f32.mrf.mxu1 }
 0x5e2   :  { %v1250_v56 = vsel %vm731_vm2, %v1184_v42, -inf }
 0x5e3   :  { %v3099_v43 = vpop.f32.mrf.mxu0  ;;  %v2353_v44 = vpop.f32.mrf.mxu1 }
 0x5e5   :  { %v2334_v45 = vpop.f32.mrf.mxu0 }
 0x5e7   :  { %v3101_v46 = vpop.f32.mrf.mxu0 }
 0x5e8   :  { %v1003_v47 = vpack.c.bf16 %v3101_v46, %v3099_v43 }
 0x5e9   :  { %v2335_v48 = vpop.f32.mrf.mxu0 }
 0x5eb   :  { %v1134_v49 = vpop.f32.mrf.mxu0 }
 0x5ec   :  { %v1241_v50 = vsel %vm731_vm2, %v1134_v49, -inf }
 0x5ed   :  { %1242 = vmax.xlane.f32.xlu0 %v1241_v50  ;;  %v2346_v51 = vpop.f32.mrf.mxu0 }
 0x5ef   :  { %v1137_v52 = vpop.f32.mrf.mxu0 }
 0x5f0   :  { %v1244_v53 = vsel %vm731_vm2, %v1137_v52, -inf }
 0x5f1   :  { %1245 = vmax.xlane.f32.xlu0 %v1244_v53  ;;  %v2347_v54 = vpop.f32.mrf.mxu0 }
 0x5f3   :  { %v1228_v55 = vpop.f32.mrf.mxu0 }
 0x5f4   :  { %v1253_v57 = vsel %vm731_vm2, %v1228_v55, -inf }
 0x5f5   :  { %1251 = vmax.xlane.f32.xlu0 %v1250_v56  ;;  %1254 = vmax.xlane.f32.xlu1 %v1253_v57  ;;  %v2358_v58 = vpop.f32.mrf.mxu0 }
 0x5f7   :  { %v1231_v12 = vpop.f32.mrf.mxu0 }
 0x5f8   :  { %v1256_v59 = vsel %vm731_vm2, %v1231_v12, -inf }
 0x5f9   :  { %1257 = vmax.xlane.f32.xlu0 %v1256_v59  ;;  %v2359_v60 = vpop.f32.mrf.mxu0 }
 0x606   :  { %1038 = vrot.lane.b32.xlu1 %v2989_v9, %s2793_s5 }
 0x63e   :  { %v1237_v61 = vpop.xlane.xlu1 %1236 }
 0x63f   :  { %v1259_v62 = vsub.f32 %v1087_v33, %v1237_v61 }
 0x641   :  { %v1267_v63 = vmul.f32 1.442695, %v1259_v62 }
 0x642   :  { %v1240_v8 = vpop.xlane.xlu0 %1239 }
 0x643   :  { %2544 = vpow2.f32 %v1267_v63  ;;  %v1260_v0 = vsub.f32 %v1090_v13, %v1240_v8 }
 0x645   :  { %v1269_v1 = vmul.f32 1.442695, %v1260_v0 }
 0x647   :  { %2546 = vpow2.f32 %v1269_v1 }
 0x650   :  { %v2545_v2 = vpop.eup %2544 }
 0x651   :  { %v1283_v4 = vsel %vm731_vm2, %v2545_v2, 0.0 }
 0x652   :  { %1284 = vadd.xlane.f32.xlu1 %v1283_v4 }
 0x654   :  { %v2547_v10 = vpop.eup %2546 }
 0x655   :  { %v1286_v11 = vsel %vm731_vm2, %v2547_v10, 0.0 }
 0x656   :  { %1287 = vadd.xlane.f32.xlu0 %v1286_v11 }
 0x668   :  { %v1249_v15 = vpop.xlane.xlu1 %1248 }
 0x669   :  { %v1263_v18 = vsub.f32 %v1181_v39, %v1249_v15 }
 0x66b   :  { %v1275_v29 = vmul.f32 1.442695, %v1263_v18 }
 0x676   :  { %v1243_v21 = vpop.xlane.xlu0 %1242 }
 0x677   :  { %v1261_v27 = vsub.f32 %v1134_v49, %v1243_v21 }
 0x679   :  { %v1271_v32 = vmul.f32 1.442695, %v1261_v27 }
 0x67a   :  { %v1246_v33 = vpop.xlane.xlu0 %1245 }
 0x67b   :  { %2548 = vpow2.f32 %v1271_v32  ;;  %v1262_v34 = vsub.f32 %v1137_v52, %v1246_v33 }
 0x67c   :  { %2550 = vpow2.f32 %v1275_v29 }
 0x67d   :  { %v1273_v36 = vmul.f32 1.442695, %v1262_v34 }
 0x67e   :  { %v1255_v13 = vpop.xlane.xlu1 %1254  ;;  %v1252_v37 = vpop.xlane.xlu0 %1251 }
 0x67f   :  { %2552 = vpow2.f32 %v1273_v36  ;;  %v1265_v38 = vsub.f32 %v1228_v55, %v1255_v13  ;;  %v1264_v40 = vsub.f32 %v1184_v42, %v1252_v37 }
 0x681   :  { %v1279_v41 = vmul.f32 1.442695, %v1265_v38  ;;  %v1277_v44 = vmul.f32 1.442695, %v1264_v40 }
 0x682   :  { %v1039_v45 = vpop.permute.xlu1 %1038  ;;  %v1258_v48 = vpop.xlane.xlu0 %1257 }
 0x683   :  { %2554 = vpow2.f32 %v1279_v41  ;;  %v1266_v39 = vsub.f32 %v1231_v12, %v1258_v48  ;;  %2367 = vmatpush3.bf16.msra.mxu0 %v1039_v45  ;;  %v2460_v45 = vld [vmem:[#allocation11 + $0x18] sm:$0xff]   ;;  %v2461_v48 = vld [vmem:[#allocation11 + $0x10] sm:$0xff]  }
 0x684   :  { %2556 = vpow2.f32 %v1277_v44  ;;  %2378 = vmatprep.subr.bf16.mxu0 %v2791_v6 }
 0x685   :  { %v1281_v49 = vmul.f32 1.442695, %v1266_v39 }
 0x687   :  { %2558 = vpow2.f32 %v1281_v49 }
 0x688   :  { %v2549_v50 = vpop.eup %2548 }
 0x689   :  { %v1289_v51 = vsel %vm731_vm2, %v2549_v50, 0.0  ;;  %v2551_v52 = vpop.eup %2550 }
 0x68a   :  { %1290 = vadd.xlane.f32.xlu1 %v1289_v51  ;;  %v1295_v42 = vsel %vm731_vm2, %v2551_v52, 0.0 }
 0x68c   :  { %v2553_v53 = vpop.eup %2552 }
 0x68d   :  { %v1292_v54 = vsel %vm731_vm2, %v2553_v53, 0.0 }
 0x68e   :  { %1296 = vadd.xlane.f32.xlu1 %v1295_v42  ;;  %1293 = vadd.xlane.f32.xlu0 %v1292_v54  ;;  %v2463_v42 = vld [vmem:[#allocation11] sm:$0xff]  }
 0x690   :  { %v3118_v55 = vpop.eup %2554 }
 0x691   :  { %v2557_v56 = vpop.eup %2556  ;;  %v1301_v57 = vsel %vm731_vm2, %v3118_v55, 0.0 }
 0x692   :  { %1302 = vadd.xlane.f32.xlu1 %v1301_v57  ;;  %v1298_v58 = vsel %vm731_vm2, %v2557_v56, 0.0 }
 0x693   :  { %1299 = vadd.xlane.f32.xlu0 %v1298_v58 }
 0x694   :  { %v2559_v12 = vpop.eup %2558 }
 0x695   :  { %v1304_v59 = vsel %vm731_vm2, %v2559_v12, 0.0 }
 0x697   :  { %1305 = vadd.xlane.f32.xlu0 %v1304_v59 }
 0x6a3   :  { %1044 = vrot.lane.b32.xlu1 %v2989_v9, %s2794_s29 }
 0x6a7   :  { %1005 = vrot.lane.b32.xlu1 %v1001_v23, %s2794_s29 }
 0x6ab   :  { %1008 = vrot.lane.b32.xlu1 %v1002_v31, %s2781_s1 }
 0x6ad   :  { %1041 = vrot.lane.b32.xlu0 %v2989_v9, %s2781_s1 }
 0x6af   :  { %1011 = vrot.lane.b32.xlu1 %v1003_v47, %s2793_s5 }
 0x6db   :  { %v1285_v60 = vpop.xlane.xlu1 %1284 }
 0x6dc   :  { %2560 = vrcp.f32 %v1285_v60 }
 0x6df   :  { %v1288_v61 = vpop.xlane.xlu0 %1287 }
 0x6e0   :  { %2562 = vrcp.f32 %v1288_v61 }
 0x6e9   :  { %v2561_v62 = vpop.eup %2560 }
 0x6ea   :  { %v1315_v22 = vmul.f32 %v2561_v62, %v2545_v2 }
 0x6ed   :  { %v2563_v20 = vpop.eup %2562 }
 0x6ee   :  { %v1316_v23 = vmul.f32 %v2563_v20, %v2547_v10 }
 0x6f0   :  { %v1323_v63 = vpack.c.bf16 %v1316_v23, %v1315_v22 }
 0x6f2   :  { %2363 = vmatmul.mubr.msk.bf16.vlgmr.msra.gmra.mxu1 %vm731_vm2, %v1323_v63 }
 0x6f3   :  { %2374 = vmatprep.mubr.msk.bf16.mxu1 %vm2792_vm0, %v2791_v6 }
 0x713   :  { %v1291_v9 = vpop.xlane.xlu1 %1290 }
 0x714   :  { %2564 = vrcp.f32 %v1291_v9 }
 0x717   :  { %v1297_v24 = vpop.xlane.xlu1 %1296  ;;  %v1294_v30 = vpop.xlane.xlu0 %1293 }
 0x718   :  { %2566 = vrcp.f32 %v1294_v30 }
 0x719   :  { %2568 = vrcp.f32 %v1297_v24 }
 0x71b   :  { %v1303_v31 = vpop.xlane.xlu1 %1302 }
 0x71c   :  { %v1300_v43 = vpop.xlane.xlu0 %1299 }
 0x71d   :  { %2570 = vrcp.f32 %v1300_v43 }
 0x71e   :  { %2572 = vrcp.f32 %v1303_v31 }
 0x71f   :  { %v1045_v46 = vpop.permute.xlu1 %1044 }
 0x720   :  { %v1306_v47 = vpop.xlane.xlu0 %1305 }
 0x721   :  { %2574 = vrcp.f32 %v1306_v47  ;;  %v2565_v0 = vpop.eup %2564 }
 0x722   :  { %v1317_v10 = vmul.f32 %v2565_v0, %v2549_v50  ;;  %v2144_v0 = vld [vmem:[%s3239_s7] ss:$0 sm:$0xff] }
 0x723   :  { %v1006_v8 = vpop.permute.xlu1 %1005 }
 0x724   :  { %v1042_v1 = vpop.permute.xlu0 %1041  ;;  %v1015_v34 = vsel %vm542_vm1, %v1000_v17, %v1006_v8  ;;  %v2459_v17 = vld [vmem:[#allocation11 + $0x20] sm:$0xff]  }
 0x725   :  { %2373 = vmatpush3.bf16.msra.mxu1 %v1042_v1  ;;  %v2567_v2 = vpop.eup %2566 }
 0x726   :  { %v1318_v11 = vmul.f32 %v2567_v2, %v2553_v53  ;;  %v2569_v15 = vpop.eup %2568  ;;  %v2462_v53 = vld [vmem:[#allocation11 + $0x8] sm:$0xff]  }
 0x727   :  { %v1009_v4 = vpop.permute.xlu1 %1008  ;;  %v1319_v27 = vmul.f32 %v2569_v15, %v2551_v52 }
 0x728   :  { %v1324_v18 = vpack.c.bf16 %v1318_v11, %v1317_v10  ;;  %v1018_v37 = vsel %vm1016_vm3, %v1015_v34, %v1009_v4 }
 0x72a   :  { %v2571_v21 = vpop.eup %2570  ;;  %2369 = vmatmul.mubr.msk.bf16.vlgmr.msra.gmra.mxu0 %vm731_vm2, %v1324_v18 }
 0x72b   :  { %v1320_v29 = vmul.f32 %v2571_v21, %v2557_v56  ;;  %v2573_v32 = vpop.eup %2572  ;;  %2379 = vmatpush3.bf16.msra.mxu0 %v1045_v46  ;;  %v1012_v33 = vpop.permute.xlu1 %1011  ;;  %2380 = vmatprep.mubr.msk.bf16.mxu0 %vm2792_vm0, %v2791_v6  ;;  %v2456_v6 = vld [vmem:[#allocation11 + $0x38] sm:$0xff]  }
 0x72c   :  { %v1021_v38 = vsel %vm1019_vm4, %v1018_v37, %v1012_v33  ;;  %v1321_v40 = vmul.f32 %v2573_v32, %v3118_v55  ;;  %2384 = vmatprep.subr.bf16.mxu1 %v2456_v6  ;;  %v2466_v33 = vld [vmem:[#allocation13 + $0x74] ss:$8 sps:$4 sm:$0xff]  }
 0x72d   :  { %v1325_v36 = vpack.c.bf16 %v1320_v29, %v1319_v27  ;;  %1824 = vmatprep.subr.bf16.mxu0 %v2466_v33 }
 0x72e   :  { %v2575_v13 = vpop.eup %2574 }
 0x72f   :  { %2375 = vmatmul.mubr.msk.bf16.vlgmr.msra.gmra.mxu1 %vm731_vm2, %v1325_v36  ;;  %v1322_v41 = vmul.f32 %v2575_v13, %v2559_v12 }
 0x730   :  { %2400 = vmatprep.mubr.bf16.mxu1 %v1021_v38  ;;  %2385 = vmatpush3.bf16.msra.mxu1 %v2456_v6 }
 0x731   :  { %v1326_v44 = vpack.c.bf16 %v1322_v41, %v1321_v40  ;;  %2386 = vmatprep.subr.bf16.mxu1 %v2457_v14 }
 0x733   :  { %2381 = vmatmul.mubr.msk.bf16.vlgmr.msra.gmra.mxu0 %vm731_vm2, %v1326_v44 }
 0x734   :  { %1856 = vmatprep.mubr.bf16.mxu0 %v2790_v35  ;;  %2387 = vmatpush3.bf16.msra.mxu1 %v2457_v14 }
 0x735   :  { %2388 = vmatprep.subr.bf16.mxu1 %v2458_v16 }
 0x738   :  { %2389 = vmatpush3.bf16.msra.mxu1 %v2458_v16 }
 0x739   :  { %2390 = vmatprep.subr.bf16.mxu1 %v2459_v17 }
 0x73c   :  { %2391 = vmatpush3.bf16.msra.mxu1 %v2459_v17 }
 0x73d   :  { %2392 = vmatprep.subr.bf16.mxu1 %v2460_v45 }
 0x740   :  { %2393 = vmatpush3.bf16.msra.mxu1 %v2460_v45 }
 0x741   :  { %2394 = vmatprep.subr.bf16.mxu1 %v2461_v48 }
 0x744   :  { %2395 = vmatpush3.bf16.msra.mxu1 %v2461_v48  ;;  %v2469_v48 = vld [vmem:[#allocation13 + $0x64] ss:$8 sps:$4 sm:$0xff]  }
 0x745   :  { %2396 = vmatprep.subr.bf16.mxu1 %v2462_v53 }
 0x748   :  { %2397 = vmatpush3.bf16.msra.mxu1 %v2462_v53  ;;  %v2476_v53 = vld [vmem:[#allocation13 + $0x30] ss:$8 sps:$4 sm:$0xff]  }
 0x749   :  { %2398 = vmatprep.subr.bf16.mxu1 %v2463_v42 }
 0x74c   :  { %2399 = vmatpush3.bf16.msra.mxu1 %v2463_v42  ;;  %v2478_v42 = vld [vmem:[#allocation13 + $0x34] ss:$8 sps:$4 sm:$0xff]  }
 0x7b2   :  { %v1364_v39 = vpop.f32.mrf.mxu1 }
 0x7b4   :  { %v2364_v49 = vpop.f32.mrf.mxu1 }
 0x7b5   :  { %v2472_v49 = vld [vmem:[#allocation13 + $0x54] ss:$8 sps:$4 sm:$0xff]  }
 0x7b6   :  { %v1367_v50 = vpop.f32.mrf.mxu1 }
 0x7b7   :  { %v1503_v51 = vpack.c.bf16 %v1367_v50, %v1364_v39  ;;  %v2467_v39 = vld [vmem:[#allocation13 + $0x60] ss:$8 sps:$4 sm:$0xff]   ;;  %v2470_v50 = vld [vmem:[#allocation13 + $0x50] ss:$8 sps:$4 sm:$0xff]  }
 0x7b8   :  { %v2365_v52 = vpop.f32.mrf.mxu1 }
 0x7b9   :  { %v2473_v52 = vld [vmem:[#allocation13 + $0x40] ss:$8 sps:$4 sm:$0xff]  }
 0x7ea   :  { %v1408_v54 = vpop.f32.mrf.mxu0 }
 0x7ec   :  { %v2370_v55 = vpop.f32.mrf.mxu0 }
 0x7ed   :  { %v2479_v55 = vld [vmem:[#allocation13 + $0x20] ss:$8 sps:$4 sm:$0xff]  }
 0x7ee   :  { %v1411_v56 = vpop.f32.mrf.mxu0 }
 0x7ef   :  { %v1452_v57 = vpop.f32.mrf.mxu1  ;;  %v1504_v58 = vpack.c.bf16 %v1411_v56, %v1408_v54  ;;  %v2481_v54 = vld [vmem:[#allocation13 + $0x24] ss:$8 sps:$4 sm:$0xff]   ;;  %v2484_v56 = vld [vmem:[#allocation13 + $0x14] ss:$8 sps:$4 sm:$0xff]  }
 0x7f0   :  { %v2371_v12 = vpop.f32.mrf.mxu0 }
 0x7f1   :  { %v2376_v59 = vpop.f32.mrf.mxu1  ;;  %1508 = vrot.lane.b32.xlu0 %v1504_v58, %s2794_s29  ;;  %v2487_v58 = vld [vmem:[#allocation13 + $0x4] ss:$8 sps:$4 sm:$0xff]   ;;  %v2485_v12 = vld [vmem:[#allocation13] ss:$8 sps:$4 sm:$0xff]  }
 0x7f2   :  { %v2488_v59 = vld [vmem:[#allocation14 + $0x78] sm:$0xff]  }
 0x7f3   :  { %v1455_v60 = vpop.f32.mrf.mxu1  ;;  %v1496_v61 = vpop.f32.mrf.mxu0  ;;  %2240 = vmatprep.subr.bf16.mxu1 %v2488_v59 }
 0x7f4   :  { %v1505_v62 = vpack.c.bf16 %v1455_v60, %v1452_v57  ;;  %v2482_v57 = vld [vmem:[#allocation13 + $0x10] ss:$8 sps:$4 sm:$0xff]  }
 0x7f5   :  { %v2377_v20 = vpop.f32.mrf.mxu1  ;;  %v2382_v22 = vpop.f32.mrf.mxu0  ;;  %v2489_v60 = vld [vmem:[#allocation14 + $0x38] sm:$0xff]  }
 0x7f6   :  { %1511 = vrot.lane.b32.xlu0 %v1505_v62, %s2781_s1  ;;  %v2491_v62 = vld [vmem:[#allocation14 + $0x30] sm:$0xff]   ;;  %v2492_v20 = vld [vmem:[#allocation14 + $0x68] sm:$0xff]  }
 0x7f7   :  { %v1499_v23 = vpop.f32.mrf.mxu0  ;;  %v2493_v22 = vld [vmem:[#allocation14 + $0x28] sm:$0xff]  }
 0x7f8   :  { %v1506_v63 = vpack.c.bf16 %v1499_v23, %v1496_v61  ;;  %v2490_v61 = vld [vmem:[#allocation14 + $0x70] sm:$0xff]   ;;  %v2494_v23 = vld [vmem:[#allocation14 + $0x60] sm:$0xff]  }
 0x7f9   :  { %v2383_v9 = vpop.f32.mrf.mxu0 }
 0x7fa   :  { %1514 = vrot.lane.b32.xlu1 %v1506_v63, %s2793_s5  ;;  %v2495_v63 = vld [vmem:[#allocation14 + $0x20] sm:$0xff]   ;;  %v2496_v9 = vld [vmem:[#allocation14 + $0x58] sm:$0xff]  }
 0x863   :  { %v1509_v24 = vpop.permute.xlu0 %1508 }
 0x864   :  { %v1518_v31 = vsel %vm542_vm1, %v1503_v51, %v1509_v24  ;;  %v2475_v51 = vld [vmem:[#allocation13 + $0x44] ss:$8 sps:$4 sm:$0xff]   ;;  %v2497_v24 = vld [vmem:[#allocation14 + $0x18] sm:$0xff]  }
 0x868   :  { %v1512_v30 = vpop.permute.xlu0 %1511 }
 0x869   :  { %v1520_v43 = vsel %vm1016_vm3, %v1518_v31, %v1512_v30 }
 0x86c   :  { %v1515_v46 = vpop.permute.xlu1 %1514 }
 0x86d   :  { %v1522_v47 = vsel %vm1019_vm4, %v1520_v43, %v1515_v46 }
 0x86e   :  { %2401 = vmatmul.mubr.bf16.vlgmr.msra.gmra.mxu1 %v1522_v47 }
 0x86f   :  { %2241 = vmatpush3.bf16.msra.mxu1 %v2489_v60 }
 0x870   :  { %2242 = vmatprep.subr.bf16.mxu1 %v2490_v61 }
 0x873   :  { %2243 = vmatpush3.bf16.msra.mxu1 %v2491_v62 }
 0x874   :  { %2244 = vmatprep.subr.bf16.mxu1 %v2492_v20 }
 0x877   :  { %2245 = vmatpush3.bf16.msra.mxu1 %v2493_v22 }
 0x878   :  { %2246 = vmatprep.subr.bf16.mxu1 %v2494_v23 }
 0x87b   :  { %2247 = vmatpush3.bf16.msra.mxu1 %v2495_v63 }
 0x87c   :  { %2248 = vmatprep.subr.bf16.mxu1 %v2496_v9 }
 0x87f   :  { %2249 = vmatpush3.bf16.msra.mxu1 %v2497_v24 }
 0x92e   :  { %v2402_v8 = vpop.f32.mrf.mxu1 }
 0x92f   :  { %v1638_v10 = vadd.f32 %v2402_v8, %v2144_v0 }
 0x930   :  { %v1629_v1 = vpop.f32.mrf.mxu1 }
 0x931   :  { %v1630_v2 = vadd.f32 %v2144_v0, %v1629_v1  ;;  %v3170_v21 = vadd.f32 %v1638_v10, %v2916_v7 }
 0x932   :  { %v2403_v4 = vpop.f32.mrf.mxu1 }
 0x933   :  { %v3166_v11 = vadd.f32 %v1630_v2, %v2910_v3  ;;  %v1641_v27 = vadd.f32 %v2403_v4, %v2144_v0  ;;  %v2464_v3 = vld [vmem:[#allocation13 + $0x70] ss:$8 sps:$4 sm:$0xff]  }
 0x934   :  { %v1632_v15 = vpop.f32.mrf.mxu1  ;;  %1825 = vmatpush1.bf16.msra.mxu0 %v2464_v3  ;;  %v2153_v3 = vld [vmem:[%s3240_s8] ss:$0 sm:$0xff] }
 0x935   :  { %v1633_v18 = vadd.f32 %v2144_v0, %v1632_v15  ;;  %1650 = vadd.xlane.f32.xlu0 %v3166_v11  ;;  %v3178_v32 = vadd.f32 %v1641_v27, %v2929_v19  ;;  %1826 = vmatprep.subr.bf16.mxu0 %v2469_v48 }
 0x937   :  { %v3173_v29 = vadd.f32 %v1633_v18, %v2913_v5 }
 0x938   :  { %1827 = vmatpush1.bf16.msra.mxu0 %v2467_v39 }
 0x939   :  { %1652 = vadd.xlane.f32.xlu1 %v3173_v29  ;;  %1654 = vadd.xlane.f32.xlu0 %v3170_v21 }
 0x93a   :  { %1828 = vmatprep.subr.bf16.mxu0 %v2472_v49  ;;  %v2498_v49 = vld [vmem:[#allocation14 + $0x50] sm:$0xff]  }
 0x93b   :  { %2250 = vmatprep.subr.bf16.mxu1 %v2498_v49 }
 0x93c   :  { %1829 = vmatpush1.bf16.msra.mxu0 %v2470_v50  ;;  %v2499_v50 = vld [vmem:[#allocation14 + $0x10] sm:$0xff]  }
 0x93d   :  { %1656 = vadd.xlane.f32.xlu0 %v3178_v32  ;;  %1830 = vmatprep.subr.bf16.mxu0 %v2475_v51  ;;  %v2500_v51 = vld [vmem:[#allocation14 + $0x48] sm:$0xff]  }
 0x93e   :  { %2251 = vmatpush3.bf16.msra.mxu1 %v2499_v50 }
 0x93f   :  { %2252 = vmatprep.subr.bf16.mxu1 %v2500_v51 }
 0x940   :  { %1831 = vmatpush1.bf16.msra.mxu0 %v2473_v52  ;;  %v2501_v52 = vld [vmem:[#allocation14 + $0x8] sm:$0xff]  }
 0x941   :  { %1832 = vmatprep.subr.bf16.mxu0 %v2478_v42 }
 0x942   :  { %2253 = vmatpush3.bf16.msra.mxu1 %v2501_v52 }
 0x944   :  { %1833 = vmatpush1.bf16.msra.mxu0 %v2476_v53 }
 0x945   :  { %1834 = vmatprep.subr.bf16.mxu0 %v2481_v54 }
 0x948   :  { %1835 = vmatpush1.bf16.msra.mxu0 %v2479_v55 }
 0x949   :  { %1836 = vmatprep.subr.bf16.mxu0 %v2484_v56 }
 0x94c   :  { %1837 = vmatpush1.bf16.msra.mxu0 %v2482_v57 }
 0x94d   :  { %1838 = vmatprep.subr.bf16.mxu0 %v2487_v58 }
 0x950   :  { %1839 = vmatpush1.bf16.msra.mxu0 %v2485_v12 }
 0x9be   :  { %v1651_v34 = vpop.xlane.xlu0 %1650 }
 0x9bf   :  { %v1658_v7 = vmul.f32 0.0078125, %v1651_v34 }
 0x9c1   :  { %v3182_v36 = vsub.f32 %v3166_v11, %v1658_v7 }
 0x9c2   :  { %v1653_v5 = vpop.xlane.xlu1 %1652  ;;  %v1655_v13 = vpop.xlane.xlu0 %1654 }
 0x9c3   :  { %v1659_v37 = vmul.f32 0.0078125, %v1653_v5  ;;  %v1660_v38 = vmul.f32 0.0078125, %v1655_v13  ;;  %v1666_v40 = vmul.f32 %v3182_v36, %v3182_v36  ;;  %v2154_v13 = vld [vmem:[%s3241_s9] ss:$0 sm:$0xff] }
 0x9c5   :  { %v3187_v19 = vsub.f32 %v3173_v29, %v1659_v37  ;;  %v3190_v41 = vsub.f32 %v3170_v21, %v1660_v38  ;;  %1670 = vadd.xlane.f32.xlu0 %v1666_v40 }
 0x9c6   :  { %v1657_v44 = vpop.xlane.xlu0 %1656 }
 0x9c7   :  { %v1661_v6 = vmul.f32 0.0078125, %v1657_v44  ;;  %v1667_v14 = vmul.f32 %v3187_v19, %v3187_v19  ;;  %v1668_v16 = vmul.f32 %v3190_v41, %v3190_v41 }
 0x9c9   :  { %v3197_v17 = vsub.f32 %v3178_v32, %v1661_v6  ;;  %1672 = vadd.xlane.f32.xlu1 %v1667_v14  ;;  %1674 = vadd.xlane.f32.xlu0 %v1668_v16 }
 0x9cb   :  { %v1669_v45 = vmul.f32 %v3197_v17, %v3197_v17 }
 0x9cd   :  { %1676 = vadd.xlane.f32.xlu1 %v1669_v45 }
 0xa4e   :  { %v1671_v30 = vpop.xlane.xlu0 %1670 }
 0xa4f   :  { %v1678_v31 = vmul.f32 0.0078125, %v1671_v30 }
 0xa51   :  { %v1682_v43 = vadd.f32 1e-05, %v1678_v31 }
 0xa52   :  { %v1673_v46 = vpop.xlane.xlu1 %1672  ;;  %v1675_v47 = vpop.xlane.xlu0 %1674 }
 0xa53   :  { %2576 = vrsqrt.f32 %v1682_v43  ;;  %v1679_v8 = vmul.f32 0.0078125, %v1673_v46  ;;  %v1680_v0 = vmul.f32 0.0078125, %v1675_v47 }
 0xa55   :  { %v1683_v1 = vadd.f32 1e-05, %v1679_v8  ;;  %v1684_v2 = vadd.f32 1e-05, %v1680_v0 }
 0xa56   :  { %v1677_v4 = vpop.xlane.xlu1 %1676 }
 0xa57   :  { %2578 = vrsqrt.f32 %v1683_v1  ;;  %v1681_v10 = vmul.f32 0.0078125, %v1677_v4 }
 0xa58   :  { %2580 = vrsqrt.f32 %v1684_v2 }
 0xa59   :  { %v1685_v15 = vadd.f32 1e-05, %v1681_v10  ;;  %v2171_v10 = vld [vmem:[%s3245_s13] ss:$0 sm:$0xff]  ;;  %s2795_s13 = smov [#allocation16]  }
 0xa5a   :  { %s2086_s15 = sshll.u32 %s2795_s13, 4  ;;  %s2087_s15 = int_to_ptr.vmem [resolvable:$true] %s2086_s15 }
 0xa5b   :  { %2582 = vrsqrt.f32 %v1685_v15  ;;  %s2744_s3 = scalar_lea.vmem %s2087_s15, 512  ;;  %p2749_p13 = scmp.lt.s32.totalorder %s2087_s15, %s2087_s15 }
 0xa5c   :  { %p2745_p12 = scmp.ne.s32.totalorder %s2087_s15, %s2744_s3  ;;  %p2750_p0 = scmp.lt.s32.totalorder %s2744_s3, %s2744_s3 }
 0xa5e   :  { %p2751_p1 = por %p2750_p0, %p2749_p13 }
 0xa60   :  { %v2577_v18 = vpop.eup %2576  ;;  %p2752_p2 = pnand %p2751_p1, %p2745_p12 }
 0xa61   :  { %v1690_v27 = vmul.f32 %v2577_v18, %v3182_v36 }
 0xa63   :  { %v1700_v7 = vmul.f32 %v2153_v3, %v1690_v27 }
 0xa64   :  { %v2579_v33 = vpop.eup %2578 }
 0xa65   :  { %v1691_v34 = vmul.f32 %v2579_v33, %v3187_v19  ;;  %v2581_v5 = vpop.eup %2580  ;;  %v1710_v40 = vadd.f32 %v2154_v13, %v1700_v7 }
 0xa66   :  { %v1692_v6 = vmul.f32 %v2581_v5, %v3190_v41  ;;  %v2502_v41 = vld [vmem:[#allocation14 + $0x40] sm:$0xff]  }
 0xa67   :  { %v1701_v37 = vmul.f32 %v2153_v3, %v1691_v34  ;;  %2254 = vmatprep.subr.bf16.mxu1 %v2502_v41 }
 0xa68   :  { %v2583_v38 = vpop.eup %2582  ;;  %v1702_v45 = vmul.f32 %v2153_v3, %v1692_v6 }
 0xa69   :  { %v1711_v44 = vadd.f32 %v2154_v13, %v1701_v37  ;;  %v1693_v36 = vmul.f32 %v2583_v38, %v3197_v17  ;;  %v2503_v17 = vld [vmem:[#allocation14] sm:$0xff]  }
 0xa6a   :  { %v1712_v48 = vadd.f32 %v2154_v13, %v1702_v45  ;;  %2255 = vmatpush3.bf16.msra.mxu1 %v2503_v17 }
 0xa6b   :  { %v1714_v14 = vpack.c.bf16 %v1711_v44, %v1710_v40  ;;  %v1703_v16 = vmul.f32 %v2153_v3, %v1693_v36 }
 0xa6d   :  { %1857 = vmatmul.mubr.bf16.vlgmr.msra.gmra.mxu0 %v1714_v14  ;;  %v1713_v19 = vadd.f32 %v2154_v13, %v1703_v16 }
 0xa6e   :  { %1866 = vmatprep.mubr.bf16.mxu0 %v2790_v35  ;;  %v1732_v35 = vld [vmem:[%s3243_s11] sm:$0x3] }
 0xa6f   :  { %v1715_v39 = vpack.c.bf16 %v1713_v19, %v1712_v48  ;;  %v1741_v42 = vrot.slane %v1732_v35, %v273_v28  ;;  %v1737_v54 = vrot.slane %v1732_v35, %v269_v26 }
 0xa75   :  { %1867 = vmatmul.mubr.bf16.gmra.mxu0 %v1715_v39 }
 0xb2d   :  { %v1858_v53 = vpop.f32.mrf.mxu0 }
 0xb2e   :  { %v1859_v12 = vadd.f32 %v1858_v53, %v1737_v54 }
 0xb2f   :  { %v1860_v55 = vpop.f32.mrf.mxu0 }
 0xb30   :  { %v1861_v57 = vadd.f32 %v1860_v55, %v1741_v42  ;;  %v1877_v23 = vmax.f32 %v1859_v12, 0.0 }
 0xb31   :  { %v1862_v56 = vpop.f32.mrf.mxu0 }
 0xb32   :  { %v1863_v58 = vadd.f32 %v1862_v56, %v1737_v54  ;;  %v1878_v20 = vmax.f32 %v1861_v57, 0.0 }
 0xb33   :  { %v1864_v59 = vpop.f32.mrf.mxu0 }
 0xb34   :  { %v1865_v60 = vadd.f32 %v1864_v59, %v1741_v42  ;;  %v1879_v61 = vmax.f32 %v1863_v58, 0.0 }
 0xb35   :  { %v1868_v62 = vpop.f32.mrf.mxu0 }
 0xb36   :  { %v1880_v22 = vmax.f32 %v1865_v60, 0.0  ;;  %v1885_v24 = vpack.c.bf16 %v1879_v61, %v1877_v23  ;;  %v1869_v25 = vadd.f32 %v1868_v62, %v1737_v54 }
 0xb37   :  { %v1870_v63 = vpop.f32.mrf.mxu0 }
 0xb38   :  { %v1886_v9 = vpack.c.bf16 %v1880_v22, %v1878_v20  ;;  %v1871_v28 = vadd.f32 %v1870_v63, %v1741_v42  ;;  %v1881_v0 = vmax.f32 %v1869_v25, 0.0 }
 0xb39   :  { %v1872_v30 = vpop.f32.mrf.mxu0 }
 0xb3a   :  { %v1873_v31 = vadd.f32 %v1872_v30, %v1737_v54  ;;  %2056 = vmatprep.mubr.bf16.mxu1 %v1886_v9  ;;  %v1882_v47 = vmax.f32 %v1871_v28, 0.0 }
 0xb3b   :  { %v1874_v26 = vpop.f32.mrf.mxu0  ;;  %2057 = vmatmul.mubr.bf16.vlgmr.msra.gmra.mxu1 %v1885_v24 }
 0xb3c   :  { %v1875_v43 = vadd.f32 %v1874_v26, %v1741_v42  ;;  %v1883_v46 = vmax.f32 %v1873_v31, 0.0 }
 0xb3e   :  { %v1884_v8 = vmax.f32 %v1875_v43, 0.0  ;;  %v1887_v2 = vpack.c.bf16 %v1883_v46, %v1881_v0 }
 0xb40   :  { %v1888_v1 = vpack.c.bf16 %v1884_v8, %v1882_v47 }
 0xb42   :  { %2064 = vmatprep.mubr.bf16.mxu1 %v1888_v1 }
 0xb43   :  { %2065 = vmatmul.mubr.bf16.gmra.mxu1 %v1887_v2 }
 0xbfb   :  { %v2256_v4 = vpop.f32.mrf.mxu1 }
 0xbfd   :  { %v2257_v15 = vpop.f32.mrf.mxu1 }
 0xbfe   :  { %v2258_v18 = vadd.f32 %v2257_v15, %v2256_v4 }
 0xbff   :  { %v2259_v27 = vpop.f32.mrf.mxu1 }
 0xc00   :  { %v2059_v3 = vadd.f32 %v2258_v18, %v2171_v10 }
 0xc01   :  { %v2260_v33 = vpop.f32.mrf.mxu1 }
 0xc02   :  { %v2073_v34 = vadd.f32 %v2059_v3, %v3166_v11  ;;  %v2261_v7 = vadd.f32 %v2260_v33, %v2259_v27 }
 0xc03   :  { %v2262_v5 = vpop.f32.mrf.mxu1 }
 0xc04   :  { %2077 = vst [vmem:[#allocation16] sm:$0xff] %v2073_v34  ;;  %v2062_v13 = vadd.f32 %v2261_v7, %v2171_v10 }
 0xc05   :  { %v2263_v37 = vpop.f32.mrf.mxu1 }
 0xc06   :  { %v2074_v38 = vadd.f32 %v2062_v13, %v3173_v29  ;;  %v2264_v40 = vadd.f32 %v2263_v37, %v2262_v5 }
 0xc07   :  { %v2265_v44 = vpop.f32.mrf.mxu1 }
 0xc08   :  { %2078 = vst [vmem:[#allocation16 + $0x8] sm:$0xff] %v2074_v38  ;;  %v2067_v6 = vadd.f32 %v2264_v40, %v2171_v10 }
 0xc09   :  { %v2266_v36 = vpop.f32.mrf.mxu1 }
 0xc0a   :  { %v2075_v14 = vadd.f32 %v2067_v6, %v3170_v21  ;;  %v2267_v16 = vadd.f32 %v2266_v36, %v2265_v44 }
 0xc0c   :  { %2079 = vst [vmem:[#allocation16 + $0x10] sm:$0xff] %v2075_v14  ;;  %v2070_v45 = vadd.f32 %v2267_v16, %v2171_v10 }
 0xc0e   :  { %v2076_v11 = vadd.f32 %v2070_v45, %v3178_v32 }
 0xc10   :  { %2080 = vst [vmem:[#allocation16 + $0x18] sm:$0xff] %v2076_v11 }
 0xc11   :  { %2755 = shalt.err (!%p2752_p2)
}
 0xc12   :  { %2092 = dma.vmem_to_hbm [thread:$0]  %s2087_s15, 512, %s3246_s14, [#allocation4], %s2778_s18, %s2778_s18, %s2779_s19  }
 0xc13   :  { %2774 = dma.done.wait [#allocation4], 512  }
 0xc14   :  { %2775 = vsyncadd [#allocation4], 4294966784 }
 0xc15   :  { %2096 = vsyncpa [#allocation3], 1 }
 0xc16   :  { %2097 = vsyncpa [#allocation6], 1 }
 0xc17   :  { %2098 = vsyncpa [#allocation9], 1 }
 0xc18   :  { %2099 = vsyncpa [#allocation12], 1 }
 0xc19   :  { %2100 = vsyncpa [#allocation15], 1 }
 0xc1a   :  { %2101 = vsyncpa [#allocation4], 1 }

</bundles_post_ra>
